<compile_context>
chip_gen: v7x
topology: tpu7x:2x2x1
jax: 0.10.0
libtpu: 0.0.40
codegen_flags: <defaults>
</compile_context>

<pallas_src>
import jax
import jax.numpy as jnp
import numpy as np
from jax.experimental import pallas as pl
from jax.experimental.pallas import tpu as pltpu

H, W = 28, 28            # input spatial
KH, KW = 3, 3            # conv kernel
OH, OW = 26, 26          # valid conv output spatial
OHW = OH * OW            # 676
C_OUT = 32               # conv output channels
HIDDEN = 128             # d1 output
CLASSES = 10             # d2 output
FLAT = C_OUT * OHW       # 21632
G = 16                   # conv channels (= 676*G w1 rows) handled per grid step
NSTEPS = C_OUT // G      # 2 grid steps


def fused_kernel(wc_ref, bc_ref, xcol_ref, w1_ref, b1_ref, w2_ref, b2_ref,
                 o_ref, acc_ref):
    """One step: conv+ReLU for G output channels, accumulate their d1 partial.

    wc_ref:  (288,)  SMEM  flat conv weights  w[oc*9 + di*3 + dj]
    bc_ref:  (32,)   SMEM  conv bias
    xcol_ref:(9,B,676) VMEM im2col patches (constant block, fetched once)
    w1_ref:  (G,676,128) VMEM bf16 tile of d1 weights for this step's channels
    b1/w2/b2: d1 bias, d2 weight, d2 bias (constant blocks, f32)
    o_ref:   (B,10) output (written once in the epilogue)
    acc_ref: (B,128) f32 VMEM accumulator scratch (persists across steps)
    """
    k = pl.program_id(0)
    B = xcol_ref.shape[1]

    @pl.when(k == 0)
    def _init():
        acc_ref[...] = jnp.zeros_like(acc_ref)

    # Hoist the 9 (B, 676) im2col rows once per grid step; reused by all G
    # channels below (was 9*G loads per step before).
    patches = [xcol_ref[r] for r in range(KH * KW)]

    partial = jnp.zeros((B, HIDDEN), jnp.float32)
    c0 = k * G
    for g in range(G):                               # static unroll (16)
        c = c0 + g                                   # conv output channel
        conv = jnp.zeros((B, OHW), jnp.float32)
        for r in range(KH * KW):                     # static unroll (9)
            conv = conv + wc_ref[c * (KH * KW) + r] * patches[r]
        conv = jnp.maximum(conv + bc_ref[c], 0.0)    # bias + ReLU, (B, 676)
        # d1 partial for this channel: bf16 (B,676) @ (676,128) on the MXU,
        # f32 accumulation.
        partial = partial + jnp.dot(conv.astype(w1_ref.dtype), w1_ref[g],
                                    preferred_element_type=jnp.float32)
    acc_ref[...] += partial

    @pl.when(k == pl.num_programs(0) - 1)
    def _epilogue():
        hidden = jnp.maximum(acc_ref[...] + b1_ref[...], 0.0)
        logits = jnp.dot(hidden, w2_ref[...],
                         preferred_element_type=jnp.float32) + b2_ref[...]
        m = jnp.max(logits, axis=1, keepdims=True)
        e = jnp.exp(logits - m)
        o_ref[...] = e / jnp.sum(e, axis=1, keepdims=True)


def digit_recognition_forward(x, params):
    """params = (w_conv (32,1,3,3) f32, b_conv (32,) f32,
                 w1 (32,676,128) bf16  [pre-converted, pre-reshaped],
                 b1 (128,) f32, w2 (128,10) f32, b2 (10,) f32)."""
    w_conv, b_conv, w1, b1, w2, b2 = params
    B = x.shape[0]
    x2 = x[:, 0, :, :]                               # (B, 28, 28), C_in = 1

    # im2col (wrapper-side layout plumbing only, ~54 KB):
    #   x_col[di*3+dj, b, i*26+j] = x[b, 0, i+di, j+dj]
    x_col = jnp.stack(
        [x2[:, di:di + OH, dj:dj + OW].reshape(B, OHW)
         for di in range(KH) for dj in range(KW)], axis=0)       # (9, B, 676)

    w1_r = w1.reshape(C_OUT, OHW, HIDDEN)            # no-op if already reshaped

    return pl.pallas_call(
        fused_kernel,
        out_shape=jax.ShapeDtypeStruct((B, CLASSES), jnp.float32),
        grid=(NSTEPS,),
        in_specs=[
            pl.BlockSpec(memory_space=pltpu.MemorySpace.SMEM),    # conv w (288,)
            pl.BlockSpec(memory_space=pltpu.MemorySpace.SMEM),    # conv b (32,)
            pl.BlockSpec((KH * KW, B, OHW), lambda k: (0, 0, 0)), # im2col patches
            pl.BlockSpec((G, OHW, HIDDEN), lambda k: (k, 0, 0)),  # w1 channel tile
            pl.BlockSpec((1, HIDDEN), lambda k: (0, 0)),          # b1
            pl.BlockSpec((HIDDEN, CLASSES), lambda k: (0, 0)),    # w2
            pl.BlockSpec((1, CLASSES), lambda k: (0, 0)),         # b2
        ],
        out_specs=pl.BlockSpec((B, CLASSES), lambda k: (0, 0)),
        scratch_shapes=[pltpu.VMEM((B, HIDDEN), jnp.float32)],
        compiler_params=pltpu.CompilerParams(
            dimension_semantics=("arbitrary",),
            vmem_limit_bytes=32 * 1024 * 1024),
    )(w_conv.reshape(-1), b_conv, x_col, w1_r,
      b1.reshape(1, HIDDEN), w2, b2.reshape(1, CLASSES))


def reference_forward(x, params):
    """Pure-JAX f32 reference matching the PyTorch forward (w1 upcast to f32)."""
    w_conv, b_conv, w1, b1, w2, b2 = params
    conv = jax.lax.conv_general_dilated(
        x, w_conv, window_strides=(1, 1), padding="VALID",
        dimension_numbers=("NCHW", "OIHW", "NCHW"))
    conv = jnp.maximum(conv + b_conv[None, :, None, None], 0.0)
    h = conv.reshape(x.shape[0], -1)
    w1_f32 = w1.astype(jnp.float32).reshape(FLAT, HIDDEN)
    hidden = jnp.maximum(h @ w1_f32 + b1, 0.0)
    logits = hidden @ w2 + b2
    return jax.nn.softmax(logits, axis=1)


if __name__ == "__main__":
    key = jax.random.PRNGKey(0)
    ks = jax.random.split(key, 7)
    B = 2  # small batch; spatial 28x28 is forced by d1's 26*26*32 input size

    x = jax.random.normal(ks[0], (B, 1, H, W), jnp.float32)

    # Deterministic synthetic parameters (same shapes as the nn.Module;
    # linear weights stored already-transposed for x @ W).  w1 is converted to
    # bf16 and pre-reshaped ONCE here, at parameter init (not per forward call).
    w_conv = jax.random.normal(ks[1], (C_OUT, 1, KH, KW), jnp.float32) * 0.10
    b_conv = jax.random.normal(ks[2], (C_OUT,), jnp.float32) * 0.10
    w1_f32 = jax.random.normal(ks[3], (FLAT, HIDDEN), jnp.float32) * 0.01  # d1.weight.T
    w1 = w1_f32.reshape(C_OUT, OHW, HIDDEN).astype(jnp.bfloat16)
    b1 = jax.random.normal(ks[4], (HIDDEN,), jnp.float32) * 0.01
    w2 = jax.random.normal(ks[5], (HIDDEN, CLASSES), jnp.float32) * 0.05   # d2.weight.T
    b2 = jax.random.normal(ks[6], (CLASSES,), jnp.float32) * 0.05
    params = (w_conv, b_conv, w1, b1, w2, b2)

    out = jax.block_until_ready(digit_recognition_forward(x, params))
    ref = reference_forward(x, params)   # uses the same (bf16-rounded) w1, in f32

    assert out.shape == (B, CLASSES)
    # Tolerance covers the residual bf16 activation cast inside the MXU dot.
    if not np.allclose(np.asarray(out), np.asarray(ref), rtol=5e-3, atol=5e-3):
        raise AssertionError("Pallas output does not match JAX reference")
    print("KERNEL_OK")
</pallas_src>

<mosaic_0001>
module attributes {stable_mosaic.version = 11 : i64} {
  func.func @fused_kernel(%arg0: i32, %arg1: memref<288xf32, #tpu.memory_space<smem>>, %arg2: memref<32xf32, #tpu.memory_space<smem>>, %arg3: memref<9x2x676xf32, #tpu.memory_space<vmem>>, %arg4: memref<16x676x128xbf16, #tpu.memory_space<vmem>>, %arg5: memref<1x128xf32, #tpu.memory_space<vmem>>, %arg6: memref<128x10xf32, #tpu.memory_space<vmem>>, %arg7: memref<1x10xf32, #tpu.memory_space<vmem>>, %arg8: memref<2x10xf32, #tpu.memory_space<vmem>>, %arg9: memref<2x128xf32, #tpu.memory_space<vmem>>) attributes {dimension_semantics = [#tpu.dimension_semantics<arbitrary>], iteration_bounds = array<i64: 2>, scalar_prefetch = 0 : i64, scratch_operands = 1 : i64, tpu.core_type = #tpu.core_type<tc>, window_params = [{transform_indices = @transform_0, window_bounds = array<i64: 288>}, {transform_indices = @transform_1, window_bounds = array<i64: 32>}, {pipeline_mode = #tpu.pipeline_mode<synchronous>, transform_indices = @transform_2, window_bounds = array<i64: 9, 2, 676>}, {transform_indices = @transform_3, window_bounds = array<i64: 16, 676, 128>}, {pipeline_mode = #tpu.pipeline_mode<synchronous>, transform_indices = @transform_4, window_bounds = array<i64: 1, 128>}, {pipeline_mode = #tpu.pipeline_mode<synchronous>, transform_indices = @transform_5, window_bounds = array<i64: 128, 10>}, {pipeline_mode = #tpu.pipeline_mode<synchronous>, transform_indices = @transform_6, window_bounds = array<i64: 1, 10>}, {pipeline_mode = #tpu.pipeline_mode<synchronous>, transform_indices = @transform_7, window_bounds = array<i64: 2, 10>}]} {
    %c0_i32 = arith.constant 0 : i32
    %0 = arith.cmpi eq, %arg0, %c0_i32 : i32
    %1 = arith.extui %0 : i1 to i32
    %c0_i32_0 = arith.constant 0 : i32
    %2 = arith.cmpi ne, %1, %c0_i32_0 : i32
    scf.if %2 {
      %cst_403 = arith.constant 0.000000e+00 : f32
      %1245 = vector.broadcast %cst_403 : f32 to vector<2x128xf32>
      %c0_404 = arith.constant 0 : index
      %c0_405 = arith.constant 0 : index
      %1246 = vector.load %arg9[%c0_404, %c0_405] : memref<2x128xf32, #tpu.memory_space<vmem>>, vector<2x128xf32>
      tpu.vector_store %arg9[%c0_404, %c0_405], %1245 {strides = array<i32>} : memref<2x128xf32, #tpu.memory_space<vmem>>, vector<2x128xf32>,
    } else {
    }
    %c0 = arith.constant 0 : index
    %c0_1 = arith.constant 0 : index
    %c0_2 = arith.constant 0 : index
    %3 = vector.load %arg3[%c0, %c0_1, %c0_2] : memref<9x2x676xf32, #tpu.memory_space<vmem>>, vector<1x2x676xf32>
    %4 = vector.shape_cast %3 : vector<1x2x676xf32> to vector<2x676xf32>
    %c1 = arith.constant 1 : index
    %c0_3 = arith.constant 0 : index
    %c0_4 = arith.constant 0 : index
    %5 = vector.load %arg3[%c1, %c0_3, %c0_4] : memref<9x2x676xf32, #tpu.memory_space<vmem>>, vector<1x2x676xf32>
    %6 = vector.shape_cast %5 : vector<1x2x676xf32> to vector<2x676xf32>
    %c2 = arith.constant 2 : index
    %c0_5 = arith.constant 0 : index
    %c0_6 = arith.constant 0 : index
    %7 = vector.load %arg3[%c2, %c0_5, %c0_6] : memref<9x2x676xf32, #tpu.memory_space<vmem>>, vector<1x2x676xf32>
    %8 = vector.shape_cast %7 : vector<1x2x676xf32> to vector<2x676xf32>
    %c3 = arith.constant 3 : index
    %c0_7 = arith.constant 0 : index
    %c0_8 = arith.constant 0 : index
    %9 = vector.load %arg3[%c3, %c0_7, %c0_8] : memref<9x2x676xf32, #tpu.memory_space<vmem>>, vector<1x2x676xf32>
    %10 = vector.shape_cast %9 : vector<1x2x676xf32> to vector<2x676xf32>
    %c4 = arith.constant 4 : index
    %c0_9 = arith.constant 0 : index
    %c0_10 = arith.constant 0 : index
    %11 = vector.load %arg3[%c4, %c0_9, %c0_10] : memref<9x2x676xf32, #tpu.memory_space<vmem>>, vector<1x2x676xf32>
    %12 = vector.shape_cast %11 : vector<1x2x676xf32> to vector<2x676xf32>
    %c5 = arith.constant 5 : index
    %c0_11 = arith.constant 0 : index
    %c0_12 = arith.constant 0 : index
    %13 = vector.load %arg3[%c5, %c0_11, %c0_12] : memref<9x2x676xf32, #tpu.memory_space<vmem>>, vector<1x2x676xf32>
    %14 = vector.shape_cast %13 : vector<1x2x676xf32> to vector<2x676xf32>
    %c6 = arith.constant 6 : index
    %c0_13 = arith.constant 0 : index
    %c0_14 = arith.constant 0 : index
    %15 = vector.load %arg3[%c6, %c0_13, %c0_14] : memref<9x2x676xf32, #tpu.memory_space<vmem>>, vector<1x2x676xf32>
    %16 = vector.shape_cast %15 : vector<1x2x676xf32> to vector<2x676xf32>
    %c7 = arith.constant 7 : index
    %c0_15 = arith.constant 0 : index
    %c0_16 = arith.constant 0 : index
    %17 = vector.load %arg3[%c7, %c0_15, %c0_16] : memref<9x2x676xf32, #tpu.memory_space<vmem>>, vector<1x2x676xf32>
    %18 = vector.shape_cast %17 : vector<1x2x676xf32> to vector<2x676xf32>
    %c8 = arith.constant 8 : index
    %c0_17 = arith.constant 0 : index
    %c0_18 = arith.constant 0 : index
    %19 = vector.load %arg3[%c8, %c0_17, %c0_18] : memref<9x2x676xf32, #tpu.memory_space<vmem>>, vector<1x2x676xf32>
    %20 = vector.shape_cast %19 : vector<1x2x676xf32> to vector<2x676xf32>
    %cst = arith.constant 0.000000e+00 : f32
    %21 = vector.broadcast %cst : f32 to vector<2x128xf32>
    %c16_i32 = arith.constant 16 : i32
    %22 = arith.muli %arg0, %c16_i32 : i32
    %c0_i32_19 = arith.constant 0 : i32
    %23 = arith.addi %22, %c0_i32_19 : i32
    %cst_20 = arith.constant 0.000000e+00 : f32
    %24 = vector.broadcast %cst_20 : f32 to vector<2x676xf32>
    %c9_i32 = arith.constant 9 : i32
    %25 = arith.muli %23, %c9_i32 : i32
    %c0_i32_21 = arith.constant 0 : i32
    %26 = arith.addi %25, %c0_i32_21 : i32
    %27 = arith.index_cast %26 : i32 to index
    %28 = memref.load %arg1[%27] : memref<288xf32, #tpu.memory_space<smem>>
    %29 = vector.broadcast %28 : f32 to vector<2x676xf32>
    %30 = arith.mulf %29, %4 : vector<2x676xf32>
    %31 = arith.addf %24, %30 : vector<2x676xf32>
    %c9_i32_22 = arith.constant 9 : i32
    %32 = arith.muli %23, %c9_i32_22 : i32
    %c1_i32 = arith.constant 1 : i32
    %33 = arith.addi %32, %c1_i32 : i32
    %34 = arith.index_cast %33 : i32 to index
    %35 = memref.load %arg1[%34] : memref<288xf32, #tpu.memory_space<smem>>
    %36 = vector.broadcast %35 : f32 to vector<2x676xf32>
    %37 = arith.mulf %36, %6 : vector<2x676xf32>
    %38 = arith.addf %31, %37 : vector<2x676xf32>
    %c9_i32_23 = arith.constant 9 : i32
    %39 = arith.muli %23, %c9_i32_23 : i32
    %c2_i32 = arith.constant 2 : i32
    %40 = arith.addi %39, %c2_i32 : i32
    %41 = arith.index_cast %40 : i32 to index
    %42 = memref.load %arg1[%41] : memref<288xf32, #tpu.memory_space<smem>>
    %43 = vector.broadcast %42 : f32 to vector<2x676xf32>
    %44 = arith.mulf %43, %8 : vector<2x676xf32>
    %45 = arith.addf %38, %44 : vector<2x676xf32>
    %c9_i32_24 = arith.constant 9 : i32
    %46 = arith.muli %23, %c9_i32_24 : i32
    %c3_i32 = arith.constant 3 : i32
    %47 = arith.addi %46, %c3_i32 : i32
    %48 = arith.index_cast %47 : i32 to index
    %49 = memref.load %arg1[%48] : memref<288xf32, #tpu.memory_space<smem>>
    %50 = vector.broadcast %49 : f32 to vector<2x676xf32>
    %51 = arith.mulf %50, %10 : vector<2x676xf32>
    %52 = arith.addf %45, %51 : vector<2x676xf32>
    %c9_i32_25 = arith.constant 9 : i32
    %53 = arith.muli %23, %c9_i32_25 : i32
    %c4_i32 = arith.constant 4 : i32
    %54 = arith.addi %53, %c4_i32 : i32
    %55 = arith.index_cast %54 : i32 to index
    %56 = memref.load %arg1[%55] : memref<288xf32, #tpu.memory_space<smem>>
    %57 = vector.broadcast %56 : f32 to vector<2x676xf32>
    %58 = arith.mulf %57, %12 : vector<2x676xf32>
    %59 = arith.addf %52, %58 : vector<2x676xf32>
    %c9_i32_26 = arith.constant 9 : i32
    %60 = arith.muli %23, %c9_i32_26 : i32
    %c5_i32 = arith.constant 5 : i32
    %61 = arith.addi %60, %c5_i32 : i32
    %62 = arith.index_cast %61 : i32 to index
    %63 = memref.load %arg1[%62] : memref<288xf32, #tpu.memory_space<smem>>
    %64 = vector.broadcast %63 : f32 to vector<2x676xf32>
    %65 = arith.mulf %64, %14 : vector<2x676xf32>
    %66 = arith.addf %59, %65 : vector<2x676xf32>
    %c9_i32_27 = arith.constant 9 : i32
    %67 = arith.muli %23, %c9_i32_27 : i32
    %c6_i32 = arith.constant 6 : i32
    %68 = arith.addi %67, %c6_i32 : i32
    %69 = arith.index_cast %68 : i32 to index
    %70 = memref.load %arg1[%69] : memref<288xf32, #tpu.memory_space<smem>>
    %71 = vector.broadcast %70 : f32 to vector<2x676xf32>
    %72 = arith.mulf %71, %16 : vector<2x676xf32>
    %73 = arith.addf %66, %72 : vector<2x676xf32>
    %c9_i32_28 = arith.constant 9 : i32
    %74 = arith.muli %23, %c9_i32_28 : i32
    %c7_i32 = arith.constant 7 : i32
    %75 = arith.addi %74, %c7_i32 : i32
    %76 = arith.index_cast %75 : i32 to index
    %77 = memref.load %arg1[%76] : memref<288xf32, #tpu.memory_space<smem>>
    %78 = vector.broadcast %77 : f32 to vector<2x676xf32>
    %79 = arith.mulf %78, %18 : vector<2x676xf32>
    %80 = arith.addf %73, %79 : vector<2x676xf32>
    %c9_i32_29 = arith.constant 9 : i32
    %81 = arith.muli %23, %c9_i32_29 : i32
    %c8_i32 = arith.constant 8 : i32
    %82 = arith.addi %81, %c8_i32 : i32
    %83 = arith.index_cast %82 : i32 to index
    %84 = memref.load %arg1[%83] : memref<288xf32, #tpu.memory_space<smem>>
    %85 = vector.broadcast %84 : f32 to vector<2x676xf32>
    %86 = arith.mulf %85, %20 : vector<2x676xf32>
    %87 = arith.addf %80, %86 : vector<2x676xf32>
    %88 = arith.index_cast %23 : i32 to index
    %89 = memref.load %arg2[%88] : memref<32xf32, #tpu.memory_space<smem>>
    %90 = vector.broadcast %89 : f32 to vector<2x676xf32>
    %91 = arith.addf %87, %90 : vector<2x676xf32>
    %cst_30 = arith.constant 0.000000e+00 : f32
    %92 = vector.broadcast %cst_30 : f32 to vector<2x676xf32>
    %93 = arith.maximumf %91, %92 : vector<2x676xf32>
    %94 = arith.truncf %93 : vector<2x676xf32> to vector<2x676xbf16>
    %c0_31 = arith.constant 0 : index
    %c0_32 = arith.constant 0 : index
    %c0_33 = arith.constant 0 : index
    %95 = vector.load %arg4[%c0_31, %c0_32, %c0_33] : memref<16x676x128xbf16, #tpu.memory_space<vmem>>, vector<1x676x128xbf16>
    %96 = vector.shape_cast %95 : vector<1x676x128xbf16> to vector<676x128xbf16>
    %cst_34 = arith.constant dense<0.000000e+00> : vector<2x128xf32>
    %97 = tpu.matmul %94, %96, %cst_34 {dimension_numbers = #tpu.dot_dimension_numbers<[1], [0], [0], [1], [0, 0, 1, 1], [], []>} : vector<2x676xbf16>, vector<676x128xbf16>, vector<2x128xf32> -> vector<2x128xf32>
    %98 = arith.addf %21, %97 : vector<2x128xf32>
    %c1_i32_35 = arith.constant 1 : i32
    %99 = arith.addi %22, %c1_i32_35 : i32
    %cst_36 = arith.constant 0.000000e+00 : f32
    %100 = vector.broadcast %cst_36 : f32 to vector<2x676xf32>
    %c9_i32_37 = arith.constant 9 : i32
    %101 = arith.muli %99, %c9_i32_37 : i32
    %c0_i32_38 = arith.constant 0 : i32
    %102 = arith.addi %101, %c0_i32_38 : i32
    %103 = arith.index_cast %102 : i32 to index
    %104 = memref.load %arg1[%103] : memref<288xf32, #tpu.memory_space<smem>>
    %105 = vector.broadcast %104 : f32 to vector<2x676xf32>
    %106 = arith.mulf %105, %4 : vector<2x676xf32>
    %107 = arith.addf %100, %106 : vector<2x676xf32>
    %c9_i32_39 = arith.constant 9 : i32
    %108 = arith.muli %99, %c9_i32_39 : i32
    %c1_i32_40 = arith.constant 1 : i32
    %109 = arith.addi %108, %c1_i32_40 : i32
    %110 = arith.index_cast %109 : i32 to index
    %111 = memref.load %arg1[%110] : memref<288xf32, #tpu.memory_space<smem>>
    %112 = vector.broadcast %111 : f32 to vector<2x676xf32>
    %113 = arith.mulf %112, %6 : vector<2x676xf32>
    %114 = arith.addf %107, %113 : vector<2x676xf32>
    %c9_i32_41 = arith.constant 9 : i32
    %115 = arith.muli %99, %c9_i32_41 : i32
    %c2_i32_42 = arith.constant 2 : i32
    %116 = arith.addi %115, %c2_i32_42 : i32
    %117 = arith.index_cast %116 : i32 to index
    %118 = memref.load %arg1[%117] : memref<288xf32, #tpu.memory_space<smem>>
    %119 = vector.broadcast %118 : f32 to vector<2x676xf32>
    %120 = arith.mulf %119, %8 : vector<2x676xf32>
    %121 = arith.addf %114, %120 : vector<2x676xf32>
    %c9_i32_43 = arith.constant 9 : i32
    %122 = arith.muli %99, %c9_i32_43 : i32
    %c3_i32_44 = arith.constant 3 : i32
    %123 = arith.addi %122, %c3_i32_44 : i32
    %124 = arith.index_cast %123 : i32 to index
    %125 = memref.load %arg1[%124] : memref<288xf32, #tpu.memory_space<smem>>
    %126 = vector.broadcast %125 : f32 to vector<2x676xf32>
    %127 = arith.mulf %126, %10 : vector<2x676xf32>
    %128 = arith.addf %121, %127 : vector<2x676xf32>
    %c9_i32_45 = arith.constant 9 : i32
    %129 = arith.muli %99, %c9_i32_45 : i32
    %c4_i32_46 = arith.constant 4 : i32
    %130 = arith.addi %129, %c4_i32_46 : i32
    %131 = arith.index_cast %130 : i32 to index
    %132 = memref.load %arg1[%131] : memref<288xf32, #tpu.memory_space<smem>>
    %133 = vector.broadcast %132 : f32 to vector<2x676xf32>
    %134 = arith.mulf %133, %12 : vector<2x676xf32>
    %135 = arith.addf %128, %134 : vector<2x676xf32>
    %c9_i32_47 = arith.constant 9 : i32
    %136 = arith.muli %99, %c9_i32_47 : i32
    %c5_i32_48 = arith.constant 5 : i32
    %137 = arith.addi %136, %c5_i32_48 : i32
    %138 = arith.index_cast %137 : i32 to index
    %139 = memref.load %arg1[%138] : memref<288xf32, #tpu.memory_space<smem>>
    %140 = vector.broadcast %139 : f32 to vector<2x676xf32>
    %141 = arith.mulf %140, %14 : vector<2x676xf32>
    %142 = arith.addf %135, %141 : vector<2x676xf32>
    %c9_i32_49 = arith.constant 9 : i32
    %143 = arith.muli %99, %c9_i32_49 : i32
    %c6_i32_50 = arith.constant 6 : i32
    %144 = arith.addi %143, %c6_i32_50 : i32
    %145 = arith.index_cast %144 : i32 to index
    %146 = memref.load %arg1[%145] : memref<288xf32, #tpu.memory_space<smem>>
    %147 = vector.broadcast %146 : f32 to vector<2x676xf32>
    %148 = arith.mulf %147, %16 : vector<2x676xf32>
    %149 = arith.addf %142, %148 : vector<2x676xf32>
    %c9_i32_51 = arith.constant 9 : i32
    %150 = arith.muli %99, %c9_i32_51 : i32
    %c7_i32_52 = arith.constant 7 : i32
    %151 = arith.addi %150, %c7_i32_52 : i32
    %152 = arith.index_cast %151 : i32 to index
    %153 = memref.load %arg1[%152] : memref<288xf32, #tpu.memory_space<smem>>
    %154 = vector.broadcast %153 : f32 to vector<2x676xf32>
    %155 = arith.mulf %154, %18 : vector<2x676xf32>
    %156 = arith.addf %149, %155 : vector<2x676xf32>
    %c9_i32_53 = arith.constant 9 : i32
    %157 = arith.muli %99, %c9_i32_53 : i32
    %c8_i32_54 = arith.constant 8 : i32
    %158 = arith.addi %157, %c8_i32_54 : i32
    %159 = arith.index_cast %158 : i32 to index
    %160 = memref.load %arg1[%159] : memref<288xf32, #tpu.memory_space<smem>>
    %161 = vector.broadcast %160 : f32 to vector<2x676xf32>
    %162 = arith.mulf %161, %20 : vector<2x676xf32>
    %163 = arith.addf %156, %162 : vector<2x676xf32>
    %164 = arith.index_cast %99 : i32 to index
    %165 = memref.load %arg2[%164] : memref<32xf32, #tpu.memory_space<smem>>
    %166 = vector.broadcast %165 : f32 to vector<2x676xf32>
    %167 = arith.addf %163, %166 : vector<2x676xf32>
    %cst_55 = arith.constant 0.000000e+00 : f32
    %168 = vector.broadcast %cst_55 : f32 to vector<2x676xf32>
    %169 = arith.maximumf %167, %168 : vector<2x676xf32>
    %170 = arith.truncf %169 : vector<2x676xf32> to vector<2x676xbf16>
    %c1_56 = arith.constant 1 : index
    %c0_57 = arith.constant 0 : index
    %c0_58 = arith.constant 0 : index
    %171 = vector.load %arg4[%c1_56, %c0_57, %c0_58] : memref<16x676x128xbf16, #tpu.memory_space<vmem>>, vector<1x676x128xbf16>
    %172 = vector.shape_cast %171 : vector<1x676x128xbf16> to vector<676x128xbf16>
    %cst_59 = arith.constant dense<0.000000e+00> : vector<2x128xf32>
    %173 = tpu.matmul %170, %172, %cst_59 {dimension_numbers = #tpu.dot_dimension_numbers<[1], [0], [0], [1], [0, 0, 1, 1], [], []>} : vector<2x676xbf16>, vector<676x128xbf16>, vector<2x128xf32> -> vector<2x128xf32>
    %174 = arith.addf %98, %173 : vector<2x128xf32>
    %c2_i32_60 = arith.constant 2 : i32
    %175 = arith.addi %22, %c2_i32_60 : i32
    %cst_61 = arith.constant 0.000000e+00 : f32
    %176 = vector.broadcast %cst_61 : f32 to vector<2x676xf32>
    %c9_i32_62 = arith.constant 9 : i32
    %177 = arith.muli %175, %c9_i32_62 : i32
    %c0_i32_63 = arith.constant 0 : i32
    %178 = arith.addi %177, %c0_i32_63 : i32
    %179 = arith.index_cast %178 : i32 to index
    %180 = memref.load %arg1[%179] : memref<288xf32, #tpu.memory_space<smem>>
    %181 = vector.broadcast %180 : f32 to vector<2x676xf32>
    %182 = arith.mulf %181, %4 : vector<2x676xf32>
    %183 = arith.addf %176, %182 : vector<2x676xf32>
    %c9_i32_64 = arith.constant 9 : i32
    %184 = arith.muli %175, %c9_i32_64 : i32
    %c1_i32_65 = arith.constant 1 : i32
    %185 = arith.addi %184, %c1_i32_65 : i32
    %186 = arith.index_cast %185 : i32 to index
    %187 = memref.load %arg1[%186] : memref<288xf32, #tpu.memory_space<smem>>
    %188 = vector.broadcast %187 : f32 to vector<2x676xf32>
    %189 = arith.mulf %188, %6 : vector<2x676xf32>
    %190 = arith.addf %183, %189 : vector<2x676xf32>
    %c9_i32_66 = arith.constant 9 : i32
    %191 = arith.muli %175, %c9_i32_66 : i32
    %c2_i32_67 = arith.constant 2 : i32
    %192 = arith.addi %191, %c2_i32_67 : i32
    %193 = arith.index_cast %192 : i32 to index
    %194 = memref.load %arg1[%193] : memref<288xf32, #tpu.memory_space<smem>>
    %195 = vector.broadcast %194 : f32 to vector<2x676xf32>
    %196 = arith.mulf %195, %8 : vector<2x676xf32>
    %197 = arith.addf %190, %196 : vector<2x676xf32>
    %c9_i32_68 = arith.constant 9 : i32
    %198 = arith.muli %175, %c9_i32_68 : i32
    %c3_i32_69 = arith.constant 3 : i32
    %199 = arith.addi %198, %c3_i32_69 : i32
    %200 = arith.index_cast %199 : i32 to index
    %201 = memref.load %arg1[%200] : memref<288xf32, #tpu.memory_space<smem>>
    %202 = vector.broadcast %201 : f32 to vector<2x676xf32>
    %203 = arith.mulf %202, %10 : vector<2x676xf32>
    %204 = arith.addf %197, %203 : vector<2x676xf32>
    %c9_i32_70 = arith.constant 9 : i32
    %205 = arith.muli %175, %c9_i32_70 : i32
    %c4_i32_71 = arith.constant 4 : i32
    %206 = arith.addi %205, %c4_i32_71 : i32
    %207 = arith.index_cast %206 : i32 to index
    %208 = memref.load %arg1[%207] : memref<288xf32, #tpu.memory_space<smem>>
    %209 = vector.broadcast %208 : f32 to vector<2x676xf32>
    %210 = arith.mulf %209, %12 : vector<2x676xf32>
    %211 = arith.addf %204, %210 : vector<2x676xf32>
    %c9_i32_72 = arith.constant 9 : i32
    %212 = arith.muli %175, %c9_i32_72 : i32
    %c5_i32_73 = arith.constant 5 : i32
    %213 = arith.addi %212, %c5_i32_73 : i32
    %214 = arith.index_cast %213 : i32 to index
    %215 = memref.load %arg1[%214] : memref<288xf32, #tpu.memory_space<smem>>
    %216 = vector.broadcast %215 : f32 to vector<2x676xf32>
    %217 = arith.mulf %216, %14 : vector<2x676xf32>
    %218 = arith.addf %211, %217 : vector<2x676xf32>
    %c9_i32_74 = arith.constant 9 : i32
    %219 = arith.muli %175, %c9_i32_74 : i32
    %c6_i32_75 = arith.constant 6 : i32
    %220 = arith.addi %219, %c6_i32_75 : i32
    %221 = arith.index_cast %220 : i32 to index
    %222 = memref.load %arg1[%221] : memref<288xf32, #tpu.memory_space<smem>>
    %223 = vector.broadcast %222 : f32 to vector<2x676xf32>
    %224 = arith.mulf %223, %16 : vector<2x676xf32>
    %225 = arith.addf %218, %224 : vector<2x676xf32>
    %c9_i32_76 = arith.constant 9 : i32
    %226 = arith.muli %175, %c9_i32_76 : i32
    %c7_i32_77 = arith.constant 7 : i32
    %227 = arith.addi %226, %c7_i32_77 : i32
    %228 = arith.index_cast %227 : i32 to index
    %229 = memref.load %arg1[%228] : memref<288xf32, #tpu.memory_space<smem>>
    %230 = vector.broadcast %229 : f32 to vector<2x676xf32>
    %231 = arith.mulf %230, %18 : vector<2x676xf32>
    %232 = arith.addf %225, %231 : vector<2x676xf32>
    %c9_i32_78 = arith.constant 9 : i32
    %233 = arith.muli %175, %c9_i32_78 : i32
    %c8_i32_79 = arith.constant 8 : i32
    %234 = arith.addi %233, %c8_i32_79 : i32
    %235 = arith.index_cast %234 : i32 to index
    %236 = memref.load %arg1[%235] : memref<288xf32, #tpu.memory_space<smem>>
    %237 = vector.broadcast %236 : f32 to vector<2x676xf32>
    %238 = arith.mulf %237, %20 : vector<2x676xf32>
    %239 = arith.addf %232, %238 : vector<2x676xf32>
    %240 = arith.index_cast %175 : i32 to index
    %241 = memref.load %arg2[%240] : memref<32xf32, #tpu.memory_space<smem>>
    %242 = vector.broadcast %241 : f32 to vector<2x676xf32>
    %243 = arith.addf %239, %242 : vector<2x676xf32>
    %cst_80 = arith.constant 0.000000e+00 : f32
    %244 = vector.broadcast %cst_80 : f32 to vector<2x676xf32>
    %245 = arith.maximumf %243, %244 : vector<2x676xf32>
    %246 = arith.truncf %245 : vector<2x676xf32> to vector<2x676xbf16>
    %c2_81 = arith.constant 2 : index
    %c0_82 = arith.constant 0 : index
    %c0_83 = arith.constant 0 : index
    %247 = vector.load %arg4[%c2_81, %c0_82, %c0_83] : memref<16x676x128xbf16, #tpu.memory_space<vmem>>, vector<1x676x128xbf16>
    %248 = vector.shape_cast %247 : vector<1x676x128xbf16> to vector<676x128xbf16>
    %cst_84 = arith.constant dense<0.000000e+00> : vector<2x128xf32>
    %249 = tpu.matmul %246, %248, %cst_84 {dimension_numbers = #tpu.dot_dimension_numbers<[1], [0], [0], [1], [0, 0, 1, 1], [], []>} : vector<2x676xbf16>, vector<676x128xbf16>, vector<2x128xf32> -> vector<2x128xf32>
    %250 = arith.addf %174, %249 : vector<2x128xf32>
    %c3_i32_85 = arith.constant 3 : i32
    %251 = arith.addi %22, %c3_i32_85 : i32
    %cst_86 = arith.constant 0.000000e+00 : f32
    %252 = vector.broadcast %cst_86 : f32 to vector<2x676xf32>
    %c9_i32_87 = arith.constant 9 : i32
    %253 = arith.muli %251, %c9_i32_87 : i32
    %c0_i32_88 = arith.constant 0 : i32
    %254 = arith.addi %253, %c0_i32_88 : i32
    %255 = arith.index_cast %254 : i32 to index
    %256 = memref.load %arg1[%255] : memref<288xf32, #tpu.memory_space<smem>>
    %257 = vector.broadcast %256 : f32 to vector<2x676xf32>
    %258 = arith.mulf %257, %4 : vector<2x676xf32>
    %259 = arith.addf %252, %258 : vector<2x676xf32>
    %c9_i32_89 = arith.constant 9 : i32
    %260 = arith.muli %251, %c9_i32_89 : i32
    %c1_i32_90 = arith.constant 1 : i32
    %261 = arith.addi %260, %c1_i32_90 : i32
    %262 = arith.index_cast %261 : i32 to index
    %263 = memref.load %arg1[%262] : memref<288xf32, #tpu.memory_space<smem>>
    %264 = vector.broadcast %263 : f32 to vector<2x676xf32>
    %265 = arith.mulf %264, %6 : vector<2x676xf32>
    %266 = arith.addf %259, %265 : vector<2x676xf32>
    %c9_i32_91 = arith.constant 9 : i32
    %267 = arith.muli %251, %c9_i32_91 : i32
    %c2_i32_92 = arith.constant 2 : i32
    %268 = arith.addi %267, %c2_i32_92 : i32
    %269 = arith.index_cast %268 : i32 to index
    %270 = memref.load %arg1[%269] : memref<288xf32, #tpu.memory_space<smem>>
    %271 = vector.broadcast %270 : f32 to vector<2x676xf32>
    %272 = arith.mulf %271, %8 : vector<2x676xf32>
    %273 = arith.addf %266, %272 : vector<2x676xf32>
    %c9_i32_93 = arith.constant 9 : i32
    %274 = arith.muli %251, %c9_i32_93 : i32
    %c3_i32_94 = arith.constant 3 : i32
    %275 = arith.addi %274, %c3_i32_94 : i32
    %276 = arith.index_cast %275 : i32 to index
    %277 = memref.load %arg1[%276] : memref<288xf32, #tpu.memory_space<smem>>
    %278 = vector.broadcast %277 : f32 to vector<2x676xf32>
    %279 = arith.mulf %278, %10 : vector<2x676xf32>
    %280 = arith.addf %273, %279 : vector<2x676xf32>
    %c9_i32_95 = arith.constant 9 : i32
    %281 = arith.muli %251, %c9_i32_95 : i32
    %c4_i32_96 = arith.constant 4 : i32
    %282 = arith.addi %281, %c4_i32_96 : i32
    %283 = arith.index_cast %282 : i32 to index
    %284 = memref.load %arg1[%283] : memref<288xf32, #tpu.memory_space<smem>>
    %285 = vector.broadcast %284 : f32 to vector<2x676xf32>
    %286 = arith.mulf %285, %12 : vector<2x676xf32>
    %287 = arith.addf %280, %286 : vector<2x676xf32>
    %c9_i32_97 = arith.constant 9 : i32
    %288 = arith.muli %251, %c9_i32_97 : i32
    %c5_i32_98 = arith.constant 5 : i32
    %289 = arith.addi %288, %c5_i32_98 : i32
    %290 = arith.index_cast %289 : i32 to index
    %291 = memref.load %arg1[%290] : memref<288xf32, #tpu.memory_space<smem>>
    %292 = vector.broadcast %291 : f32 to vector<2x676xf32>
    %293 = arith.mulf %292, %14 : vector<2x676xf32>
    %294 = arith.addf %287, %293 : vector<2x676xf32>
    %c9_i32_99 = arith.constant 9 : i32
    %295 = arith.muli %251, %c9_i32_99 : i32
    %c6_i32_100 = arith.constant 6 : i32
    %296 = arith.addi %295, %c6_i32_100 : i32
    %297 = arith.index_cast %296 : i32 to index
    %298 = memref.load %arg1[%297] : memref<288xf32, #tpu.memory_space<smem>>
    %299 = vector.broadcast %298 : f32 to vector<2x676xf32>
    %300 = arith.mulf %299, %16 : vector<2x676xf32>
    %301 = arith.addf %294, %300 : vector<2x676xf32>
    %c9_i32_101 = arith.constant 9 : i32
    %302 = arith.muli %251, %c9_i32_101 : i32
    %c7_i32_102 = arith.constant 7 : i32
    %303 = arith.addi %302, %c7_i32_102 : i32
    %304 = arith.index_cast %303 : i32 to index
    %305 = memref.load %arg1[%304] : memref<288xf32, #tpu.memory_space<smem>>
    %306 = vector.broadcast %305 : f32 to vector<2x676xf32>
    %307 = arith.mulf %306, %18 : vector<2x676xf32>
    %308 = arith.addf %301, %307 : vector<2x676xf32>
    %c9_i32_103 = arith.constant 9 : i32
    %309 = arith.muli %251, %c9_i32_103 : i32
    %c8_i32_104 = arith.constant 8 : i32
    %310 = arith.addi %309, %c8_i32_104 : i32
    %311 = arith.index_cast %310 : i32 to index
    %312 = memref.load %arg1[%311] : memref<288xf32, #tpu.memory_space<smem>>
    %313 = vector.broadcast %312 : f32 to vector<2x676xf32>
    %314 = arith.mulf %313, %20 : vector<2x676xf32>
    %315 = arith.addf %308, %314 : vector<2x676xf32>
    %316 = arith.index_cast %251 : i32 to index
    %317 = memref.load %arg2[%316] : memref<32xf32, #tpu.memory_space<smem>>
    %318 = vector.broadcast %317 : f32 to vector<2x676xf32>
    %319 = arith.addf %315, %318 : vector<2x676xf32>
    %cst_105 = arith.constant 0.000000e+00 : f32
    %320 = vector.broadcast %cst_105 : f32 to vector<2x676xf32>
    %321 = arith.maximumf %319, %320 : vector<2x676xf32>
    %322 = arith.truncf %321 : vector<2x676xf32> to vector<2x676xbf16>
    %c3_106 = arith.constant 3 : index
    %c0_107 = arith.constant 0 : index
    %c0_108 = arith.constant 0 : index
    %323 = vector.load %arg4[%c3_106, %c0_107, %c0_108] : memref<16x676x128xbf16, #tpu.memory_space<vmem>>, vector<1x676x128xbf16>
    %324 = vector.shape_cast %323 : vector<1x676x128xbf16> to vector<676x128xbf16>
    %cst_109 = arith.constant dense<0.000000e+00> : vector<2x128xf32>
    %325 = tpu.matmul %322, %324, %cst_109 {dimension_numbers = #tpu.dot_dimension_numbers<[1], [0], [0], [1], [0, 0, 1, 1], [], []>} : vector<2x676xbf16>, vector<676x128xbf16>, vector<2x128xf32> -> vector<2x128xf32>
    %326 = arith.addf %250, %325 : vector<2x128xf32>
    %c4_i32_110 = arith.constant 4 : i32
    %327 = arith.addi %22, %c4_i32_110 : i32
    %cst_111 = arith.constant 0.000000e+00 : f32
    %328 = vector.broadcast %cst_111 : f32 to vector<2x676xf32>
    %c9_i32_112 = arith.constant 9 : i32
    %329 = arith.muli %327, %c9_i32_112 : i32
    %c0_i32_113 = arith.constant 0 : i32
    %330 = arith.addi %329, %c0_i32_113 : i32
    %331 = arith.index_cast %330 : i32 to index
    %332 = memref.load %arg1[%331] : memref<288xf32, #tpu.memory_space<smem>>
    %333 = vector.broadcast %332 : f32 to vector<2x676xf32>
    %334 = arith.mulf %333, %4 : vector<2x676xf32>
    %335 = arith.addf %328, %334 : vector<2x676xf32>
    %c9_i32_114 = arith.constant 9 : i32
    %336 = arith.muli %327, %c9_i32_114 : i32
    %c1_i32_115 = arith.constant 1 : i32
    %337 = arith.addi %336, %c1_i32_115 : i32
    %338 = arith.index_cast %337 : i32 to index
    %339 = memref.load %arg1[%338] : memref<288xf32, #tpu.memory_space<smem>>
    %340 = vector.broadcast %339 : f32 to vector<2x676xf32>
    %341 = arith.mulf %340, %6 : vector<2x676xf32>
    %342 = arith.addf %335, %341 : vector<2x676xf32>
    %c9_i32_116 = arith.constant 9 : i32
    %343 = arith.muli %327, %c9_i32_116 : i32
    %c2_i32_117 = arith.constant 2 : i32
    %344 = arith.addi %343, %c2_i32_117 : i32
    %345 = arith.index_cast %344 : i32 to index
    %346 = memref.load %arg1[%345] : memref<288xf32, #tpu.memory_space<smem>>
    %347 = vector.broadcast %346 : f32 to vector<2x676xf32>
    %348 = arith.mulf %347, %8 : vector<2x676xf32>
    %349 = arith.addf %342, %348 : vector<2x676xf32>
    %c9_i32_118 = arith.constant 9 : i32
    %350 = arith.muli %327, %c9_i32_118 : i32
    %c3_i32_119 = arith.constant 3 : i32
    %351 = arith.addi %350, %c3_i32_119 : i32
    %352 = arith.index_cast %351 : i32 to index
    %353 = memref.load %arg1[%352] : memref<288xf32, #tpu.memory_space<smem>>
    %354 = vector.broadcast %353 : f32 to vector<2x676xf32>
    %355 = arith.mulf %354, %10 : vector<2x676xf32>
    %356 = arith.addf %349, %355 : vector<2x676xf32>
    %c9_i32_120 = arith.constant 9 : i32
    %357 = arith.muli %327, %c9_i32_120 : i32
    %c4_i32_121 = arith.constant 4 : i32
    %358 = arith.addi %357, %c4_i32_121 : i32
    %359 = arith.index_cast %358 : i32 to index
    %360 = memref.load %arg1[%359] : memref<288xf32, #tpu.memory_space<smem>>
    %361 = vector.broadcast %360 : f32 to vector<2x676xf32>
    %362 = arith.mulf %361, %12 : vector<2x676xf32>
    %363 = arith.addf %356, %362 : vector<2x676xf32>
    %c9_i32_122 = arith.constant 9 : i32
    %364 = arith.muli %327, %c9_i32_122 : i32
    %c5_i32_123 = arith.constant 5 : i32
    %365 = arith.addi %364, %c5_i32_123 : i32
    %366 = arith.index_cast %365 : i32 to index
    %367 = memref.load %arg1[%366] : memref<288xf32, #tpu.memory_space<smem>>
    %368 = vector.broadcast %367 : f32 to vector<2x676xf32>
    %369 = arith.mulf %368, %14 : vector<2x676xf32>
    %370 = arith.addf %363, %369 : vector<2x676xf32>
    %c9_i32_124 = arith.constant 9 : i32
    %371 = arith.muli %327, %c9_i32_124 : i32
    %c6_i32_125 = arith.constant 6 : i32
    %372 = arith.addi %371, %c6_i32_125 : i32
    %373 = arith.index_cast %372 : i32 to index
    %374 = memref.load %arg1[%373] : memref<288xf32, #tpu.memory_space<smem>>
    %375 = vector.broadcast %374 : f32 to vector<2x676xf32>
    %376 = arith.mulf %375, %16 : vector<2x676xf32>
    %377 = arith.addf %370, %376 : vector<2x676xf32>
    %c9_i32_126 = arith.constant 9 : i32
    %378 = arith.muli %327, %c9_i32_126 : i32
    %c7_i32_127 = arith.constant 7 : i32
    %379 = arith.addi %378, %c7_i32_127 : i32
    %380 = arith.index_cast %379 : i32 to index
    %381 = memref.load %arg1[%380] : memref<288xf32, #tpu.memory_space<smem>>
    %382 = vector.broadcast %381 : f32 to vector<2x676xf32>
    %383 = arith.mulf %382, %18 : vector<2x676xf32>
    %384 = arith.addf %377, %383 : vector<2x676xf32>
    %c9_i32_128 = arith.constant 9 : i32
    %385 = arith.muli %327, %c9_i32_128 : i32
    %c8_i32_129 = arith.constant 8 : i32
    %386 = arith.addi %385, %c8_i32_129 : i32
    %387 = arith.index_cast %386 : i32 to index
    %388 = memref.load %arg1[%387] : memref<288xf32, #tpu.memory_space<smem>>
    %389 = vector.broadcast %388 : f32 to vector<2x676xf32>
    %390 = arith.mulf %389, %20 : vector<2x676xf32>
    %391 = arith.addf %384, %390 : vector<2x676xf32>
    %392 = arith.index_cast %327 : i32 to index
    %393 = memref.load %arg2[%392] : memref<32xf32, #tpu.memory_space<smem>>
    %394 = vector.broadcast %393 : f32 to vector<2x676xf32>
    %395 = arith.addf %391, %394 : vector<2x676xf32>
    %cst_130 = arith.constant 0.000000e+00 : f32
    %396 = vector.broadcast %cst_130 : f32 to vector<2x676xf32>
    %397 = arith.maximumf %395, %396 : vector<2x676xf32>
    %398 = arith.truncf %397 : vector<2x676xf32> to vector<2x676xbf16>
    %c4_131 = arith.constant 4 : index
    %c0_132 = arith.constant 0 : index
    %c0_133 = arith.constant 0 : index
    %399 = vector.load %arg4[%c4_131, %c0_132, %c0_133] : memref<16x676x128xbf16, #tpu.memory_space<vmem>>, vector<1x676x128xbf16>
    %400 = vector.shape_cast %399 : vector<1x676x128xbf16> to vector<676x128xbf16>
    %cst_134 = arith.constant dense<0.000000e+00> : vector<2x128xf32>
    %401 = tpu.matmul %398, %400, %cst_134 {dimension_numbers = #tpu.dot_dimension_numbers<[1], [0], [0], [1], [0, 0, 1, 1], [], []>} : vector<2x676xbf16>, vector<676x128xbf16>, vector<2x128xf32> -> vector<2x128xf32>
    %402 = arith.addf %326, %401 : vector<2x128xf32>
    %c5_i32_135 = arith.constant 5 : i32
    %403 = arith.addi %22, %c5_i32_135 : i32
    %cst_136 = arith.constant 0.000000e+00 : f32
    %404 = vector.broadcast %cst_136 : f32 to vector<2x676xf32>
    %c9_i32_137 = arith.constant 9 : i32
    %405 = arith.muli %403, %c9_i32_137 : i32
    %c0_i32_138 = arith.constant 0 : i32
    %406 = arith.addi %405, %c0_i32_138 : i32
    %407 = arith.index_cast %406 : i32 to index
    %408 = memref.load %arg1[%407] : memref<288xf32, #tpu.memory_space<smem>>
    %409 = vector.broadcast %408 : f32 to vector<2x676xf32>
    %410 = arith.mulf %409, %4 : vector<2x676xf32>
    %411 = arith.addf %404, %410 : vector<2x676xf32>
    %c9_i32_139 = arith.constant 9 : i32
    %412 = arith.muli %403, %c9_i32_139 : i32
    %c1_i32_140 = arith.constant 1 : i32
    %413 = arith.addi %412, %c1_i32_140 : i32
    %414 = arith.index_cast %413 : i32 to index
    %415 = memref.load %arg1[%414] : memref<288xf32, #tpu.memory_space<smem>>
    %416 = vector.broadcast %415 : f32 to vector<2x676xf32>
    %417 = arith.mulf %416, %6 : vector<2x676xf32>
    %418 = arith.addf %411, %417 : vector<2x676xf32>
    %c9_i32_141 = arith.constant 9 : i32
    %419 = arith.muli %403, %c9_i32_141 : i32
    %c2_i32_142 = arith.constant 2 : i32
    %420 = arith.addi %419, %c2_i32_142 : i32
    %421 = arith.index_cast %420 : i32 to index
    %422 = memref.load %arg1[%421] : memref<288xf32, #tpu.memory_space<smem>>
    %423 = vector.broadcast %422 : f32 to vector<2x676xf32>
    %424 = arith.mulf %423, %8 : vector<2x676xf32>
    %425 = arith.addf %418, %424 : vector<2x676xf32>
    %c9_i32_143 = arith.constant 9 : i32
    %426 = arith.muli %403, %c9_i32_143 : i32
    %c3_i32_144 = arith.constant 3 : i32
    %427 = arith.addi %426, %c3_i32_144 : i32
    %428 = arith.index_cast %427 : i32 to index
    %429 = memref.load %arg1[%428] : memref<288xf32, #tpu.memory_space<smem>>
    %430 = vector.broadcast %429 : f32 to vector<2x676xf32>
    %431 = arith.mulf %430, %10 : vector<2x676xf32>
    %432 = arith.addf %425, %431 : vector<2x676xf32>
    %c9_i32_145 = arith.constant 9 : i32
    %433 = arith.muli %403, %c9_i32_145 : i32
    %c4_i32_146 = arith.constant 4 : i32
    %434 = arith.addi %433, %c4_i32_146 : i32
    %435 = arith.index_cast %434 : i32 to index
    %436 = memref.load %arg1[%435] : memref<288xf32, #tpu.memory_space<smem>>
    %437 = vector.broadcast %436 : f32 to vector<2x676xf32>
    %438 = arith.mulf %437, %12 : vector<2x676xf32>
    %439 = arith.addf %432, %438 : vector<2x676xf32>
    %c9_i32_147 = arith.constant 9 : i32
    %440 = arith.muli %403, %c9_i32_147 : i32
    %c5_i32_148 = arith.constant 5 : i32
    %441 = arith.addi %440, %c5_i32_148 : i32
    %442 = arith.index_cast %441 : i32 to index
    %443 = memref.load %arg1[%442] : memref<288xf32, #tpu.memory_space<smem>>
    %444 = vector.broadcast %443 : f32 to vector<2x676xf32>
    %445 = arith.mulf %444, %14 : vector<2x676xf32>
    %446 = arith.addf %439, %445 : vector<2x676xf32>
    %c9_i32_149 = arith.constant 9 : i32
    %447 = arith.muli %403, %c9_i32_149 : i32
    %c6_i32_150 = arith.constant 6 : i32
    %448 = arith.addi %447, %c6_i32_150 : i32
    %449 = arith.index_cast %448 : i32 to index
    %450 = memref.load %arg1[%449] : memref<288xf32, #tpu.memory_space<smem>>
    %451 = vector.broadcast %450 : f32 to vector<2x676xf32>
    %452 = arith.mulf %451, %16 : vector<2x676xf32>
    %453 = arith.addf %446, %452 : vector<2x676xf32>
    %c9_i32_151 = arith.constant 9 : i32
    %454 = arith.muli %403, %c9_i32_151 : i32
    %c7_i32_152 = arith.constant 7 : i32
    %455 = arith.addi %454, %c7_i32_152 : i32
    %456 = arith.index_cast %455 : i32 to index
    %457 = memref.load %arg1[%456] : memref<288xf32, #tpu.memory_space<smem>>
    %458 = vector.broadcast %457 : f32 to vector<2x676xf32>
    %459 = arith.mulf %458, %18 : vector<2x676xf32>
    %460 = arith.addf %453, %459 : vector<2x676xf32>
    %c9_i32_153 = arith.constant 9 : i32
    %461 = arith.muli %403, %c9_i32_153 : i32
    %c8_i32_154 = arith.constant 8 : i32
    %462 = arith.addi %461, %c8_i32_154 : i32
    %463 = arith.index_cast %462 : i32 to index
    %464 = memref.load %arg1[%463] : memref<288xf32, #tpu.memory_space<smem>>
    %465 = vector.broadcast %464 : f32 to vector<2x676xf32>
    %466 = arith.mulf %465, %20 : vector<2x676xf32>
    %467 = arith.addf %460, %466 : vector<2x676xf32>
    %468 = arith.index_cast %403 : i32 to index
    %469 = memref.load %arg2[%468] : memref<32xf32, #tpu.memory_space<smem>>
    %470 = vector.broadcast %469 : f32 to vector<2x676xf32>
    %471 = arith.addf %467, %470 : vector<2x676xf32>
    %cst_155 = arith.constant 0.000000e+00 : f32
    %472 = vector.broadcast %cst_155 : f32 to vector<2x676xf32>
    %473 = arith.maximumf %471, %472 : vector<2x676xf32>
    %474 = arith.truncf %473 : vector<2x676xf32> to vector<2x676xbf16>
    %c5_156 = arith.constant 5 : index
    %c0_157 = arith.constant 0 : index
    %c0_158 = arith.constant 0 : index
    %475 = vector.load %arg4[%c5_156, %c0_157, %c0_158] : memref<16x676x128xbf16, #tpu.memory_space<vmem>>, vector<1x676x128xbf16>
    %476 = vector.shape_cast %475 : vector<1x676x128xbf16> to vector<676x128xbf16>
    %cst_159 = arith.constant dense<0.000000e+00> : vector<2x128xf32>
    %477 = tpu.matmul %474, %476, %cst_159 {dimension_numbers = #tpu.dot_dimension_numbers<[1], [0], [0], [1], [0, 0, 1, 1], [], []>} : vector<2x676xbf16>, vector<676x128xbf16>, vector<2x128xf32> -> vector<2x128xf32>
    %478 = arith.addf %402, %477 : vector<2x128xf32>
    %c6_i32_160 = arith.constant 6 : i32
    %479 = arith.addi %22, %c6_i32_160 : i32
    %cst_161 = arith.constant 0.000000e+00 : f32
    %480 = vector.broadcast %cst_161 : f32 to vector<2x676xf32>
    %c9_i32_162 = arith.constant 9 : i32
    %481 = arith.muli %479, %c9_i32_162 : i32
    %c0_i32_163 = arith.constant 0 : i32
    %482 = arith.addi %481, %c0_i32_163 : i32
    %483 = arith.index_cast %482 : i32 to index
    %484 = memref.load %arg1[%483] : memref<288xf32, #tpu.memory_space<smem>>
    %485 = vector.broadcast %484 : f32 to vector<2x676xf32>
    %486 = arith.mulf %485, %4 : vector<2x676xf32>
    %487 = arith.addf %480, %486 : vector<2x676xf32>
    %c9_i32_164 = arith.constant 9 : i32
    %488 = arith.muli %479, %c9_i32_164 : i32
    %c1_i32_165 = arith.constant 1 : i32
    %489 = arith.addi %488, %c1_i32_165 : i32
    %490 = arith.index_cast %489 : i32 to index
    %491 = memref.load %arg1[%490] : memref<288xf32, #tpu.memory_space<smem>>
    %492 = vector.broadcast %491 : f32 to vector<2x676xf32>
    %493 = arith.mulf %492, %6 : vector<2x676xf32>
    %494 = arith.addf %487, %493 : vector<2x676xf32>
    %c9_i32_166 = arith.constant 9 : i32
    %495 = arith.muli %479, %c9_i32_166 : i32
    %c2_i32_167 = arith.constant 2 : i32
    %496 = arith.addi %495, %c2_i32_167 : i32
    %497 = arith.index_cast %496 : i32 to index
    %498 = memref.load %arg1[%497] : memref<288xf32, #tpu.memory_space<smem>>
    %499 = vector.broadcast %498 : f32 to vector<2x676xf32>
    %500 = arith.mulf %499, %8 : vector<2x676xf32>
    %501 = arith.addf %494, %500 : vector<2x676xf32>
    %c9_i32_168 = arith.constant 9 : i32
    %502 = arith.muli %479, %c9_i32_168 : i32
    %c3_i32_169 = arith.constant 3 : i32
    %503 = arith.addi %502, %c3_i32_169 : i32
    %504 = arith.index_cast %503 : i32 to index
    %505 = memref.load %arg1[%504] : memref<288xf32, #tpu.memory_space<smem>>
    %506 = vector.broadcast %505 : f32 to vector<2x676xf32>
    %507 = arith.mulf %506, %10 : vector<2x676xf32>
    %508 = arith.addf %501, %507 : vector<2x676xf32>
    %c9_i32_170 = arith.constant 9 : i32
    %509 = arith.muli %479, %c9_i32_170 : i32
    %c4_i32_171 = arith.constant 4 : i32
    %510 = arith.addi %509, %c4_i32_171 : i32
    %511 = arith.index_cast %510 : i32 to index
    %512 = memref.load %arg1[%511] : memref<288xf32, #tpu.memory_space<smem>>
    %513 = vector.broadcast %512 : f32 to vector<2x676xf32>
    %514 = arith.mulf %513, %12 : vector<2x676xf32>
    %515 = arith.addf %508, %514 : vector<2x676xf32>
    %c9_i32_172 = arith.constant 9 : i32
    %516 = arith.muli %479, %c9_i32_172 : i32
    %c5_i32_173 = arith.constant 5 : i32
    %517 = arith.addi %516, %c5_i32_173 : i32
    %518 = arith.index_cast %517 : i32 to index
    %519 = memref.load %arg1[%518] : memref<288xf32, #tpu.memory_space<smem>>
    %520 = vector.broadcast %519 : f32 to vector<2x676xf32>
    %521 = arith.mulf %520, %14 : vector<2x676xf32>
    %522 = arith.addf %515, %521 : vector<2x676xf32>
    %c9_i32_174 = arith.constant 9 : i32
    %523 = arith.muli %479, %c9_i32_174 : i32
    %c6_i32_175 = arith.constant 6 : i32
    %524 = arith.addi %523, %c6_i32_175 : i32
    %525 = arith.index_cast %524 : i32 to index
    %526 = memref.load %arg1[%525] : memref<288xf32, #tpu.memory_space<smem>>
    %527 = vector.broadcast %526 : f32 to vector<2x676xf32>
    %528 = arith.mulf %527, %16 : vector<2x676xf32>
    %529 = arith.addf %522, %528 : vector<2x676xf32>
    %c9_i32_176 = arith.constant 9 : i32
    %530 = arith.muli %479, %c9_i32_176 : i32
    %c7_i32_177 = arith.constant 7 : i32
    %531 = arith.addi %530, %c7_i32_177 : i32
    %532 = arith.index_cast %531 : i32 to index
    %533 = memref.load %arg1[%532] : memref<288xf32, #tpu.memory_space<smem>>
    %534 = vector.broadcast %533 : f32 to vector<2x676xf32>
    %535 = arith.mulf %534, %18 : vector<2x676xf32>
    %536 = arith.addf %529, %535 : vector<2x676xf32>
    %c9_i32_178 = arith.constant 9 : i32
    %537 = arith.muli %479, %c9_i32_178 : i32
    %c8_i32_179 = arith.constant 8 : i32
    %538 = arith.addi %537, %c8_i32_179 : i32
    %539 = arith.index_cast %538 : i32 to index
    %540 = memref.load %arg1[%539] : memref<288xf32, #tpu.memory_space<smem>>
    %541 = vector.broadcast %540 : f32 to vector<2x676xf32>
    %542 = arith.mulf %541, %20 : vector<2x676xf32>
    %543 = arith.addf %536, %542 : vector<2x676xf32>
    %544 = arith.index_cast %479 : i32 to index
    %545 = memref.load %arg2[%544] : memref<32xf32, #tpu.memory_space<smem>>
    %546 = vector.broadcast %545 : f32 to vector<2x676xf32>
    %547 = arith.addf %543, %546 : vector<2x676xf32>
    %cst_180 = arith.constant 0.000000e+00 : f32
    %548 = vector.broadcast %cst_180 : f32 to vector<2x676xf32>
    %549 = arith.maximumf %547, %548 : vector<2x676xf32>
    %550 = arith.truncf %549 : vector<2x676xf32> to vector<2x676xbf16>
    %c6_181 = arith.constant 6 : index
    %c0_182 = arith.constant 0 : index
    %c0_183 = arith.constant 0 : index
    %551 = vector.load %arg4[%c6_181, %c0_182, %c0_183] : memref<16x676x128xbf16, #tpu.memory_space<vmem>>, vector<1x676x128xbf16>
    %552 = vector.shape_cast %551 : vector<1x676x128xbf16> to vector<676x128xbf16>
    %cst_184 = arith.constant dense<0.000000e+00> : vector<2x128xf32>
    %553 = tpu.matmul %550, %552, %cst_184 {dimension_numbers = #tpu.dot_dimension_numbers<[1], [0], [0], [1], [0, 0, 1, 1], [], []>} : vector<2x676xbf16>, vector<676x128xbf16>, vector<2x128xf32> -> vector<2x128xf32>
    %554 = arith.addf %478, %553 : vector<2x128xf32>
    %c7_i32_185 = arith.constant 7 : i32
    %555 = arith.addi %22, %c7_i32_185 : i32
    %cst_186 = arith.constant 0.000000e+00 : f32
    %556 = vector.broadcast %cst_186 : f32 to vector<2x676xf32>
    %c9_i32_187 = arith.constant 9 : i32
    %557 = arith.muli %555, %c9_i32_187 : i32
    %c0_i32_188 = arith.constant 0 : i32
    %558 = arith.addi %557, %c0_i32_188 : i32
    %559 = arith.index_cast %558 : i32 to index
    %560 = memref.load %arg1[%559] : memref<288xf32, #tpu.memory_space<smem>>
    %561 = vector.broadcast %560 : f32 to vector<2x676xf32>
    %562 = arith.mulf %561, %4 : vector<2x676xf32>
    %563 = arith.addf %556, %562 : vector<2x676xf32>
    %c9_i32_189 = arith.constant 9 : i32
    %564 = arith.muli %555, %c9_i32_189 : i32
    %c1_i32_190 = arith.constant 1 : i32
    %565 = arith.addi %564, %c1_i32_190 : i32
    %566 = arith.index_cast %565 : i32 to index
    %567 = memref.load %arg1[%566] : memref<288xf32, #tpu.memory_space<smem>>
    %568 = vector.broadcast %567 : f32 to vector<2x676xf32>
    %569 = arith.mulf %568, %6 : vector<2x676xf32>
    %570 = arith.addf %563, %569 : vector<2x676xf32>
    %c9_i32_191 = arith.constant 9 : i32
    %571 = arith.muli %555, %c9_i32_191 : i32
    %c2_i32_192 = arith.constant 2 : i32
    %572 = arith.addi %571, %c2_i32_192 : i32
    %573 = arith.index_cast %572 : i32 to index
    %574 = memref.load %arg1[%573] : memref<288xf32, #tpu.memory_space<smem>>
    %575 = vector.broadcast %574 : f32 to vector<2x676xf32>
    %576 = arith.mulf %575, %8 : vector<2x676xf32>
    %577 = arith.addf %570, %576 : vector<2x676xf32>
    %c9_i32_193 = arith.constant 9 : i32
    %578 = arith.muli %555, %c9_i32_193 : i32
    %c3_i32_194 = arith.constant 3 : i32
    %579 = arith.addi %578, %c3_i32_194 : i32
    %580 = arith.index_cast %579 : i32 to index
    %581 = memref.load %arg1[%580] : memref<288xf32, #tpu.memory_space<smem>>
    %582 = vector.broadcast %581 : f32 to vector<2x676xf32>
    %583 = arith.mulf %582, %10 : vector<2x676xf32>
    %584 = arith.addf %577, %583 : vector<2x676xf32>
    %c9_i32_195 = arith.constant 9 : i32
    %585 = arith.muli %555, %c9_i32_195 : i32
    %c4_i32_196 = arith.constant 4 : i32
    %586 = arith.addi %585, %c4_i32_196 : i32
    %587 = arith.index_cast %586 : i32 to index
    %588 = memref.load %arg1[%587] : memref<288xf32, #tpu.memory_space<smem>>
    %589 = vector.broadcast %588 : f32 to vector<2x676xf32>
    %590 = arith.mulf %589, %12 : vector<2x676xf32>
    %591 = arith.addf %584, %590 : vector<2x676xf32>
    %c9_i32_197 = arith.constant 9 : i32
    %592 = arith.muli %555, %c9_i32_197 : i32
    %c5_i32_198 = arith.constant 5 : i32
    %593 = arith.addi %592, %c5_i32_198 : i32
    %594 = arith.index_cast %593 : i32 to index
    %595 = memref.load %arg1[%594] : memref<288xf32, #tpu.memory_space<smem>>
    %596 = vector.broadcast %595 : f32 to vector<2x676xf32>
    %597 = arith.mulf %596, %14 : vector<2x676xf32>
    %598 = arith.addf %591, %597 : vector<2x676xf32>
    %c9_i32_199 = arith.constant 9 : i32
    %599 = arith.muli %555, %c9_i32_199 : i32
    %c6_i32_200 = arith.constant 6 : i32
    %600 = arith.addi %599, %c6_i32_200 : i32
    %601 = arith.index_cast %600 : i32 to index
    %602 = memref.load %arg1[%601] : memref<288xf32, #tpu.memory_space<smem>>
    %603 = vector.broadcast %602 : f32 to vector<2x676xf32>
    %604 = arith.mulf %603, %16 : vector<2x676xf32>
    %605 = arith.addf %598, %604 : vector<2x676xf32>
    %c9_i32_201 = arith.constant 9 : i32
    %606 = arith.muli %555, %c9_i32_201 : i32
    %c7_i32_202 = arith.constant 7 : i32
    %607 = arith.addi %606, %c7_i32_202 : i32
    %608 = arith.index_cast %607 : i32 to index
    %609 = memref.load %arg1[%608] : memref<288xf32, #tpu.memory_space<smem>>
    %610 = vector.broadcast %609 : f32 to vector<2x676xf32>
    %611 = arith.mulf %610, %18 : vector<2x676xf32>
    %612 = arith.addf %605, %611 : vector<2x676xf32>
    %c9_i32_203 = arith.constant 9 : i32
    %613 = arith.muli %555, %c9_i32_203 : i32
    %c8_i32_204 = arith.constant 8 : i32
    %614 = arith.addi %613, %c8_i32_204 : i32
    %615 = arith.index_cast %614 : i32 to index
    %616 = memref.load %arg1[%615] : memref<288xf32, #tpu.memory_space<smem>>
    %617 = vector.broadcast %616 : f32 to vector<2x676xf32>
    %618 = arith.mulf %617, %20 : vector<2x676xf32>
    %619 = arith.addf %612, %618 : vector<2x676xf32>
    %620 = arith.index_cast %555 : i32 to index
    %621 = memref.load %arg2[%620] : memref<32xf32, #tpu.memory_space<smem>>
    %622 = vector.broadcast %621 : f32 to vector<2x676xf32>
    %623 = arith.addf %619, %622 : vector<2x676xf32>
    %cst_205 = arith.constant 0.000000e+00 : f32
    %624 = vector.broadcast %cst_205 : f32 to vector<2x676xf32>
    %625 = arith.maximumf %623, %624 : vector<2x676xf32>
    %626 = arith.truncf %625 : vector<2x676xf32> to vector<2x676xbf16>
    %c7_206 = arith.constant 7 : index
    %c0_207 = arith.constant 0 : index
    %c0_208 = arith.constant 0 : index
    %627 = vector.load %arg4[%c7_206, %c0_207, %c0_208] : memref<16x676x128xbf16, #tpu.memory_space<vmem>>, vector<1x676x128xbf16>
    %628 = vector.shape_cast %627 : vector<1x676x128xbf16> to vector<676x128xbf16>
    %cst_209 = arith.constant dense<0.000000e+00> : vector<2x128xf32>
    %629 = tpu.matmul %626, %628, %cst_209 {dimension_numbers = #tpu.dot_dimension_numbers<[1], [0], [0], [1], [0, 0, 1, 1], [], []>} : vector<2x676xbf16>, vector<676x128xbf16>, vector<2x128xf32> -> vector<2x128xf32>
    %630 = arith.addf %554, %629 : vector<2x128xf32>
    %c8_i32_210 = arith.constant 8 : i32
    %631 = arith.addi %22, %c8_i32_210 : i32
    %cst_211 = arith.constant 0.000000e+00 : f32
    %632 = vector.broadcast %cst_211 : f32 to vector<2x676xf32>
    %c9_i32_212 = arith.constant 9 : i32
    %633 = arith.muli %631, %c9_i32_212 : i32
    %c0_i32_213 = arith.constant 0 : i32
    %634 = arith.addi %633, %c0_i32_213 : i32
    %635 = arith.index_cast %634 : i32 to index
    %636 = memref.load %arg1[%635] : memref<288xf32, #tpu.memory_space<smem>>
    %637 = vector.broadcast %636 : f32 to vector<2x676xf32>
    %638 = arith.mulf %637, %4 : vector<2x676xf32>
    %639 = arith.addf %632, %638 : vector<2x676xf32>
    %c9_i32_214 = arith.constant 9 : i32
    %640 = arith.muli %631, %c9_i32_214 : i32
    %c1_i32_215 = arith.constant 1 : i32
    %641 = arith.addi %640, %c1_i32_215 : i32
    %642 = arith.index_cast %641 : i32 to index
    %643 = memref.load %arg1[%642] : memref<288xf32, #tpu.memory_space<smem>>
    %644 = vector.broadcast %643 : f32 to vector<2x676xf32>
    %645 = arith.mulf %644, %6 : vector<2x676xf32>
    %646 = arith.addf %639, %645 : vector<2x676xf32>
    %c9_i32_216 = arith.constant 9 : i32
    %647 = arith.muli %631, %c9_i32_216 : i32
    %c2_i32_217 = arith.constant 2 : i32
    %648 = arith.addi %647, %c2_i32_217 : i32
    %649 = arith.index_cast %648 : i32 to index
    %650 = memref.load %arg1[%649] : memref<288xf32, #tpu.memory_space<smem>>
    %651 = vector.broadcast %650 : f32 to vector<2x676xf32>
    %652 = arith.mulf %651, %8 : vector<2x676xf32>
    %653 = arith.addf %646, %652 : vector<2x676xf32>
    %c9_i32_218 = arith.constant 9 : i32
    %654 = arith.muli %631, %c9_i32_218 : i32
    %c3_i32_219 = arith.constant 3 : i32
    %655 = arith.addi %654, %c3_i32_219 : i32
    %656 = arith.index_cast %655 : i32 to index
    %657 = memref.load %arg1[%656] : memref<288xf32, #tpu.memory_space<smem>>
    %658 = vector.broadcast %657 : f32 to vector<2x676xf32>
    %659 = arith.mulf %658, %10 : vector<2x676xf32>
    %660 = arith.addf %653, %659 : vector<2x676xf32>
    %c9_i32_220 = arith.constant 9 : i32
    %661 = arith.muli %631, %c9_i32_220 : i32
    %c4_i32_221 = arith.constant 4 : i32
    %662 = arith.addi %661, %c4_i32_221 : i32
    %663 = arith.index_cast %662 : i32 to index
    %664 = memref.load %arg1[%663] : memref<288xf32, #tpu.memory_space<smem>>
    %665 = vector.broadcast %664 : f32 to vector<2x676xf32>
    %666 = arith.mulf %665, %12 : vector<2x676xf32>
    %667 = arith.addf %660, %666 : vector<2x676xf32>
    %c9_i32_222 = arith.constant 9 : i32
    %668 = arith.muli %631, %c9_i32_222 : i32
    %c5_i32_223 = arith.constant 5 : i32
    %669 = arith.addi %668, %c5_i32_223 : i32
    %670 = arith.index_cast %669 : i32 to index
    %671 = memref.load %arg1[%670] : memref<288xf32, #tpu.memory_space<smem>>
    %672 = vector.broadcast %671 : f32 to vector<2x676xf32>
    %673 = arith.mulf %672, %14 : vector<2x676xf32>
    %674 = arith.addf %667, %673 : vector<2x676xf32>
    %c9_i32_224 = arith.constant 9 : i32
    %675 = arith.muli %631, %c9_i32_224 : i32
    %c6_i32_225 = arith.constant 6 : i32
    %676 = arith.addi %675, %c6_i32_225 : i32
    %677 = arith.index_cast %676 : i32 to index
    %678 = memref.load %arg1[%677] : memref<288xf32, #tpu.memory_space<smem>>
    %679 = vector.broadcast %678 : f32 to vector<2x676xf32>
    %680 = arith.mulf %679, %16 : vector<2x676xf32>
    %681 = arith.addf %674, %680 : vector<2x676xf32>
    %c9_i32_226 = arith.constant 9 : i32
    %682 = arith.muli %631, %c9_i32_226 : i32
    %c7_i32_227 = arith.constant 7 : i32
    %683 = arith.addi %682, %c7_i32_227 : i32
    %684 = arith.index_cast %683 : i32 to index
    %685 = memref.load %arg1[%684] : memref<288xf32, #tpu.memory_space<smem>>
    %686 = vector.broadcast %685 : f32 to vector<2x676xf32>
    %687 = arith.mulf %686, %18 : vector<2x676xf32>
    %688 = arith.addf %681, %687 : vector<2x676xf32>
    %c9_i32_228 = arith.constant 9 : i32
    %689 = arith.muli %631, %c9_i32_228 : i32
    %c8_i32_229 = arith.constant 8 : i32
    %690 = arith.addi %689, %c8_i32_229 : i32
    %691 = arith.index_cast %690 : i32 to index
    %692 = memref.load %arg1[%691] : memref<288xf32, #tpu.memory_space<smem>>
    %693 = vector.broadcast %692 : f32 to vector<2x676xf32>
    %694 = arith.mulf %693, %20 : vector<2x676xf32>
    %695 = arith.addf %688, %694 : vector<2x676xf32>
    %696 = arith.index_cast %631 : i32 to index
    %697 = memref.load %arg2[%696] : memref<32xf32, #tpu.memory_space<smem>>
    %698 = vector.broadcast %697 : f32 to vector<2x676xf32>
    %699 = arith.addf %695, %698 : vector<2x676xf32>
    %cst_230 = arith.constant 0.000000e+00 : f32
    %700 = vector.broadcast %cst_230 : f32 to vector<2x676xf32>
    %701 = arith.maximumf %699, %700 : vector<2x676xf32>
    %702 = arith.truncf %701 : vector<2x676xf32> to vector<2x676xbf16>
    %c8_231 = arith.constant 8 : index
    %c0_232 = arith.constant 0 : index
    %c0_233 = arith.constant 0 : index
    %703 = vector.load %arg4[%c8_231, %c0_232, %c0_233] : memref<16x676x128xbf16, #tpu.memory_space<vmem>>, vector<1x676x128xbf16>
    %704 = vector.shape_cast %703 : vector<1x676x128xbf16> to vector<676x128xbf16>
    %cst_234 = arith.constant dense<0.000000e+00> : vector<2x128xf32>
    %705 = tpu.matmul %702, %704, %cst_234 {dimension_numbers = #tpu.dot_dimension_numbers<[1], [0], [0], [1], [0, 0, 1, 1], [], []>} : vector<2x676xbf16>, vector<676x128xbf16>, vector<2x128xf32> -> vector<2x128xf32>
    %706 = arith.addf %630, %705 : vector<2x128xf32>
    %c9_i32_235 = arith.constant 9 : i32
    %707 = arith.addi %22, %c9_i32_235 : i32
    %cst_236 = arith.constant 0.000000e+00 : f32
    %708 = vector.broadcast %cst_236 : f32 to vector<2x676xf32>
    %c9_i32_237 = arith.constant 9 : i32
    %709 = arith.muli %707, %c9_i32_237 : i32
    %c0_i32_238 = arith.constant 0 : i32
    %710 = arith.addi %709, %c0_i32_238 : i32
    %711 = arith.index_cast %710 : i32 to index
    %712 = memref.load %arg1[%711] : memref<288xf32, #tpu.memory_space<smem>>
    %713 = vector.broadcast %712 : f32 to vector<2x676xf32>
    %714 = arith.mulf %713, %4 : vector<2x676xf32>
    %715 = arith.addf %708, %714 : vector<2x676xf32>
    %c9_i32_239 = arith.constant 9 : i32
    %716 = arith.muli %707, %c9_i32_239 : i32
    %c1_i32_240 = arith.constant 1 : i32
    %717 = arith.addi %716, %c1_i32_240 : i32
    %718 = arith.index_cast %717 : i32 to index
    %719 = memref.load %arg1[%718] : memref<288xf32, #tpu.memory_space<smem>>
    %720 = vector.broadcast %719 : f32 to vector<2x676xf32>
    %721 = arith.mulf %720, %6 : vector<2x676xf32>
    %722 = arith.addf %715, %721 : vector<2x676xf32>
    %c9_i32_241 = arith.constant 9 : i32
    %723 = arith.muli %707, %c9_i32_241 : i32
    %c2_i32_242 = arith.constant 2 : i32
    %724 = arith.addi %723, %c2_i32_242 : i32
    %725 = arith.index_cast %724 : i32 to index
    %726 = memref.load %arg1[%725] : memref<288xf32, #tpu.memory_space<smem>>
    %727 = vector.broadcast %726 : f32 to vector<2x676xf32>
    %728 = arith.mulf %727, %8 : vector<2x676xf32>
    %729 = arith.addf %722, %728 : vector<2x676xf32>
    %c9_i32_243 = arith.constant 9 : i32
    %730 = arith.muli %707, %c9_i32_243 : i32
    %c3_i32_244 = arith.constant 3 : i32
    %731 = arith.addi %730, %c3_i32_244 : i32
    %732 = arith.index_cast %731 : i32 to index
    %733 = memref.load %arg1[%732] : memref<288xf32, #tpu.memory_space<smem>>
    %734 = vector.broadcast %733 : f32 to vector<2x676xf32>
    %735 = arith.mulf %734, %10 : vector<2x676xf32>
    %736 = arith.addf %729, %735 : vector<2x676xf32>
    %c9_i32_245 = arith.constant 9 : i32
    %737 = arith.muli %707, %c9_i32_245 : i32
    %c4_i32_246 = arith.constant 4 : i32
    %738 = arith.addi %737, %c4_i32_246 : i32
    %739 = arith.index_cast %738 : i32 to index
    %740 = memref.load %arg1[%739] : memref<288xf32, #tpu.memory_space<smem>>
    %741 = vector.broadcast %740 : f32 to vector<2x676xf32>
    %742 = arith.mulf %741, %12 : vector<2x676xf32>
    %743 = arith.addf %736, %742 : vector<2x676xf32>
    %c9_i32_247 = arith.constant 9 : i32
    %744 = arith.muli %707, %c9_i32_247 : i32
    %c5_i32_248 = arith.constant 5 : i32
    %745 = arith.addi %744, %c5_i32_248 : i32
    %746 = arith.index_cast %745 : i32 to index
    %747 = memref.load %arg1[%746] : memref<288xf32, #tpu.memory_space<smem>>
    %748 = vector.broadcast %747 : f32 to vector<2x676xf32>
    %749 = arith.mulf %748, %14 : vector<2x676xf32>
    %750 = arith.addf %743, %749 : vector<2x676xf32>
    %c9_i32_249 = arith.constant 9 : i32
    %751 = arith.muli %707, %c9_i32_249 : i32
    %c6_i32_250 = arith.constant 6 : i32
    %752 = arith.addi %751, %c6_i32_250 : i32
    %753 = arith.index_cast %752 : i32 to index
    %754 = memref.load %arg1[%753] : memref<288xf32, #tpu.memory_space<smem>>
    %755 = vector.broadcast %754 : f32 to vector<2x676xf32>
    %756 = arith.mulf %755, %16 : vector<2x676xf32>
    %757 = arith.addf %750, %756 : vector<2x676xf32>
    %c9_i32_251 = arith.constant 9 : i32
    %758 = arith.muli %707, %c9_i32_251 : i32
    %c7_i32_252 = arith.constant 7 : i32
    %759 = arith.addi %758, %c7_i32_252 : i32
    %760 = arith.index_cast %759 : i32 to index
    %761 = memref.load %arg1[%760] : memref<288xf32, #tpu.memory_space<smem>>
    %762 = vector.broadcast %761 : f32 to vector<2x676xf32>
    %763 = arith.mulf %762, %18 : vector<2x676xf32>
    %764 = arith.addf %757, %763 : vector<2x676xf32>
    %c9_i32_253 = arith.constant 9 : i32
    %765 = arith.muli %707, %c9_i32_253 : i32
    %c8_i32_254 = arith.constant 8 : i32
    %766 = arith.addi %765, %c8_i32_254 : i32
    %767 = arith.index_cast %766 : i32 to index
    %768 = memref.load %arg1[%767] : memref<288xf32, #tpu.memory_space<smem>>
    %769 = vector.broadcast %768 : f32 to vector<2x676xf32>
    %770 = arith.mulf %769, %20 : vector<2x676xf32>
    %771 = arith.addf %764, %770 : vector<2x676xf32>
    %772 = arith.index_cast %707 : i32 to index
    %773 = memref.load %arg2[%772] : memref<32xf32, #tpu.memory_space<smem>>
    %774 = vector.broadcast %773 : f32 to vector<2x676xf32>
    %775 = arith.addf %771, %774 : vector<2x676xf32>
    %cst_255 = arith.constant 0.000000e+00 : f32
    %776 = vector.broadcast %cst_255 : f32 to vector<2x676xf32>
    %777 = arith.maximumf %775, %776 : vector<2x676xf32>
    %778 = arith.truncf %777 : vector<2x676xf32> to vector<2x676xbf16>
    %c9 = arith.constant 9 : index
    %c0_256 = arith.constant 0 : index
    %c0_257 = arith.constant 0 : index
    %779 = vector.load %arg4[%c9, %c0_256, %c0_257] : memref<16x676x128xbf16, #tpu.memory_space<vmem>>, vector<1x676x128xbf16>
    %780 = vector.shape_cast %779 : vector<1x676x128xbf16> to vector<676x128xbf16>
    %cst_258 = arith.constant dense<0.000000e+00> : vector<2x128xf32>
    %781 = tpu.matmul %778, %780, %cst_258 {dimension_numbers = #tpu.dot_dimension_numbers<[1], [0], [0], [1], [0, 0, 1, 1], [], []>} : vector<2x676xbf16>, vector<676x128xbf16>, vector<2x128xf32> -> vector<2x128xf32>
    %782 = arith.addf %706, %781 : vector<2x128xf32>
    %c10_i32 = arith.constant 10 : i32
    %783 = arith.addi %22, %c10_i32 : i32
    %cst_259 = arith.constant 0.000000e+00 : f32
    %784 = vector.broadcast %cst_259 : f32 to vector<2x676xf32>
    %c9_i32_260 = arith.constant 9 : i32
    %785 = arith.muli %783, %c9_i32_260 : i32
    %c0_i32_261 = arith.constant 0 : i32
    %786 = arith.addi %785, %c0_i32_261 : i32
    %787 = arith.index_cast %786 : i32 to index
    %788 = memref.load %arg1[%787] : memref<288xf32, #tpu.memory_space<smem>>
    %789 = vector.broadcast %788 : f32 to vector<2x676xf32>
    %790 = arith.mulf %789, %4 : vector<2x676xf32>
    %791 = arith.addf %784, %790 : vector<2x676xf32>
    %c9_i32_262 = arith.constant 9 : i32
    %792 = arith.muli %783, %c9_i32_262 : i32
    %c1_i32_263 = arith.constant 1 : i32
    %793 = arith.addi %792, %c1_i32_263 : i32
    %794 = arith.index_cast %793 : i32 to index
    %795 = memref.load %arg1[%794] : memref<288xf32, #tpu.memory_space<smem>>
    %796 = vector.broadcast %795 : f32 to vector<2x676xf32>
    %797 = arith.mulf %796, %6 : vector<2x676xf32>
    %798 = arith.addf %791, %797 : vector<2x676xf32>
    %c9_i32_264 = arith.constant 9 : i32
    %799 = arith.muli %783, %c9_i32_264 : i32
    %c2_i32_265 = arith.constant 2 : i32
    %800 = arith.addi %799, %c2_i32_265 : i32
    %801 = arith.index_cast %800 : i32 to index
    %802 = memref.load %arg1[%801] : memref<288xf32, #tpu.memory_space<smem>>
    %803 = vector.broadcast %802 : f32 to vector<2x676xf32>
    %804 = arith.mulf %803, %8 : vector<2x676xf32>
    %805 = arith.addf %798, %804 : vector<2x676xf32>
    %c9_i32_266 = arith.constant 9 : i32
    %806 = arith.muli %783, %c9_i32_266 : i32
    %c3_i32_267 = arith.constant 3 : i32
    %807 = arith.addi %806, %c3_i32_267 : i32
    %808 = arith.index_cast %807 : i32 to index
    %809 = memref.load %arg1[%808] : memref<288xf32, #tpu.memory_space<smem>>
    %810 = vector.broadcast %809 : f32 to vector<2x676xf32>
    %811 = arith.mulf %810, %10 : vector<2x676xf32>
    %812 = arith.addf %805, %811 : vector<2x676xf32>
    %c9_i32_268 = arith.constant 9 : i32
    %813 = arith.muli %783, %c9_i32_268 : i32
    %c4_i32_269 = arith.constant 4 : i32
    %814 = arith.addi %813, %c4_i32_269 : i32
    %815 = arith.index_cast %814 : i32 to index
    %816 = memref.load %arg1[%815] : memref<288xf32, #tpu.memory_space<smem>>
    %817 = vector.broadcast %816 : f32 to vector<2x676xf32>
    %818 = arith.mulf %817, %12 : vector<2x676xf32>
    %819 = arith.addf %812, %818 : vector<2x676xf32>
    %c9_i32_270 = arith.constant 9 : i32
    %820 = arith.muli %783, %c9_i32_270 : i32
    %c5_i32_271 = arith.constant 5 : i32
    %821 = arith.addi %820, %c5_i32_271 : i32
    %822 = arith.index_cast %821 : i32 to index
    %823 = memref.load %arg1[%822] : memref<288xf32, #tpu.memory_space<smem>>
    %824 = vector.broadcast %823 : f32 to vector<2x676xf32>
    %825 = arith.mulf %824, %14 : vector<2x676xf32>
    %826 = arith.addf %819, %825 : vector<2x676xf32>
    %c9_i32_272 = arith.constant 9 : i32
    %827 = arith.muli %783, %c9_i32_272 : i32
    %c6_i32_273 = arith.constant 6 : i32
    %828 = arith.addi %827, %c6_i32_273 : i32
    %829 = arith.index_cast %828 : i32 to index
    %830 = memref.load %arg1[%829] : memref<288xf32, #tpu.memory_space<smem>>
    %831 = vector.broadcast %830 : f32 to vector<2x676xf32>
    %832 = arith.mulf %831, %16 : vector<2x676xf32>
    %833 = arith.addf %826, %832 : vector<2x676xf32>
    %c9_i32_274 = arith.constant 9 : i32
    %834 = arith.muli %783, %c9_i32_274 : i32
    %c7_i32_275 = arith.constant 7 : i32
    %835 = arith.addi %834, %c7_i32_275 : i32
    %836 = arith.index_cast %835 : i32 to index
    %837 = memref.load %arg1[%836] : memref<288xf32, #tpu.memory_space<smem>>
    %838 = vector.broadcast %837 : f32 to vector<2x676xf32>
    %839 = arith.mulf %838, %18 : vector<2x676xf32>
    %840 = arith.addf %833, %839 : vector<2x676xf32>
    %c9_i32_276 = arith.constant 9 : i32
    %841 = arith.muli %783, %c9_i32_276 : i32
    %c8_i32_277 = arith.constant 8 : i32
    %842 = arith.addi %841, %c8_i32_277 : i32
    %843 = arith.index_cast %842 : i32 to index
    %844 = memref.load %arg1[%843] : memref<288xf32, #tpu.memory_space<smem>>
    %845 = vector.broadcast %844 : f32 to vector<2x676xf32>
    %846 = arith.mulf %845, %20 : vector<2x676xf32>
    %847 = arith.addf %840, %846 : vector<2x676xf32>
    %848 = arith.index_cast %783 : i32 to index
    %849 = memref.load %arg2[%848] : memref<32xf32, #tpu.memory_space<smem>>
    %850 = vector.broadcast %849 : f32 to vector<2x676xf32>
    %851 = arith.addf %847, %850 : vector<2x676xf32>
    %cst_278 = arith.constant 0.000000e+00 : f32
    %852 = vector.broadcast %cst_278 : f32 to vector<2x676xf32>
    %853 = arith.maximumf %851, %852 : vector<2x676xf32>
    %854 = arith.truncf %853 : vector<2x676xf32> to vector<2x676xbf16>
    %c10 = arith.constant 10 : index
    %c0_279 = arith.constant 0 : index
    %c0_280 = arith.constant 0 : index
    %855 = vector.load %arg4[%c10, %c0_279, %c0_280] : memref<16x676x128xbf16, #tpu.memory_space<vmem>>, vector<1x676x128xbf16>
    %856 = vector.shape_cast %855 : vector<1x676x128xbf16> to vector<676x128xbf16>
    %cst_281 = arith.constant dense<0.000000e+00> : vector<2x128xf32>
    %857 = tpu.matmul %854, %856, %cst_281 {dimension_numbers = #tpu.dot_dimension_numbers<[1], [0], [0], [1], [0, 0, 1, 1], [], []>} : vector<2x676xbf16>, vector<676x128xbf16>, vector<2x128xf32> -> vector<2x128xf32>
    %858 = arith.addf %782, %857 : vector<2x128xf32>
    %c11_i32 = arith.constant 11 : i32
    %859 = arith.addi %22, %c11_i32 : i32
    %cst_282 = arith.constant 0.000000e+00 : f32
    %860 = vector.broadcast %cst_282 : f32 to vector<2x676xf32>
    %c9_i32_283 = arith.constant 9 : i32
    %861 = arith.muli %859, %c9_i32_283 : i32
    %c0_i32_284 = arith.constant 0 : i32
    %862 = arith.addi %861, %c0_i32_284 : i32
    %863 = arith.index_cast %862 : i32 to index
    %864 = memref.load %arg1[%863] : memref<288xf32, #tpu.memory_space<smem>>
    %865 = vector.broadcast %864 : f32 to vector<2x676xf32>
    %866 = arith.mulf %865, %4 : vector<2x676xf32>
    %867 = arith.addf %860, %866 : vector<2x676xf32>
    %c9_i32_285 = arith.constant 9 : i32
    %868 = arith.muli %859, %c9_i32_285 : i32
    %c1_i32_286 = arith.constant 1 : i32
    %869 = arith.addi %868, %c1_i32_286 : i32
    %870 = arith.index_cast %869 : i32 to index
    %871 = memref.load %arg1[%870] : memref<288xf32, #tpu.memory_space<smem>>
    %872 = vector.broadcast %871 : f32 to vector<2x676xf32>
    %873 = arith.mulf %872, %6 : vector<2x676xf32>
    %874 = arith.addf %867, %873 : vector<2x676xf32>
    %c9_i32_287 = arith.constant 9 : i32
    %875 = arith.muli %859, %c9_i32_287 : i32
    %c2_i32_288 = arith.constant 2 : i32
    %876 = arith.addi %875, %c2_i32_288 : i32
    %877 = arith.index_cast %876 : i32 to index
    %878 = memref.load %arg1[%877] : memref<288xf32, #tpu.memory_space<smem>>
    %879 = vector.broadcast %878 : f32 to vector<2x676xf32>
    %880 = arith.mulf %879, %8 : vector<2x676xf32>
    %881 = arith.addf %874, %880 : vector<2x676xf32>
    %c9_i32_289 = arith.constant 9 : i32
    %882 = arith.muli %859, %c9_i32_289 : i32
    %c3_i32_290 = arith.constant 3 : i32
    %883 = arith.addi %882, %c3_i32_290 : i32
    %884 = arith.index_cast %883 : i32 to index
    %885 = memref.load %arg1[%884] : memref<288xf32, #tpu.memory_space<smem>>
    %886 = vector.broadcast %885 : f32 to vector<2x676xf32>
    %887 = arith.mulf %886, %10 : vector<2x676xf32>
    %888 = arith.addf %881, %887 : vector<2x676xf32>
    %c9_i32_291 = arith.constant 9 : i32
    %889 = arith.muli %859, %c9_i32_291 : i32
    %c4_i32_292 = arith.constant 4 : i32
    %890 = arith.addi %889, %c4_i32_292 : i32
    %891 = arith.index_cast %890 : i32 to index
    %892 = memref.load %arg1[%891] : memref<288xf32, #tpu.memory_space<smem>>
    %893 = vector.broadcast %892 : f32 to vector<2x676xf32>
    %894 = arith.mulf %893, %12 : vector<2x676xf32>
    %895 = arith.addf %888, %894 : vector<2x676xf32>
    %c9_i32_293 = arith.constant 9 : i32
    %896 = arith.muli %859, %c9_i32_293 : i32
    %c5_i32_294 = arith.constant 5 : i32
    %897 = arith.addi %896, %c5_i32_294 : i32
    %898 = arith.index_cast %897 : i32 to index
    %899 = memref.load %arg1[%898] : memref<288xf32, #tpu.memory_space<smem>>
    %900 = vector.broadcast %899 : f32 to vector<2x676xf32>
    %901 = arith.mulf %900, %14 : vector<2x676xf32>
    %902 = arith.addf %895, %901 : vector<2x676xf32>
    %c9_i32_295 = arith.constant 9 : i32
    %903 = arith.muli %859, %c9_i32_295 : i32
    %c6_i32_296 = arith.constant 6 : i32
    %904 = arith.addi %903, %c6_i32_296 : i32
    %905 = arith.index_cast %904 : i32 to index
    %906 = memref.load %arg1[%905] : memref<288xf32, #tpu.memory_space<smem>>
    %907 = vector.broadcast %906 : f32 to vector<2x676xf32>
    %908 = arith.mulf %907, %16 : vector<2x676xf32>
    %909 = arith.addf %902, %908 : vector<2x676xf32>
    %c9_i32_297 = arith.constant 9 : i32
    %910 = arith.muli %859, %c9_i32_297 : i32
    %c7_i32_298 = arith.constant 7 : i32
    %911 = arith.addi %910, %c7_i32_298 : i32
    %912 = arith.index_cast %911 : i32 to index
    %913 = memref.load %arg1[%912] : memref<288xf32, #tpu.memory_space<smem>>
    %914 = vector.broadcast %913 : f32 to vector<2x676xf32>
    %915 = arith.mulf %914, %18 : vector<2x676xf32>
    %916 = arith.addf %909, %915 : vector<2x676xf32>
    %c9_i32_299 = arith.constant 9 : i32
    %917 = arith.muli %859, %c9_i32_299 : i32
    %c8_i32_300 = arith.constant 8 : i32
    %918 = arith.addi %917, %c8_i32_300 : i32
    %919 = arith.index_cast %918 : i32 to index
    %920 = memref.load %arg1[%919] : memref<288xf32, #tpu.memory_space<smem>>
    %921 = vector.broadcast %920 : f32 to vector<2x676xf32>
    %922 = arith.mulf %921, %20 : vector<2x676xf32>
    %923 = arith.addf %916, %922 : vector<2x676xf32>
    %924 = arith.index_cast %859 : i32 to index
    %925 = memref.load %arg2[%924] : memref<32xf32, #tpu.memory_space<smem>>
    %926 = vector.broadcast %925 : f32 to vector<2x676xf32>
    %927 = arith.addf %923, %926 : vector<2x676xf32>
    %cst_301 = arith.constant 0.000000e+00 : f32
    %928 = vector.broadcast %cst_301 : f32 to vector<2x676xf32>
    %929 = arith.maximumf %927, %928 : vector<2x676xf32>
    %930 = arith.truncf %929 : vector<2x676xf32> to vector<2x676xbf16>
    %c11 = arith.constant 11 : index
    %c0_302 = arith.constant 0 : index
    %c0_303 = arith.constant 0 : index
    %931 = vector.load %arg4[%c11, %c0_302, %c0_303] : memref<16x676x128xbf16, #tpu.memory_space<vmem>>, vector<1x676x128xbf16>
    %932 = vector.shape_cast %931 : vector<1x676x128xbf16> to vector<676x128xbf16>
    %cst_304 = arith.constant dense<0.000000e+00> : vector<2x128xf32>
    %933 = tpu.matmul %930, %932, %cst_304 {dimension_numbers = #tpu.dot_dimension_numbers<[1], [0], [0], [1], [0, 0, 1, 1], [], []>} : vector<2x676xbf16>, vector<676x128xbf16>, vector<2x128xf32> -> vector<2x128xf32>
    %934 = arith.addf %858, %933 : vector<2x128xf32>
    %c12_i32 = arith.constant 12 : i32
    %935 = arith.addi %22, %c12_i32 : i32
    %cst_305 = arith.constant 0.000000e+00 : f32
    %936 = vector.broadcast %cst_305 : f32 to vector<2x676xf32>
    %c9_i32_306 = arith.constant 9 : i32
    %937 = arith.muli %935, %c9_i32_306 : i32
    %c0_i32_307 = arith.constant 0 : i32
    %938 = arith.addi %937, %c0_i32_307 : i32
    %939 = arith.index_cast %938 : i32 to index
    %940 = memref.load %arg1[%939] : memref<288xf32, #tpu.memory_space<smem>>
    %941 = vector.broadcast %940 : f32 to vector<2x676xf32>
    %942 = arith.mulf %941, %4 : vector<2x676xf32>
    %943 = arith.addf %936, %942 : vector<2x676xf32>
    %c9_i32_308 = arith.constant 9 : i32
    %944 = arith.muli %935, %c9_i32_308 : i32
    %c1_i32_309 = arith.constant 1 : i32
    %945 = arith.addi %944, %c1_i32_309 : i32
    %946 = arith.index_cast %945 : i32 to index
    %947 = memref.load %arg1[%946] : memref<288xf32, #tpu.memory_space<smem>>
    %948 = vector.broadcast %947 : f32 to vector<2x676xf32>
    %949 = arith.mulf %948, %6 : vector<2x676xf32>
    %950 = arith.addf %943, %949 : vector<2x676xf32>
    %c9_i32_310 = arith.constant 9 : i32
    %951 = arith.muli %935, %c9_i32_310 : i32
    %c2_i32_311 = arith.constant 2 : i32
    %952 = arith.addi %951, %c2_i32_311 : i32
    %953 = arith.index_cast %952 : i32 to index
    %954 = memref.load %arg1[%953] : memref<288xf32, #tpu.memory_space<smem>>
    %955 = vector.broadcast %954 : f32 to vector<2x676xf32>
    %956 = arith.mulf %955, %8 : vector<2x676xf32>
    %957 = arith.addf %950, %956 : vector<2x676xf32>
    %c9_i32_312 = arith.constant 9 : i32
    %958 = arith.muli %935, %c9_i32_312 : i32
    %c3_i32_313 = arith.constant 3 : i32
    %959 = arith.addi %958, %c3_i32_313 : i32
    %960 = arith.index_cast %959 : i32 to index
    %961 = memref.load %arg1[%960] : memref<288xf32, #tpu.memory_space<smem>>
    %962 = vector.broadcast %961 : f32 to vector<2x676xf32>
    %963 = arith.mulf %962, %10 : vector<2x676xf32>
    %964 = arith.addf %957, %963 : vector<2x676xf32>
    %c9_i32_314 = arith.constant 9 : i32
    %965 = arith.muli %935, %c9_i32_314 : i32
    %c4_i32_315 = arith.constant 4 : i32
    %966 = arith.addi %965, %c4_i32_315 : i32
    %967 = arith.index_cast %966 : i32 to index
    %968 = memref.load %arg1[%967] : memref<288xf32, #tpu.memory_space<smem>>
    %969 = vector.broadcast %968 : f32 to vector<2x676xf32>
    %970 = arith.mulf %969, %12 : vector<2x676xf32>
    %971 = arith.addf %964, %970 : vector<2x676xf32>
    %c9_i32_316 = arith.constant 9 : i32
    %972 = arith.muli %935, %c9_i32_316 : i32
    %c5_i32_317 = arith.constant 5 : i32
    %973 = arith.addi %972, %c5_i32_317 : i32
    %974 = arith.index_cast %973 : i32 to index
    %975 = memref.load %arg1[%974] : memref<288xf32, #tpu.memory_space<smem>>
    %976 = vector.broadcast %975 : f32 to vector<2x676xf32>
    %977 = arith.mulf %976, %14 : vector<2x676xf32>
    %978 = arith.addf %971, %977 : vector<2x676xf32>
    %c9_i32_318 = arith.constant 9 : i32
    %979 = arith.muli %935, %c9_i32_318 : i32
    %c6_i32_319 = arith.constant 6 : i32
    %980 = arith.addi %979, %c6_i32_319 : i32
    %981 = arith.index_cast %980 : i32 to index
    %982 = memref.load %arg1[%981] : memref<288xf32, #tpu.memory_space<smem>>
    %983 = vector.broadcast %982 : f32 to vector<2x676xf32>
    %984 = arith.mulf %983, %16 : vector<2x676xf32>
    %985 = arith.addf %978, %984 : vector<2x676xf32>
    %c9_i32_320 = arith.constant 9 : i32
    %986 = arith.muli %935, %c9_i32_320 : i32
    %c7_i32_321 = arith.constant 7 : i32
    %987 = arith.addi %986, %c7_i32_321 : i32
    %988 = arith.index_cast %987 : i32 to index
    %989 = memref.load %arg1[%988] : memref<288xf32, #tpu.memory_space<smem>>
    %990 = vector.broadcast %989 : f32 to vector<2x676xf32>
    %991 = arith.mulf %990, %18 : vector<2x676xf32>
    %992 = arith.addf %985, %991 : vector<2x676xf32>
    %c9_i32_322 = arith.constant 9 : i32
    %993 = arith.muli %935, %c9_i32_322 : i32
    %c8_i32_323 = arith.constant 8 : i32
    %994 = arith.addi %993, %c8_i32_323 : i32
    %995 = arith.index_cast %994 : i32 to index
    %996 = memref.load %arg1[%995] : memref<288xf32, #tpu.memory_space<smem>>
    %997 = vector.broadcast %996 : f32 to vector<2x676xf32>
    %998 = arith.mulf %997, %20 : vector<2x676xf32>
    %999 = arith.addf %992, %998 : vector<2x676xf32>
    %1000 = arith.index_cast %935 : i32 to index
    %1001 = memref.load %arg2[%1000] : memref<32xf32, #tpu.memory_space<smem>>
    %1002 = vector.broadcast %1001 : f32 to vector<2x676xf32>
    %1003 = arith.addf %999, %1002 : vector<2x676xf32>
    %cst_324 = arith.constant 0.000000e+00 : f32
    %1004 = vector.broadcast %cst_324 : f32 to vector<2x676xf32>
    %1005 = arith.maximumf %1003, %1004 : vector<2x676xf32>
    %1006 = arith.truncf %1005 : vector<2x676xf32> to vector<2x676xbf16>
    %c12 = arith.constant 12 : index
    %c0_325 = arith.constant 0 : index
    %c0_326 = arith.constant 0 : index
    %1007 = vector.load %arg4[%c12, %c0_325, %c0_326] : memref<16x676x128xbf16, #tpu.memory_space<vmem>>, vector<1x676x128xbf16>
    %1008 = vector.shape_cast %1007 : vector<1x676x128xbf16> to vector<676x128xbf16>
    %cst_327 = arith.constant dense<0.000000e+00> : vector<2x128xf32>
    %1009 = tpu.matmul %1006, %1008, %cst_327 {dimension_numbers = #tpu.dot_dimension_numbers<[1], [0], [0], [1], [0, 0, 1, 1], [], []>} : vector<2x676xbf16>, vector<676x128xbf16>, vector<2x128xf32> -> vector<2x128xf32>
    %1010 = arith.addf %934, %1009 : vector<2x128xf32>
    %c13_i32 = arith.constant 13 : i32
    %1011 = arith.addi %22, %c13_i32 : i32
    %cst_328 = arith.constant 0.000000e+00 : f32
    %1012 = vector.broadcast %cst_328 : f32 to vector<2x676xf32>
    %c9_i32_329 = arith.constant 9 : i32
    %1013 = arith.muli %1011, %c9_i32_329 : i32
    %c0_i32_330 = arith.constant 0 : i32
    %1014 = arith.addi %1013, %c0_i32_330 : i32
    %1015 = arith.index_cast %1014 : i32 to index
    %1016 = memref.load %arg1[%1015] : memref<288xf32, #tpu.memory_space<smem>>
    %1017 = vector.broadcast %1016 : f32 to vector<2x676xf32>
    %1018 = arith.mulf %1017, %4 : vector<2x676xf32>
    %1019 = arith.addf %1012, %1018 : vector<2x676xf32>
    %c9_i32_331 = arith.constant 9 : i32
    %1020 = arith.muli %1011, %c9_i32_331 : i32
    %c1_i32_332 = arith.constant 1 : i32
    %1021 = arith.addi %1020, %c1_i32_332 : i32
    %1022 = arith.index_cast %1021 : i32 to index
    %1023 = memref.load %arg1[%1022] : memref<288xf32, #tpu.memory_space<smem>>
    %1024 = vector.broadcast %1023 : f32 to vector<2x676xf32>
    %1025 = arith.mulf %1024, %6 : vector<2x676xf32>
    %1026 = arith.addf %1019, %1025 : vector<2x676xf32>
    %c9_i32_333 = arith.constant 9 : i32
    %1027 = arith.muli %1011, %c9_i32_333 : i32
    %c2_i32_334 = arith.constant 2 : i32
    %1028 = arith.addi %1027, %c2_i32_334 : i32
    %1029 = arith.index_cast %1028 : i32 to index
    %1030 = memref.load %arg1[%1029] : memref<288xf32, #tpu.memory_space<smem>>
    %1031 = vector.broadcast %1030 : f32 to vector<2x676xf32>
    %1032 = arith.mulf %1031, %8 : vector<2x676xf32>
    %1033 = arith.addf %1026, %1032 : vector<2x676xf32>
    %c9_i32_335 = arith.constant 9 : i32
    %1034 = arith.muli %1011, %c9_i32_335 : i32
    %c3_i32_336 = arith.constant 3 : i32
    %1035 = arith.addi %1034, %c3_i32_336 : i32
    %1036 = arith.index_cast %1035 : i32 to index
    %1037 = memref.load %arg1[%1036] : memref<288xf32, #tpu.memory_space<smem>>
    %1038 = vector.broadcast %1037 : f32 to vector<2x676xf32>
    %1039 = arith.mulf %1038, %10 : vector<2x676xf32>
    %1040 = arith.addf %1033, %1039 : vector<2x676xf32>
    %c9_i32_337 = arith.constant 9 : i32
    %1041 = arith.muli %1011, %c9_i32_337 : i32
    %c4_i32_338 = arith.constant 4 : i32
    %1042 = arith.addi %1041, %c4_i32_338 : i32
    %1043 = arith.index_cast %1042 : i32 to index
    %1044 = memref.load %arg1[%1043] : memref<288xf32, #tpu.memory_space<smem>>
    %1045 = vector.broadcast %1044 : f32 to vector<2x676xf32>
    %1046 = arith.mulf %1045, %12 : vector<2x676xf32>
    %1047 = arith.addf %1040, %1046 : vector<2x676xf32>
    %c9_i32_339 = arith.constant 9 : i32
    %1048 = arith.muli %1011, %c9_i32_339 : i32
    %c5_i32_340 = arith.constant 5 : i32
    %1049 = arith.addi %1048, %c5_i32_340 : i32
    %1050 = arith.index_cast %1049 : i32 to index
    %1051 = memref.load %arg1[%1050] : memref<288xf32, #tpu.memory_space<smem>>
    %1052 = vector.broadcast %1051 : f32 to vector<2x676xf32>
    %1053 = arith.mulf %1052, %14 : vector<2x676xf32>
    %1054 = arith.addf %1047, %1053 : vector<2x676xf32>
    %c9_i32_341 = arith.constant 9 : i32
    %1055 = arith.muli %1011, %c9_i32_341 : i32
    %c6_i32_342 = arith.constant 6 : i32
    %1056 = arith.addi %1055, %c6_i32_342 : i32
    %1057 = arith.index_cast %1056 : i32 to index
    %1058 = memref.load %arg1[%1057] : memref<288xf32, #tpu.memory_space<smem>>
    %1059 = vector.broadcast %1058 : f32 to vector<2x676xf32>
    %1060 = arith.mulf %1059, %16 : vector<2x676xf32>
    %1061 = arith.addf %1054, %1060 : vector<2x676xf32>
    %c9_i32_343 = arith.constant 9 : i32
    %1062 = arith.muli %1011, %c9_i32_343 : i32
    %c7_i32_344 = arith.constant 7 : i32
    %1063 = arith.addi %1062, %c7_i32_344 : i32
    %1064 = arith.index_cast %1063 : i32 to index
    %1065 = memref.load %arg1[%1064] : memref<288xf32, #tpu.memory_space<smem>>
    %1066 = vector.broadcast %1065 : f32 to vector<2x676xf32>
    %1067 = arith.mulf %1066, %18 : vector<2x676xf32>
    %1068 = arith.addf %1061, %1067 : vector<2x676xf32>
    %c9_i32_345 = arith.constant 9 : i32
    %1069 = arith.muli %1011, %c9_i32_345 : i32
    %c8_i32_346 = arith.constant 8 : i32
    %1070 = arith.addi %1069, %c8_i32_346 : i32
    %1071 = arith.index_cast %1070 : i32 to index
    %1072 = memref.load %arg1[%1071] : memref<288xf32, #tpu.memory_space<smem>>
    %1073 = vector.broadcast %1072 : f32 to vector<2x676xf32>
    %1074 = arith.mulf %1073, %20 : vector<2x676xf32>
    %1075 = arith.addf %1068, %1074 : vector<2x676xf32>
    %1076 = arith.index_cast %1011 : i32 to index
    %1077 = memref.load %arg2[%1076] : memref<32xf32, #tpu.memory_space<smem>>
    %1078 = vector.broadcast %1077 : f32 to vector<2x676xf32>
    %1079 = arith.addf %1075, %1078 : vector<2x676xf32>
    %cst_347 = arith.constant 0.000000e+00 : f32
    %1080 = vector.broadcast %cst_347 : f32 to vector<2x676xf32>
    %1081 = arith.maximumf %1079, %1080 : vector<2x676xf32>
    %1082 = arith.truncf %1081 : vector<2x676xf32> to vector<2x676xbf16>
    %c13 = arith.constant 13 : index
    %c0_348 = arith.constant 0 : index
    %c0_349 = arith.constant 0 : index
    %1083 = vector.load %arg4[%c13, %c0_348, %c0_349] : memref<16x676x128xbf16, #tpu.memory_space<vmem>>, vector<1x676x128xbf16>
    %1084 = vector.shape_cast %1083 : vector<1x676x128xbf16> to vector<676x128xbf16>
    %cst_350 = arith.constant dense<0.000000e+00> : vector<2x128xf32>
    %1085 = tpu.matmul %1082, %1084, %cst_350 {dimension_numbers = #tpu.dot_dimension_numbers<[1], [0], [0], [1], [0, 0, 1, 1], [], []>} : vector<2x676xbf16>, vector<676x128xbf16>, vector<2x128xf32> -> vector<2x128xf32>
    %1086 = arith.addf %1010, %1085 : vector<2x128xf32>
    %c14_i32 = arith.constant 14 : i32
    %1087 = arith.addi %22, %c14_i32 : i32
    %cst_351 = arith.constant 0.000000e+00 : f32
    %1088 = vector.broadcast %cst_351 : f32 to vector<2x676xf32>
    %c9_i32_352 = arith.constant 9 : i32
    %1089 = arith.muli %1087, %c9_i32_352 : i32
    %c0_i32_353 = arith.constant 0 : i32
    %1090 = arith.addi %1089, %c0_i32_353 : i32
    %1091 = arith.index_cast %1090 : i32 to index
    %1092 = memref.load %arg1[%1091] : memref<288xf32, #tpu.memory_space<smem>>
    %1093 = vector.broadcast %1092 : f32 to vector<2x676xf32>
    %1094 = arith.mulf %1093, %4 : vector<2x676xf32>
    %1095 = arith.addf %1088, %1094 : vector<2x676xf32>
    %c9_i32_354 = arith.constant 9 : i32
    %1096 = arith.muli %1087, %c9_i32_354 : i32
    %c1_i32_355 = arith.constant 1 : i32
    %1097 = arith.addi %1096, %c1_i32_355 : i32
    %1098 = arith.index_cast %1097 : i32 to index
    %1099 = memref.load %arg1[%1098] : memref<288xf32, #tpu.memory_space<smem>>
    %1100 = vector.broadcast %1099 : f32 to vector<2x676xf32>
    %1101 = arith.mulf %1100, %6 : vector<2x676xf32>
    %1102 = arith.addf %1095, %1101 : vector<2x676xf32>
    %c9_i32_356 = arith.constant 9 : i32
    %1103 = arith.muli %1087, %c9_i32_356 : i32
    %c2_i32_357 = arith.constant 2 : i32
    %1104 = arith.addi %1103, %c2_i32_357 : i32
    %1105 = arith.index_cast %1104 : i32 to index
    %1106 = memref.load %arg1[%1105] : memref<288xf32, #tpu.memory_space<smem>>
    %1107 = vector.broadcast %1106 : f32 to vector<2x676xf32>
    %1108 = arith.mulf %1107, %8 : vector<2x676xf32>
    %1109 = arith.addf %1102, %1108 : vector<2x676xf32>
    %c9_i32_358 = arith.constant 9 : i32
    %1110 = arith.muli %1087, %c9_i32_358 : i32
    %c3_i32_359 = arith.constant 3 : i32
    %1111 = arith.addi %1110, %c3_i32_359 : i32
    %1112 = arith.index_cast %1111 : i32 to index
    %1113 = memref.load %arg1[%1112] : memref<288xf32, #tpu.memory_space<smem>>
    %1114 = vector.broadcast %1113 : f32 to vector<2x676xf32>
    %1115 = arith.mulf %1114, %10 : vector<2x676xf32>
    %1116 = arith.addf %1109, %1115 : vector<2x676xf32>
    %c9_i32_360 = arith.constant 9 : i32
    %1117 = arith.muli %1087, %c9_i32_360 : i32
    %c4_i32_361 = arith.constant 4 : i32
    %1118 = arith.addi %1117, %c4_i32_361 : i32
    %1119 = arith.index_cast %1118 : i32 to index
    %1120 = memref.load %arg1[%1119] : memref<288xf32, #tpu.memory_space<smem>>
    %1121 = vector.broadcast %1120 : f32 to vector<2x676xf32>
    %1122 = arith.mulf %1121, %12 : vector<2x676xf32>
    %1123 = arith.addf %1116, %1122 : vector<2x676xf32>
    %c9_i32_362 = arith.constant 9 : i32
    %1124 = arith.muli %1087, %c9_i32_362 : i32
    %c5_i32_363 = arith.constant 5 : i32
    %1125 = arith.addi %1124, %c5_i32_363 : i32
    %1126 = arith.index_cast %1125 : i32 to index
    %1127 = memref.load %arg1[%1126] : memref<288xf32, #tpu.memory_space<smem>>
    %1128 = vector.broadcast %1127 : f32 to vector<2x676xf32>
    %1129 = arith.mulf %1128, %14 : vector<2x676xf32>
    %1130 = arith.addf %1123, %1129 : vector<2x676xf32>
    %c9_i32_364 = arith.constant 9 : i32
    %1131 = arith.muli %1087, %c9_i32_364 : i32
    %c6_i32_365 = arith.constant 6 : i32
    %1132 = arith.addi %1131, %c6_i32_365 : i32
    %1133 = arith.index_cast %1132 : i32 to index
    %1134 = memref.load %arg1[%1133] : memref<288xf32, #tpu.memory_space<smem>>
    %1135 = vector.broadcast %1134 : f32 to vector<2x676xf32>
    %1136 = arith.mulf %1135, %16 : vector<2x676xf32>
    %1137 = arith.addf %1130, %1136 : vector<2x676xf32>
    %c9_i32_366 = arith.constant 9 : i32
    %1138 = arith.muli %1087, %c9_i32_366 : i32
    %c7_i32_367 = arith.constant 7 : i32
    %1139 = arith.addi %1138, %c7_i32_367 : i32
    %1140 = arith.index_cast %1139 : i32 to index
    %1141 = memref.load %arg1[%1140] : memref<288xf32, #tpu.memory_space<smem>>
    %1142 = vector.broadcast %1141 : f32 to vector<2x676xf32>
    %1143 = arith.mulf %1142, %18 : vector<2x676xf32>
    %1144 = arith.addf %1137, %1143 : vector<2x676xf32>
    %c9_i32_368 = arith.constant 9 : i32
    %1145 = arith.muli %1087, %c9_i32_368 : i32
    %c8_i32_369 = arith.constant 8 : i32
    %1146 = arith.addi %1145, %c8_i32_369 : i32
    %1147 = arith.index_cast %1146 : i32 to index
    %1148 = memref.load %arg1[%1147] : memref<288xf32, #tpu.memory_space<smem>>
    %1149 = vector.broadcast %1148 : f32 to vector<2x676xf32>
    %1150 = arith.mulf %1149, %20 : vector<2x676xf32>
    %1151 = arith.addf %1144, %1150 : vector<2x676xf32>
    %1152 = arith.index_cast %1087 : i32 to index
    %1153 = memref.load %arg2[%1152] : memref<32xf32, #tpu.memory_space<smem>>
    %1154 = vector.broadcast %1153 : f32 to vector<2x676xf32>
    %1155 = arith.addf %1151, %1154 : vector<2x676xf32>
    %cst_370 = arith.constant 0.000000e+00 : f32
    %1156 = vector.broadcast %cst_370 : f32 to vector<2x676xf32>
    %1157 = arith.maximumf %1155, %1156 : vector<2x676xf32>
    %1158 = arith.truncf %1157 : vector<2x676xf32> to vector<2x676xbf16>
    %c14 = arith.constant 14 : index
    %c0_371 = arith.constant 0 : index
    %c0_372 = arith.constant 0 : index
    %1159 = vector.load %arg4[%c14, %c0_371, %c0_372] : memref<16x676x128xbf16, #tpu.memory_space<vmem>>, vector<1x676x128xbf16>
    %1160 = vector.shape_cast %1159 : vector<1x676x128xbf16> to vector<676x128xbf16>
    %cst_373 = arith.constant dense<0.000000e+00> : vector<2x128xf32>
    %1161 = tpu.matmul %1158, %1160, %cst_373 {dimension_numbers = #tpu.dot_dimension_numbers<[1], [0], [0], [1], [0, 0, 1, 1], [], []>} : vector<2x676xbf16>, vector<676x128xbf16>, vector<2x128xf32> -> vector<2x128xf32>
    %1162 = arith.addf %1086, %1161 : vector<2x128xf32>
    %c15_i32 = arith.constant 15 : i32
    %1163 = arith.addi %22, %c15_i32 : i32
    %cst_374 = arith.constant 0.000000e+00 : f32
    %1164 = vector.broadcast %cst_374 : f32 to vector<2x676xf32>
    %c9_i32_375 = arith.constant 9 : i32
    %1165 = arith.muli %1163, %c9_i32_375 : i32
    %c0_i32_376 = arith.constant 0 : i32
    %1166 = arith.addi %1165, %c0_i32_376 : i32
    %1167 = arith.index_cast %1166 : i32 to index
    %1168 = memref.load %arg1[%1167] : memref<288xf32, #tpu.memory_space<smem>>
    %1169 = vector.broadcast %1168 : f32 to vector<2x676xf32>
    %1170 = arith.mulf %1169, %4 : vector<2x676xf32>
    %1171 = arith.addf %1164, %1170 : vector<2x676xf32>
    %c9_i32_377 = arith.constant 9 : i32
    %1172 = arith.muli %1163, %c9_i32_377 : i32
    %c1_i32_378 = arith.constant 1 : i32
    %1173 = arith.addi %1172, %c1_i32_378 : i32
    %1174 = arith.index_cast %1173 : i32 to index
    %1175 = memref.load %arg1[%1174] : memref<288xf32, #tpu.memory_space<smem>>
    %1176 = vector.broadcast %1175 : f32 to vector<2x676xf32>
    %1177 = arith.mulf %1176, %6 : vector<2x676xf32>
    %1178 = arith.addf %1171, %1177 : vector<2x676xf32>
    %c9_i32_379 = arith.constant 9 : i32
    %1179 = arith.muli %1163, %c9_i32_379 : i32
    %c2_i32_380 = arith.constant 2 : i32
    %1180 = arith.addi %1179, %c2_i32_380 : i32
    %1181 = arith.index_cast %1180 : i32 to index
    %1182 = memref.load %arg1[%1181] : memref<288xf32, #tpu.memory_space<smem>>
    %1183 = vector.broadcast %1182 : f32 to vector<2x676xf32>
    %1184 = arith.mulf %1183, %8 : vector<2x676xf32>
    %1185 = arith.addf %1178, %1184 : vector<2x676xf32>
    %c9_i32_381 = arith.constant 9 : i32
    %1186 = arith.muli %1163, %c9_i32_381 : i32
    %c3_i32_382 = arith.constant 3 : i32
    %1187 = arith.addi %1186, %c3_i32_382 : i32
    %1188 = arith.index_cast %1187 : i32 to index
    %1189 = memref.load %arg1[%1188] : memref<288xf32, #tpu.memory_space<smem>>
    %1190 = vector.broadcast %1189 : f32 to vector<2x676xf32>
    %1191 = arith.mulf %1190, %10 : vector<2x676xf32>
    %1192 = arith.addf %1185, %1191 : vector<2x676xf32>
    %c9_i32_383 = arith.constant 9 : i32
    %1193 = arith.muli %1163, %c9_i32_383 : i32
    %c4_i32_384 = arith.constant 4 : i32
    %1194 = arith.addi %1193, %c4_i32_384 : i32
    %1195 = arith.index_cast %1194 : i32 to index
    %1196 = memref.load %arg1[%1195] : memref<288xf32, #tpu.memory_space<smem>>
    %1197 = vector.broadcast %1196 : f32 to vector<2x676xf32>
    %1198 = arith.mulf %1197, %12 : vector<2x676xf32>
    %1199 = arith.addf %1192, %1198 : vector<2x676xf32>
    %c9_i32_385 = arith.constant 9 : i32
    %1200 = arith.muli %1163, %c9_i32_385 : i32
    %c5_i32_386 = arith.constant 5 : i32
    %1201 = arith.addi %1200, %c5_i32_386 : i32
    %1202 = arith.index_cast %1201 : i32 to index
    %1203 = memref.load %arg1[%1202] : memref<288xf32, #tpu.memory_space<smem>>
    %1204 = vector.broadcast %1203 : f32 to vector<2x676xf32>
    %1205 = arith.mulf %1204, %14 : vector<2x676xf32>
    %1206 = arith.addf %1199, %1205 : vector<2x676xf32>
    %c9_i32_387 = arith.constant 9 : i32
    %1207 = arith.muli %1163, %c9_i32_387 : i32
    %c6_i32_388 = arith.constant 6 : i32
    %1208 = arith.addi %1207, %c6_i32_388 : i32
    %1209 = arith.index_cast %1208 : i32 to index
    %1210 = memref.load %arg1[%1209] : memref<288xf32, #tpu.memory_space<smem>>
    %1211 = vector.broadcast %1210 : f32 to vector<2x676xf32>
    %1212 = arith.mulf %1211, %16 : vector<2x676xf32>
    %1213 = arith.addf %1206, %1212 : vector<2x676xf32>
    %c9_i32_389 = arith.constant 9 : i32
    %1214 = arith.muli %1163, %c9_i32_389 : i32
    %c7_i32_390 = arith.constant 7 : i32
    %1215 = arith.addi %1214, %c7_i32_390 : i32
    %1216 = arith.index_cast %1215 : i32 to index
    %1217 = memref.load %arg1[%1216] : memref<288xf32, #tpu.memory_space<smem>>
    %1218 = vector.broadcast %1217 : f32 to vector<2x676xf32>
    %1219 = arith.mulf %1218, %18 : vector<2x676xf32>
    %1220 = arith.addf %1213, %1219 : vector<2x676xf32>
    %c9_i32_391 = arith.constant 9 : i32
    %1221 = arith.muli %1163, %c9_i32_391 : i32
    %c8_i32_392 = arith.constant 8 : i32
    %1222 = arith.addi %1221, %c8_i32_392 : i32
    %1223 = arith.index_cast %1222 : i32 to index
    %1224 = memref.load %arg1[%1223] : memref<288xf32, #tpu.memory_space<smem>>
    %1225 = vector.broadcast %1224 : f32 to vector<2x676xf32>
    %1226 = arith.mulf %1225, %20 : vector<2x676xf32>
    %1227 = arith.addf %1220, %1226 : vector<2x676xf32>
    %1228 = arith.index_cast %1163 : i32 to index
    %1229 = memref.load %arg2[%1228] : memref<32xf32, #tpu.memory_space<smem>>
    %1230 = vector.broadcast %1229 : f32 to vector<2x676xf32>
    %1231 = arith.addf %1227, %1230 : vector<2x676xf32>
    %cst_393 = arith.constant 0.000000e+00 : f32
    %1232 = vector.broadcast %cst_393 : f32 to vector<2x676xf32>
    %1233 = arith.maximumf %1231, %1232 : vector<2x676xf32>
    %1234 = arith.truncf %1233 : vector<2x676xf32> to vector<2x676xbf16>
    %c15 = arith.constant 15 : index
    %c0_394 = arith.constant 0 : index
    %c0_395 = arith.constant 0 : index
    %1235 = vector.load %arg4[%c15, %c0_394, %c0_395] : memref<16x676x128xbf16, #tpu.memory_space<vmem>>, vector<1x676x128xbf16>
    %1236 = vector.shape_cast %1235 : vector<1x676x128xbf16> to vector<676x128xbf16>
    %cst_396 = arith.constant dense<0.000000e+00> : vector<2x128xf32>
    %1237 = tpu.matmul %1234, %1236, %cst_396 {dimension_numbers = #tpu.dot_dimension_numbers<[1], [0], [0], [1], [0, 0, 1, 1], [], []>} : vector<2x676xbf16>, vector<676x128xbf16>, vector<2x128xf32> -> vector<2x128xf32>
    %1238 = arith.addf %1162, %1237 : vector<2x128xf32>
    %c0_397 = arith.constant 0 : index
    %c0_398 = arith.constant 0 : index
    %1239 = vector.load %arg9[%c0_397, %c0_398] : memref<2x128xf32, #tpu.memory_space<vmem>>, vector<2x128xf32>
    %1240 = arith.addf %1239, %1238 : vector<2x128xf32>
    %c0_399 = arith.constant 0 : index
    %c0_400 = arith.constant 0 : index
    %1241 = vector.load %arg9[%c0_399, %c0_400] : memref<2x128xf32, #tpu.memory_space<vmem>>, vector<2x128xf32>
    tpu.vector_store %arg9[%c0_399, %c0_400], %1240 {strides = array<i32>} : memref<2x128xf32, #tpu.memory_space<vmem>>, vector<2x128xf32>,
    %c1_i32_401 = arith.constant 1 : i32
    %1242 = arith.cmpi eq, %arg0, %c1_i32_401 : i32
    %1243 = arith.extui %1242 : i1 to i32
    %c0_i32_402 = arith.constant 0 : i32
    %1244 = arith.cmpi ne, %1243, %c0_i32_402 : i32
    scf.if %1244 {
      %c0_403 = arith.constant 0 : index
      %c0_404 = arith.constant 0 : index
      %1245 = vector.load %arg9[%c0_403, %c0_404] : memref<2x128xf32, #tpu.memory_space<vmem>>, vector<2x128xf32>
      %c0_405 = arith.constant 0 : index
      %c0_406 = arith.constant 0 : index
      %1246 = vector.load %arg5[%c0_405, %c0_406] : memref<1x128xf32, #tpu.memory_space<vmem>>, vector<1x128xf32>
      %1247 = vector.broadcast %1246 : vector<1x128xf32> to vector<2x128xf32>
      %1248 = arith.addf %1245, %1247 : vector<2x128xf32>
      %cst_407 = arith.constant 0.000000e+00 : f32
      %1249 = vector.broadcast %cst_407 : f32 to vector<2x128xf32>
      %1250 = arith.maximumf %1248, %1249 : vector<2x128xf32>
      %c0_408 = arith.constant 0 : index
      %c0_409 = arith.constant 0 : index
      %1251 = vector.load %arg6[%c0_408, %c0_409] : memref<128x10xf32, #tpu.memory_space<vmem>>, vector<128x10xf32>
      %cst_410 = arith.constant dense<0.000000e+00> : vector<2x10xf32>
      %1252 = tpu.matmul %1250, %1251, %cst_410 {dimension_numbers = #tpu.dot_dimension_numbers<[1], [0], [0], [1], [0, 0, 1, 1], [], []>} : vector<2x128xf32>, vector<128x10xf32>, vector<2x10xf32> -> vector<2x10xf32>
      %c0_411 = arith.constant 0 : index
      %c0_412 = arith.constant 0 : index
      %1253 = vector.load %arg7[%c0_411, %c0_412] : memref<1x10xf32, #tpu.memory_space<vmem>>, vector<1x10xf32>
      %1254 = vector.broadcast %1253 : vector<1x10xf32> to vector<2x10xf32>
      %1255 = arith.addf %1252, %1254 : vector<2x10xf32>
      %cst_413 = arith.constant dense<0xFF800000> : vector<2xf32>
      %1256 = vector.multi_reduction <maximumf>, %1255, %cst_413 [1] : vector<2x10xf32> to vector<2xf32>
      %1257 = vector.shape_cast %1256 : vector<2xf32> to vector<2x1xf32>
      %1258 = vector.broadcast %1257 : vector<2x1xf32> to vector<2x10xf32>
      %1259 = arith.subf %1255, %1258 : vector<2x10xf32>
      %1260 = math.exp %1259 : vector<2x10xf32>
      %cst_414 = arith.constant dense<0.000000e+00> : vector<2xf32>
      %1261 = vector.multi_reduction <add>, %1260, %cst_414 [1] : vector<2x10xf32> to vector<2xf32>
      %1262 = vector.shape_cast %1261 : vector<2xf32> to vector<2x1xf32>
      %1263 = vector.broadcast %1262 : vector<2x1xf32> to vector<2x10xf32>
      %1264 = arith.divf %1260, %1263 : vector<2x10xf32>
      %c0_415 = arith.constant 0 : index
      %c0_416 = arith.constant 0 : index
      %1265 = vector.load %arg8[%c0_415, %c0_416] : memref<2x10xf32, #tpu.memory_space<vmem>>, vector<2x10xf32>
      tpu.vector_store %arg8[%c0_415, %c0_416], %1264 {strides = array<i32>} : memref<2x10xf32, #tpu.memory_space<vmem>>, vector<2x10xf32>,
    } else {
    }
    return
  }
  func.func @transform_0(%arg0: i32) -> i32 {
    %c0_i32 = arith.constant 0 : i32
    %c0_i32_0 = arith.constant 0 : i32
    return %c0_i32 : i32
  }
  func.func @transform_1(%arg0: i32) -> i32 {
    %c0_i32 = arith.constant 0 : i32
    %c0_i32_0 = arith.constant 0 : i32
    return %c0_i32 : i32
  }
  func.func @transform_2(%arg0: i32) -> (i32, i32, i32) {
    %c0_i32 = arith.constant 0 : i32
    %c0_i32_0 = arith.constant 0 : i32
    %c0_i32_1 = arith.constant 0 : i32
    %c0_i32_2 = arith.constant 0 : i32
    return %c0_i32, %c0_i32_0, %c0_i32_1 : i32, i32, i32
  }
  func.func @transform_3(%arg0: i32) -> (i32, i32, i32) {
    %c0_i32 = arith.constant 0 : i32
    %c0_i32_0 = arith.constant 0 : i32
    %c0_i32_1 = arith.constant 0 : i32
    return %arg0, %c0_i32, %c0_i32_0 : i32, i32, i32
  }
  func.func @transform_4(%arg0: i32) -> (i32, i32) {
    %c0_i32 = arith.constant 0 : i32
    %c0_i32_0 = arith.constant 0 : i32
    %c0_i32_1 = arith.constant 0 : i32
    return %c0_i32, %c0_i32_0 : i32, i32
  }
  func.func @transform_5(%arg0: i32) -> (i32, i32) {
    %c0_i32 = arith.constant 0 : i32
    %c0_i32_0 = arith.constant 0 : i32
    %c0_i32_1 = arith.constant 0 : i32
    return %c0_i32, %c0_i32_0 : i32, i32
  }
  func.func @transform_6(%arg0: i32) -> (i32, i32) {
    %c0_i32 = arith.constant 0 : i32
    %c0_i32_0 = arith.constant 0 : i32
    %c0_i32_1 = arith.constant 0 : i32
    return %c0_i32, %c0_i32_0 : i32, i32
  }
  func.func @transform_7(%arg0: i32) -> (i32, i32) {
    %c0_i32 = arith.constant 0 : i32
    %c0_i32_0 = arith.constant 0 : i32
    %c0_i32_1 = arith.constant 0 : i32
    return %c0_i32, %c0_i32_0 : i32, i32
  }
}

</mosaic_0001>

<bundles_post_ra>
// kernel: tpu_custom_call.1
= control target key start
LH: loop header
LB: loop body
LE: loop exit
PB: predicated region body
PF: predicated region fallthrough
CT: control target
= control target key end

     0   :  { %s17295_s0 = inlined_call_operand.vmem [shape: f32[288], index: 0, kind: input, shape index: {}]   ;;  %s17296_s1 = inlined_call_operand.vmem [shape: f32[32], index: 1, kind: input, shape index: {}]   ;;  %s17297_s2 = inlined_call_operand.vmem [shape: f32[9,2,676], index: 2, kind: input, shape index: {}]   ;;  %s17298_s3 = inlined_call_operand.vmem [shape: bf16[32,676,128], index: 3, kind: input, shape index: {}]   ;;  %s17299_s4 = inlined_call_operand.vmem [shape: f32[1,128], index: 4, kind: input, shape index: {}]   ;;  %s17300_s5 = inlined_call_operand.vmem [shape: f32[128,10], index: 5, kind: input, shape index: {}]   ;;  %s17301_s6 = inlined_call_operand.vmem [shape: f32[1,10], index: 6, kind: input, shape index: {}]   ;;  %s17302_s7 = inlined_call_operand.hbm [shape: f32[2,10], index: 7, kind: output, shape index: {}]  }
   0x1   :  { %17306 = sst [smem:[#allocation12_spill]] %s17295_s0 }
   0x2   :  { %12 = vsyncpa [#allocation5], 0 }
   0x3   :  { %13 = vsyncpa [#allocation7], 0 }
   0x4   :  { %14 = vsyncpa [#allocation4], 0  ;;  %s13513_s24 = smov 0  }
   0x5 LB: > { %s13519_s25 = sadd.s32 4294967295, %s13462_s24   ;;  %p9752_p0 = scmp.ge.s32.totalorder %s13462_s24, 1  ;;  %s13462_s24 = sphi %s13513_s24, %s20_s24  }
   0x6   : > { %p198_p1 = scmp.lt.s32.totalorder %s13462_s24, 3  ;;  %s17307_s0 = sld [smem:[#allocation12_spill]] }
   0x7   : > { %p17303_p4 = scmp.eq.s32.totalorder %s13519_s25, 0  ;;  %s222_s9 = sshll.u32 %s17296_s1, 4  ;;  %s223_s9 = int_to_ptr.vmem [resolvable:$true] %s222_s9 }
   0x8   : > { %p13527_p3 = pnand %p9752_p0, %p198_p1 }
   0xa   : > { %s17308_s29 = scalar_select %p13527_p3, 1, 0 }
   0xb   : > { %p12558_p5 = pneg %p13527_p3 }
   0xc   : > { %s211_s28 = sshll.u32 %s17307_s0, 4  ;;  %s212_s28 = int_to_ptr.vmem [resolvable:$true] %s211_s28 }
   0xd   : > { %p13539_p6 = pnand %p17303_p4, %p12558_p5  ;;  %s13388_s11 = scalar_lea.vmem %s212_s28, 48 }
   0xe   : > { %p13389_p7 = scmp.ne.s32.totalorder %s212_s28, %s13388_s11  ;;  %s13395_s12 = scalar_lea.vmem %s212_s28, 64 }
   0xf   : > { %p13390_p8 = pneg %p13539_p6  ;;  %p13396_p11 = scmp.lt.s32.totalorder %s212_s28, %s212_s28 }
  0x10   : > { %p13397_p12 = scmp.lt.s32.totalorder %s13395_s12, %s13388_s11 }
  0x11   : > { %p13391_p9 = pnand %p13390_p8, %p13389_p7 }
  0x12   : > { %p13398_p13 = por %p13397_p12, %p13396_p11 }
  0x13   : > { %p13392_p10 = pneg %p13391_p9 }
  0x15   : > { %p13399_p0 = pnand %p13398_p13, %p13392_p10 }
  0x17   : > { %13402 = shalt.err (!%p13399_p0)
}
  0x18   : > { %s13464_s13 = smov [#allocation3]   ;;  %s13403_s14 = scalar_lea.vmem %s223_s9, 16 }
  0x19   : > { %12561 = dma.vmem_to_smem (!%p13539_p6), %s212_s28, 48, %s13464_s13, [#allocation5]  }
  0x1a   : > { %p13404_p1 = scmp.ne.s32.totalorder %s223_s9, %s13403_s14  ;;  %p13411_p4 = scmp.lt.s32.totalorder %s223_s9, %s223_s9 }
  0x1b   : > { %p13412_p7 = scmp.lt.s32.totalorder %s13403_s14, %s13403_s14 }
  0x1c   : > { %p13406_p5 = pnand %p13404_p1, %p13390_p8 }
  0x1d   : > { %p13413_p9 = por %p13412_p7, %p13411_p4 }
  0x1e   : > { %p13407_p2 = pneg %p13406_p5 }
  0x20   : > { %p13414_p3 = pnand %p13413_p9, %p13407_p2 }
  0x22   : > { %13417 = shalt.err (!%p13414_p3)
}
  0x23   : > { %s13465_s15 = smov [#allocation6]   ;;  %p17310_p10 = scmp.ne.s32.totalorder %s17308_s29, 0 }
  0x24   : > { %12564 = dma.vmem_to_smem (!%p13539_p6), %s223_s9, 16, %s13465_s15, [#allocation7]  }
  0x25   : > { %257 = sbr.rel (%p17310_p10) target bundleno = 1737 (0x6c9), region = 48  ;;  %p17311_p11 = scmp.eq.s32.totalorder (!%p17310_p10), %s13519_s25, 0 }
  0x2c   : > { %13449 = dma.done.wait (%p17311_p11), [#allocation5], 48   ;;  %p17312_p12 = pmov %p17311_p11 }
  0x2d   : > { %p17313_p8 = pmov %p17311_p11 }
  0x2e   : > { %13451 = vsyncadd (%p17312_p12), [#allocation5], 4294967248 }
  0x2f   : > { %13453 = dma.done.wait (%p17313_p8), [#allocation7], 16   ;;  %p17314_p4 = pmov %p17313_p8 }
  0x31   : > { %13455 = vsyncadd (%p17314_p4), [#allocation7], 4294967280 }
  0x32   : > { %267 = sfence }
  0x33   : > { %s13566_s16 = sshll.u32 %s13519_s25, 4  ;;  %p17315_p3 = scmp.ne.s32.totalorder %s13519_s25, 0 }
  0x34   : > { %p291_p2 = scmp.lt.s32.totalorder %s13566_s16, 31  ;;  %v13466_v0 = vmov (!%p17315_p3), 0.0  }
  0x35   : > { %301 = sbr.rel (%p17315_p3) target bundleno = 60 (0x3c), region = 60  ;;  %302 = vst [vmem:[#allocation2] sm:$0x3] (!%p17315_p3), %v13466_v0 }
  0x36   : > { %s292_s17 = scalar_select %p291_p2, %s13566_s16, 31 }
  0x38   : > { %s12545_s18 = smul.u32 340, %s292_s17 }
  0x3a   : > { %s13573_s21 = scalar_lea.vmem %s17298_s3, %s12545_s18 }
  0x3c PF: > { %v12588_v1 = vld [vmem:[%s13573_s21 + $0x194] sm:$0xff]   ;;  %s17305_s22 = sadd.s32 1, %s13566_s16  ;;  %v12592_v5 = vld [vmem:[%s13573_s21 + $0x19c] sm:$0xff]   ;;  %v12596_v9 = vld [vmem:[%s13573_s21 + $0x1a4] sm:$0xff]   ;;  %s13628_s18 = smul.u32 144, %s13519_s25  ;;  %v13467_v40 = vmov 0   ;;  %v405_v55 = vlaneseq }
  0x3d   : > { %v12589_v2 = vld [vmem:[%s13573_s21 + $0x154] sm:$0xff]   ;;  %11765 = vmatprep.subr.bf16.mxu0 %v12588_v1  ;;  %s13585_s23 = smul.u32 9, %s17305_s22  ;;  %v12593_v6 = vld [vmem:[%s13573_s21 + $0x15c] sm:$0xff]   ;;  %v12597_v10 = vld [vmem:[%s13573_s21 + $0x164] sm:$0xff]   ;;  %s17316_s0 = sadd.s32 1, %s13566_s16  ;;  %vm973_vm0 = vcmask 293888  }
  0x3e   : > { %v12590_v3 = vld [vmem:[%s13573_s21 + $0x214] sm:$0xff]   ;;  %11766 = vmatpush3.bf16.msra.mxu0 %v12589_v2  ;;  %v12594_v7 = vld [vmem:[%s13573_s21 + $0x21c] sm:$0xff]   ;;  %v12598_v11 = vld [vmem:[%s13573_s21 + $0x224] sm:$0xff]   ;;  %vm977_vm1 = vcmask 1041408   ;;  %p11758_p6 = scmp.ne.s32.totalorder %s13519_s25, 1 }
  0x3f   : > { %v12591_v4 = vld [vmem:[%s13573_s21 + $0x1d4] sm:$0xff]   ;;  %11787 = vmatprep.subr.bf16.mxu1 %v12590_v3  ;;  %11767 = vmatprep.subr.bf16.mxu0 %v12592_v5  ;;  %v12595_v8 = vld [vmem:[%s13573_s21 + $0x1dc] sm:$0xff]   ;;  %s531_s26 = sadd.s32 1, %s13585_s23  ;;  %s13594_s27 = sld [smem:[#allocation3 + %s13585_s23]]  ;;  %v12599_v12 = vld [vmem:[%s13573_s21 + $0x1e4] sm:$0xff]   ;;  %vm13470_vm2 = vmmov (!%p11758_p6), 0  }
  0x40   : > { %11788 = vmatpush3.bf16.msra.mxu1 %v12591_v4  ;;  %s538_s28 = sadd.s32 2, %s13585_s23  ;;  %s13599_s29 = sld [smem:[#allocation3 + %s531_s26]]  ;;  %v12600_v13 = vld [vmem:[%s13573_s21 + $0x1ac] sm:$0xff]   ;;  %v12604_v17 = vld [vmem:[%s13573_s21 + $0x1b4] sm:$0xff]   ;;  %v12608_v21 = vld [vmem:[%s13573_s21 + $0x1bc] sm:$0xff]   ;;  %vm9670_vm3 = vcmask (!%p11758_p6), 74752  }
  0x41   : > { %11789 = vmatprep.subr.bf16.mxu1 %v12594_v7  ;;  %s545_s30 = sadd.s32 3, %s13585_s23  ;;  %v12601_v14 = vld [vmem:[%s13573_s21 + $0x16c] sm:$0xff]   ;;  %s13604_s8 = sld [smem:[#allocation3 + %s538_s28]]  ;;  %v12605_v18 = vld [vmem:[%s13573_s21 + $0x174] sm:$0xff]   ;;  %v12609_v22 = vld [vmem:[%s13573_s21 + $0x17c] sm:$0xff]  }
  0x42   : > { %11768 = vmatpush3.bf16.msra.mxu0 %v12593_v6  ;;  %v12602_v15 = vld [vmem:[%s13573_s21 + $0x22c] sm:$0xff]   ;;  %s552_s9 = sadd.s32 4, %s13585_s23  ;;  %s13609_s10 = sld [smem:[#allocation3 + %s545_s30]]  ;;  %v12606_v19 = vld [vmem:[%s13573_s21 + $0x234] sm:$0xff]   ;;  %v12610_v23 = vld [vmem:[%s13573_s21 + $0x23c] sm:$0xff]  }
  0x43   : > { %11769 = vmatprep.subr.bf16.mxu0 %v12596_v9  ;;  %v12603_v16 = vld [vmem:[%s13573_s21 + $0x1ec] sm:$0xff]   ;;  %s559_s11 = sadd.s32 5, %s13585_s23  ;;  %s13614_s12 = sld [smem:[#allocation3 + %s552_s9]]  ;;  %v12607_v20 = vld [vmem:[%s13573_s21 + $0x1f4] sm:$0xff]   ;;  %v12611_v24 = vld [vmem:[%s13573_s21 + $0x1fc] sm:$0xff]  }
  0x44   : > { %11790 = vmatpush3.bf16.msra.mxu1 %v12595_v8  ;;  %s566_s13 = sadd.s32 6, %s13585_s23  ;;  %s13619_s14 = sld [smem:[#allocation3 + %s559_s11]]  ;;  %v12612_v25 = vld [vmem:[%s13573_s21 + $0x1c4] sm:$0xff]   ;;  %v12616_v29 = vld [vmem:[%s13573_s21 + $0x1cc] sm:$0xff]   ;;  %v13678_v41 = vld [vmem:[%s17297_s2 + $0x14] sm:$0xf] }
  0x45   : > { %11791 = vmatprep.subr.bf16.mxu1 %v12598_v11  ;;  %s573_s15 = sadd.s32 7, %s13585_s23  ;;  %s13624_s17 = sld [smem:[#allocation3 + %s566_s13]]  ;;  %v12613_v26 = vld [vmem:[%s13573_s21 + $0x184] sm:$0xff]   ;;  %v12617_v30 = vld [vmem:[%s13573_s21 + $0x18c] sm:$0xff]   ;;  %v526_v31 = vstv %s13594_s27  ;;  %v13683_v42 = vld [vmem:[%s17297_s2 + $0x18] sm:$0xff] }
  0x46   : > { %11770 = vmatpush3.bf16.msra.mxu0 %v12597_v10  ;;  %s13631_s19 = sld [smem:[#allocation3 + %s573_s15]]  ;;  %s580_s20 = sadd.s32 8, %s13585_s23  ;;  %v12614_v27 = vld [vmem:[%s13573_s21 + $0x244] sm:$0xff]   ;;  %v12618_v32 = vld [vmem:[%s13573_s21 + $0x24c] sm:$0xff]   ;;  %v533_v33 = vstv %s13599_s29  ;;  %v13688_v43 = vld [vmem:[%s17297_s2 + $0x20] sm:$0xf] }
  0x47   : > { %11771 = vmatprep.subr.bf16.mxu0 %v12600_v13  ;;  %s337_s26 = sadd.s32 1, %s13628_s18  ;;  %v12615_v28 = vld [vmem:[%s13573_s21 + $0x204] sm:$0xff]   ;;  %s13640_s28 = sld [smem:[#allocation3 + %s13628_s18]]  ;;  %v12619_v34 = vld [vmem:[%s13573_s21 + $0x20c] sm:$0xff]   ;;  %v540_v35 = vstv %s13604_s8  ;;  %v535_v50 = vmul.f32 %v13678_v41, %v533_v33  ;;  %v13718_v54 = vld [vmem:[%s17297_s2 + $0x38] sm:$0xf] }
  0x48   : > { %11792 = vmatpush3.bf16.msra.mxu1 %v12599_v12  ;;  %s13643_s30 = sld [smem:[#allocation3 + %s337_s26]]  ;;  %s344_s23 = sadd.s32 2, %s13628_s18  ;;  %v13658_v36 = vld [vmem:[%s17297_s2] sm:$0xff]  ;;  %v13663_v37 = vld [vmem:[%s17297_s2 + $0x8] sm:$0xf]  ;;  %v13668_v38 = vld [vmem:[%s17297_s2 + $0xc] sm:$0xff]  ;;  %v547_v39 = vstv %s13609_s10  ;;  %v541_v51 = vmul.f32 %v13683_v42, %v540_v35  ;;  %v542_v52 = vmul.f32 %v13688_v43, %v540_v35 }
  0x49   : > { %11793 = vmatprep.subr.bf16.mxu1 %v12602_v15  ;;  %s351_s9 = sadd.s32 3, %s13628_s18  ;;  %s13653_s11 = sld [smem:[#allocation3 + %s580_s20]]  ;;  %v527_v44 = vmul.f32 %v526_v31, %v13658_v36  ;;  %v528_v45 = vmul.f32 %v526_v31, %v13663_v37  ;;  %v534_v46 = vmul.f32 %v13668_v38, %v533_v33  ;;  %v13698_v47 = vld [vmem:[%s17297_s2 + $0x24] sm:$0xff]  ;;  %v13703_v48 = vld [vmem:[%s17297_s2 + $0x2c] sm:$0xf]  ;;  %v13708_v49 = vld [vmem:[%s17297_s2 + $0x30] sm:$0xff]  ;;  %v554_v53 = vstv %s13614_s12 }
  0x4a   : > { %11772 = vmatpush3.bf16.msra.mxu0 %v12601_v14  ;;  %s13672_s29 = sld [smem:[#allocation3 + %s344_s23]]  ;;  %s358_s8 = sadd.s32 4, %s13628_s18  ;;  %v548_v57 = vmul.f32 %v13698_v47, %v547_v39  ;;  %v13727_v59 = vld [vmem:[%s17297_s2 + $0x3c] sm:$0xff]  ;;  %v549_v61 = vmul.f32 %v13703_v48, %v547_v39  ;;  %v561_v62 = vstv %s13619_s14  ;;  %v13735_v63 = vld [vmem:[%s17297_s2 + $0x44] sm:$0xf]  ;;  %v555_v2 = vmul.f32 %v13708_v49, %v554_v53  ;;  %v13754_v5 = vld [vmem:[%s17297_s2 + $0x48] sm:$0xff] }
  0x4b   : > { %11773 = vmatprep.subr.bf16.mxu0 %v12604_v17  ;;  %s13693_s23 = sld [smem:[#allocation3 + %s351_s9]]  ;;  %s365_s9 = sadd.s32 5, %s13628_s18  ;;  %v536_v56 = vadd.f32 %v534_v46, %v527_v44  ;;  %v537_v60 = vadd.f32 %v535_v50, %v528_v45  ;;  %v13740_v0 = vld [vmem:[%s17297_s2 + $0x50] sm:$0xf]  ;;  %v568_v3 = vstv %s13624_s17  ;;  %v556_v7 = vmul.f32 %v13718_v54, %v554_v53  ;;  %v13765_v10 = vld [vmem:[%s17297_s2 + $0x5c] sm:$0xf] }
  0x4c   : > { %11794 = vmatpush3.bf16.msra.mxu1 %v12603_v16  ;;  %s13722_s26 = sld [smem:[#allocation3 + %s358_s8]]  ;;  %s372_s12 = sadd.s32 6, %s13628_s18  ;;  %v575_v8 = vstv %s13631_s19  ;;  %v13468_v11 = vmov 1983009808   ;;  %v562_v14 = vmul.f32 %v13727_v59, %v561_v62  ;;  %v12621_v16 = vld [vmem:[%s13573_s21 + $0x40] sm:$0xff]   ;;  %v13775_v17 = vld [vmem:[%s17297_s2 + $0x54] sm:$0xff] }
  0x4d   : > { %11795 = vmatprep.subr.bf16.mxu1 %v12606_v19  ;;  %v332_v58 = vstv %s13640_s28  ;;  %v543_v1 = vadd.f32 %v541_v51, %v536_v56  ;;  %s13746_s10 = sld [smem:[#allocation6 + %s17316_s0]]  ;;  %v544_v6 = vadd.f32 %v542_v52, %v537_v60  ;;  %s379_s17 = sadd.s32 7, %s13628_s18  ;;  %v403_v12 = vunpack.c.l.s4 %v13468_v11 }
  0x4e   : > { %11774 = vmatpush3.bf16.msra.mxu0 %v12605_v18  ;;  %v339_v4 = vstv %s13643_s30  ;;  %s13749_s14 = sld [smem:[#allocation3 + %s365_s9]]  ;;  %v333_v9 = vmul.f32 %v332_v58, %v13658_v36  ;;  %v563_v19 = vmul.f32 %v13735_v63, %v561_v62  ;;  %s386_s15 = sadd.s32 8, %s13628_s18  ;;  %v577_v44 = vmul.f32 %v13765_v10, %v575_v8 }
  0x4f   : > { %11775 = vmatprep.subr.bf16.mxu0 %v12608_v21  ;;  %v550_v13 = vadd.f32 %v548_v57, %v543_v1  ;;  %v582_v15 = vstv %s13653_s11  ;;  %s13770_s9 = sld [smem:[#allocation3 + %s372_s12]]  ;;  %v551_v18 = vadd.f32 %v549_v61, %v544_v6  ;;  %v404_v50 = vunpack.c.0.s8 %v403_v12 }
  0x50   : > { %11796 = vmatpush3.bf16.msra.mxu1 %v12607_v20  ;;  %v340_v20 = vmul.f32 %v13668_v38, %v339_v4  ;;  %v346_v21 = vstv %s13672_s29  ;;  %s13791_s11 = sld [smem:[#allocation3 + %s379_s17]] }
  0x51   : > { %11797 = vmatprep.subr.bf16.mxu1 %v12610_v23  ;;  %v557_v23 = vadd.f32 %v555_v2, %v550_v13  ;;  %s13804_s18 = sld [smem:[#allocation3 + %s386_s15]] }
  0x52   : > { %11776 = vmatpush3.bf16.msra.mxu0 %v12609_v22  ;;  %v13786_v22 = vld [vmem:[%s17297_s2 + $0x60] sm:$0xff]  ;;  %v360_v35 = vstv %s13722_s26  ;;  %s13817_s29 = sld [smem:[#allocation6 + %s13566_s16]] }
  0x53   : > { %11777 = vmatprep.subr.bf16.mxu0 %v12612_v25  ;;  %v347_v25 = vmul.f32 %v13683_v42, %v346_v21  ;;  %v564_v33 = vadd.f32 %v562_v14, %v557_v23  ;;  %v361_v46 = vmul.f32 %v13708_v49, %v360_v35  ;;  %v583_v52 = vmul.f32 %v13786_v22, %v582_v15 }
  0x54   : > { %11798 = vmatpush3.bf16.msra.mxu1 %v12611_v24  ;;  %v569_v24 = vmul.f32 %v13754_v5, %v568_v3  ;;  %v367_v53 = vstv %s13749_s14  ;;  %v588_v2 = vstv %s13746_s10  ;;  %s1482_s10 = sadd.s32 2, %s13566_s16 }
  0x55   : > { %11799 = vmatprep.subr.bf16.mxu1 %v12614_v27  ;;  %v13796_v27 = vld [vmem:[%s17297_s2 + $0x68] sm:$0xf]  ;;  %v368_v60 = vmul.f32 %v13727_v59, %v367_v53  ;;  %v374_v62 = vstv %s13770_s9  ;;  %s13846_s28 = smul.u32 9, %s1482_s10 }
  0x56   : > { %11778 = vmatpush3.bf16.msra.mxu0 %v12613_v26  ;;  %v353_v26 = vstv %s13693_s23  ;;  %v571_v51 = vadd.f32 %v569_v24, %v564_v33  ;;  %v584_v56 = vmul.f32 %v13796_v27, %v582_v15  ;;  %v375_v6 = vmul.f32 %v13754_v5, %v374_v62 }
  0x57   : > { %11779 = vmatprep.subr.bf16.mxu0 %v12616_v29  ;;  %v570_v29 = vmul.f32 %v13740_v0, %v568_v3  ;;  %v354_v31 = vmul.f32 %v13698_v47, %v353_v26  ;;  %v334_v15 = vmul.f32 %v332_v58, %v13663_v37  ;;  %s1490_s30 = sadd.s32 1, %s13846_s28  ;;  %s13866_s17 = sld [smem:[#allocation3 + %s13846_s28]] }
  0x58   : > { %11800 = vmatpush3.bf16.msra.mxu1 %v12615_v28  ;;  %v558_v28 = vadd.f32 %v556_v7, %v551_v18  ;;  %v388_v18 = vstv %s13804_s18  ;;  %s13872_s23 = sld [smem:[#allocation3 + %s1490_s30]]  ;;  %s1497_s13 = sadd.s32 2, %s13846_s28 }
  0x59   : > { %11801 = vmatprep.subr.bf16.mxu1 %v12618_v32  ;;  %v406_v32 = vshrl.u32 %v405_v55, 7  ;;  %v389_v23 = vmul.f32 %v13786_v22, %v388_v18  ;;  %s13885_s26 = sld [smem:[#allocation3 + %s1497_s13]]  ;;  %s1504_s22 = sadd.s32 3, %s13846_s28 }
  0x5a   : > { %11780 = vmatpush3.bf16.msra.mxu0 %v12617_v30  ;;  %v342_v30 = vadd.f32 %v340_v20, %v333_v9  ;;  %v565_v39 = vadd.f32 %v563_v19, %v558_v28  ;;  %s13897_s19 = sld [smem:[#allocation3 + %s1504_s22]]  ;;  %s1511_s14 = sadd.s32 4, %s13846_s28 }
  0x5b   : > { %1061 = vmatprep.subr.bf16.mxu0 %v13467_v40  ;;  %v13825_v9 = vsub.s32 %v404_v50, %v406_v32  ;;  %v12620_v50 = vld [vmem:[%s13573_s21 + $0x254] sm:$0xff]   ;;  %s13914_s9 = sld [smem:[#allocation3 + %s1511_s14]]  ;;  %s1518_s8 = sadd.s32 5, %s13846_s28 }
  0x5c   : > { %11802 = vmatpush3.bf16.msra.mxu1 %v12619_v34  ;;  %v576_v34 = vmul.f32 %v13775_v17, %v575_v8  ;;  %v349_v45 = vadd.f32 %v347_v25, %v342_v30  ;;  %v572_v55 = vadd.f32 %v570_v29, %v565_v39  ;;  %v381_v8 = vstv %s13791_s11  ;;  %s13928_s15 = sld [smem:[#allocation3 + %s1518_s8]]  ;;  %s1525_s0 = sadd.s32 6, %s13846_s28 }
  0x5d   : > { %11809 = vmatprep.subr.bf16.mxu1 %v12621_v16  ;;  %v382_v13 = vmul.f32 %v13775_v17, %v381_v8  ;;  %v341_v16 = vmul.f32 %v13678_v41, %v339_v4  ;;  %v394_v29 = vstv %s13817_s29  ;;  %v348_v4 = vmul.f32 %v13688_v43, %v346_v21  ;;  %s13944_s27 = sld [smem:[#allocation3 + %s1525_s0]]  ;;  %s1532_s11 = sadd.s32 7, %s13846_s28 }
  0x5e   : > { %v356_v57 = vadd.f32 %v354_v31, %v349_v45  ;;  %v578_v61 = vadd.f32 %v576_v34, %v571_v51  ;;  %v579_v1 = vadd.f32 %v577_v44, %v572_v55  ;;  %v355_v55 = vmul.f32 %v13703_v48, %v353_v26  ;;  %v12623_v26 = vld [vmem:[%s13573_s21 + $0x25c] sm:$0xff]   ;;  %s13958_s12 = sld [smem:[#allocation3 + %s1532_s11]]  ;;  %s1539_s20 = sadd.s32 8, %s13846_s28 }
  0x5f   : > { %v343_v31 = vadd.f32 %v341_v16, %v334_v15  ;;  %v369_v16 = vmul.f32 %v13735_v63, %v367_v53  ;;  %v12629_v53 = vld [vmem:[%s13573_s21 + $0x26c] sm:$0xff]   ;;  %s13973_s18 = sld [smem:[#allocation3 + %s1539_s20]] }
  0x60   : > { %v363_v3 = vadd.f32 %v361_v46, %v356_v57  ;;  %v585_v7 = vadd.f32 %v583_v52, %v578_v61  ;;  %v586_v11 = vadd.f32 %v584_v56, %v579_v1  ;;  %v12622_v57 = vld [vmem:[%s13573_s21] sm:$0xff]   ;;  %v12624_v1 = vld [vmem:[%s13573_s21 + $0x48] sm:$0xff]   ;;  %s13999_s29 = sld [smem:[#allocation6 + %s1482_s10]]  ;;  %s2059_s10 = sadd.s32 3, %s13566_s16 }
  0x61   : > { %v350_v52 = vadd.f32 %v348_v4, %v343_v31  ;;  %v12633_v4 = vld [vmem:[%s13573_s21 + $0x60] sm:$0xff]   ;;  %s14029_s28 = smul.u32 9, %s2059_s10 }
  0x62   : > { %v370_v12 = vadd.f32 %v368_v60, %v363_v3  ;;  %v589_v14 = vadd.f32 %v588_v2, %v585_v7  ;;  %v590_v19 = vadd.f32 %v588_v2, %v586_v11  ;;  %v362_v7 = vmul.f32 %v13718_v54, %v360_v35  ;;  %v12626_v35 = vld [vmem:[%s13573_s21 + $0x264] sm:$0xff]  }
  0x63   : > { %s2067_s30 = sadd.s32 1, %s14029_s28  ;;  %s2074_s13 = sadd.s32 2, %s14029_s28 }
  0x64   : > { %v377_v20 = vadd.f32 %v375_v6, %v370_v12  ;;  %v591_v24 = vmax.f32 %v589_v14, 0.0  ;;  %v592_v25 = vmax.f32 %v590_v19, 0.0  ;;  %v357_v6 = vadd.f32 %v355_v55, %v350_v52  ;;  %v12625_v12 = vld [vmem:[%s13573_s21 + $0x8] sm:$0xff]   ;;  %v12628_v19 = vld [vmem:[%s13573_s21 + $0x10] sm:$0xff]   ;;  %s2081_s22 = sadd.s32 3, %s14029_s28  ;;  %s2088_s14 = sadd.s32 4, %s14029_s28 }
  0x65   : > { %s2095_s11 = sadd.s32 5, %s14029_s28 }
  0x66   : > { %v384_v28 = vadd.f32 %v382_v13, %v377_v20  ;;  %v602_v30 = vrot.slane %v591_v24, %v13825_v9  ;;  %v595_v58 = vcombine.high %v591_v24, %v591_v24  ;;  %v13849_v32 = vrot.slane %v592_v25, %v13825_v9  ;;  %v12627_v13 = vld [vmem:[%s13573_s21 + $0x50] sm:$0xff]   ;;  %v12630_v20 = vld [vmem:[%s13573_s21 + $0x58] sm:$0xff]  }
  0x67   : > { %v364_v15 = vadd.f32 %v362_v7, %v357_v6  ;;  %v1492_v24 = vstv %s13872_s23  ;;  %v1520_v6 = vstv %s13928_s15  ;;  %v12641_v7 = vld [vmem:[%s13573_s21 + $0x28c] sm:$0xff]   ;;  %s14053_s23 = sld [smem:[#allocation3 + %s2067_s30]] }
  0x68   : > { %v391_v33 = vadd.f32 %v389_v23, %v384_v28  ;;  %v610_v34 = vcombine.high %v602_v30, %v602_v30  ;;  %v609_v39 = vrot.slane %v595_v58, %v13825_v9  ;;  %v626_v44 = vpack.c.bf16 %v602_v30, %v602_v30  ;;  %v12631_v30 = vld [vmem:[%s13573_s21 + $0x18] sm:$0xff]  }
  0x69   : > { %v619_v21 = vcombine.high %v13849_v32, %v13849_v32  ;;  %v1485_v23 = vstv %s13866_s17  ;;  %v371_v25 = vadd.f32 %v369_v16, %v364_v15  ;;  %v376_v28 = vmul.f32 %v13740_v0, %v374_v62  ;;  %v12632_v62 = vld [vmem:[%s13573_s21 + $0x274] sm:$0xff]   ;;  %s14051_s17 = sld [smem:[#allocation3 + %s14029_s28]] }
  0x6a   : > { %v395_v45 = vadd.f32 %v394_v29, %v391_v33  ;;  %v627_v46 = vpack.c.bf16 %v610_v34, %v610_v34  ;;  %v611_v51 = vcombine.high %v609_v39, %v609_v39  ;;  %v628_v56 = vpack.c.bf16 %v609_v39, %v609_v39  ;;  %v12644_v15 = vld [vmem:[%s13573_s21 + $0x294] sm:$0xff]  }
  0x6b   : > { %v631_v2 = vpack.c.bf16 %v619_v21, %v619_v21  ;;  %v1486_v58 = vmul.f32 %v1485_v23, %v13658_v36  ;;  %v1493_v31 = vmul.f32 %v13668_v38, %v1492_v24  ;;  %v1499_v33 = vstv %s13885_s26  ;;  %v12634_v36 = vld [vmem:[%s13573_s21 + $0x20] sm:$0xff]   ;;  %s14067_s26 = sld [smem:[#allocation3 + %s2074_s13]]  ;;  %s2102_s13 = sadd.s32 6, %s14029_s28 }
  0x6c   : > { %v13862_v60 = vmax.f32 %v395_v45, 0.0  ;;  %1013 = vmatprep.mubr.bf16.mxu0 %v627_v46  ;;  %v629_v61 = vpack.c.bf16 %v611_v51, %v611_v51  ;;  %v378_v34 = vadd.f32 %v376_v28, %v371_v25  ;;  %v383_v39 = vmul.f32 %v13765_v10, %v381_v8  ;;  %v12636_v45 = vld [vmem:[%s13573_s21 + $0x68] sm:$0xff]   ;;  %v12635_v8 = vld [vmem:[%s13573_s21 + $0x27c] sm:$0xff]  }
  0x6d   : > { %1014 = vmatmul.mubr.bf16.vlgmr.msra.gmra.mrb[0].mxu0 %v626_v44  ;;  %v1495_v38 = vadd.f32 %v1493_v31, %v1486_v58  ;;  %v1500_v44 = vmul.f32 %v13683_v42, %v1499_v33  ;;  %v1506_v21 = vstv %s13897_s19  ;;  %v12637_v42 = vld [vmem:[%s13573_s21 + $0x28] sm:$0xff]   ;;  %v1534_v58 = vstv %s13958_s12  ;;  %v12647_v31 = vld [vmem:[%s13573_s21 + $0x29c] sm:$0xff]   ;;  %s14083_s19 = sld [smem:[#allocation3 + %s2081_s22]] }
  0x6e   : > { %v13870_v3 = vrot.slane %v13862_v60, %v13825_v9  ;;  %1062 = vmatpush1.bf16.msra.mxu0 %v12620_v50  ;;  %1053 = vmatprep.mubr.bf16.mxu1 %v629_v61  ;;  %v385_v46 = vadd.f32 %v383_v39, %v378_v34  ;;  %v390_v50 = vmul.f32 %v13796_v27, %v388_v18  ;;  %v12638_v18 = vld [vmem:[%s13573_s21 + $0x284] sm:$0xff]   ;;  %v12651_v34 = vld [vmem:[%s13573_s21 + $0xd0] sm:$0xff]   ;;  %v1541_v39 = vstv %s13973_s18  ;;  %s14129_s12 = sld [smem:[#allocation3 + %s2095_s11]]  ;;  %s2116_s11 = sadd.s32 8, %s14029_s28 }
  0x6f   : > { %1054 = vmatmul.mubr.bf16.vlgmr.msra.gmra.mrb[0].mxu1 %v628_v56  ;;  %1063 = vmatprep.subr.bf16.mxu0 %v13467_v40  ;;  %v401_v51 = vcombine.high %v13862_v60, %v13862_v60  ;;  %v1502_v52 = vadd.f32 %v1500_v44, %v1495_v38  ;;  %v1507_v55 = vmul.f32 %v13698_v47, %v1506_v21  ;;  %v12639_v56 = vld [vmem:[%s13573_s21 + $0x70] sm:$0xff]   ;;  %v12648_v28 = vld [vmem:[%s13573_s21 + $0xc8] sm:$0xff]   ;;  %v12654_v44 = vld [vmem:[%s13573_s21 + $0xd8] sm:$0xff]   ;;  %s14150_s18 = sld [smem:[#allocation3 + %s2102_s13]] }
  0x70   : > { %v416_v11 = vcombine.high %v13870_v3, %v13870_v3  ;;  %11810 = vmatpush3.bf16.msra.mxu1 %v12622_v57  ;;  %9907 = vmatprep.mubr.msk.bf16.mxu0 %vm973_vm0, %v631_v2  ;;  %v1513_v57 = vstv %s13914_s9  ;;  %v392_v61 = vadd.f32 %v390_v50, %v385_v46  ;;  %v12640_v60 = vld [vmem:[%s13573_s21 + $0x30] sm:$0xff]   ;;  %v630_v46 = vpack.c.bf16 %v13849_v32, %v13849_v32  ;;  %v12653_v50 = vld [vmem:[%s13573_s21 + $0x100] sm:$0xff]   ;;  %s2109_s9 = sadd.s32 7, %s14029_s28  ;;  %s14187_s28 = sld [smem:[#allocation3 + %s2116_s11]] }
  0x71   : > { %11811 = vmatprep.subr.bf16.mxu1 %v12624_v1  ;;  %v13951_v47 = vrot.slane %v401_v51, %v13825_v9  ;;  %v1509_v1 = vadd.f32 %v1507_v55, %v1502_v52  ;;  %v1514_v2 = vmul.f32 %v13708_v49, %v1513_v57  ;;  %v12655_v51 = vld [vmem:[%s13573_s21 + $0x98] sm:$0xff]   ;;  %v1487_v52 = vmul.f32 %v1485_v23, %v13663_v37  ;;  %v12657_v32 = vld [vmem:[%s13573_s21 + $0xe0] sm:$0xff]   ;;  %s14170_s0 = sld [smem:[#allocation3 + %s2109_s9]] }
  0x72   : > { %v433_v14 = vpack.c.bf16 %v416_v11, %v416_v11  ;;  %1064 = vmatpush1.bf16.msra.mxu0 %v12623_v26  ;;  %v12642_v26 = vld [vmem:[%s13573_s21 + $0x78] sm:$0xff]   ;;  %v396_v11 = vadd.f32 %v394_v29, %v392_v61  ;;  %v1527_v29 = vstv %s13944_s27  ;;  %v12658_v37 = vld [vmem:[%s13573_s21 + $0xa0] sm:$0xff]   ;;  %v1501_v23 = vmul.f32 %v13688_v43, %v1499_v33  ;;  %v12660_v61 = vld [vmem:[%s13573_s21 + $0xe8] sm:$0xff]   ;;  %s14110_s27 = sld [smem:[#allocation3 + %s2088_s14]] }
  0x73   : > { %1065 = vmatprep.subr.bf16.mxu0 %v13467_v40  ;;  %v417_v49 = vcombine.high %v13951_v47, %v13951_v47  ;;  %v1528_v25 = vmul.f32 %v13754_v5, %v1527_v29  ;;  %v1508_v43 = vmul.f32 %v13703_v48, %v1506_v21  ;;  %v1515_v21 = vmul.f32 %v13718_v54, %v1513_v57  ;;  %v12667_v54 = vld [vmem:[%s13573_s21 + $0xb8] sm:$0xff]   ;;  %s14226_s9 = sld [smem:[#allocation6 + %s2059_s10]] }
  0x74   : > { %1394 = vmatprep.mubr.bf16.mxu1 %v433_v14  ;;  %11812 = vmatpush3.bf16.msra.mxu1 %v12625_v12  ;;  %v12643_v12 = vld [vmem:[%s13573_s21 + $0x38] sm:$0xff]   ;;  %v1521_v14 = vmul.f32 %v13727_v59, %v1520_v6  ;;  %v398_v16 = vmax.f32 %v396_v11, 0.0  ;;  %v12646_v59 = vld [vmem:[%s13573_s21 + $0x80] sm:$0xff]   ;;  %v12664_v11 = vld [vmem:[%s13573_s21 + $0xb0] sm:$0xff]  }
  0x75   : > { %11813 = vmatprep.subr.bf16.mxu1 %v12627_v13  ;;  %v1516_v13 = vadd.f32 %v1514_v2, %v1509_v1  ;;  %v12661_v1 = vld [vmem:[%s13573_s21 + $0xa8] sm:$0xff]  }
  0x76   : > { %1066 = vmatpush1.bf16.msra.mxu0 %v12626_v35  ;;  %v12645_v35 = vld [vmem:[%s13573_s21 + $0xc0] sm:$0xff]  }
  0x77   : > { %1067 = vmatprep.subr.bf16.mxu0 %v13467_v40 }
  0x78   : > { %11814 = vmatpush3.bf16.msra.mxu1 %v12628_v19  ;;  %v432_v19 = vpack.c.bf16 %v13870_v3, %v13870_v3  ;;  %v13988_v3 = vrot.slane %v398_v16, %v13825_v9  ;;  %v12668_v16 = vld [vmem:[%s13573_s21 + $0x128] sm:$0xff]  }
  0x79   : > { %11815 = vmatprep.subr.bf16.mxu1 %v12630_v20  ;;  %v435_v20 = vpack.c.bf16 %v417_v49, %v417_v49  ;;  %v12666_v49 = vld [vmem:[%s13573_s21 + $0xf8] sm:$0xff]  }
  0x7a   : > { %1068 = vmatpush1.bf16.msra.mxu0 %v12629_v53  ;;  %v1523_v53 = vadd.f32 %v1521_v14, %v1516_v13  ;;  %v12665_v13 = vld [vmem:[%s13573_s21 + $0x120] sm:$0xff]   ;;  %v1522_v14 = vmul.f32 %v13735_v63, %v1520_v6  ;;  %v2069_v63 = vstv %s14053_s23  ;;  %v12670_v6 = vld [vmem:[%s13573_s21 + $0x2a8] sm:$0xff]  }
  0x7b   : > { %1069 = vmatprep.subr.bf16.mxu0 %v13467_v40 }
  0x7c   : > { %11816 = vmatpush3.bf16.msra.mxu1 %v12631_v30  ;;  %v12650_v30 = vld [vmem:[%s13573_s21 + $0x2a4] ss:$0 sps:$4 sm:$0x33]   ;;  %v1530_v5 = vadd.f32 %v1528_v25, %v1523_v53  ;;  %v1529_v53 = vmul.f32 %v13740_v0, %v1527_v29  ;;  %v14103_v0 = vld [vmem:[%s17297_s2 + $0xc] sm:$0xff] }
  0x7d   : > { %11817 = vmatprep.subr.bf16.mxu1 %v12633_v4  ;;  %v12649_v4 = vld [vmem:[%s13573_s21 + $0x88] sm:$0xff]   ;;  %v979_v38 = vsel %vm977_vm1, %v12650_v30, 0  ;;  %v14095_v30 = vld [vmem:[%s17297_s2] sm:$0xff]  ;;  %v2070_v29 = vmul.f32 %v14103_v0, %v2069_v63 }
  0x7e   : > { %1070 = vmatpush1.bf16.msra.mxu0 %v12632_v62  ;;  %v1535_v62 = vmul.f32 %v13775_v17, %v1534_v58  ;;  %v12652_v17 = vld [vmem:[%s13573_s21 + $0x90] sm:$0xff]  }
  0x7f   : > { %1071 = vmatprep.subr.bf16.mxu0 %v13467_v40 }
  0x80   : > { %11818 = vmatpush3.bf16.msra.mxu1 %v12634_v36  ;;  %v425_v36 = vcombine.high %v13988_v3, %v13988_v3 }
  0x81   : > { %11819 = vmatprep.subr.bf16.mxu1 %v12636_v45  ;;  %v1537_v45 = vadd.f32 %v1535_v62, %v1530_v5  ;;  %v12673_v5 = vld [vmem:[%s13573_s21 + $0x2b0] sm:$0xff]  }
  0x82   : > { %1072 = vmatpush1.bf16.msra.mxu0 %v12635_v8  ;;  %v1542_v8 = vmul.f32 %v13786_v22, %v1541_v39  ;;  %v1494_v22 = vmul.f32 %v13678_v41, %v1492_v24 }
  0x83   : > { %1073 = vmatprep.subr.bf16.mxu0 %v13467_v40 }
  0x84   : > { %11820 = vmatpush3.bf16.msra.mxu1 %v12637_v42  ;;  %v437_v42 = vpack.c.bf16 %v425_v36, %v425_v36  ;;  %v1544_v55 = vadd.f32 %v1542_v8, %v1537_v45  ;;  %v1496_v41 = vadd.f32 %v1494_v22, %v1487_v52  ;;  %v12675_v36 = vld [vmem:[%s13573_s21 + $0x2f8] sm:$0xff]   ;;  %v14143_v22 = vld [vmem:[%s17297_s2 + $0x24] sm:$0xff] }
  0x85   : > { %11821 = vmatprep.subr.bf16.mxu1 %v12639_v56  ;;  %v1547_v56 = vstv %s13999_s29  ;;  %s2636_s29 = sadd.s32 4, %s13566_s16 }
  0x86   : > { %1074 = vmatpush1.bf16.msra.mxu0 %v12638_v18  ;;  %v12656_v18 = vld [vmem:[%s13573_s21 + $0x108] sm:$0xff]   ;;  %v1548_v24 = vadd.f32 %v1547_v56, %v1544_v55  ;;  %v1503_v2 = vadd.f32 %v1501_v23, %v1496_v41  ;;  %v12679_v55 = vld [vmem:[%s13573_s21 + $0x2c0] sm:$0xff]  }
  0x87   : > { %1075 = vmatprep.subr.bf16.mxu0 %v13467_v40  ;;  %v12680_v41 = vld [vmem:[%s13573_s21 + $0x148] sm:$0xff]  }
  0x88   : > { %11822 = vmatpush3.bf16.msra.mxu1 %v12640_v60  ;;  %v12659_v60 = vld [vmem:[%s13573_s21 + $0x110] sm:$0xff]   ;;  %v14045_v33 = vmax.f32 %v1548_v24, 0.0  ;;  %v1510_v48 = vadd.f32 %v1508_v43, %v1503_v2  ;;  %v12682_v2 = vld [vmem:[%s13573_s21 + $0x2c8] sm:$0xff]  }
  0x89   : > { %11823 = vmatprep.subr.bf16.mxu1 %v12642_v26  ;;  %v12663_v26 = vld [vmem:[%s13573_s21 + $0xf0] sm:$0xff]  }
  0x8a   : > { %1076 = vmatpush1.bf16.msra.mxu0 %v12641_v7  ;;  %v12662_v7 = vld [vmem:[%s13573_s21 + $0x118] sm:$0xff]   ;;  %v1517_v57 = vadd.f32 %v1515_v21, %v1510_v48  ;;  %v12686_v21 = vld [vmem:[%s13573_s21 + $0x368] sm:$0xff]  }
  0x8b   : > { %1077 = vmatprep.subr.bf16.mxu0 %v13467_v40 }
  0x8c   : > { %11824 = vmatpush3.bf16.msra.mxu1 %v12643_v12  ;;  %v14061_v12 = vrot.slane %v14045_v33, %v13825_v9 }
  0x8d   : > { %11831 = vmatprep.subr.bf16.mxu1 %v12645_v35 }
  0x8e   : > { %1078 = vmatpush1.bf16.msra.mxu0 %v12644_v15  ;;  %v1569_v35 = vcombine.high %v14061_v12, %v14061_v12  ;;  %v12669_v15 = vld [vmem:[%s13573_s21 + $0x2e8] sm:$0xff]  }
  0x8f   : > { %1395 = vmatmul.mubr.bf16.vlgmr.msra.gmra.mrb[4].mxu1 %v432_v19  ;;  %1079 = vmatprep.subr.bf16.mxu0 %v13467_v40  ;;  %v434_v19 = vpack.c.bf16 %v13951_v47, %v13951_v47  ;;  %v12671_v47 = vld [vmem:[%s13573_s21 + $0x130] sm:$0xff]  }
  0x90   : > { %11832 = vmatpush3.bf16.msra.mxu1 %v12646_v59  ;;  %1434 = vmatprep.mubr.bf16.mxu1 %v435_v20  ;;  %v2062_v59 = vstv %s14051_s17  ;;  %v1524_v20 = vadd.f32 %v1522_v14, %v1517_v57  ;;  %v1586_v25 = vpack.c.bf16 %v1569_v35, %v1569_v35  ;;  %v436_v57 = vpack.c.bf16 %v13988_v3, %v13988_v3  ;;  %v12688_v14 = vld [vmem:[%s13573_s21 + $0x318] sm:$0xff]   ;;  %v12687_v35 = vld [vmem:[%s13573_s21 + $0x328] sm:$0xff]   ;;  %s14270_s17 = smul.u32 9, %s2636_s29 }
  0x91   : > { %11833 = vmatprep.subr.bf16.mxu1 %v12648_v28  ;;  %v12672_v28 = vld [vmem:[%s13573_s21 + $0x2f0] sm:$0xff]   ;;  %v2111_v3 = vstv %s14170_s0 }
  0x92   : > { %1080 = vmatpush1.bf16.msra.mxu0 %v12647_v31  ;;  %v2063_v31 = vmul.f32 %v14095_v30, %v2062_v59  ;;  %v1531_v62 = vadd.f32 %v1529_v53, %v1524_v20  ;;  %v12690_v20 = vld [vmem:[%s13573_s21 + $0x370] sm:$0xff]   ;;  %v12689_v53 = vld [vmem:[%s13573_s21 + $0x2d8] sm:$0xff]   ;;  %s2644_s22 = sadd.s32 1, %s14270_s17  ;;  %s14300_s8 = sld [smem:[#allocation3 + %s14270_s17]] }
  0x93   : > { %1081 = vmatprep.subr.bf16.mxu0 %v13467_v40  ;;  %s14303_s15 = sld [smem:[#allocation3 + %s2644_s22]]  ;;  %s2651_s10 = sadd.s32 2, %s14270_s17 }
  0x94   : > { %11834 = vmatpush3.bf16.msra.mxu1 %v12649_v4  ;;  %v2076_v4 = vstv %s14067_s26  ;;  %s14322_s20 = sld [smem:[#allocation3 + %s2651_s10]]  ;;  %s2658_s30 = sadd.s32 3, %s14270_s17 }
  0x95   : > { %11835 = vmatprep.subr.bf16.mxu1 %v12651_v34  ;;  %v1536_v34 = vmul.f32 %v13765_v10, %v1534_v58  ;;  %v2083_v10 = vstv %s14083_s19  ;;  %v12676_v58 = vld [vmem:[%s13573_s21 + $0x2b8] sm:$0xff]   ;;  %s14341_s13 = sld [smem:[#allocation3 + %s2658_s30]]  ;;  %s2679_s0 = sadd.s32 6, %s14270_s17 }
  0x96   : > { %1082 = vmatpush1.bf16.msra.mxu0 %v979_v38  ;;  %v12674_v38 = vld [vmem:[%s13573_s21 + $0x138] sm:$0xff]   ;;  %s2686_s23 = sadd.s32 7, %s14270_s17  ;;  %s2693_s22 = sadd.s32 8, %s14270_s17 }
  0x97   : > { %1442 = vmatprep.subr.bf16.mxu0 %v13467_v40  ;;  %v1538_v8 = vadd.f32 %v1536_v34, %v1531_v62  ;;  %v12694_v62 = vld [vmem:[%s13573_s21 + $0x378] sm:$0xff]   ;;  %v2118_v34 = vstv %s14187_s28  ;;  %s14405_s28 = sld [smem:[#allocation3 + %s2679_s0]] }
  0x98   : > { %11836 = vmatpush3.bf16.msra.mxu1 %v12652_v17  ;;  %v2072_v17 = vadd.f32 %v2070_v29, %v2063_v31  ;;  %v14217_v29 = vld [vmem:[%s17297_s2 + $0x54] sm:$0xff] }
  0x99   : > { %1094 = vmatmul.mubr.bf16.vlgmr.msra.gmra.mrb[4].mxu0 %v630_v46  ;;  %11837 = vmatprep.subr.bf16.mxu1 %v12654_v44  ;;  %v14122_v44 = vld [vmem:[%s17297_s2 + $0x18] sm:$0xff]  ;;  %v1543_v46 = vmul.f32 %v13796_v27, %v1541_v39  ;;  %v2084_v27 = vmul.f32 %v14143_v22, %v2083_v10  ;;  %v2090_v39 = vstv %s14110_s27 }
  0x9a   : > { %1443 = vmatpush1.bf16.msra.mxu0 %v12653_v50  ;;  %9951 = vmatprep.mubr.msk.bf16.mxu0 %vm973_vm0, %v437_v42  ;;  %v2077_v45 = vmul.f32 %v14122_v44, %v2076_v4  ;;  %v12678_v50 = vld [vmem:[%s13573_s21 + $0x300] sm:$0xff]  }
  0x9b   : > { %1444 = vmatprep.subr.bf16.mxu0 %v13467_v40  ;;  %v12677_v42 = vld [vmem:[%s13573_s21 + $0x140] sm:$0xff]  }
  0x9c   : > { %11838 = vmatpush3.bf16.msra.mxu1 %v12655_v51  ;;  %v1554_v51 = vcombine.high %v14045_v33, %v14045_v33  ;;  %v2079_v52 = vadd.f32 %v2077_v45, %v2072_v17  ;;  %v12684_v33 = vld [vmem:[%s13573_s21 + $0x310] sm:$0xff]   ;;  %v12695_v17 = vld [vmem:[%s13573_s21 + $0x338] sm:$0xff]  }
  0x9d   : > { %11839 = vmatprep.subr.bf16.mxu1 %v12657_v32  ;;  %v1545_v32 = vadd.f32 %v1543_v46, %v1538_v8  ;;  %v1585_v46 = vpack.c.bf16 %v14061_v12, %v14061_v12 }
  0x9e   : > { %1445 = vmatpush1.bf16.msra.mxu0 %v12656_v18  ;;  %v12681_v18 = vld [vmem:[%s13573_s21 + $0x308] sm:$0xff]   ;;  %v14158_v23 = vrot.slane %v1554_v51, %v13825_v9  ;;  %v2086_v24 = vadd.f32 %v2084_v27, %v2079_v52  ;;  %v12698_v52 = vld [vmem:[%s13573_s21 + $0x340] sm:$0xff]  }
  0x9f   : > { %1446 = vmatprep.subr.bf16.mxu0 %v13467_v40  ;;  %v1549_v43 = vadd.f32 %v1547_v56, %v1545_v32  ;;  %v14249_v27 = vld [vmem:[%s17297_s2 + $0x8] sm:$0xf] }
  0xa0   : > { %11840 = vmatpush3.bf16.msra.mxu1 %v12658_v37  ;;  %v12683_v37 = vld [vmem:[%s13573_s21 + $0x150] ss:$0 sps:$4 sm:$0x33]   ;;  %v2064_v12 = vmul.f32 %v14249_v27, %v2062_v59 }
  0xa1   : > { %11841 = vmatprep.subr.bf16.mxu1 %v12660_v61  ;;  %v14163_v61 = vld [vmem:[%s17297_s2 + $0x30] sm:$0xff]  ;;  %v1360_v56 = vsel %vm977_vm1, %v12683_v37, 0  ;;  %v12700_v37 = vld [vmem:[%s13573_s21 + $0x388] sm:$0xff]  }
  0xa2   : > { %1447 = vmatpush1.bf16.msra.mxu0 %v12659_v60  ;;  %v2091_v60 = vmul.f32 %v14163_v61, %v2090_v39  ;;  %v12699_v59 = vld [vmem:[%s13573_s21 + $0x3b0] sm:$0xff]  }
  0xa3   : > { %1448 = vmatprep.subr.bf16.mxu0 %v13467_v40 }
  0xa4   : > { %11842 = vmatpush3.bf16.msra.mxu1 %v12661_v1  ;;  %v2097_v1 = vstv %s14129_s12  ;;  %s2665_s12 = sadd.s32 4, %s14270_s17 }
  0xa5   : > { %11843 = vmatprep.subr.bf16.mxu1 %v12663_v26  ;;  %v1570_v26 = vcombine.high %v14158_v23, %v14158_v23  ;;  %s14365_s14 = sld [smem:[#allocation3 + %s2665_s12]] }
  0xa6   : > { %1449 = vmatpush1.bf16.msra.mxu0 %v12662_v7  ;;  %v2093_v7 = vadd.f32 %v2091_v60, %v2086_v24  ;;  %v14276_v60 = vld [vmem:[%s17297_s2 + $0x20] sm:$0xf]  ;;  %s14420_s12 = sld [smem:[#allocation3 + %s2686_s23]] }
  0xa7   : > { %1450 = vmatprep.subr.bf16.mxu0 %v13467_v40 }
  0xa8   : > { %11844 = vmatpush3.bf16.msra.mxu1 %v12664_v11  ;;  %v14182_v11 = vld [vmem:[%s17297_s2 + $0x3c] sm:$0xff] }
  0xa9   : > { %11845 = vmatprep.subr.bf16.mxu1 %v12666_v49  ;;  %v2098_v48 = vmul.f32 %v14182_v11, %v2097_v1  ;;  %v2104_v49 = vstv %s14150_s18  ;;  %s2672_s18 = sadd.s32 5, %s14270_s17  ;;  %s14434_s17 = sld [smem:[#allocation3 + %s2693_s22]] }
  0xaa   : > { %1451 = vmatpush1.bf16.msra.mxu0 %v12665_v13  ;;  %v12685_v13 = vld [vmem:[%s13573_s21 + $0x2d0] sm:$0xff]   ;;  %s14384_s11 = sld [smem:[#allocation3 + %s2672_s18]] }
  0xab   : > { %1452 = vmatprep.subr.bf16.mxu0 %v13467_v40 }
  0xac   : > { %11846 = vmatpush3.bf16.msra.mxu1 %v12667_v54  ;;  %v1551_v54 = vmax.f32 %v1549_v43, 0.0 }
  0xad   : > { %11853 = vmatprep.subr.bf16.mxu1 %v12669_v15  ;;  %v1588_v15 = vpack.c.bf16 %v1570_v26, %v1570_v26  ;;  %v12702_v26 = vld [vmem:[%s13573_s21 + $0x3b8] sm:$0xff]  }
  0xae   : > { %1453 = vmatpush1.bf16.msra.mxu0 %v12668_v16  ;;  %v2100_v16 = vadd.f32 %v2098_v48, %v2093_v7  ;;  %v12704_v7 = vld [vmem:[%s13573_s21 + $0x350] sm:$0xff]  }
  0xaf   : > { %1435 = vmatmul.mubr.bf16.vlgmr.msra.gmra.mrb[8].mxu1 %v434_v19  ;;  %1454 = vmatprep.subr.bf16.mxu0 %v13467_v40  ;;  %v14201_v19 = vld [vmem:[%s17297_s2 + $0x48] sm:$0xff] }
  0xb0   : > { %11854 = vmatpush3.bf16.msra.mxu1 %v12670_v6  ;;  %1970 = vmatprep.mubr.bf16.mxu1 %v1586_v25  ;;  %v2105_v6 = vmul.f32 %v14201_v19, %v2104_v49  ;;  %v14210_v25 = vrot.slane %v1551_v54, %v13825_v9  ;;  %v12705_v54 = vld [vmem:[%s13573_s21 + $0x3c0] sm:$0xff]  }
  0xb1   : > { %11855 = vmatprep.subr.bf16.mxu1 %v12672_v28  ;;  %v12692_v28 = vld [vmem:[%s13573_s21 + $0x320] sm:$0xff]  }
  0xb2   : > { %1455 = vmatpush1.bf16.msra.mxu0 %v12671_v47  ;;  %v12691_v47 = vld [vmem:[%s13573_s21 + $0x330] sm:$0xff]   ;;  %v2107_v31 = vadd.f32 %v2105_v6, %v2100_v16  ;;  %v12709_v16 = vld [vmem:[%s13573_s21 + $0x3a0] sm:$0xff]   ;;  %v12708_v6 = vld [vmem:[%s13573_s21 + $0x3c8] sm:$0xff]  }
  0xb3   : > { %1456 = vmatprep.subr.bf16.mxu0 %v13467_v40 }
  0xb4   : > { %11856 = vmatpush3.bf16.msra.mxu1 %v12673_v5  ;;  %v2112_v5 = vmul.f32 %v14217_v29, %v2111_v3 }
  0xb5   : > { %11857 = vmatprep.subr.bf16.mxu1 %v12675_v36  ;;  %v12693_v36 = vld [vmem:[%s13573_s21 + $0x2e0] sm:$0xff]  }
  0xb6   : > { %1457 = vmatpush1.bf16.msra.mxu0 %v12674_v38  ;;  %v1578_v38 = vcombine.high %v14210_v25, %v14210_v25  ;;  %v2114_v45 = vadd.f32 %v2112_v5, %v2107_v31  ;;  %v12712_v31 = vld [vmem:[%s13573_s21 + $0x43c] sm:$0xff]   ;;  %v2639_v5 = vstv %s14300_s8 }
  0xb7   : > { %1458 = vmatprep.subr.bf16.mxu0 %v13467_v40 }
  0xb8   : > { %11858 = vmatpush3.bf16.msra.mxu1 %v12676_v58  ;;  %v14235_v58 = vld [vmem:[%s17297_s2 + $0x60] sm:$0xff]  ;;  %v1590_v51 = vpack.c.bf16 %v1578_v38, %v1578_v38 }
  0xb9   : > { %11859 = vmatprep.subr.bf16.mxu1 %v12678_v50  ;;  %v2119_v8 = vmul.f32 %v14235_v58, %v2118_v34  ;;  %v12697_v50 = vld [vmem:[%s13573_s21 + $0x380] sm:$0xff]  }
  0xba   : > { %1459 = vmatpush1.bf16.msra.mxu0 %v12677_v42  ;;  %v12696_v42 = vld [vmem:[%s13573_s21 + $0x3a8] sm:$0xff]   ;;  %v12713_v38 = vld [vmem:[%s13573_s21 + $0x3fc] sm:$0xff]  }
  0xbb   : > { %1460 = vmatprep.subr.bf16.mxu0 %v13467_v40 }
  0xbc   : > { %11860 = vmatpush3.bf16.msra.mxu1 %v12679_v55  ;;  %v14257_v55 = vld [vmem:[%s17297_s2 + $0x14] sm:$0xf] }
  0xbd   : > { %11861 = vmatprep.subr.bf16.mxu1 %v12681_v18  ;;  %v2071_v32 = vmul.f32 %v14257_v55, %v2069_v63  ;;  %v2121_v18 = vadd.f32 %v2119_v8, %v2114_v45  ;;  %v12701_v63 = vld [vmem:[%s13573_s21 + $0x348] sm:$0xff]   ;;  %v14351_v45 = vld [vmem:[%s17297_s2 + $0x50] sm:$0xf] }
  0xbe   : > { %1461 = vmatpush1.bf16.msra.mxu0 %v12680_v41  ;;  %v2124_v41 = vstv %s14226_s9  ;;  %v2106_v8 = vmul.f32 %v14351_v45, %v2104_v49  ;;  %s14461_s9 = sld [smem:[#allocation6 + %s2636_s29]]  ;;  %s3213_s29 = sadd.s32 5, %s13566_s16 }
  0xbf   : > { %1462 = vmatprep.subr.bf16.mxu0 %v13467_v40  ;;  %v2073_v24 = vadd.f32 %v2071_v32, %v2064_v12  ;;  %v2125_v43 = vadd.f32 %v2124_v41, %v2121_v18  ;;  %v12718_v32 = vld [vmem:[%s13573_s21 + $0x44c] sm:$0xff]   ;;  %s14488_s26 = smul.u32 9, %s3213_s29 }
  0xc0   : > { %11862 = vmatpush3.bf16.msra.mxu1 %v12682_v2  ;;  %v2078_v2 = vmul.f32 %v14276_v60, %v2076_v4  ;;  %v14291_v4 = vld [vmem:[%s17297_s2 + $0x2c] sm:$0xf] }
  0xc1   : > { %11863 = vmatprep.subr.bf16.mxu1 %v12684_v33  ;;  %v12703_v33 = vld [vmem:[%s13573_s21 + $0x390] sm:$0xff]   ;;  %s3221_s8 = sadd.s32 1, %s14488_s26  ;;  %s3228_s18 = sadd.s32 2, %s14488_s26 }
  0xc2   : > { %1463 = vmatpush1.bf16.msra.mxu0 %v1360_v56  ;;  %v2080_v48 = vadd.f32 %v2078_v2, %v2073_v24  ;;  %v2085_v56 = vmul.f32 %v14291_v4, %v2083_v10  ;;  %v14392_v2 = vld [vmem:[%s17297_s2 + $0x68] sm:$0xf]  ;;  %s3235_s10 = sadd.s32 3, %s14488_s26  ;;  %s3242_s19 = sadd.s32 4, %s14488_s26 }
  0xc3   : > { %11875 = vmatprep.subr.bf16.mxu0 %v12686_v21  ;;  %v14296_v21 = vmax.f32 %v2125_v43, 0.0  ;;  %v12721_v43 = vld [vmem:[%s13573_s21 + $0x454] sm:$0xff]   ;;  %s14569_s23 = sld [smem:[#allocation3 + %s3242_s19]]  ;;  %s3249_s22 = sadd.s32 5, %s14488_s26 }
  0xc4   : > { %11864 = vmatpush3.bf16.msra.mxu1 %v12685_v13  ;;  %v12706_v13 = vld [vmem:[%s13573_s21 + $0x398] sm:$0xff]   ;;  %v2087_v10 = vadd.f32 %v2085_v56, %v2080_v48  ;;  %v2667_v56 = vstv %s14365_s14  ;;  %s14541_s14 = sld [smem:[#allocation3 + %s3235_s10]]  ;;  %s3256_s10 = sadd.s32 6, %s14488_s26 }
  0xc5   : > { %1475 = vmatmul.mubr.bf16.vlgmr.msra.gmra.mrb[8].mxu0 %v436_v57  ;;  %11865 = vmatprep.subr.bf16.mxu1 %v12688_v14  ;;  %v12707_v57 = vld [vmem:[%s13573_s21 + $0x358] sm:$0xff]   ;;  %v2131_v48 = vcombine.high %v14296_v21, %v14296_v21  ;;  %s3263_s0 = sadd.s32 7, %s14488_s26 }
  0xc6   : > { %11876 = vmatpush3.bf16.msra.mxu0 %v12687_v35  ;;  %2010 = vmatprep.mubr.bf16.mxu0 %v1588_v15  ;;  %v14311_v14 = vld [vmem:[%s17297_s2 + $0x38] sm:$0xf]  ;;  %v14318_v15 = vrot.slane %v14296_v21, %v13825_v9  ;;  %v2668_v21 = vmul.f32 %v14163_v61, %v2667_v56  ;;  %v12727_v61 = vld [vmem:[%s13573_s21 + $0x464] sm:$0xff]   ;;  %s14625_s27 = sld [smem:[#allocation3 + %s3263_s0]] }
  0xc7   : > { %11877 = vmatprep.subr.bf16.mxu0 %v12690_v20  ;;  %v2092_v35 = vmul.f32 %v14311_v14, %v2090_v39  ;;  %v12710_v39 = vld [vmem:[%s13573_s21 + $0x360] sm:$0xff]   ;;  %s14685_s0 = sld [smem:[#allocation6 + %s3213_s29]] }
  0xc8   : > { %11866 = vmatpush3.bf16.msra.mxu1 %v12689_v53  ;;  %v14330_v53 = vld [vmem:[%s17297_s2 + $0x44] sm:$0xf] }
  0xc9   : > { %11867 = vmatprep.subr.bf16.mxu1 %v12692_v28  ;;  %v2094_v20 = vadd.f32 %v2092_v35, %v2087_v10  ;;  %v2099_v28 = vmul.f32 %v14330_v53, %v2097_v1  ;;  %v1587_v1 = vpack.c.bf16 %v14158_v23, %v14158_v23  ;;  %v2640_v23 = vmul.f32 %v14095_v30, %v2639_v5  ;;  %v12716_v30 = vld [vmem:[%s13573_s21 + $0x404] sm:$0xff]   ;;  %v12723_v10 = vld [vmem:[%s13573_s21 + $0x3f0] sm:$0xff]  }
  0xca   : > { %11878 = vmatpush3.bf16.msra.mxu0 %v12691_v47  ;;  %v2146_v47 = vcombine.high %v14318_v15, %v14318_v15  ;;  %v14417_v35 = vrot.slane %v2131_v48, %v13825_v9 }
  0xcb   : > { %11879 = vmatprep.subr.bf16.mxu0 %v12694_v62  ;;  %v12711_v62 = vld [vmem:[%s13573_s21 + $0x3d0] sm:$0xff]  }
  0xcc   : > { %11868 = vmatpush3.bf16.msra.mxu1 %v12693_v36  ;;  %v2646_v36 = vstv %s14303_s15  ;;  %s14506_s15 = sld [smem:[#allocation3 + %s14488_s26]] }
  0xcd   : > { %2018 = vmatprep.subr.bf16.mxu1 %v13467_v40 }
  0xce   : > { %11880 = vmatpush3.bf16.msra.mxu0 %v12695_v17  ;;  %v2101_v17 = vadd.f32 %v2099_v28, %v2094_v20 }
  0xcf   : > { %1971 = vmatmul.mubr.bf16.vlgmr.msra.gmra.mrb[12].mxu1 %v1585_v46  ;;  %11881 = vmatprep.subr.bf16.mxu0 %v12697_v50  ;;  %v2163_v46 = vpack.c.bf16 %v2146_v47, %v2146_v47  ;;  %v12715_v50 = vld [vmem:[%s13573_s21 + $0x444] sm:$0xff]   ;;  %v2147_v47 = vcombine.high %v14417_v35, %v14417_v35 }
  0xd0   : > { %2019 = vmatpush1.bf16.msra.mxu1 %v12696_v42  ;;  %10080 = vmatprep.mubr.msk.bf16.mxu1 %vm973_vm0, %v1590_v51  ;;  %v2647_v42 = vmul.f32 %v14103_v0, %v2646_v36  ;;  %v12714_v51 = vld [vmem:[%s13573_s21 + $0x3d8] sm:$0xff]   ;;  %v2108_v49 = vadd.f32 %v2106_v8, %v2101_v17  ;;  %v12731_v17 = vld [vmem:[%s13573_s21 + $0x46c] sm:$0xff]  }
  0xd1   : > { %2020 = vmatprep.subr.bf16.mxu1 %v13467_v40  ;;  %v14373_v0 = vld [vmem:[%s17297_s2 + $0x5c] sm:$0xf] }
  0xd2   : > { %11882 = vmatpush3.bf16.msra.mxu0 %v12698_v52  ;;  %v2653_v52 = vstv %s14322_s20  ;;  %v2113_v12 = vmul.f32 %v14373_v0, %v2111_v3  ;;  %v2649_v18 = vadd.f32 %v2647_v42, %v2640_v23  ;;  %v12719_v3 = vld [vmem:[%s13573_s21 + $0x40c] sm:$0xff]   ;;  %v2165_v23 = vpack.c.bf16 %v2147_v47, %v2147_v47  ;;  %s14512_s20 = sld [smem:[#allocation3 + %s3221_s8]]  ;;  %v12752_v47 = vld [vmem:[%s13573_s21 + $0x4f4] sm:$0xff]  }
  0xd3   : > { %11883 = vmatprep.subr.bf16.mxu0 %v12700_v37  ;;  %v2654_v37 = vmul.f32 %v14122_v44, %v2653_v52  ;;  %v2120_v44 = vmul.f32 %v14392_v2, %v2118_v34  ;;  %v12722_v34 = vld [vmem:[%s13573_s21 + $0x414] sm:$0xff]   ;;  %v2688_v42 = vstv %s14420_s12 }
  0xd4   : > { %2021 = vmatpush1.bf16.msra.mxu1 %v12699_v59  ;;  %v12717_v59 = vld [vmem:[%s13573_s21 + $0x3e0] sm:$0xff]   ;;  %v2115_v24 = vadd.f32 %v2113_v12, %v2108_v49  ;;  %v2689_v12 = vmul.f32 %v14217_v29, %v2688_v42 }
  0xd5   : > { %2022 = vmatprep.subr.bf16.mxu1 %v13467_v40 }
  0xd6   : > { %11884 = vmatpush3.bf16.msra.mxu0 %v12701_v63  ;;  %v2660_v63 = vstv %s14341_s13  ;;  %s14526_s13 = sld [smem:[#allocation3 + %s3228_s18]] }
  0xd7   : > { %11885 = vmatprep.subr.bf16.mxu0 %v12703_v33  ;;  %v2656_v33 = vadd.f32 %v2654_v37, %v2649_v18  ;;  %v2695_v18 = vstv %s14434_s17  ;;  %v12737_v37 = vld [vmem:[%s13573_s21 + $0x4cc] sm:$0xff]   ;;  %s14588_s18 = sld [smem:[#allocation3 + %s3249_s22]]  ;;  %s3270_s22 = sadd.s32 8, %s14488_s26 }
  0xd8   : > { %2023 = vmatpush1.bf16.msra.mxu1 %v12702_v26  ;;  %v2661_v26 = vmul.f32 %v14143_v22, %v2660_v63  ;;  %v12724_v22 = vld [vmem:[%s13573_s21 + $0x45c] sm:$0xff]   ;;  %s14647_s26 = sld [smem:[#allocation3 + %s3270_s22]] }
  0xd9   : > { %2024 = vmatprep.subr.bf16.mxu1 %v13467_v40 }
  0xda   : > { %11886 = vmatpush3.bf16.msra.mxu0 %v12704_v7  ;;  %v12720_v7 = vld [vmem:[%s13573_s21 + $0x3e8] sm:$0xff]  }
  0xdb   : > { %11887 = vmatprep.subr.bf16.mxu0 %v12706_v13  ;;  %v2122_v13 = vadd.f32 %v2120_v44, %v2115_v24  ;;  %v2696_v24 = vmul.f32 %v14235_v58, %v2695_v18  ;;  %v12738_v44 = vld [vmem:[%s13573_s21 + $0x48c] sm:$0xff]   ;;  %v12741_v58 = vld [vmem:[%s13573_s21 + $0x494] sm:$0xff]  }
  0xdc   : > { %2025 = vmatpush1.bf16.msra.mxu1 %v12705_v54  ;;  %v12726_v54 = vld [vmem:[%s13573_s21 + $0x3f8] ss:$0 sps:$4 sm:$0x33]  }
  0xdd   : > { %2026 = vmatprep.subr.bf16.mxu1 %v13467_v40 }
  0xde   : > { %11888 = vmatpush3.bf16.msra.mxu0 %v12707_v57  ;;  %v2663_v57 = vadd.f32 %v2661_v26, %v2656_v33  ;;  %v12740_v33 = vld [vmem:[%s13573_s21 + $0x4d4] sm:$0xff]   ;;  %v12739_v26 = vld [vmem:[%s13573_s21 + $0x4fc] sm:$0xff]  }
  0xdf   : > { %11889 = vmatprep.subr.bf16.mxu0 %v12709_v16  ;;  %v2674_v16 = vstv %s14384_s11  ;;  %s14607_s11 = sld [smem:[#allocation3 + %s3256_s10]] }
  0xe0   : > { %2027 = vmatpush1.bf16.msra.mxu1 %v12708_v6  ;;  %v12725_v6 = vld [vmem:[%s13573_s21 + $0x41c] sm:$0xff]   ;;  %v2670_v20 = vadd.f32 %v2668_v21, %v2663_v57  ;;  %v2675_v28 = vmul.f32 %v14182_v11, %v2674_v16  ;;  %v1589_v11 = vpack.c.bf16 %v14210_v25, %v14210_v25  ;;  %v12746_v57 = vld [vmem:[%s13573_s21 + $0x4e4] sm:$0xff]   ;;  %v12745_v21 = vld [vmem:[%s13573_s21 + $0x50c] sm:$0xff]  }
  0xe1   : > { %2028 = vmatprep.subr.bf16.mxu1 %v13467_v40 }
  0xe2   : > { %11890 = vmatpush3.bf16.msra.mxu0 %v12710_v39  ;;  %v2126_v39 = vadd.f32 %v2124_v41, %v2122_v13  ;;  %v1936_v41 = vsel %vm977_vm1, %v12726_v54, 0  ;;  %v2677_v8 = vadd.f32 %v2675_v28, %v2670_v20  ;;  %v2701_v13 = vstv %s14461_s9  ;;  %v12742_v54 = vld [vmem:[%s13573_s21 + $0x504] sm:$0xff]   ;;  %v12750_v20 = vld [vmem:[%s13573_s21 + $0x4ac] sm:$0xff]  }
  0xe3   : > { %11897 = vmatprep.subr.bf16.mxu0 %v12712_v31  ;;  %v2681_v31 = vstv %s14405_s28 }
  0xe4   : > { %2029 = vmatpush1.bf16.msra.mxu1 %v12711_v62  ;;  %v12729_v62 = vld [vmem:[%s13573_s21 + $0x4bc] sm:$0xff]  }
  0xe5   : > { %2011 = vmatmul.mubr.bf16.vlgmr.msra.gmra.mrb[12].mxu0 %v1587_v1  ;;  %2030 = vmatprep.subr.bf16.mxu1 %v13467_v40  ;;  %v12728_v1 = vld [vmem:[%s13573_s21 + $0x424] sm:$0xff]  }
  0xe6   : > { %11898 = vmatpush3.bf16.msra.mxu0 %v12713_v38  ;;  %2547 = vmatprep.mubr.bf16.mxu0 %v2163_v46  ;;  %v2128_v38 = vmax.f32 %v2126_v39, 0.0  ;;  %v2682_v46 = vmul.f32 %v14201_v19, %v2681_v31  ;;  %v12735_v19 = vld [vmem:[%s13573_s21 + $0x474] sm:$0xff]  }
  0xe7   : > { %11899 = vmatprep.subr.bf16.mxu0 %v12715_v50  ;;  %v12730_v50 = vld [vmem:[%s13573_s21 + $0x47c] sm:$0xff]  }
  0xe8   : > { %2031 = vmatpush1.bf16.msra.mxu1 %v12714_v51  ;;  %v12733_v51 = vld [vmem:[%s13573_s21 + $0x4c4] sm:$0xff]   ;;  %v14451_v25 = vrot.slane %v2128_v38, %v13825_v9  ;;  %v2684_v49 = vadd.f32 %v2682_v46, %v2677_v8  ;;  %v2676_v38 = vmul.f32 %v14330_v53, %v2674_v16  ;;  %v2164_v46 = vpack.c.bf16 %v14417_v35, %v14417_v35  ;;  %v12756_v35 = vld [vmem:[%s13573_s21 + $0x550] sm:$0xff]  }
  0xe9   : > { %2032 = vmatprep.subr.bf16.mxu1 %v13467_v40  ;;  %v12754_v8 = vld [vmem:[%s13573_s21 + $0x524] sm:$0xff]  }
  0xea   : > { %11900 = vmatpush3.bf16.msra.mxu0 %v12716_v30  ;;  %v12732_v30 = vld [vmem:[%s13573_s21 + $0x42c] sm:$0xff]   ;;  %v2691_v29 = vadd.f32 %v2689_v12, %v2684_v49  ;;  %v14551_v53 = vld [vmem:[%s17297_s2] sm:$0xff]  ;;  %v3230_v49 = vstv %s14526_s13  ;;  %v12758_v12 = vld [vmem:[%s13573_s21 + $0x598] sm:$0xff]  }
  0xeb   : > { %11901 = vmatprep.subr.bf16.mxu0 %v12718_v32  ;;  %v12734_v32 = vld [vmem:[%s13573_s21 + $0x484] sm:$0xff]  }
  0xec   : > { %2033 = vmatpush1.bf16.msra.mxu1 %v12717_v59  ;;  %v12736_v59 = vld [vmem:[%s13573_s21 + $0x434] sm:$0xff]   ;;  %v2698_v48 = vadd.f32 %v2696_v24, %v2691_v29  ;;  %v2690_v29 = vmul.f32 %v14373_v0, %v2688_v42  ;;  %v3237_v24 = vstv %s14541_s14  ;;  %v14597_v0 = vld [vmem:[%s17297_s2 + $0x24] sm:$0xff] }
  0xed   : > { %2034 = vmatprep.subr.bf16.mxu1 %v13467_v40  ;;  %v3238_v42 = vmul.f32 %v14597_v0, %v3237_v24 }
  0xee   : > { %11902 = vmatpush3.bf16.msra.mxu0 %v12719_v3  ;;  %v2155_v3 = vcombine.high %v14451_v25, %v14451_v25 }
  0xef   : > { %11903 = vmatprep.subr.bf16.mxu0 %v12721_v43  ;;  %v2162_v43 = vpack.c.bf16 %v14318_v15, %v14318_v15  ;;  %v2648_v15 = vmul.f32 %v14257_v55, %v2646_v36  ;;  %v12744_v55 = vld [vmem:[%s13573_s21 + $0x49c] sm:$0xff]   ;;  %v2655_v36 = vmul.f32 %v14276_v60, %v2653_v52  ;;  %v2662_v60 = vmul.f32 %v14291_v4, %v2660_v63  ;;  %v12749_v52 = vld [vmem:[%s13573_s21 + $0x4ec] sm:$0xff]  }
  0xf0   : > { %2035 = vmatpush1.bf16.msra.mxu1 %v12720_v7  ;;  %v2167_v7 = vpack.c.bf16 %v2155_v3, %v2155_v3  ;;  %v2669_v4 = vmul.f32 %v14311_v14, %v2667_v56  ;;  %v12753_v14 = vld [vmem:[%s13573_s21 + $0x4b4] sm:$0xff]  }
  0xf1   : > { %2036 = vmatprep.subr.bf16.mxu1 %v13467_v40  ;;  %v12755_v56 = vld [vmem:[%s13573_s21 + $0x590] sm:$0xff]  }
  0xf2   : > { %11904 = vmatpush3.bf16.msra.mxu0 %v12722_v34  ;;  %v2641_v34 = vmul.f32 %v14249_v27, %v2639_v5  ;;  %v2702_v27 = vadd.f32 %v2701_v13, %v2698_v48  ;;  %v2697_v48 = vmul.f32 %v14392_v2, %v2695_v18  ;;  %v14618_v2 = vld [vmem:[%s17297_s2 + $0x30] sm:$0xff] }
  0xf3   : > { %11905 = vmatprep.subr.bf16.mxu0 %v12724_v22  ;;  %v12743_v22 = vld [vmem:[%s13573_s21 + $0x4dc] sm:$0xff]  }
  0xf4   : > { %2037 = vmatpush1.bf16.msra.mxu1 %v12723_v10  ;;  %v2650_v5 = vadd.f32 %v2648_v15, %v2641_v34  ;;  %v14503_v10 = vmax.f32 %v2702_v27, 0.0  ;;  %v12764_v34 = vld [vmem:[%s13573_s21 + $0x5a8] sm:$0xff]   ;;  %v12763_v15 = vld [vmem:[%s13573_s21 + $0x53c] sm:$0xff]  }
  0xf5   : > { %2038 = vmatprep.subr.bf16.mxu1 %v13467_v40  ;;  %v12765_v27 = vld [vmem:[%s13573_s21 + $0x568] sm:$0xff]  }
  0xf6   : > { %11906 = vmatpush3.bf16.msra.mxu0 %v12725_v6  ;;  %v12747_v6 = vld [vmem:[%s13573_s21 + $0x4a4] sm:$0xff]   ;;  %v2657_v39 = vadd.f32 %v2655_v36, %v2650_v5  ;;  %v14524_v63 = vrot.slane %v14503_v10, %v13825_v9  ;;  %v3251_v5 = vstv %s14588_s18  ;;  %v12767_v36 = vld [vmem:[%s13573_s21 + $0x5b0] sm:$0xff]  }
  0xf7   : > { %11907 = vmatprep.subr.bf16.mxu0 %v12727_v61  ;;  %v12748_v61 = vld [vmem:[%s13573_s21 + $0x514] sm:$0xff]  }
  0xf8   : > { %2039 = vmatpush1.bf16.msra.mxu1 %v1936_v41  ;;  %v2664_v28 = vadd.f32 %v2662_v60, %v2657_v39  ;;  %v12751_v41 = vld [vmem:[%s13573_s21 + $0x51c] sm:$0xff]  }
  0xf9   : > { %11919 = vmatprep.subr.bf16.mxu1 %v12729_v62  ;;  %v3216_v62 = vstv %s14506_s15  ;;  %v14638_v39 = vld [vmem:[%s17297_s2 + $0x3c] sm:$0xff]  ;;  %s3790_s15 = sadd.s32 6, %s13566_s16 }
  0xfa   : > { %11908 = vmatpush3.bf16.msra.mxu0 %v12728_v1  ;;  %v2671_v1 = vadd.f32 %v2669_v4, %v2664_v28  ;;  %v3217_v16 = vmul.f32 %v14551_v53, %v3216_v62  ;;  %v3252_v60 = vmul.f32 %v14638_v39, %v3251_v5  ;;  %v12770_v28 = vld [vmem:[%s13573_s21 + $0x5b8] sm:$0xff]   ;;  %s14742_s10 = smul.u32 9, %s3790_s15 }
  0xfb   : > { %2051 = vmatmul.mubr.bf16.vlgmr.msra.gmra.mrb[16].mxu1 %v1589_v11  ;;  %11909 = vmatprep.subr.bf16.mxu0 %v12731_v17  ;;  %v2723_v11 = vcombine.high %v14524_v63, %v14524_v63  ;;  %v3223_v17 = vstv %s14512_s20 }
  0xfc   : > { %11920 = vmatpush3.bf16.msra.mxu1 %v12730_v50  ;;  %2587 = vmatprep.mubr.bf16.mxu1 %v2165_v23  ;;  %v14559_v50 = vld [vmem:[%s17297_s2 + $0xc] sm:$0xff]  ;;  %s3798_s19 = sadd.s32 1, %s14742_s10  ;;  %s14763_s17 = sld [smem:[#allocation3 + %s14742_s10]] }
  0xfd   : > { %11921 = vmatprep.subr.bf16.mxu1 %v12733_v51  ;;  %v3224_v23 = vmul.f32 %v14559_v50, %v3223_v17  ;;  %v2678_v51 = vadd.f32 %v2676_v38, %v2671_v1  ;;  %v12771_v1 = vld [vmem:[%s13573_s21 + $0x578] sm:$0xff]   ;;  %s14773_s29 = sld [smem:[#allocation3 + %s3798_s19]]  ;;  %s3805_s22 = sadd.s32 2, %s14742_s10 }
  0xfe   : > { %11910 = vmatpush3.bf16.msra.mxu0 %v12732_v30  ;;  %v2683_v30 = vmul.f32 %v14351_v45, %v2681_v31  ;;  %v14578_v45 = vld [vmem:[%s17297_s2 + $0x18] sm:$0xff]  ;;  %s14794_s8 = sld [smem:[#allocation3 + %s3805_s22]]  ;;  %s3812_s20 = sadd.s32 3, %s14742_s10 }
  0xff   : > { %11911 = vmatprep.subr.bf16.mxu0 %v12735_v19  ;;  %v2740_v19 = vpack.c.bf16 %v2723_v11, %v2723_v11  ;;  %v3231_v31 = vmul.f32 %v14578_v45, %v3230_v49  ;;  %v3265_v11 = vstv %s14625_s27  ;;  %s14813_s13 = sld [smem:[#allocation3 + %s3812_s20]]  ;;  %s3819_s12 = sadd.s32 4, %s14742_s10 }
 0x100   : > { %11922 = vmatpush3.bf16.msra.mxu1 %v12734_v32  ;;  %v12757_v32 = vld [vmem:[%s13573_s21 + $0x52c] sm:$0xff]   ;;  %v2685_v3 = vadd.f32 %v2683_v30, %v2678_v51  ;;  %v14673_v30 = vld [vmem:[%s17297_s2 + $0x54] sm:$0xff]  ;;  %s14837_s14 = sld [smem:[#allocation3 + %s3819_s12]]  ;;  %s3826_s30 = sadd.s32 5, %s14742_s10 }
 0x101   : > { %11923 = vmatprep.subr.bf16.mxu1 %v12737_v37  ;;  %v3226_v37 = vadd.f32 %v3224_v23, %v3217_v16  ;;  %v12773_v16 = vld [vmem:[%s13573_s21 + $0x5d0] sm:$0xff]   ;;  %s3833_s28 = sadd.s32 6, %s14742_s10  ;;  %s3840_s20 = sadd.s32 7, %s14742_s10 }
 0x102   : > { %11912 = vmatpush3.bf16.msra.mxu0 %v12736_v59  ;;  %v12759_v59 = vld [vmem:[%s13573_s21 + $0x558] sm:$0xff]   ;;  %s14886_s18 = sld [smem:[#allocation3 + %s3840_s20]]  ;;  %s3847_s9 = sadd.s32 8, %s14742_s10 }
 0x103   : > { %2595 = vmatprep.subr.bf16.mxu0 %v13467_v40  ;;  %s14925_s10 = sld [smem:[#allocation6 + %s3790_s15]]  ;;  %s4367_s15 = sadd.s32 7, %s13566_s16 }
 0x104   : > { %11924 = vmatpush3.bf16.msra.mxu1 %v12738_v44  ;;  %v12761_v44 = vld [vmem:[%s13573_s21 + $0x5a0] sm:$0xff]  }
 0x105   : > { %2548 = vmatmul.mubr.bf16.vlgmr.msra.gmra.mrb[16].mxu0 %v2162_v43  ;;  %11925 = vmatprep.subr.bf16.mxu1 %v12740_v33  ;;  %v12760_v43 = vld [vmem:[%s13573_s21 + $0x534] sm:$0xff]   ;;  %v3233_v33 = vadd.f32 %v3231_v31, %v3226_v37  ;;  %v12778_v37 = vld [vmem:[%s13573_s21 + $0x5c8] sm:$0xff]  }
 0x106   : > { %2596 = vmatpush1.bf16.msra.mxu0 %v12739_v26  ;;  %10209 = vmatprep.mubr.msk.bf16.mxu0 %vm973_vm0, %v2167_v7  ;;  %v12762_v26 = vld [vmem:[%s13573_s21 + $0x560] sm:$0xff]   ;;  %v2692_v7 = vadd.f32 %v2690_v29, %v2685_v3  ;;  %v12777_v31 = vld [vmem:[%s13573_s21 + $0x5d8] sm:$0xff]  }
 0x107   : > { %2597 = vmatprep.subr.bf16.mxu0 %v13467_v40  ;;  %v14693_v29 = vld [vmem:[%s17297_s2 + $0x60] sm:$0xff] }
 0x108   : > { %11926 = vmatpush3.bf16.msra.mxu1 %v12741_v58  ;;  %v3244_v58 = vstv %s14569_s23  ;;  %s14856_s23 = sld [smem:[#allocation3 + %s3826_s30]] }
 0x109   : > { %11927 = vmatprep.subr.bf16.mxu1 %v12743_v22  ;;  %v2708_v22 = vcombine.high %v14503_v10, %v14503_v10  ;;  %v3245_v18 = vmul.f32 %v14618_v2, %v3244_v58 }
 0x10a   : > { %2598 = vmatpush1.bf16.msra.mxu0 %v12742_v54  ;;  %v3240_v54 = vadd.f32 %v3238_v42, %v3233_v33  ;;  %v12781_v42 = vld [vmem:[%s13573_s21 + $0x5e0] sm:$0xff]  }
 0x10b   : > { %2599 = vmatprep.subr.bf16.mxu0 %v13467_v40  ;;  %v14632_v10 = vrot.slane %v2708_v22, %v13825_v9  ;;  %v14709_v22 = vld [vmem:[%s17297_s2 + $0x8] sm:$0xf] }
 0x10c   : > { %11928 = vmatpush3.bf16.msra.mxu1 %v12744_v55  ;;  %v2699_v55 = vadd.f32 %v2697_v48, %v2692_v7  ;;  %v12783_v7 = vld [vmem:[%s13573_s21 + $0x628] sm:$0xff]  }
 0x10d   : > { %11929 = vmatprep.subr.bf16.mxu1 %v12746_v57  ;;  %v12769_v57 = vld [vmem:[%s13573_s21 + $0x54c] ss:$0 sps:$4 sm:$0x33]   ;;  %v2724_v4 = vcombine.high %v14632_v10, %v14632_v10 }
 0x10e   : > { %2600 = vmatpush1.bf16.msra.mxu0 %v12745_v21  ;;  %v12766_v21 = vld [vmem:[%s13573_s21 + $0x544] sm:$0xff]  }
 0x10f   : > { %2601 = vmatprep.subr.bf16.mxu0 %v13467_v40  ;;  %v2742_v23 = vpack.c.bf16 %v2724_v4, %v2724_v4 }
 0x110   : > { %11930 = vmatpush3.bf16.msra.mxu1 %v12747_v6  ;;  %v3247_v6 = vadd.f32 %v3245_v18, %v3240_v54  ;;  %v3218_v54 = vmul.f32 %v14709_v22, %v3216_v62  ;;  %v12786_v62 = vld [vmem:[%s13573_s21 + $0x630] sm:$0xff]  }
 0x111   : > { %11931 = vmatprep.subr.bf16.mxu1 %v12749_v52  ;;  %v12768_v52 = vld [vmem:[%s13573_s21 + $0x570] sm:$0xff]  }
 0x112   : > { %2602 = vmatpush1.bf16.msra.mxu0 %v12748_v61  ;;  %v2703_v61 = vadd.f32 %v2701_v13, %v2699_v55  ;;  %v14658_v13 = vld [vmem:[%s17297_s2 + $0x48] sm:$0xff] }
 0x113   : > { %2603 = vmatprep.subr.bf16.mxu0 %v13467_v40  ;;  %v12784_v55 = vld [vmem:[%s13573_s21 + $0x5e8] sm:$0xff]  }
 0x114   : > { %11932 = vmatpush3.bf16.msra.mxu1 %v12750_v20  ;;  %v3258_v20 = vstv %s14607_s11  ;;  %v2705_v38 = vmax.f32 %v2703_v61, 0.0  ;;  %v12789_v61 = vld [vmem:[%s13573_s21 + $0x638] sm:$0xff]  }
 0x115   : > { %11933 = vmatprep.subr.bf16.mxu1 %v12752_v47  ;;  %v2513_v47 = vsel %vm977_vm1, %v12769_v57, 0  ;;  %v12785_v57 = vld [vmem:[%s13573_s21 + $0x658] sm:$0xff]  }
 0x116   : > { %2604 = vmatpush1.bf16.msra.mxu0 %v12751_v41  ;;  %v12772_v41 = vld [vmem:[%s13573_s21 + $0x610] sm:$0xff]  }
 0x117   : > { %2605 = vmatprep.subr.bf16.mxu0 %v13467_v40 }
 0x118   : > { %11934 = vmatpush3.bf16.msra.mxu1 %v12753_v14  ;;  %v3254_v14 = vadd.f32 %v3252_v60, %v3247_v6  ;;  %v12787_v60 = vld [vmem:[%s13573_s21 + $0x5f0] sm:$0xff]  }
 0x119   : > { %11941 = vmatprep.subr.bf16.mxu1 %v12755_v56  ;;  %v3259_v56 = vmul.f32 %v14658_v13, %v3258_v20 }
 0x11a   : > { %2606 = vmatpush1.bf16.msra.mxu0 %v12754_v8  ;;  %v2166_v8 = vpack.c.bf16 %v14451_v25, %v14451_v25  ;;  %v12775_v25 = vld [vmem:[%s13573_s21 + $0x580] sm:$0xff]  }
 0x11b   : > { %2588 = vmatmul.mubr.bf16.vlgmr.msra.gmra.mrb[20].mxu1 %v2164_v46  ;;  %2607 = vmatprep.subr.bf16.mxu0 %v13467_v40  ;;  %v12774_v46 = vld [vmem:[%s13573_s21 + $0x5c0] sm:$0xff]   ;;  %v3261_v51 = vadd.f32 %v3259_v56, %v3254_v14 }
 0x11c   : > { %11942 = vmatpush3.bf16.msra.mxu1 %v12756_v35  ;;  %3124 = vmatprep.mubr.bf16.mxu1 %v2740_v19  ;;  %v12776_v35 = vld [vmem:[%s13573_s21 + $0x618] sm:$0xff]   ;;  %v3266_v19 = vmul.f32 %v14673_v30, %v3265_v11 }
 0x11d   : > { %11943 = vmatprep.subr.bf16.mxu1 %v12758_v12  ;;  %v14680_v12 = vrot.slane %v2705_v38, %v13825_v9 }
 0x11e   : > { %2608 = vmatpush1.bf16.msra.mxu0 %v12757_v32  ;;  %v3272_v32 = vstv %s14647_s26  ;;  %v3268_v3 = vadd.f32 %v3266_v19, %v3261_v51  ;;  %s14869_s26 = sld [smem:[#allocation3 + %s3833_s28]] }
 0x11f   : > { %2609 = vmatprep.subr.bf16.mxu0 %v13467_v40  ;;  %v2732_v33 = vcombine.high %v14680_v12, %v14680_v12 }
 0x120   : > { %11944 = vmatpush3.bf16.msra.mxu1 %v12759_v59  ;;  %v12780_v59 = vld [vmem:[%s13573_s21 + $0x620] sm:$0xff]  }
 0x121   : > { %11945 = vmatprep.subr.bf16.mxu1 %v12761_v44  ;;  %v3273_v44 = vmul.f32 %v14693_v29, %v3272_v32 }
 0x122   : > { %2610 = vmatpush1.bf16.msra.mxu0 %v12760_v43  ;;  %v12779_v43 = vld [vmem:[%s13573_s21 + $0x588] sm:$0xff]  }
 0x123   : > { %2611 = vmatprep.subr.bf16.mxu0 %v13467_v40  ;;  %v3275_v48 = vadd.f32 %v3273_v44, %v3268_v3 }
 0x124   : > { %11946 = vmatpush3.bf16.msra.mxu1 %v12762_v26  ;;  %v2739_v26 = vpack.c.bf16 %v14524_v63, %v14524_v63  ;;  %v14717_v63 = vld [vmem:[%s17297_s2 + $0x14] sm:$0xf] }
 0x125   : > { %11947 = vmatprep.subr.bf16.mxu1 %v12764_v34  ;;  %v12782_v34 = vld [vmem:[%s13573_s21 + $0x650] sm:$0xff]   ;;  %v3225_v18 = vmul.f32 %v14717_v63, %v3223_v17 }
 0x126   : > { %2612 = vmatpush1.bf16.msra.mxu0 %v12763_v15  ;;  %v2744_v15 = vpack.c.bf16 %v2732_v33, %v2732_v33 }
 0x127   : > { %2613 = vmatprep.subr.bf16.mxu0 %v13467_v40  ;;  %v3227_v17 = vadd.f32 %v3225_v18, %v3218_v54  ;;  %v14806_v54 = vld [vmem:[%s17297_s2 + $0x50] sm:$0xf] }
 0x128   : > { %11948 = vmatpush3.bf16.msra.mxu1 %v12765_v27  ;;  %v3278_v27 = vstv %s14685_s0  ;;  %v3260_v18 = vmul.f32 %v14806_v54, %v3258_v20  ;;  %s14898_s0 = sld [smem:[#allocation3 + %s3847_s9]] }
 0x129   : > { %11949 = vmatprep.subr.bf16.mxu1 %v12767_v36  ;;  %v3279_v36 = vadd.f32 %v3278_v27, %v3275_v48  ;;  %v12797_v48 = vld [vmem:[%s13573_s21 + $0x678] sm:$0xff]  }
 0x12a   : > { %2614 = vmatpush1.bf16.msra.mxu0 %v12766_v21  ;;  %v14734_v21 = vld [vmem:[%s17297_s2 + $0x20] sm:$0xf] }
 0x12b   : > { %2615 = vmatprep.subr.bf16.mxu0 %v13467_v40  ;;  %v3232_v6 = vmul.f32 %v14734_v21, %v3230_v49 }
 0x12c   : > { %11950 = vmatpush3.bf16.msra.mxu1 %v12768_v52  ;;  %v12788_v52 = vld [vmem:[%s13573_s21 + $0x660] sm:$0xff]  }
 0x12d   : > { %11951 = vmatprep.subr.bf16.mxu1 %v12770_v28  ;;  %v14747_v28 = vmax.f32 %v3279_v36, 0.0  ;;  %v3234_v49 = vadd.f32 %v3232_v6, %v3227_v17  ;;  %v2741_v36 = vpack.c.bf16 %v14632_v10, %v14632_v10  ;;  %v12801_v6 = vld [vmem:[%s13573_s21 + $0x6ec] sm:$0xff]   ;;  %v14831_v10 = vld [vmem:[%s17297_s2 + $0x5c] sm:$0xf] }
 0x12e   : > { %2616 = vmatpush1.bf16.msra.mxu0 %v2513_v47  ;;  %v12790_v47 = vld [vmem:[%s13573_s21 + $0x5f8] sm:$0xff]  }
 0x12f   : > { %11963 = vmatprep.subr.bf16.mxu0 %v12772_v41  ;;  %v14753_v41 = vld [vmem:[%s17297_s2 + $0x2c] sm:$0xf]  ;;  %v14782_v44 = vrot.slane %v14747_v28, %v13825_v9 }
 0x130   : > { %11952 = vmatpush3.bf16.msra.mxu1 %v12771_v1  ;;  %v3239_v14 = vmul.f32 %v14753_v41, %v3237_v24 }
 0x131   : > { %2628 = vmatmul.mubr.bf16.vlgmr.msra.gmra.mrb[20].mxu0 %v2166_v8  ;;  %11953 = vmatprep.subr.bf16.mxu1 %v12774_v46  ;;  %v12791_v46 = vld [vmem:[%s13573_s21 + $0x668] sm:$0xff]  }
 0x132   : > { %11964 = vmatpush3.bf16.msra.mxu0 %v12773_v16  ;;  %3164 = vmatprep.mubr.bf16.mxu0 %v2742_v23  ;;  %v12792_v16 = vld [vmem:[%s13573_s21 + $0x640] sm:$0xff]   ;;  %v3241_v19 = vadd.f32 %v3239_v14, %v3234_v49  ;;  %v12803_v14 = vld [vmem:[%s13573_s21 + $0x688] sm:$0xff]  }
 0x133   : > { %11965 = vmatprep.subr.bf16.mxu0 %v12776_v35 }
 0x134   : > { %11954 = vmatpush3.bf16.msra.mxu1 %v12775_v25  ;;  %v14768_v25 = vld [vmem:[%s17297_s2 + $0x38] sm:$0xf] }
 0x135   : > { %11955 = vmatprep.subr.bf16.mxu1 %v12778_v37  ;;  %v3246_v37 = vmul.f32 %v14768_v25, %v3244_v58  ;;  %v12795_v58 = vld [vmem:[%s13573_s21 + $0x648] sm:$0xff]  }
 0x136   : > { %11966 = vmatpush3.bf16.msra.mxu0 %v12777_v31 }
 0x137   : > { %11967 = vmatprep.subr.bf16.mxu0 %v12780_v59  ;;  %v12793_v59 = vld [vmem:[%s13573_s21 + $0x600] sm:$0xff]   ;;  %v3248_v33 = vadd.f32 %v3246_v37, %v3241_v19 }
 0x138   : > { %11956 = vmatpush3.bf16.msra.mxu1 %v12779_v43  ;;  %v12794_v43 = vld [vmem:[%s13573_s21 + $0x670] sm:$0xff]   ;;  %v12808_v19 = vld [vmem:[%s13573_s21 + $0x6bc] sm:$0xff]  }
 0x139   : > { %3172 = vmatprep.subr.bf16.mxu1 %v13467_v40  ;;  %v12812_v37 = vld [vmem:[%s13573_s21 + $0x6a0] ss:$0 sps:$4 sm:$0x33]  }
 0x13a   : > { %11968 = vmatpush3.bf16.msra.mxu0 %v12781_v42  ;;  %v14789_v42 = vld [vmem:[%s17297_s2 + $0x44] sm:$0xf] }
 0x13b   : > { %3125 = vmatmul.mubr.bf16.vlgmr.msra.gmra.mrb[24].mxu1 %v2739_v26  ;;  %11969 = vmatprep.subr.bf16.mxu0 %v12783_v7  ;;  %v3253_v26 = vmul.f32 %v14789_v42, %v3251_v5  ;;  %v12796_v7 = vld [vmem:[%s13573_s21 + $0x608] sm:$0xff]  }
 0x13c   : > { %3173 = vmatpush1.bf16.msra.mxu1 %v12782_v34  ;;  %10338 = vmatprep.mubr.msk.bf16.mxu1 %vm973_vm0, %v2744_v15  ;;  %v3300_v34 = vcombine.high %v14782_v44, %v14782_v44  ;;  %v12798_v15 = vld [vmem:[%s13573_s21 + $0x6e4] sm:$0xff]  }
 0x13d   : > { %3174 = vmatprep.subr.bf16.mxu1 %v13467_v40  ;;  %v3255_v5 = vadd.f32 %v3253_v26, %v3248_v33  ;;  %v3828_v33 = vstv %s14856_s23  ;;  %v12811_v26 = vld [vmem:[%s13573_s21 + $0x6c4] sm:$0xff]  }
 0x13e   : > { %11970 = vmatpush3.bf16.msra.mxu0 %v12784_v55  ;;  %v3793_v55 = vstv %s14763_s17  ;;  %v3317_v17 = vpack.c.bf16 %v3300_v34, %v3300_v34  ;;  %s14964_s17 = smul.u32 9, %s4367_s15 }
 0x13f   : > { %11971 = vmatprep.subr.bf16.mxu0 %v12786_v62  ;;  %v3800_v62 = vstv %s14773_s29  ;;  %v3794_v20 = vmul.f32 %v14551_v53, %v3793_v55  ;;  %v12802_v53 = vld [vmem:[%s13573_s21 + $0x6ac] sm:$0xff]  }
 0x140   : > { %3175 = vmatpush1.bf16.msra.mxu1 %v12785_v57  ;;  %v11781_v4 = vpop.f32.mrb[0].mxu0  ;;  %v12799_v57 = vld [vmem:[%s13573_s21 + $0x6a4] sm:$0xff]   ;;  %s4375_s29 = sadd.s32 1, %s14964_s17  ;;  %s4382_s12 = sadd.s32 2, %s14964_s17 }
 0x141   : > { %v11782_v56 = vpop.f32.mrb[1].mxu0  ;;  %3176 = vmatprep.subr.bf16.mxu1 %v13467_v40  ;;  %s15000_s11 = sld [smem:[#allocation3 + %s4382_s12]]  ;;  %s4389_s19 = sadd.s32 3, %s14964_s17 }
 0x142   : > { %v11783_v1 = vadd.f32 %v11782_v56, %v11781_v4  ;;  %11972 = vmatpush3.bf16.msra.mxu0 %v12787_v60  ;;  %v11784_v38 = vpop.f32.mrb[2].mxu0  ;;  %v11803_v8 = vpop.f32.mrb[0].mxu1  ;;  %v3801_v60 = vmul.f32 %v14559_v50, %v3800_v62  ;;  %v3267_v4 = vmul.f32 %v14831_v10, %v3265_v11  ;;  %v12804_v50 = vld [vmem:[%s13573_s21 + $0x6f4] sm:$0xff]   ;;  %s4396_s30 = sadd.s32 4, %s14964_s17  ;;  %s4403_s20 = sadd.s32 5, %s14964_s17 }
 0x143   : > { %v11785_v23 = vpop.f32.mrb[3].mxu0  ;;  %v11804_v35 = vpop.f32.mrb[1].mxu1  ;;  %11973 = vmatprep.subr.bf16.mxu0 %v12789_v61  ;;  %v3262_v61 = vadd.f32 %v3260_v18, %v3255_v5  ;;  %v3090_v5 = vsel %vm977_vm1, %v12812_v37, 0  ;;  %v12815_v18 = vld [vmem:[%s13573_s21 + $0x764] sm:$0xff]   ;;  %s4417_s27 = sadd.s32 7, %s14964_s17 }
 0x144   : > { %v11805_v24 = vadd.f32 %v11804_v35, %v11803_v8  ;;  %3177 = vmatpush1.bf16.msra.mxu1 %v12788_v52  ;;  %v11806_v51 = vpop.f32.mrb[2].mxu1  ;;  %v12800_v52 = vld [vmem:[%s13573_s21 + $0x680] sm:$0xff]   ;;  %v3803_v49 = vadd.f32 %v3801_v60, %v3794_v20  ;;  %v3814_v8 = vstv %s14813_s13  ;;  %s14985_s13 = sld [smem:[#allocation3 + %s4375_s29]] }
 0x145   : > { %3178 = vmatprep.subr.bf16.mxu1 %v13467_v40  ;;  %v11807_v31 = vpop.f32.mrb[3].mxu1  ;;  %v3269_v56 = vadd.f32 %v3267_v4, %v3262_v61  ;;  %v3815_v23 = vmul.f32 %v14597_v0, %v3814_v8  ;;  %v3821_v51 = vstv %s14837_s14  ;;  %v12810_v0 = vld [vmem:[%s13573_s21 + $0x704] sm:$0xff]   ;;  %s15016_s14 = sld [smem:[#allocation3 + %s4389_s19]] }
 0x146   : > { %11974 = vmatpush3.bf16.msra.mxu0 %v12790_v47  ;;  %v14778_v3 = vadd.f32 %v11805_v24, %v11783_v1  ;;  %v3807_v47 = vstv %s14794_s8  ;;  %v14850_v1 = vld [vmem:[%s17297_s2 + $0x68] sm:$0xf]  ;;  %v3285_v24 = vcombine.high %v14747_v28, %v14747_v28  ;;  %v3822_v28 = vmul.f32 %v14618_v2, %v3821_v51  ;;  %v12813_v2 = vld [vmem:[%s13573_s21 + $0x70c] sm:$0xff]   ;;  %s14983_s8 = sld [smem:[#allocation3 + %s14964_s17]] }
 0x147   : > { %11975 = vmatprep.subr.bf16.mxu0 %v12792_v16  ;;  %v3808_v11 = vmul.f32 %v14578_v45, %v3807_v47  ;;  %v3274_v38 = vmul.f32 %v14850_v1, %v3272_v32  ;;  %v12805_v45 = vld [vmem:[%s13573_s21 + $0x6b4] sm:$0xff]   ;;  %s15064_s29 = sld [smem:[#allocation3 + %s4403_s20]] }
 0x148   : > { %3179 = vmatpush1.bf16.msra.mxu1 %v12791_v46  ;;  %v12807_v46 = vld [vmem:[%s13573_s21 + $0x6fc] sm:$0xff]   ;;  %v12806_v32 = vld [vmem:[%s13573_s21 + $0x690] sm:$0xff]   ;;  %s15104_s28 = sld [smem:[#allocation3 + %s4417_s27]] }
 0x149   : > { %3180 = vmatprep.subr.bf16.mxu1 %v13467_v40  ;;  %v3810_v16 = vadd.f32 %v3808_v11, %v3803_v49  ;;  %v3276_v35 = vadd.f32 %v3274_v38, %v3269_v56  ;;  %v12819_v49 = vld [vmem:[%s13573_s21 + $0x76c] sm:$0xff]   ;;  %v12818_v11 = vld [vmem:[%s13573_s21 + $0x6d4] sm:$0xff]   ;;  %s15161_s27 = sld [smem:[#allocation6 + %s4367_s15]] }
 0x14a   : > { %11976 = vmatpush3.bf16.msra.mxu0 %v12793_v59  ;;  %v12809_v59 = vld [vmem:[%s13573_s21 + $0x698] sm:$0xff]  }
 0x14b   : > { %11977 = vmatprep.subr.bf16.mxu0 %v12795_v58  ;;  %v3817_v31 = vadd.f32 %v3815_v23, %v3810_v16  ;;  %v3280_v58 = vadd.f32 %v3278_v27, %v3276_v35  ;;  %v3829_v27 = vmul.f32 %v14638_v39, %v3828_v33  ;;  %v12823_v16 = vld [vmem:[%s13573_s21 + $0x774] sm:$0xff]   ;;  %v12822_v23 = vld [vmem:[%s13573_s21 + $0x6dc] sm:$0xff]  }
 0x14c   : > { %3181 = vmatpush1.bf16.msra.mxu1 %v12794_v43  ;;  %v14883_v43 = vrot.slane %v3285_v24, %v13825_v9 }
 0x14d   : > { %3182 = vmatprep.subr.bf16.mxu1 %v13467_v40 }
 0x14e   : > { %11978 = vmatpush3.bf16.msra.mxu0 %v12796_v7  ;;  %v3824_v7 = vadd.f32 %v3822_v28, %v3817_v31  ;;  %v3301_v34 = vcombine.high %v14883_v43, %v14883_v43  ;;  %v3316_v31 = vpack.c.bf16 %v14782_v44, %v14782_v44  ;;  %v12826_v28 = vld [vmem:[%s13573_s21 + $0x77c] sm:$0xff]  }
 0x14f   : > { %11985 = vmatprep.subr.bf16.mxu0 %v12798_v15  ;;  %v3835_v15 = vstv %s14869_s26  ;;  %v12827_v44 = vld [vmem:[%s13573_s21 + $0x73c] sm:$0xff]   ;;  %s15045_s26 = sld [smem:[#allocation3 + %s4396_s30]] }
 0x150   : > { %3183 = vmatpush1.bf16.msra.mxu1 %v12797_v48  ;;  %v3282_v48 = vmax.f32 %v3280_v58, 0.0  ;;  %v3831_v20 = vadd.f32 %v3829_v27, %v3824_v7  ;;  %v3836_v60 = vmul.f32 %v14658_v13, %v3835_v15  ;;  %v12821_v13 = vld [vmem:[%s13573_s21 + $0x71c] sm:$0xff]   ;;  %v12825_v58 = vld [vmem:[%s13573_s21 + $0x7a4] sm:$0xff]  }
 0x151   : > { %3165 = vmatmul.mubr.bf16.vlgmr.msra.gmra.mrb[24].mxu0 %v2741_v36  ;;  %3184 = vmatprep.subr.bf16.mxu1 %v13467_v40  ;;  %v12814_v36 = vld [vmem:[%s13573_s21 + $0x6cc] sm:$0xff]  }
 0x152   : > { %11986 = vmatpush3.bf16.msra.mxu0 %v12799_v57  ;;  %3701 = vmatprep.mubr.bf16.mxu0 %v3317_v17  ;;  %v2743_v57 = vpack.c.bf16 %v14680_v12, %v14680_v12  ;;  %v12817_v17 = vld [vmem:[%s13573_s21 + $0x714] sm:$0xff]   ;;  %v3838_v56 = vadd.f32 %v3836_v60, %v3831_v20 }
 0x153   : > { %11987 = vmatprep.subr.bf16.mxu0 %v12801_v6 }
 0x154   : > { %3185 = vmatpush1.bf16.msra.mxu1 %v12800_v52  ;;  %v12816_v52 = vld [vmem:[%s13573_s21 + $0x724] sm:$0xff]  }
 0x155   : > { %3186 = vmatprep.subr.bf16.mxu1 %v13467_v40 }
 0x156   : > { %11988 = vmatpush3.bf16.msra.mxu0 %v12802_v53  ;;  %v3319_v53 = vpack.c.bf16 %v3301_v34, %v3301_v34 }
 0x157   : > { %11989 = vmatprep.subr.bf16.mxu0 %v12804_v50  ;;  %v3842_v50 = vstv %s14886_s18 }
 0x158   : > { %3187 = vmatpush1.bf16.msra.mxu1 %v12803_v14  ;;  %v14915_v14 = vrot.slane %v3282_v48, %v13825_v9  ;;  %v3843_v38 = vmul.f32 %v14673_v30, %v3842_v50  ;;  %v3855_v48 = vstv %s14925_s10  ;;  %s4424_s10 = sadd.s32 8, %s14964_s17 }
 0x159   : > { %3188 = vmatprep.subr.bf16.mxu1 %v13467_v40 }
 0x15a   : > { %11990 = vmatpush3.bf16.msra.mxu0 %v12805_v45  ;;  %v12820_v45 = vld [vmem:[%s13573_s21 + $0x72c] sm:$0xff]   ;;  %v3845_v30 = vadd.f32 %v3843_v38, %v3838_v56  ;;  %v3318_v38 = vpack.c.bf16 %v14883_v43, %v14883_v43  ;;  %v12843_v43 = vld [vmem:[%s13573_s21 + $0x7d4] sm:$0xff]  }
 0x15b   : > { %11991 = vmatprep.subr.bf16.mxu0 %v12807_v46  ;;  %v3849_v46 = vstv %s14898_s0  ;;  %s4410_s0 = sadd.s32 6, %s14964_s17  ;;  %s15123_s17 = sld [smem:[#allocation3 + %s4424_s10]] }
 0x15c   : > { %3189 = vmatpush1.bf16.msra.mxu1 %v12806_v32  ;;  %v3309_v32 = vcombine.high %v14915_v14, %v14915_v14  ;;  %v3850_v35 = vmul.f32 %v14693_v29, %v3849_v46  ;;  %s15082_s30 = sld [smem:[#allocation3 + %s4410_s0]] }
 0x15d   : > { %3190 = vmatprep.subr.bf16.mxu1 %v13467_v40 }
 0x15e   : > { %11992 = vmatpush3.bf16.msra.mxu0 %v12808_v19  ;;  %v12824_v19 = vld [vmem:[%s13573_s21 + $0x734] sm:$0xff]   ;;  %v3321_v29 = vpack.c.bf16 %v3309_v32, %v3309_v32  ;;  %v3852_v27 = vadd.f32 %v3850_v35, %v3845_v30  ;;  %v3844_v35 = vmul.f32 %v14831_v10, %v3842_v50  ;;  %v15038_v10 = vld [vmem:[%s17297_s2 + $0xc] sm:$0xff] }
 0x15f   : > { %11993 = vmatprep.subr.bf16.mxu0 %v12810_v0 }
 0x160   : > { %3191 = vmatpush1.bf16.msra.mxu1 %v12809_v59  ;;  %v3856_v34 = vadd.f32 %v3855_v48, %v3852_v27  ;;  %v12848_v27 = vld [vmem:[%s13573_s21 + $0x808] sm:$0xff]  }
 0x161   : > { %3192 = vmatprep.subr.bf16.mxu1 %v13467_v40 }
 0x162   : > { %11994 = vmatpush3.bf16.msra.mxu0 %v12811_v26  ;;  %v11825_v39 = vpop.f32.mrb[4].mxu1  ;;  %v3795_v26 = vmul.f32 %v14709_v22, %v3793_v55  ;;  %v12829_v22 = vld [vmem:[%s13573_s21 + $0x784] sm:$0xff]  }
 0x163   : > { %11995 = vmatprep.subr.bf16.mxu0 %v12813_v2  ;;  %v11826_v6 = vpop.f32.mrb[5].mxu1 }
 0x164   : > { %3193 = vmatpush1.bf16.msra.mxu1 %v3090_v5  ;;  %v11827_v61 = vadd.f32 %v11826_v6, %v11825_v39  ;;  %v11828_v4 = vpop.f32.mrb[6].mxu1  ;;  %v12830_v5 = vld [vmem:[%s13573_s21 + $0x744] sm:$0xff]   ;;  %v12834_v6 = vld [vmem:[%s13573_s21 + $0x7bc] sm:$0xff]  }
 0x165   : > { %12007 = vmatprep.subr.bf16.mxu1 %v12815_v18  ;;  %v11829_v12 = vpop.f32.mrb[7].mxu1  ;;  %v12832_v18 = vld [vmem:[%s13573_s21 + $0x78c] sm:$0xff]   ;;  %v12839_v4 = vld [vmem:[%s13573_s21 + $0x75c] sm:$0xff]  }
 0x166   : > { %11996 = vmatpush3.bf16.msra.mxu0 %v12814_v36  ;;  %v12831_v36 = vld [vmem:[%s13573_s21 + $0x7b4] sm:$0xff]  }
 0x167   : > { %3205 = vmatmul.mubr.bf16.vlgmr.msra.gmra.mrb[28].mxu1 %v2743_v57  ;;  %11997 = vmatprep.subr.bf16.mxu0 %v12817_v17  ;;  %v12833_v57 = vld [vmem:[%s13573_s21 + $0x74c] sm:$0xff]   ;;  %v12835_v17 = vld [vmem:[%s13573_s21 + $0x794] sm:$0xff]  }
 0x168   : > { %12008 = vmatpush3.bf16.msra.mxu1 %v12816_v52  ;;  %3741 = vmatprep.mubr.bf16.mxu1 %v3319_v53  ;;  %v12838_v52 = vld [vmem:[%s13573_s21 + $0x79c] sm:$0xff]   ;;  %v12840_v53 = vld [vmem:[%s13573_s21 + $0x7cc] sm:$0xff]  }
 0x169   : > { %12009 = vmatprep.subr.bf16.mxu1 %v12819_v49  ;;  %v12841_v12 = vld [vmem:[%s13573_s21 + $0x838] sm:$0xff]  }
 0x16a   : > { %11998 = vmatpush3.bf16.msra.mxu0 %v12818_v11 }
 0x16b   : > { %11999 = vmatprep.subr.bf16.mxu0 %v12821_v13  ;;  %v3837_v13 = vmul.f32 %v14806_v54, %v3835_v15  ;;  %v12844_v54 = vld [vmem:[%s13573_s21 + $0x840] sm:$0xff]  }
 0x16c   : > { %v1095_v24 = vpop.f32.mrb[4].mxu0  ;;  %12010 = vmatpush3.bf16.msra.mxu1 %v12820_v45  ;;  %v4370_v45 = vstv %s14983_s8  ;;  %s4944_s8 = sadd.s32 8, %s13566_s16 }
 0x16d   : > { %v1096_v0 = vadd.f32 %v1095_v24, %v14778_v3  ;;  %v1097_v37 = vpop.f32.mrb[5].mxu0  ;;  %12011 = vmatprep.subr.bf16.mxu1 %v12823_v16  ;;  %v3802_v3 = vmul.f32 %v14717_v63, %v3800_v62  ;;  %v12828_v63 = vld [vmem:[%s13573_s21 + $0x7ac] sm:$0xff]   ;;  %v3809_v62 = vmul.f32 %v14734_v21, %v3807_v47  ;;  %v3816_v21 = vmul.f32 %v14753_v41, %v3814_v8  ;;  %v12836_v8 = vld [vmem:[%s13573_s21 + $0x754] sm:$0xff]   ;;  %s15218_s0 = smul.u32 9, %s4944_s8 }
 0x16e   : > { %v1098_v59 = vpop.f32.mrb[6].mxu0  ;;  %12000 = vmatpush3.bf16.msra.mxu0 %v12822_v23  ;;  %v14972_v47 = vmax.f32 %v3856_v34, 0.0  ;;  %v3823_v41 = vmul.f32 %v14768_v25, %v3821_v51  ;;  %v12837_v25 = vld [vmem:[%s13573_s21 + $0x7c4] sm:$0xff]   ;;  %v4377_v16 = vstv %s14985_s13 }
 0x16f   : > { %v14946_v2 = vadd.f32 %v11827_v61, %v1096_v0  ;;  %v1099_v7 = vpop.f32.mrb[7].mxu0  ;;  %3749 = vmatprep.subr.bf16.mxu0 %v13467_v40  ;;  %v3804_v55 = vadd.f32 %v3802_v3, %v3795_v26  ;;  %v3830_v61 = vmul.f32 %v14789_v42, %v3828_v33  ;;  %v12842_v42 = vld [vmem:[%s13573_s21 + $0x7f8] sm:$0xff]   ;;  %v15030_v0 = vld [vmem:[%s17297_s2] sm:$0xff]  ;;  %v4378_v50 = vmul.f32 %v15038_v10, %v4377_v16  ;;  %v12847_v59 = vld [vmem:[%s13573_s21 + $0x848] sm:$0xff]   ;;  %s4952_s19 = sadd.s32 1, %s15218_s0  ;;  %s15239_s22 = sld [smem:[#allocation3 + %s15218_s0]] }
 0x170   : > { %12012 = vmatpush3.bf16.msra.mxu1 %v12824_v19  ;;  %v14990_v60 = vrot.slane %v14972_v47, %v13825_v9  ;;  %v4371_v37 = vmul.f32 %v15030_v0, %v4370_v45  ;;  %v3851_v26 = vmul.f32 %v14850_v1, %v3849_v46  ;;  %v12850_v1 = vld [vmem:[%s13573_s21 + $0x850] sm:$0xff]   ;;  %v3862_v46 = vcombine.high %v14972_v47, %v14972_v47  ;;  %s15241_s23 = sld [smem:[#allocation3 + %s4952_s19]]  ;;  %s4959_s10 = sadd.s32 2, %s15218_s0 }
 0x171   : > { %3702 = vmatmul.mubr.bf16.vlgmr.msra.gmra.mrb[28].mxu0 %v3316_v31  ;;  %12013 = vmatprep.subr.bf16.mxu1 %v12826_v28  ;;  %v3811_v39 = vadd.f32 %v3809_v62, %v3804_v55  ;;  %v4384_v31 = vstv %s15000_s11  ;;  %v12845_v28 = vld [vmem:[%s13573_s21 + $0x800] sm:$0xff]   ;;  %v12852_v47 = vld [vmem:[%s13573_s21 + $0x7ec] sm:$0xff]   ;;  %s15261_s20 = sld [smem:[#allocation3 + %s4959_s10]]  ;;  %s4966_s13 = sadd.s32 3, %s15218_s0 }
 0x172   : > { %3750 = vmatpush1.bf16.msra.mxu0 %v12825_v58  ;;  %10467 = vmatprep.mubr.msk.bf16.mxu0 %vm973_vm0, %v3321_v29  ;;  %v3877_v49 = vcombine.high %v14990_v60, %v14990_v60  ;;  %v12846_v58 = vld [vmem:[%s13573_s21 + $0x7dc] sm:$0xff]   ;;  %v4380_v3 = vadd.f32 %v4378_v50, %v4371_v37  ;;  %v15075_v62 = vld [vmem:[%s17297_s2 + $0x24] sm:$0xff]  ;;  %v12864_v50 = vld [vmem:[%s13573_s21 + $0x870] sm:$0xff]   ;;  %s4973_s12 = sadd.s32 4, %s15218_s0  ;;  %s4980_s15 = sadd.s32 5, %s15218_s0 }
 0x173   : > { %3751 = vmatprep.subr.bf16.mxu0 %v13467_v40  ;;  %v3818_v20 = vadd.f32 %v3816_v21, %v3811_v39  ;;  %v12853_v39 = vld [vmem:[%s13573_s21 + $0x858] sm:$0xff]   ;;  %v15089_v21 = vrot.slane %v3862_v46, %v13825_v9  ;;  %s4987_s18 = sadd.s32 6, %s15218_s0  ;;  %s5001_s11 = sadd.s32 8, %s15218_s0 }
 0x174   : > { %12014 = vmatpush3.bf16.msra.mxu1 %v12827_v44  ;;  %v3894_v30 = vpack.c.bf16 %v3877_v49, %v3877_v49  ;;  %v4391_v44 = vstv %s15016_s14  ;;  %v12858_v49 = vld [vmem:[%s13573_s21 + $0x8b8] sm:$0xff]  }
 0x175   : > { %12015 = vmatprep.subr.bf16.mxu1 %v12829_v22  ;;  %v3825_v51 = vadd.f32 %v3823_v41, %v3818_v20  ;;  %v12849_v22 = vld [vmem:[%s13573_s21 + $0x7e4] sm:$0xff]   ;;  %v4392_v34 = vmul.f32 %v15075_v62, %v4391_v44  ;;  %v4405_v41 = vstv %s15064_s29  ;;  %s15282_s29 = sld [smem:[#allocation3 + %s4966_s13]]  ;;  %s4994_s13 = sadd.s32 7, %s15218_s0 }
 0x176   : > { %3752 = vmatpush1.bf16.msra.mxu0 %v12828_v63  ;;  %s15361_s9 = sld [smem:[#allocation3 + %s4994_s13]] }
 0x177   : > { %3753 = vmatprep.subr.bf16.mxu0 %v13467_v40  ;;  %v3832_v33 = vadd.f32 %v3830_v61, %v3825_v51  ;;  %s15406_s0 = sld [smem:[#allocation6 + %s4944_s8]]  ;;  %s5521_s8 = sadd.s32 9, %s13566_s16 }
 0x178   : > { %12016 = vmatpush3.bf16.msra.mxu1 %v12830_v5  ;;  %v4398_v5 = vstv %s15045_s26 }
 0x179   : > { %12017 = vmatprep.subr.bf16.mxu1 %v12832_v18  ;;  %v3839_v19 = vadd.f32 %v3837_v13, %v3832_v33  ;;  %v12851_v18 = vld [vmem:[%s13573_s21 + $0x810] sm:$0xff]  }
 0x17a   : > { %3754 = vmatpush1.bf16.msra.mxu0 %v12831_v36  ;;  %v12855_v36 = vld [vmem:[%s13573_s21 + $0x7f4] ss:$0 sps:$4 sm:$0x33]  }
 0x17b   : > { %3755 = vmatprep.subr.bf16.mxu0 %v13467_v40  ;;  %v3846_v29 = vadd.f32 %v3844_v35, %v3839_v19  ;;  %v12861_v19 = vld [vmem:[%s13573_s21 + $0x828] sm:$0xff]  }
 0x17c   : > { %12018 = vmatpush3.bf16.msra.mxu1 %v12833_v57 }
 0x17d   : > { %12019 = vmatprep.subr.bf16.mxu1 %v12835_v17  ;;  %v3853_v63 = vadd.f32 %v3851_v26, %v3846_v29  ;;  %v12866_v26 = vld [vmem:[%s13573_s21 + $0x8c8] sm:$0xff]  }
 0x17e   : > { %3756 = vmatpush1.bf16.msra.mxu0 %v12834_v6  ;;  %v15097_v6 = vld [vmem:[%s17297_s2 + $0x30] sm:$0xff] }
 0x17f   : > { %3757 = vmatprep.subr.bf16.mxu0 %v13467_v40  ;;  %v3857_v57 = vadd.f32 %v3855_v48, %v3853_v63  ;;  %v4399_v20 = vmul.f32 %v15097_v6, %v4398_v5  ;;  %v12856_v48 = vld [vmem:[%s13573_s21 + $0x860] sm:$0xff]  }
 0x180   : > { %12020 = vmatpush3.bf16.msra.mxu1 %v12836_v8  ;;  %v12854_v8 = vld [vmem:[%s13573_s21 + $0x818] sm:$0xff]   ;;  %v15170_v63 = vld [vmem:[%s17297_s2 + $0x60] sm:$0xff] }
 0x181   : > { %12021 = vmatprep.subr.bf16.mxu1 %v12838_v52  ;;  %v3878_v52 = vcombine.high %v15089_v21, %v15089_v21  ;;  %v3859_v51 = vmax.f32 %v3857_v57, 0.0 }
 0x182   : > { %v11847_v11 = vpop.f32.mrb[8].mxu1  ;;  %3758 = vmatpush1.bf16.msra.mxu0 %v12837_v25  ;;  %v3667_v25 = vsel %vm977_vm1, %v12855_v36, 0 }
 0x183   : > { %v11848_v56 = vpop.f32.mrb[9].mxu1  ;;  %3759 = vmatprep.subr.bf16.mxu0 %v13467_v40  ;;  %v15145_v37 = vrot.slane %v3859_v51, %v13825_v9 }
 0x184   : > { %v11849_v23 = vadd.f32 %v11848_v56, %v11847_v11  ;;  %12022 = vmatpush3.bf16.msra.mxu1 %v12839_v4  ;;  %v11850_v32 = vpop.f32.mrb[10].mxu1  ;;  %v15115_v4 = vld [vmem:[%s17297_s2 + $0x3c] sm:$0xff]  ;;  %v3320_v56 = vpack.c.bf16 %v14915_v14, %v14915_v14 }
 0x185   : > { %12029 = vmatprep.subr.bf16.mxu1 %v12841_v12  ;;  %v11851_v15 = vpop.f32.mrb[11].mxu1  ;;  %v4412_v12 = vstv %s15082_s30  ;;  %v12859_v32 = vld [vmem:[%s13573_s21 + $0x878] sm:$0xff]   ;;  %v12862_v14 = vld [vmem:[%s13573_s21 + $0x8c0] sm:$0xff]   ;;  %s15306_s30 = sld [smem:[#allocation3 + %s4973_s12]] }
 0x186   : > { %3760 = vmatpush1.bf16.msra.mxu0 %v12840_v53  ;;  %v15025_v24 = vadd.f32 %v11849_v23, %v14946_v2  ;;  %v15057_v2 = vld [vmem:[%s17297_s2 + $0x18] sm:$0xff]  ;;  %v4406_v53 = vmul.f32 %v15115_v4, %v4405_v41  ;;  %v15136_v15 = vld [vmem:[%s17297_s2 + $0x48] sm:$0xff] }
 0x187   : > { %3742 = vmatmul.mubr.bf16.vlgmr.msra.gmra.mrb[32].mxu1 %v3318_v38  ;;  %3761 = vmatprep.subr.bf16.mxu0 %v13467_v40  ;;  %v4385_v7 = vmul.f32 %v15057_v2, %v4384_v31  ;;  %v12860_v38 = vld [vmem:[%s13573_s21 + $0x868] sm:$0xff]   ;;  %v4413_v35 = vmul.f32 %v15136_v15, %v4412_v12 }
 0x188   : > { %12030 = vmatpush3.bf16.msra.mxu1 %v12842_v42  ;;  %4278 = vmatprep.mubr.bf16.mxu1 %v3894_v30  ;;  %v12857_v42 = vld [vmem:[%s13573_s21 + $0x820] sm:$0xff]   ;;  %v3896_v30 = vpack.c.bf16 %v3878_v52, %v3878_v52  ;;  %v15194_v52 = vld [vmem:[%s17297_s2 + $0x14] sm:$0xf] }
 0x189   : > { %12031 = vmatprep.subr.bf16.mxu1 %v12844_v54  ;;  %v4387_v55 = vadd.f32 %v4385_v7, %v4380_v3  ;;  %v4426_v3 = vstv %s15123_s17  ;;  %v12865_v7 = vld [vmem:[%s13573_s21 + $0x830] sm:$0xff]   ;;  %s15346_s17 = sld [smem:[#allocation3 + %s4987_s18]] }
 0x18a   : > { %3762 = vmatpush1.bf16.msra.mxu0 %v12843_v43 }
 0x18b   : > { %3763 = vmatprep.subr.bf16.mxu0 %v13467_v40  ;;  %v4394_v17 = vadd.f32 %v4392_v34, %v4387_v55  ;;  %v4427_v55 = vmul.f32 %v15170_v63, %v4426_v3  ;;  %v3893_v34 = vpack.c.bf16 %v14990_v60, %v14990_v60  ;;  %v15186_v60 = vld [vmem:[%s17297_s2 + $0x8] sm:$0xf] }
 0x18c   : > { %12032 = vmatpush3.bf16.msra.mxu1 %v12845_v28  ;;  %v12863_v28 = vld [vmem:[%s13573_s21 + $0x880] sm:$0xff]  }
 0x18d   : > { %12033 = vmatprep.subr.bf16.mxu1 %v12847_v59  ;;  %v4401_v61 = vadd.f32 %v4399_v20, %v4394_v17 }
 0x18e   : > { %3764 = vmatpush1.bf16.msra.mxu0 %v12846_v58  ;;  %v15152_v58 = vld [vmem:[%s17297_s2 + $0x54] sm:$0xff] }
 0x18f   : > { %3765 = vmatprep.subr.bf16.mxu0 %v13467_v40  ;;  %v4408_v54 = vadd.f32 %v4406_v53, %v4401_v61  ;;  %v12872_v61 = vld [vmem:[%s13573_s21 + $0x8d8] sm:$0xff]   ;;  %v4432_v53 = vstv %s15161_s27  ;;  %s15378_s27 = sld [smem:[#allocation3 + %s5001_s11]] }
 0x190   : > { %12034 = vmatpush3.bf16.msra.mxu1 %v12848_v27  ;;  %v3886_v27 = vcombine.high %v15145_v37, %v15145_v37 }
 0x191   : > { %12035 = vmatprep.subr.bf16.mxu1 %v12850_v1  ;;  %v4415_v59 = vadd.f32 %v4413_v35, %v4408_v54  ;;  %v12867_v1 = vld [vmem:[%s13573_s21 + $0x888] sm:$0xff]  }
 0x192   : > { %3766 = vmatpush1.bf16.msra.mxu0 %v12849_v22  ;;  %v3898_v17 = vpack.c.bf16 %v3886_v27, %v3886_v27  ;;  %v12878_v35 = vld [vmem:[%s13573_s21 + $0x8e8] sm:$0xff]   ;;  %v15267_v27 = vld [vmem:[%s17297_s2 + $0x44] sm:$0xf] }
 0x193   : > { %3767 = vmatprep.subr.bf16.mxu0 %v13467_v40 }
 0x194   : > { %12036 = vmatpush3.bf16.msra.mxu1 %v12851_v18  ;;  %v12869_v18 = vld [vmem:[%s13573_s21 + $0x8d0] sm:$0xff]  }
 0x195   : > { %12037 = vmatprep.subr.bf16.mxu1 %v12853_v39  ;;  %v12868_v39 = vld [vmem:[%s13573_s21 + $0x8f8] sm:$0xff]  }
 0x196   : > { %3768 = vmatpush1.bf16.msra.mxu0 %v12852_v47 }
 0x197   : > { %3769 = vmatprep.subr.bf16.mxu0 %v13467_v40 }
 0x198   : > { %v1476_v11 = vpop.f32.mrb[8].mxu0  ;;  %12038 = vmatpush3.bf16.msra.mxu1 %v12854_v8  ;;  %v12870_v8 = vld [vmem:[%s13573_s21 + $0x890] sm:$0xff]  }
 0x199   : > { %v15127_v33 = vadd.f32 %v1476_v11, %v15025_v24  ;;  %v1478_v13 = vpop.f32.mrb[9].mxu0  ;;  %12039 = vmatprep.subr.bf16.mxu1 %v12856_v48  ;;  %v4419_v24 = vstv %s15104_s28  ;;  %v4372_v48 = vmul.f32 %v15186_v60, %v4370_v45  ;;  %v12871_v45 = vld [vmem:[%s13573_s21 + $0x900] sm:$0xff]   ;;  %s15325_s28 = sld [smem:[#allocation3 + %s4980_s15]] }
 0x19a   : > { %v1479_v23 = vpop.f32.mrb[10].mxu0  ;;  %3770 = vmatpush1.bf16.msra.mxu0 %v3667_v25  ;;  %v4420_v29 = vmul.f32 %v15152_v58, %v4419_v24  ;;  %v4379_v25 = vmul.f32 %v15194_v52, %v4377_v16  ;;  %v12873_v16 = vld [vmem:[%s13573_s21 + $0x898] sm:$0xff]   ;;  %v15209_v11 = vld [vmem:[%s17297_s2 + $0x20] sm:$0xf] }
 0x19b   : > { %v1480_v43 = vpop.f32.mrb[11].mxu0  ;;  %12051 = vmatprep.subr.bf16.mxu0 %v12858_v49  ;;  %v12876_v23 = vld [vmem:[%s13573_s21 + $0x8a0] sm:$0xff]  }
 0x19c   : > { %12040 = vmatpush3.bf16.msra.mxu1 %v12857_v42  ;;  %v4422_v22 = vadd.f32 %v4420_v29, %v4415_v59  ;;  %v4381_v49 = vadd.f32 %v4379_v25, %v4372_v48  ;;  %v4386_v42 = vmul.f32 %v15209_v11, %v4384_v31  ;;  %v15227_v31 = vld [vmem:[%s17297_s2 + $0x2c] sm:$0xf]  ;;  %v12877_v43 = vld [vmem:[%s13573_s21 + $0x910] sm:$0xff]   ;;  %v12880_v29 = vld [vmem:[%s13573_s21 + $0x918] sm:$0xff]  }
 0x19d   : > { %3782 = vmatmul.mubr.bf16.vlgmr.msra.gmra.mrb[32].mxu0 %v3320_v56  ;;  %12041 = vmatprep.subr.bf16.mxu1 %v12860_v38  ;;  %v12875_v56 = vld [vmem:[%s13573_s21 + $0x8e0] sm:$0xff]   ;;  %v12874_v38 = vld [vmem:[%s13573_s21 + $0x908] sm:$0xff]   ;;  %v12881_v59 = vld [vmem:[%s13573_s21 + $0x8f0] sm:$0xff]  }
 0x19e   : > { %12052 = vmatpush3.bf16.msra.mxu0 %v12859_v32  ;;  %4318 = vmatprep.mubr.bf16.mxu0 %v3896_v30  ;;  %v4429_v51 = vadd.f32 %v4427_v55, %v4422_v22  ;;  %v4388_v32 = vadd.f32 %v4386_v42, %v4381_v49  ;;  %v4393_v30 = vmul.f32 %v15227_v31, %v4391_v44  ;;  %v12879_v44 = vld [vmem:[%s13573_s21 + $0x8a8] sm:$0xff]   ;;  %v4961_v49 = vstv %s15261_s20  ;;  %v12888_v42 = vld [vmem:[%s13573_s21 + $0x954] sm:$0xff]  }
 0x19f   : > { %12053 = vmatprep.subr.bf16.mxu0 %v12862_v14  ;;  %v12884_v22 = vld [vmem:[%s13573_s21 + $0x98c] sm:$0xff]  }
 0x1a0   : > { %12042 = vmatpush3.bf16.msra.mxu1 %v12861_v19  ;;  %v4433_v13 = vadd.f32 %v4432_v53, %v4429_v51  ;;  %v4395_v14 = vadd.f32 %v4393_v30, %v4388_v32  ;;  %v15247_v19 = vld [vmem:[%s17297_s2 + $0x38] sm:$0xf]  ;;  %v4968_v32 = vstv %s15282_s29 }
 0x1a1   : > { %12043 = vmatprep.subr.bf16.mxu1 %v12864_v50  ;;  %v4400_v50 = vmul.f32 %v15247_v19, %v4398_v5  ;;  %v12883_v5 = vld [vmem:[%s13573_s21 + $0x920] sm:$0xff]   ;;  %v12887_v51 = vld [vmem:[%s13573_s21 + $0x994] sm:$0xff]  }
 0x1a2   : > { %12054 = vmatpush3.bf16.msra.mxu0 %v12863_v28  ;;  %v11869_v46 = vpop.f32.mrb[12].mxu1  ;;  %v15232_v54 = vmax.f32 %v4433_v13, 0.0  ;;  %v15312_v13 = vld [vmem:[%s17297_s2 + $0x5c] sm:$0xf] }
 0x1a3   : > { %12055 = vmatprep.subr.bf16.mxu0 %v12866_v26  ;;  %v11870_v36 = vpop.f32.mrb[13].mxu1  ;;  %v12882_v26 = vld [vmem:[%s13573_s21 + $0x8b0] sm:$0xff]  }
 0x1a4   : > { %12044 = vmatpush3.bf16.msra.mxu1 %v12865_v7  ;;  %v15179_v47 = vadd.f32 %v11870_v36, %v11869_v46  ;;  %v11872_v57 = vpop.f32.mrb[14].mxu1  ;;  %v15254_v28 = vrot.slane %v15232_v54, %v13825_v9  ;;  %v4402_v7 = vadd.f32 %v4400_v50, %v4395_v14  ;;  %v3895_v36 = vpack.c.bf16 %v15089_v21, %v15089_v21 }
 0x1a5   : > { %4326 = vmatprep.subr.bf16.mxu1 %v13467_v40  ;;  %v11873_v20 = vpop.f32.mrb[15].mxu1  ;;  %v4439_v14 = vcombine.high %v15232_v54, %v15232_v54  ;;  %v12896_v54 = vld [vmem:[%s13573_s21 + $0x9ac] sm:$0xff]  }
 0x1a6   : > { %12056 = vmatpush3.bf16.msra.mxu0 %v12867_v1  ;;  %v4407_v1 = vmul.f32 %v15267_v27, %v4405_v41  ;;  %v4454_v46 = vcombine.high %v15254_v28, %v15254_v28  ;;  %v4947_v41 = vstv %s15239_s22  ;;  %s15437_s22 = smul.u32 9, %s5521_s8 }
 0x1a7   : > { %4279 = vmatmul.mubr.bf16.vlgmr.msra.gmra.mrb[36].mxu1 %v3893_v34  ;;  %12057 = vmatprep.subr.bf16.mxu0 %v12869_v18  ;;  %v12885_v34 = vld [vmem:[%s13573_s21 + $0x94c] sm:$0xff]  }
 0x1a8   : > { %4327 = vmatpush1.bf16.msra.mxu1 %v12868_v39  ;;  %10596 = vmatprep.mubr.msk.bf16.mxu1 %vm973_vm0, %v3898_v17  ;;  %v4954_v39 = vstv %s15241_s23  ;;  %v4409_v20 = vadd.f32 %v4407_v1, %v4402_v7  ;;  %v4471_v48 = vpack.c.bf16 %v4454_v46, %v4454_v46  ;;  %v15354_v7 = vrot.slane %v4439_v14, %v13825_v9  ;;  %v12908_v14 = vld [vmem:[%s13573_s21 + $0x984] sm:$0xff]   ;;  %s5529_s23 = sadd.s32 1, %s15437_s22  ;;  %s15458_s20 = sld [smem:[#allocation3 + %s15437_s22]] }
 0x1a9   : > { %4328 = vmatprep.subr.bf16.mxu1 %v13467_v40  ;;  %s15460_s12 = sld [smem:[#allocation3 + %s5529_s23]]  ;;  %s5536_s19 = sadd.s32 2, %s15437_s22 }
 0x1aa   : > { %12058 = vmatpush3.bf16.msra.mxu0 %v12870_v8  ;;  %v15287_v8 = vld [vmem:[%s17297_s2 + $0x50] sm:$0xf]  ;;  %s15474_s29 = sld [smem:[#allocation3 + %s5536_s19]]  ;;  %s5550_s15 = sadd.s32 4, %s15437_s22 }
 0x1ab   : > { %12059 = vmatprep.subr.bf16.mxu0 %v12872_v61  ;;  %v4414_v21 = vmul.f32 %v15287_v8, %v4412_v12  ;;  %v12886_v61 = vld [vmem:[%s13573_s21 + $0x928] sm:$0xff]   ;;  %v4955_v12 = vmul.f32 %v15038_v10, %v4954_v39  ;;  %v12889_v10 = vld [vmem:[%s13573_s21 + $0x930] sm:$0xff]   ;;  %s5557_s13 = sadd.s32 5, %s15437_s22  ;;  %s5564_s19 = sadd.s32 6, %s15437_s22 }
 0x1ac   : > { %4329 = vmatpush1.bf16.msra.mxu1 %v12871_v45 }
 0x1ad   : > { %4330 = vmatprep.subr.bf16.mxu1 %v13467_v40 }
 0x1ae   : > { %12060 = vmatpush3.bf16.msra.mxu0 %v12873_v16  ;;  %v4948_v16 = vmul.f32 %v15030_v0, %v4947_v41  ;;  %v4421_v0 = vmul.f32 %v15312_v13, %v4419_v24  ;;  %v12891_v24 = vld [vmem:[%s13573_s21 + $0x95c] sm:$0xff]  }
 0x1af   : > { %12061 = vmatprep.subr.bf16.mxu0 %v12875_v56  ;;  %v12890_v56 = vld [vmem:[%s13573_s21 + $0x99c] sm:$0xff]  }
 0x1b0   : > { %4331 = vmatpush1.bf16.msra.mxu1 %v12874_v38  ;;  %v4957_v38 = vadd.f32 %v4955_v12, %v4948_v16  ;;  %v12902_v12 = vld [vmem:[%s13573_s21 + $0x9cc] sm:$0xff]  }
 0x1b1   : > { %4332 = vmatprep.subr.bf16.mxu1 %v13467_v40 }
 0x1b2   : > { %12062 = vmatpush3.bf16.msra.mxu0 %v12876_v23  ;;  %v4962_v23 = vmul.f32 %v15057_v2, %v4961_v49 }
 0x1b3   : > { %12063 = vmatprep.subr.bf16.mxu0 %v12878_v35  ;;  %v15331_v35 = vld [vmem:[%s17297_s2 + $0x68] sm:$0xf] }
 0x1b4   : > { %4333 = vmatpush1.bf16.msra.mxu1 %v12877_v43  ;;  %v4428_v2 = vmul.f32 %v15331_v35, %v4426_v3  ;;  %v12893_v43 = vld [vmem:[%s13573_s21 + $0x9a4] sm:$0xff]   ;;  %v4964_v50 = vadd.f32 %v4962_v23, %v4957_v38  ;;  %v4975_v3 = vstv %s15306_s30  ;;  %v4996_v38 = vstv %s15361_s9  ;;  %v12904_v23 = vld [vmem:[%s13573_s21 + $0x97c] sm:$0xff]   ;;  %s5543_s30 = sadd.s32 3, %s15437_s22  ;;  %s15540_s9 = sld [smem:[#allocation3 + %s5557_s13]] }
 0x1b5   : > { %4334 = vmatprep.subr.bf16.mxu1 %v13467_v40  ;;  %v4976_v46 = vmul.f32 %v15097_v6, %v4975_v3  ;;  %v4455_v6 = vcombine.high %v15354_v7, %v15354_v7  ;;  %s15492_s14 = sld [smem:[#allocation3 + %s5543_s30]]  ;;  %s5578_s13 = sadd.s32 8, %s15437_s22 }
 0x1b6   : > { %12064 = vmatpush3.bf16.msra.mxu0 %v12879_v44  ;;  %v12892_v44 = vld [vmem:[%s13573_s21 + $0x938] sm:$0xff]  }
 0x1b7   : > { %12065 = vmatprep.subr.bf16.mxu0 %v12881_v59  ;;  %v4969_v59 = vmul.f32 %v15075_v62, %v4968_v32  ;;  %v12895_v62 = vld [vmem:[%s13573_s21 + $0x940] sm:$0xff]  }
 0x1b8   : > { %v11891_v55 = vpop.f32.mrb[12].mxu0  ;;  %4335 = vmatpush1.bf16.msra.mxu1 %v12880_v29  ;;  %v12894_v29 = vld [vmem:[%s13573_s21 + $0x964] sm:$0xff]  }
 0x1b9   : > { %v11892_v18 = vpop.f32.mrb[13].mxu0  ;;  %4336 = vmatprep.subr.bf16.mxu1 %v13467_v40  ;;  %v4971_v1 = vadd.f32 %v4969_v59, %v4964_v50  ;;  %v12910_v59 = vld [vmem:[%s13573_s21 + $0x9dc] sm:$0xff]  }
 0x1ba   : > { %v11893_v57 = vadd.f32 %v11892_v18, %v11891_v55  ;;  %v11894_v17 = vpop.f32.mrb[14].mxu0  ;;  %12066 = vmatpush3.bf16.msra.mxu0 %v12882_v26  ;;  %v12898_v26 = vld [vmem:[%s13573_s21 + $0x948] ss:$0 sps:$4 sm:$0x33]   ;;  %v12897_v55 = vld [vmem:[%s13573_s21 + $0x96c] sm:$0xff]   ;;  %v12899_v18 = vld [vmem:[%s13573_s21 + $0x9b4] sm:$0xff]  }
 0x1bb   : > { %v11895_v25 = vpop.f32.mrb[15].mxu0  ;;  %12073 = vmatprep.subr.bf16.mxu0 %v12884_v22  ;;  %v4982_v22 = vstv %s15325_s28  ;;  %v4978_v17 = vadd.f32 %v4976_v46, %v4971_v1  ;;  %v12912_v1 = vld [vmem:[%s13573_s21 + $0xa24] sm:$0xff]   ;;  %s5571_s28 = sadd.s32 7, %s15437_s22 }
 0x1bc   : > { %4337 = vmatpush1.bf16.msra.mxu1 %v12883_v5  ;;  %v15296_v45 = vadd.f32 %v11893_v57, %v15179_v47  ;;  %v4416_v47 = vadd.f32 %v4414_v21, %v4409_v20  ;;  %v12900_v57 = vld [vmem:[%s13573_s21 + $0x974] sm:$0xff]   ;;  %v4983_v20 = vmul.f32 %v15115_v4, %v4982_v22  ;;  %v12901_v21 = vld [vmem:[%s13573_s21 + $0xa0c] sm:$0xff]   ;;  %v12903_v4 = vld [vmem:[%s13573_s21 + $0x9bc] sm:$0xff]   ;;  %s15582_s18 = sld [smem:[#allocation3 + %s5571_s28]] }
 0x1bd   : > { %4319 = vmatmul.mubr.bf16.vlgmr.msra.gmra.mrb[36].mxu0 %v3895_v36  ;;  %4338 = vmatprep.subr.bf16.mxu1 %v13467_v40  ;;  %v4244_v36 = vsel %vm977_vm1, %v12898_v26, 0  ;;  %v12911_v26 = vld [vmem:[%s13573_s21 + $0xa4c] sm:$0xff]   ;;  %s15641_s28 = sld [smem:[#allocation6 + %s5521_s8]] }
 0x1be   : > { %12074 = vmatpush3.bf16.msra.mxu0 %v12885_v34  ;;  %4855 = vmatprep.mubr.bf16.mxu0 %v4471_v48  ;;  %v4423_v30 = vadd.f32 %v4421_v0, %v4416_v47  ;;  %v4473_v47 = vpack.c.bf16 %v4455_v6, %v4455_v6  ;;  %v4985_v0 = vadd.f32 %v4983_v20, %v4978_v17  ;;  %v12915_v17 = vld [vmem:[%s13573_s21 + $0xa2c] sm:$0xff]   ;;  %v5009_v20 = vstv %s15406_s0  ;;  %s15602_s0 = sld [smem:[#allocation3 + %s5578_s13]] }
 0x1bf   : > { %12075 = vmatprep.subr.bf16.mxu0 %v12887_v51 }
 0x1c0   : > { %4339 = vmatpush1.bf16.msra.mxu1 %v12886_v61  ;;  %v4430_v5 = vadd.f32 %v4428_v2, %v4423_v30  ;;  %v3897_v61 = vpack.c.bf16 %v15145_v37, %v15145_v37  ;;  %v4997_v2 = vmul.f32 %v15152_v58, %v4996_v38 }
 0x1c1   : > { %4340 = vmatprep.subr.bf16.mxu1 %v13467_v40 }
 0x1c2   : > { %12076 = vmatpush3.bf16.msra.mxu0 %v12888_v42  ;;  %v4434_v34 = vadd.f32 %v4432_v53, %v4430_v5  ;;  %v4989_v53 = vstv %s15346_s17  ;;  %s15521_s17 = sld [smem:[#allocation3 + %s5550_s15]] }
 0x1c3   : > { %12077 = vmatprep.subr.bf16.mxu0 %v12890_v56  ;;  %v12905_v56 = vld [vmem:[%s13573_s21 + $0xa14] sm:$0xff]  }
 0x1c4   : > { %4341 = vmatpush1.bf16.msra.mxu1 %v12889_v10  ;;  %v4436_v25 = vmax.f32 %v4434_v34, 0.0  ;;  %v4990_v10 = vmul.f32 %v15136_v15, %v4989_v53  ;;  %v12907_v15 = vld [vmem:[%s13573_s21 + $0x9c4] sm:$0xff]  }
 0x1c5   : > { %4342 = vmatprep.subr.bf16.mxu1 %v13467_v40  ;;  %v12913_v34 = vld [vmem:[%s13573_s21 + $0x9e4] sm:$0xff]  }
 0x1c6   : > { %12078 = vmatpush3.bf16.msra.mxu0 %v12891_v24  ;;  %v15395_v24 = vrot.slane %v4436_v25, %v13825_v9  ;;  %v4992_v30 = vadd.f32 %v4990_v10, %v4985_v0  ;;  %v12919_v25 = vld [vmem:[%s13573_s21 + $0x9f4] sm:$0xff]   ;;  %v12925_v0 = vld [vmem:[%s13573_s21 + $0xa04] sm:$0xff]  }
 0x1c7   : > { %12079 = vmatprep.subr.bf16.mxu0 %v12893_v43  ;;  %v12909_v43 = vld [vmem:[%s13573_s21 + $0xa1c] sm:$0xff]  }
 0x1c8   : > { %4343 = vmatpush1.bf16.msra.mxu1 %v12892_v44  ;;  %v5003_v44 = vstv %s15378_s27  ;;  %v4463_v50 = vcombine.high %v15395_v24, %v15395_v24  ;;  %v4999_v58 = vadd.f32 %v4997_v2, %v4992_v30  ;;  %v5531_v30 = vstv %s15460_s12  ;;  %s15562_s27 = sld [smem:[#allocation3 + %s5564_s19]] }
 0x1c9   : > { %4344 = vmatprep.subr.bf16.mxu1 %v13467_v40  ;;  %v5004_v5 = vmul.f32 %v15170_v63, %v5003_v44  ;;  %v12914_v63 = vld [vmem:[%s13573_s21 + $0xa54] sm:$0xff]  }
 0x1ca   : > { %12080 = vmatpush3.bf16.msra.mxu0 %v12894_v29 }
 0x1cb   : > { %12081 = vmatprep.subr.bf16.mxu0 %v12896_v54  ;;  %v5006_v6 = vadd.f32 %v5004_v5, %v4999_v58  ;;  %v15506_v5 = vld [vmem:[%s17297_s2] sm:$0xff] }
 0x1cc   : > { %4345 = vmatpush1.bf16.msra.mxu1 %v12895_v62  ;;  %v4470_v62 = vpack.c.bf16 %v15254_v28, %v15254_v28  ;;  %v4949_v28 = vmul.f32 %v15186_v60, %v4947_v41  ;;  %v12917_v60 = vld [vmem:[%s13573_s21 + $0xa5c] sm:$0xff]   ;;  %v4963_v41 = vmul.f32 %v15209_v11, %v4961_v49 }
 0x1cd   : > { %4346 = vmatprep.subr.bf16.mxu1 %v13467_v40  ;;  %v12921_v49 = vld [vmem:[%s13573_s21 + $0xa3c] sm:$0xff]  }
 0x1ce   : > { %v2052_v48 = vpop.f32.mrb[16].mxu1  ;;  %12082 = vmatpush3.bf16.msra.mxu0 %v12897_v55 }
 0x1cf   : > { %v2053_v51 = vadd.f32 %v2052_v48, %v15296_v45  ;;  %12083 = vmatprep.subr.bf16.mxu0 %v12899_v18  ;;  %v2054_v16 = vpop.f32.mrb[17].mxu1  ;;  %v4475_v18 = vpack.c.bf16 %v4463_v50, %v4463_v50  ;;  %v12918_v48 = vld [vmem:[%s13573_s21 + $0xa34] sm:$0xff]   ;;  %v4991_v50 = vmul.f32 %v15287_v8, %v4989_v53  ;;  %v15514_v53 = vld [vmem:[%s17297_s2 + $0xc] sm:$0xff] }
 0x1d0   : > { %4347 = vmatpush1.bf16.msra.mxu1 %v4244_v36  ;;  %v2055_v42 = vpop.f32.mrb[18].mxu1  ;;  %v12922_v16 = vld [vmem:[%s13573_s21 + $0x9fc] sm:$0xff]  }
 0x1d1   : > { %v15389_v45 = vadd.f32 %v2053_v51, %v15127_v33  ;;  %12095 = vmatprep.subr.bf16.mxu1 %v12901_v21  ;;  %v2056_v37 = vpop.f32.mrb[19].mxu1  ;;  %v12906_v33 = vld [vmem:[%s13573_s21 + $0x9d4] sm:$0xff]   ;;  %v12916_v21 = vld [vmem:[%s13573_s21 + $0x9ec] sm:$0xff]   ;;  %v12920_v51 = vld [vmem:[%s13573_s21 + $0xa64] sm:$0xff]  }
 0x1d2   : > { %12084 = vmatpush3.bf16.msra.mxu0 %v12900_v57  ;;  %v4956_v57 = vmul.f32 %v15194_v52, %v4954_v39  ;;  %v5010_v39 = vadd.f32 %v5009_v20, %v5006_v6  ;;  %v12924_v42 = vld [vmem:[%s13573_s21 + $0xa44] sm:$0xff]   ;;  %v5005_v6 = vmul.f32 %v15331_v35, %v5003_v44  ;;  %v12937_v44 = vld [vmem:[%s13573_s21 + $0xab8] sm:$0xff]  }
 0x1d3   : > { %4359 = vmatmul.mubr.bf16.vlgmr.msra.gmra.mrb[40].mxu1 %v3897_v61  ;;  %12085 = vmatprep.subr.bf16.mxu0 %v12903_v4  ;;  %v4970_v4 = vmul.f32 %v15227_v31, %v4968_v32  ;;  %v4977_v31 = vmul.f32 %v15247_v19, %v4975_v3  ;;  %v4984_v19 = vmul.f32 %v15267_v27, %v4982_v22  ;;  %v12928_v27 = vld [vmem:[%s13573_s21 + $0xaa0] sm:$0xff]   ;;  %v5524_v22 = vstv %s15458_s20  ;;  %s6098_s20 = sadd.s32 10, %s13566_s16 }
 0x1d4   : > { %12096 = vmatpush3.bf16.msra.mxu1 %v12902_v12  ;;  %4895 = vmatprep.mubr.bf16.mxu1 %v4473_v47  ;;  %v4958_v52 = vadd.f32 %v4956_v57, %v4949_v28  ;;  %v15454_v11 = vmax.f32 %v5010_v39, 0.0  ;;  %v12923_v47 = vld [vmem:[%s13573_s21 + $0xa6c] sm:$0xff]   ;;  %v5525_v8 = vmul.f32 %v15506_v5, %v5524_v22  ;;  %v5552_v39 = vstv %s15521_s17  ;;  %s15699_s19 = smul.u32 9, %s6098_s20 }
 0x1d5   : > { %12097 = vmatprep.subr.bf16.mxu1 %v12905_v56  ;;  %v12927_v56 = vld [vmem:[%s13573_s21 + $0xae0] sm:$0xff]  }
 0x1d6   : > { %12086 = vmatpush3.bf16.msra.mxu0 %v12904_v23  ;;  %v4965_v61 = vadd.f32 %v4963_v41, %v4958_v52  ;;  %v15470_v32 = vrot.slane %v15454_v11, %v13825_v9  ;;  %v12926_v23 = vld [vmem:[%s13573_s21 + $0xa74] sm:$0xff]   ;;  %v15554_v41 = vld [vmem:[%s17297_s2 + $0x24] sm:$0xff]  ;;  %s6106_s15 = sadd.s32 1, %s15699_s19  ;;  %s15719_s10 = sld [smem:[#allocation3 + %s15699_s19]] }
 0x1d7   : > { %12087 = vmatprep.subr.bf16.mxu0 %v12907_v15  ;;  %s15721_s26 = sld [smem:[#allocation3 + %s6106_s15]]  ;;  %s6113_s13 = sadd.s32 2, %s15699_s19 }
 0x1d8   : > { %v11913_v29 = vpop.f32.mrb[16].mxu0  ;;  %12098 = vmatpush3.bf16.msra.mxu1 %v12906_v33  ;;  %v4972_v12 = vadd.f32 %v4970_v4, %v4965_v61  ;;  %v5031_v3 = vcombine.high %v15470_v32, %v15470_v32  ;;  %v4472_v33 = vpack.c.bf16 %v15354_v7, %v15354_v7  ;;  %v12930_v7 = vld [vmem:[%s13573_s21 + $0xae8] sm:$0xff]   ;;  %v12938_v61 = vld [vmem:[%s13573_s21 + $0xa94] sm:$0xff]   ;;  %s15740_s11 = sld [smem:[#allocation3 + %s6113_s13]]  ;;  %s6120_s12 = sadd.s32 3, %s15699_s19 }
 0x1d9   : > { %v11914_v54 = vpop.f32.mrb[17].mxu0  ;;  %12099 = vmatprep.subr.bf16.mxu1 %v12909_v43  ;;  %s6127_s30 = sadd.s32 4, %s15699_s19  ;;  %s6134_s8 = sadd.s32 5, %s15699_s19 }
 0x1da   : > { %v15419_v46 = vadd.f32 %v11914_v54, %v11913_v29  ;;  %v11916_v55 = vpop.f32.mrb[18].mxu0  ;;  %12088 = vmatpush3.bf16.msra.mxu0 %v12908_v14  ;;  %v4979_v10 = vadd.f32 %v4977_v31, %v4972_v12  ;;  %v5532_v54 = vmul.f32 %v15514_v53, %v5531_v30  ;;  %v12940_v12 = vld [vmem:[%s13573_s21 + $0xac0] sm:$0xff]   ;;  %v5559_v31 = vstv %s15540_s9  ;;  %s15762_s9 = sld [smem:[#allocation3 + %s6120_s12]]  ;;  %s6141_s23 = sadd.s32 6, %s15699_s19 }
 0x1db   : > { %v11917_v36 = vpop.f32.mrb[19].mxu0  ;;  %4903 = vmatprep.subr.bf16.mxu0 %v13467_v40  ;;  %v4998_v55 = vmul.f32 %v15312_v13, %v4996_v38  ;;  %v5545_v13 = vstv %s15492_s14  ;;  %v12934_v38 = vld [vmem:[%s13573_s21 + $0xab0] sm:$0xff]   ;;  %s6148_s12 = sadd.s32 7, %s15699_s19 }
 0x1dc   : > { %12100 = vmatpush3.bf16.msra.mxu1 %v12910_v59  ;;  %v4986_v14 = vadd.f32 %v4984_v19, %v4979_v10  ;;  %v5048_v59 = vpack.c.bf16 %v5031_v3, %v5031_v3  ;;  %v5534_v36 = vadd.f32 %v5532_v54, %v5525_v8  ;;  %v5546_v35 = vmul.f32 %v15554_v41, %v5545_v13  ;;  %v15594_v3 = vld [vmem:[%s17297_s2 + $0x3c] sm:$0xff]  ;;  %v15614_v8 = vld [vmem:[%s17297_s2 + $0x48] sm:$0xff]  ;;  %s15842_s22 = sld [smem:[#allocation3 + %s6148_s12]] }
 0x1dd   : > { %4856 = vmatmul.mubr.bf16.vlgmr.msra.gmra.mrb[40].mxu0 %v4470_v62  ;;  %12101 = vmatprep.subr.bf16.mxu1 %v12912_v1  ;;  %v5538_v62 = vstv %s15474_s29  ;;  %v12931_v1 = vld [vmem:[%s13573_s21 + $0xaa8] sm:$0xff]   ;;  %s6155_s29 = sadd.s32 8, %s15699_s19  ;;  %s15886_s19 = sld [smem:[#allocation6 + %s6098_s20]] }
 0x1de   : > { %4904 = vmatpush1.bf16.msra.mxu0 %v12911_v26  ;;  %10725 = vmatprep.mubr.msk.bf16.mxu0 %vm973_vm0, %v4475_v18  ;;  %v12929_v26 = vld [vmem:[%s13573_s21 + $0xa7c] sm:$0xff]   ;;  %v12932_v18 = vld [vmem:[%s13573_s21 + $0xa84] sm:$0xff]   ;;  %s6675_s20 = sadd.s32 11, %s13566_s16 }
 0x1df   : > { %4905 = vmatprep.subr.bf16.mxu0 %v13467_v40 }
 0x1e0   : > { %12102 = vmatpush3.bf16.msra.mxu1 %v12913_v34  ;;  %v12933_v34 = vld [vmem:[%s13573_s21 + $0xaf0] sm:$0xff]  }
 0x1e1   : > { %12103 = vmatprep.subr.bf16.mxu1 %v12915_v17  ;;  %v12936_v17 = vld [vmem:[%s13573_s21 + $0xaf8] sm:$0xff]  }
 0x1e2   : > { %4906 = vmatpush1.bf16.msra.mxu0 %v12914_v63  ;;  %v15533_v63 = vld [vmem:[%s17297_s2 + $0x18] sm:$0xff] }
 0x1e3   : > { %4907 = vmatprep.subr.bf16.mxu0 %v13467_v40  ;;  %v5539_v28 = vmul.f32 %v15533_v63, %v5538_v62 }
 0x1e4   : > { %12104 = vmatpush3.bf16.msra.mxu1 %v12916_v21  ;;  %v12935_v21 = vld [vmem:[%s13573_s21 + $0xa8c] sm:$0xff]  }
 0x1e5   : > { %12105 = vmatprep.subr.bf16.mxu1 %v12918_v48  ;;  %v5541_v52 = vadd.f32 %v5539_v28, %v5534_v36  ;;  %v12939_v48 = vld [vmem:[%s13573_s21 + $0xb00] sm:$0xff]   ;;  %v15632_v36 = vld [vmem:[%s17297_s2 + $0x54] sm:$0xff] }
 0x1e6   : > { %4908 = vmatpush1.bf16.msra.mxu0 %v12917_v60  ;;  %v5016_v60 = vcombine.high %v15454_v11, %v15454_v11 }
 0x1e7   : > { %4909 = vmatprep.subr.bf16.mxu0 %v13467_v40  ;;  %v5548_v11 = vadd.f32 %v5546_v35, %v5541_v52  ;;  %v15650_v35 = vld [vmem:[%s17297_s2 + $0x60] sm:$0xff] }
 0x1e8   : > { %12106 = vmatpush3.bf16.msra.mxu1 %v12919_v25  ;;  %v12941_v25 = vld [vmem:[%s13573_s21 + $0xa9c] ss:$0 sps:$4 sm:$0x33]   ;;  %v15569_v4 = vrot.slane %v5016_v60, %v13825_v9 }
 0x1e9   : > { %12107 = vmatprep.subr.bf16.mxu1 %v12921_v49  ;;  %v15574_v49 = vld [vmem:[%s17297_s2 + $0x30] sm:$0xff] }
 0x1ea   : > { %4910 = vmatpush1.bf16.msra.mxu0 %v12920_v51  ;;  %v5032_v10 = vcombine.high %v15569_v4, %v15569_v4 }
 0x1eb   : > { %4911 = vmatprep.subr.bf16.mxu0 %v13467_v40 }
 0x1ec   : > { %12108 = vmatpush3.bf16.msra.mxu1 %v12922_v16  ;;  %v5553_v16 = vmul.f32 %v15574_v49, %v5552_v39 }
 0x1ed   : > { %12109 = vmatprep.subr.bf16.mxu1 %v12924_v42  ;;  %v12942_v42 = vld [vmem:[%s13573_s21 + $0xb08] sm:$0xff]  }
 0x1ee   : > { %v11935_v37 = vpop.f32.mrb[20].mxu1  ;;  %4912 = vmatpush1.bf16.msra.mxu0 %v12923_v47  ;;  %v5555_v19 = vadd.f32 %v5553_v16, %v5548_v11 }
 0x1ef   : > { %v11936_v15 = vpop.f32.mrb[21].mxu1  ;;  %4913 = vmatprep.subr.bf16.mxu0 %v13467_v40 }
 0x1f0   : > { %v11937_v2 = vadd.f32 %v11936_v15, %v11935_v37  ;;  %12110 = vmatpush3.bf16.msra.mxu1 %v12925_v0  ;;  %v11938_v43 = vpop.f32.mrb[22].mxu1  ;;  %v4821_v0 = vsel %vm977_vm1, %v12941_v25, 0  ;;  %v5566_v37 = vstv %s15562_s27  ;;  %v12943_v15 = vld [vmem:[%s13573_s21 + $0xac8] sm:$0xff]   ;;  %v12955_v25 = vld [vmem:[%s13573_s21 + $0xb78] sm:$0xff]   ;;  %s15786_s27 = sld [smem:[#allocation3 + %s6127_s30]] }
 0x1f1   : > { %12117 = vmatprep.subr.bf16.mxu1 %v12927_v56  ;;  %v11939_v29 = vpop.f32.mrb[23].mxu1  ;;  %v5560_v56 = vmul.f32 %v15594_v3, %v5559_v31 }
 0x1f2   : > { %4914 = vmatpush1.bf16.msra.mxu0 %v12926_v23  ;;  %v15501_v58 = vadd.f32 %v11937_v2, %v15419_v46  ;;  %v4993_v46 = vadd.f32 %v4991_v50, %v4986_v14  ;;  %v4474_v14 = vpack.c.bf16 %v15395_v24, %v15395_v24  ;;  %v12946_v50 = vld [vmem:[%s13573_s21 + $0xb10] sm:$0xff]   ;;  %v5050_v29 = vpack.c.bf16 %v5032_v10, %v5032_v10 }
 0x1f3   : > { %4896 = vmatmul.mubr.bf16.vlgmr.msra.gmra.mrb[44].mxu1 %v4472_v33  ;;  %4915 = vmatprep.subr.bf16.mxu0 %v13467_v40  ;;  %v12945_v33 = vld [vmem:[%s13573_s21 + $0xb20] sm:$0xff]  }
 0x1f4   : > { %12118 = vmatpush3.bf16.msra.mxu1 %v12928_v27  ;;  %5432 = vmatprep.mubr.bf16.mxu1 %v5048_v59  ;;  %v5000_v57 = vadd.f32 %v4998_v55, %v4993_v46  ;;  %v5573_v46 = vstv %s15582_s18  ;;  %v12950_v55 = vld [vmem:[%s13573_s21 + $0xb18] sm:$0xff]   ;;  %s15805_s18 = sld [smem:[#allocation3 + %s6134_s8]] }
 0x1f5   : > { %12119 = vmatprep.subr.bf16.mxu1 %v12930_v7  ;;  %v12947_v7 = vld [vmem:[%s13573_s21 + $0xad0] sm:$0xff]   ;;  %v5574_v28 = vmul.f32 %v15632_v36, %v5573_v46 }
 0x1f6   : > { %4916 = vmatpush1.bf16.msra.mxu0 %v12929_v26  ;;  %v5007_v51 = vadd.f32 %v5005_v6, %v5000_v57  ;;  %v5562_v26 = vadd.f32 %v5560_v56, %v5555_v19  ;;  %v5580_v57 = vstv %s15602_s0  ;;  %v12951_v6 = vld [vmem:[%s13573_s21 + $0xad8] sm:$0xff]   ;;  %v15675_v19 = vld [vmem:[%s17297_s2 + $0x14] sm:$0xf]  ;;  %s15827_s0 = sld [smem:[#allocation3 + %s6141_s23]] }
 0x1f7   : > { %4917 = vmatprep.subr.bf16.mxu0 %v13467_v40  ;;  %v5533_v56 = vmul.f32 %v15675_v19, %v5531_v30 }
 0x1f8   : > { %12120 = vmatpush3.bf16.msra.mxu1 %v12931_v1  ;;  %v5011_v47 = vadd.f32 %v5009_v20, %v5007_v51  ;;  %v12944_v20 = vld [vmem:[%s13573_s21 + $0xb60] sm:$0xff]   ;;  %v12948_v1 = vld [vmem:[%s13573_s21 + $0xb68] sm:$0xff]  }
 0x1f9   : > { %12121 = vmatprep.subr.bf16.mxu1 %v12933_v34 }
 0x1fa   : > { %4918 = vmatpush1.bf16.msra.mxu0 %v12932_v18  ;;  %v5013_v27 = vmax.f32 %v5011_v47, 0.0  ;;  %v12949_v18 = vld [vmem:[%s13573_s21 + $0xb28] sm:$0xff]  }
 0x1fb   : > { %4919 = vmatprep.subr.bf16.mxu0 %v13467_v40 }
 0x1fc   : > { %12122 = vmatpush3.bf16.msra.mxu1 %v12934_v38  ;;  %v15626_v34 = vrot.slane %v5013_v27, %v13825_v9  ;;  %v12952_v38 = vld [vmem:[%s13573_s21 + $0xb70] sm:$0xff]   ;;  %v15690_v27 = vld [vmem:[%s17297_s2 + $0x20] sm:$0xf] }
 0x1fd   : > { %12123 = vmatprep.subr.bf16.mxu1 %v12936_v17 }
 0x1fe   : > { %4920 = vmatpush1.bf16.msra.mxu0 %v12935_v21  ;;  %v5040_v17 = vcombine.high %v15626_v34, %v15626_v34  ;;  %v12953_v21 = vld [vmem:[%s13573_s21 + $0xb30] sm:$0xff]  }
 0x1ff   : > { %4921 = vmatprep.subr.bf16.mxu0 %v13467_v40 }
 0x200   : > { %12124 = vmatpush3.bf16.msra.mxu1 %v12937_v44  ;;  %v5581_v44 = vmul.f32 %v15650_v35, %v5580_v57 }
 0x201   : > { %12125 = vmatprep.subr.bf16.mxu1 %v12939_v48  ;;  %v5047_v48 = vpack.c.bf16 %v15470_v32, %v15470_v32  ;;  %v15667_v32 = vld [vmem:[%s17297_s2 + $0x8] sm:$0xf] }
 0x202   : > { %4922 = vmatpush1.bf16.msra.mxu0 %v12938_v61  ;;  %v12954_v61 = vld [vmem:[%s13573_s21 + $0xba0] sm:$0xff]   ;;  %v5526_v10 = vmul.f32 %v15667_v32, %v5524_v22 }
 0x203   : > { %4923 = vmatprep.subr.bf16.mxu0 %v13467_v40  ;;  %v12959_v22 = vld [vmem:[%s13573_s21 + $0xb40] sm:$0xff]  }
 0x204   : > { %v2629_v23 = vpop.f32.mrb[20].mxu0  ;;  %12126 = vmatpush3.bf16.msra.mxu1 %v12940_v12  ;;  %v5052_v12 = vpack.c.bf16 %v5040_v17, %v5040_v17  ;;  %v5535_v30 = vadd.f32 %v5533_v56, %v5526_v10  ;;  %v12973_v56 = vld [vmem:[%s13573_s21 + $0xc3c] sm:$0xff]  }
 0x205   : > { %v2630_v2 = vadd.f32 %v2629_v23, %v15501_v58  ;;  %v2631_v43 = vpop.f32.mrb[21].mxu0  ;;  %12127 = vmatprep.subr.bf16.mxu1 %v12942_v42  ;;  %v5567_v58 = vmul.f32 %v15614_v8, %v5566_v37  ;;  %v12956_v42 = vld [vmem:[%s13573_s21 + $0xb38] sm:$0xff]   ;;  %v12958_v23 = vld [vmem:[%s13573_s21 + $0xb80] sm:$0xff]  }
 0x206   : > { %v2632_v59 = vpop.f32.mrb[22].mxu0  ;;  %4924 = vmatpush1.bf16.msra.mxu0 %v4821_v0  ;;  %v12957_v0 = vld [vmem:[%s13573_s21 + $0xba8] sm:$0xff]  }
 0x207   : > { %v15620_v54 = vadd.f32 %v2630_v2, %v15389_v45  ;;  %v2633_v24 = vpop.f32.mrb[23].mxu0  ;;  %12139 = vmatprep.subr.bf16.mxu0 %v12944_v20  ;;  %v5569_v45 = vadd.f32 %v5567_v58, %v5562_v26  ;;  %v5540_v2 = vmul.f32 %v15690_v27, %v5538_v62  ;;  %v15707_v62 = vld [vmem:[%s17297_s2 + $0x2c] sm:$0xf]  ;;  %v12964_v26 = vld [vmem:[%s13573_s21 + $0xb90] sm:$0xff]   ;;  %v12963_v58 = vld [vmem:[%s13573_s21 + $0xbb8] sm:$0xff]  }
 0x208   : > { %12128 = vmatpush3.bf16.msra.mxu1 %v12943_v15  ;;  %v5586_v15 = vstv %s15641_s28  ;;  %v12965_v24 = vld [vmem:[%s13573_s21 + $0xb50] sm:$0xff]   ;;  %s15858_s28 = sld [smem:[#allocation3 + %s6155_s29]] }
 0x209   : > { %4936 = vmatmul.mubr.bf16.vlgmr.msra.gmra.mrb[44].mxu0 %v4474_v14  ;;  %12129 = vmatprep.subr.bf16.mxu1 %v12946_v50  ;;  %v5576_v52 = vadd.f32 %v5574_v28, %v5569_v45  ;;  %v12961_v14 = vld [vmem:[%s13573_s21 + $0xb88] sm:$0xff]   ;;  %v5542_v59 = vadd.f32 %v5540_v2, %v5535_v30  ;;  %v12967_v45 = vld [vmem:[%s13573_s21 + $0xb98] sm:$0xff]   ;;  %v12966_v28 = vld [vmem:[%s13573_s21 + $0xbc0] sm:$0xff]  }
 0x20a   : > { %12140 = vmatpush3.bf16.msra.mxu0 %v12945_v33  ;;  %5472 = vmatprep.mubr.bf16.mxu0 %v5050_v29  ;;  %v12960_v33 = vld [vmem:[%s13573_s21 + $0xbb0] sm:$0xff]   ;;  %v12962_v50 = vld [vmem:[%s13573_s21 + $0xb48] sm:$0xff]   ;;  %v12974_v30 = vld [vmem:[%s13573_s21 + $0xbfc] sm:$0xff]  }
 0x20b   : > { %12141 = vmatprep.subr.bf16.mxu0 %v12948_v1  ;;  %v5583_v20 = vadd.f32 %v5581_v44, %v5576_v52  ;;  %v15727_v1 = vld [vmem:[%s17297_s2 + $0x38] sm:$0xf]  ;;  %v12969_v44 = vld [vmem:[%s13573_s21 + $0xbc8] sm:$0xff]  }
 0x20c   : > { %12130 = vmatpush3.bf16.msra.mxu1 %v12947_v7  ;;  %v5547_v7 = vmul.f32 %v15707_v62, %v5545_v13  ;;  %v12976_v2 = vld [vmem:[%s13573_s21 + $0xc44] sm:$0xff]  }
 0x20d   : > { %12131 = vmatprep.subr.bf16.mxu1 %v12950_v55  ;;  %v5587_v43 = vadd.f32 %v5586_v15, %v5583_v20  ;;  %v5554_v55 = vmul.f32 %v15727_v1, %v5552_v39  ;;  %v12972_v20 = vld [vmem:[%s13573_s21 + $0xbd0] sm:$0xff]  }
 0x20e   : > { %12142 = vmatpush3.bf16.msra.mxu0 %v12949_v18  ;;  %v11957_v60 = vpop.f32.mrb[24].mxu1  ;;  %v5549_v13 = vadd.f32 %v5547_v7, %v5542_v59  ;;  %v6122_v59 = vstv %s15762_s9 }
 0x20f   : > { %12143 = vmatprep.subr.bf16.mxu0 %v12952_v38  ;;  %v11958_v51 = vpop.f32.mrb[25].mxu1  ;;  %v15712_v29 = vmax.f32 %v5587_v43, 0.0  ;;  %v12968_v38 = vld [vmem:[%s13573_s21 + $0xb58] sm:$0xff]  }
 0x210   : > { %12132 = vmatpush3.bf16.msra.mxu1 %v12951_v6  ;;  %v15659_v11 = vadd.f32 %v11958_v51, %v11957_v60  ;;  %v11960_v16 = vpop.f32.mrb[26].mxu1  ;;  %v5556_v39 = vadd.f32 %v5554_v55, %v5549_v13  ;;  %v15746_v6 = vld [vmem:[%s17297_s2 + $0x44] sm:$0xf]  ;;  %v12970_v60 = vld [vmem:[%s13573_s21 + $0xc34] sm:$0xff]  }
 0x211   : > { %5480 = vmatprep.subr.bf16.mxu1 %v13467_v40  ;;  %v11961_v47 = vpop.f32.mrb[27].mxu1  ;;  %v15734_v18 = vrot.slane %v15712_v29, %v13825_v9  ;;  %v5561_v17 = vmul.f32 %v15746_v6, %v5559_v31  ;;  %v12971_v51 = vld [vmem:[%s13573_s21 + $0xbf4] sm:$0xff]   ;;  %v6101_v31 = vstv %s15719_s10  ;;  %v5593_v13 = vcombine.high %v15712_v29, %v15712_v29  ;;  %s15923_s10 = smul.u32 9, %s6675_s20 }
 0x212   : > { %12144 = vmatpush3.bf16.msra.mxu0 %v12953_v21  ;;  %v15767_v47 = vld [vmem:[%s17297_s2 + $0x50] sm:$0xf]  ;;  %v12975_v43 = vld [vmem:[%s13573_s21 + $0xbd8] sm:$0xff]  }
 0x213   : > { %5433 = vmatmul.mubr.bf16.vlgmr.msra.gmra.mrb[48].mxu1 %v5047_v48  ;;  %12145 = vmatprep.subr.bf16.mxu0 %v12955_v25  ;;  %v5608_v21 = vcombine.high %v15734_v18, %v15734_v18  ;;  %v5049_v25 = vpack.c.bf16 %v15569_v4, %v15569_v4  ;;  %v5568_v4 = vmul.f32 %v15767_v47, %v5566_v37  ;;  %s6690_s9 = sadd.s32 2, %s15923_s10  ;;  %s6704_s8 = sadd.s32 4, %s15923_s10 }
 0x214   : > { %5481 = vmatpush1.bf16.msra.mxu1 %v12954_v61  ;;  %10854 = vmatprep.mubr.msk.bf16.mxu1 %vm973_vm0, %v5052_v12  ;;  %v6108_v61 = vstv %s15721_s26  ;;  %s6683_s26 = sadd.s32 1, %s15923_s10  ;;  %s15954_s15 = sld [smem:[#allocation3 + %s6690_s9]] }
 0x215   : > { %5482 = vmatprep.subr.bf16.mxu1 %v13467_v40  ;;  %v6109_v37 = vmul.f32 %v15514_v53, %v6108_v61  ;;  %s15941_s30 = sld [smem:[#allocation3 + %s6683_s26]]  ;;  %s6711_s12 = sadd.s32 5, %s15923_s10 }
 0x216   : > { %12146 = vmatpush3.bf16.msra.mxu0 %v12956_v42  ;;  %v5563_v42 = vadd.f32 %v5561_v17, %v5556_v39  ;;  %v12984_v39 = vld [vmem:[%s13573_s21 + $0xbf0] ss:$0 sps:$4 sm:$0x33]   ;;  %v15834_v17 = vrot.slane %v5593_v13, %v13825_v9  ;;  %s6718_s9 = sadd.s32 6, %s15923_s10 }
 0x217   : > { %12147 = vmatprep.subr.bf16.mxu0 %v12958_v23  ;;  %v12994_v13 = vld [vmem:[%s13573_s21 + $0xc2c] sm:$0xff]  }
 0x218   : > { %5483 = vmatpush1.bf16.msra.mxu1 %v12957_v0  ;;  %v5625_v0 = vpack.c.bf16 %v5608_v21, %v5608_v21 }
 0x219   : > { %5484 = vmatprep.subr.bf16.mxu1 %v13467_v40 }
 0x21a   : > { %12148 = vmatpush3.bf16.msra.mxu0 %v12959_v22  ;;  %v6102_v22 = vmul.f32 %v15506_v5, %v6101_v31  ;;  %v15792_v5 = vld [vmem:[%s17297_s2 + $0x5c] sm:$0xf] }
 0x21b   : > { %12149 = vmatprep.subr.bf16.mxu0 %v12961_v14  ;;  %v5575_v53 = vmul.f32 %v15792_v5, %v5573_v46  ;;  %v12977_v46 = vld [vmem:[%s13573_s21 + $0xc04] sm:$0xff]  }
 0x21c   : > { %5485 = vmatpush1.bf16.msra.mxu1 %v12960_v33  ;;  %v6115_v33 = vstv %s15740_s11  ;;  %v6111_v14 = vadd.f32 %v6109_v37, %v6102_v22  ;;  %v12989_v22 = vld [vmem:[%s13573_s21 + $0xc64] sm:$0xff]   ;;  %s15938_s11 = sld [smem:[#allocation3 + %s15923_s10]] }
 0x21d   : > { %5486 = vmatprep.subr.bf16.mxu1 %v13467_v40 }
 0x21e   : > { %12150 = vmatpush3.bf16.msra.mxu0 %v12962_v50  ;;  %v6116_v50 = vmul.f32 %v15533_v63, %v6115_v33 }
 0x21f   : > { %12151 = vmatprep.subr.bf16.mxu0 %v12964_v26  ;;  %v15811_v26 = vld [vmem:[%s17297_s2 + $0x68] sm:$0xf] }
 0x220   : > { %5487 = vmatpush1.bf16.msra.mxu1 %v12963_v58  ;;  %v5582_v63 = vmul.f32 %v15811_v26, %v5580_v57  ;;  %v12979_v58 = vld [vmem:[%s13573_s21 + $0xc4c] sm:$0xff]   ;;  %v6118_v55 = vadd.f32 %v6116_v50, %v6111_v14  ;;  %v6129_v57 = vstv %s15786_s27  ;;  %v6150_v50 = vstv %s15842_s22  ;;  %s6697_s27 = sadd.s32 3, %s15923_s10  ;;  %s16020_s22 = sld [smem:[#allocation3 + %s6711_s12]] }
 0x221   : > { %5488 = vmatprep.subr.bf16.mxu1 %v13467_v40  ;;  %s15972_s14 = sld [smem:[#allocation3 + %s6697_s27]]  ;;  %s6732_s12 = sadd.s32 8, %s15923_s10 }
 0x222   : > { %12152 = vmatpush3.bf16.msra.mxu0 %v12965_v24  ;;  %v12978_v24 = vld [vmem:[%s13573_s21 + $0xbe0] sm:$0xff]  }
 0x223   : > { %12153 = vmatprep.subr.bf16.mxu0 %v12967_v45  ;;  %v6123_v45 = vmul.f32 %v15554_v41, %v6122_v59  ;;  %v12981_v41 = vld [vmem:[%s13573_s21 + $0xbe8] sm:$0xff]  }
 0x224   : > { %v11979_v52 = vpop.f32.mrb[24].mxu0  ;;  %5489 = vmatpush1.bf16.msra.mxu1 %v12966_v28  ;;  %v12980_v28 = vld [vmem:[%s13573_s21 + $0xc0c] sm:$0xff]  }
 0x225   : > { %v11980_v48 = vpop.f32.mrb[25].mxu0  ;;  %5490 = vmatprep.subr.bf16.mxu1 %v13467_v40  ;;  %v6125_v21 = vadd.f32 %v6123_v45, %v6118_v55 }
 0x226   : > { %v11981_v16 = vadd.f32 %v11980_v48, %v11979_v52  ;;  %v11982_v12 = vpop.f32.mrb[26].mxu0  ;;  %12154 = vmatpush3.bf16.msra.mxu0 %v12968_v38  ;;  %v12982_v38 = vld [vmem:[%s13573_s21 + $0xc54] sm:$0xff]   ;;  %v12985_v48 = vld [vmem:[%s13573_s21 + $0xc5c] sm:$0xff]  }
 0x227   : > { %v11983_v10 = vpop.f32.mrb[27].mxu0  ;;  %12161 = vmatprep.subr.bf16.mxu0 %v12970_v60  ;;  %v6130_v60 = vmul.f32 %v15574_v49, %v6129_v57  ;;  %v12983_v52 = vld [vmem:[%s13573_s21 + $0xc14] sm:$0xff]   ;;  %v12986_v49 = vld [vmem:[%s13573_s21 + $0xc1c] sm:$0xff]  }
 0x228   : > { %5491 = vmatpush1.bf16.msra.mxu1 %v12969_v44  ;;  %v15776_v23 = vadd.f32 %v11981_v16, %v15659_v11  ;;  %v5570_v11 = vadd.f32 %v5568_v4, %v5563_v42  ;;  %v6136_v44 = vstv %s15805_s18  ;;  %v5609_v16 = vcombine.high %v15834_v17, %v15834_v17  ;;  %v12987_v4 = vld [vmem:[%s13573_s21 + $0xcb4] sm:$0xff]   ;;  %s6725_s18 = sadd.s32 7, %s15923_s10 }
 0x229   : > { %5473 = vmatmul.mubr.bf16.vlgmr.msra.gmra.mrb[48].mxu0 %v5049_v25  ;;  %5492 = vmatprep.subr.bf16.mxu1 %v13467_v40  ;;  %v6132_v12 = vadd.f32 %v6130_v60, %v6125_v21  ;;  %v6137_v42 = vmul.f32 %v15594_v3, %v6136_v44  ;;  %v12988_v10 = vld [vmem:[%s13573_s21 + $0xc74] sm:$0xff]   ;;  %v5051_v3 = vpack.c.bf16 %v15626_v34, %v15626_v34  ;;  %s16062_s23 = sld [smem:[#allocation3 + %s6725_s18]] }
 0x22a   : > { %12162 = vmatpush3.bf16.msra.mxu0 %v12971_v51  ;;  %6009 = vmatprep.mubr.bf16.mxu0 %v5625_v0  ;;  %v5577_v7 = vadd.f32 %v5575_v53, %v5570_v11  ;;  %v5398_v51 = vsel %vm977_vm1, %v12984_v39, 0  ;;  %v6143_v0 = vstv %s15827_s0  ;;  %v5627_v53 = vpack.c.bf16 %v5609_v16, %v5609_v16  ;;  %v13001_v16 = vld [vmem:[%s13573_s21 + $0xcd4] sm:$0xff]   ;;  %s16001_s0 = sld [smem:[#allocation3 + %s6704_s8]] }
 0x22b   : > { %12163 = vmatprep.subr.bf16.mxu0 %v12973_v56  ;;  %s16121_s18 = sld [smem:[#allocation6 + %s6675_s20]] }
 0x22c   : > { %5493 = vmatpush1.bf16.msra.mxu1 %v12972_v20  ;;  %v5584_v29 = vadd.f32 %v5582_v63, %v5577_v7  ;;  %v6151_v63 = vmul.f32 %v15632_v36, %v6150_v50 }
 0x22d   : > { %5494 = vmatprep.subr.bf16.mxu1 %v13467_v40 }
 0x22e   : > { %12164 = vmatpush3.bf16.msra.mxu0 %v12974_v30  ;;  %v5588_v25 = vadd.f32 %v5586_v15, %v5584_v29  ;;  %v12990_v30 = vld [vmem:[%s13573_s21 + $0xc24] sm:$0xff]   ;;  %v5624_v29 = vpack.c.bf16 %v15734_v18, %v15734_v18  ;;  %v6103_v18 = vmul.f32 %v15667_v32, %v6101_v31  ;;  %v13002_v32 = vld [vmem:[%s13573_s21 + $0xc94] sm:$0xff]   ;;  %v6117_v31 = vmul.f32 %v15690_v27, %v6115_v33 }
 0x22f   : > { %12165 = vmatprep.subr.bf16.mxu0 %v12976_v2  ;;  %v6139_v2 = vadd.f32 %v6137_v42, %v6132_v12  ;;  %v6163_v12 = vstv %s15886_s19  ;;  %v13000_v42 = vld [vmem:[%s13573_s21 + $0xcfc] sm:$0xff]   ;;  %v6124_v33 = vmul.f32 %v15707_v62, %v6122_v59  ;;  %v13008_v62 = vld [vmem:[%s13573_s21 + $0xca4] sm:$0xff]   ;;  %s16083_s19 = sld [smem:[#allocation3 + %s6732_s12]] }
 0x230   : > { %5495 = vmatpush1.bf16.msra.mxu1 %v12975_v43  ;;  %v5590_v56 = vmax.f32 %v5588_v25, 0.0  ;;  %v6144_v43 = vmul.f32 %v15614_v8, %v6143_v0  ;;  %v12992_v8 = vld [vmem:[%s13573_s21 + $0xc7c] sm:$0xff]  }
 0x231   : > { %5496 = vmatprep.subr.bf16.mxu1 %v13467_v40 }
 0x232   : > { %12166 = vmatpush3.bf16.msra.mxu0 %v12977_v46  ;;  %v12993_v46 = vld [vmem:[%s13573_s21 + $0xc6c] sm:$0xff]   ;;  %v15876_v7 = vrot.slane %v5590_v56, %v13825_v9 }
 0x233   : > { %12167 = vmatprep.subr.bf16.mxu0 %v12979_v58  ;;  %v12995_v58 = vld [vmem:[%s13573_s21 + $0xcc4] sm:$0xff]  }
 0x234   : > { %5497 = vmatpush1.bf16.msra.mxu1 %v12978_v24  ;;  %v6157_v24 = vstv %s15858_s28  ;;  %v5617_v55 = vcombine.high %v15876_v7, %v15876_v7  ;;  %s16042_s28 = sld [smem:[#allocation3 + %s6718_s9]] }
 0x235   : > { %5498 = vmatprep.subr.bf16.mxu1 %v13467_v40 }
 0x236   : > { %12168 = vmatpush3.bf16.msra.mxu0 %v12980_v28  ;;  %v12996_v28 = vld [vmem:[%s13573_s21 + $0xc84] sm:$0xff]  }
 0x237   : > { %12169 = vmatprep.subr.bf16.mxu0 %v12982_v38  ;;  %v6158_v38 = vmul.f32 %v15650_v35, %v6157_v24  ;;  %v12999_v35 = vld [vmem:[%s13573_s21 + $0xc8c] sm:$0xff]  }
 0x238   : > { %5499 = vmatpush1.bf16.msra.mxu1 %v12981_v41  ;;  %v12998_v41 = vld [vmem:[%s13573_s21 + $0xccc] sm:$0xff]  }
 0x239   : > { %5500 = vmatprep.subr.bf16.mxu1 %v13467_v40 }
 0x23a   : > { %v3206_v15 = vpop.f32.mrb[28].mxu1  ;;  %12170 = vmatpush3.bf16.msra.mxu0 %v12983_v52  ;;  %v12997_v52 = vld [vmem:[%s13573_s21 + $0xcf4] sm:$0xff]  }
 0x23b   : > { %v3207_v20 = vadd.f32 %v3206_v15, %v15776_v23  ;;  %12171 = vmatprep.subr.bf16.mxu0 %v12985_v48  ;;  %v3208_v37 = vpop.f32.mrb[29].mxu1  ;;  %v12991_v23 = vld [vmem:[%s13573_s21 + $0xcbc] sm:$0xff]   ;;  %v5629_v48 = vpack.c.bf16 %v5617_v55, %v5617_v55  ;;  %v13003_v15 = vld [vmem:[%s13573_s21 + $0xd04] sm:$0xff]   ;;  %v6145_v55 = vmul.f32 %v15767_v47, %v6143_v0  ;;  %v15994_v0 = vld [vmem:[%s17297_s2 + $0xc] sm:$0xff] }
 0x23c   : > { %5501 = vmatpush1.bf16.msra.mxu1 %v5398_v51  ;;  %v3209_v11 = vpop.f32.mrb[30].mxu1  ;;  %v6110_v51 = vmul.f32 %v15675_v19, %v6108_v61 }
 0x23d   : > { %v15870_v14 = vadd.f32 %v3207_v20, %v15620_v54  ;;  %12183 = vmatprep.subr.bf16.mxu1 %v12987_v4  ;;  %v3210_v34 = vpop.f32.mrb[31].mxu1  ;;  %v6146_v54 = vadd.f32 %v6144_v43, %v6139_v2  ;;  %v13004_v4 = vld [vmem:[%s13573_s21 + $0xcdc] sm:$0xff]   ;;  %v13007_v20 = vld [vmem:[%s13573_s21 + $0xce4] sm:$0xff]   ;;  %v13009_v11 = vld [vmem:[%s13573_s21 + $0xd14] sm:$0xff]  }
 0x23e   : > { %12172 = vmatpush3.bf16.msra.mxu0 %v12986_v49  ;;  %v6112_v19 = vadd.f32 %v6110_v51, %v6103_v18  ;;  %v13013_v43 = vld [vmem:[%s13573_s21 + $0xd88] sm:$0xff]   ;;  %v13012_v34 = vld [vmem:[%s13573_s21 + $0xd1c] sm:$0xff]  }
 0x23f   : > { %5513 = vmatmul.mubr.bf16.vlgmr.msra.gmra.mrb[52].mxu1 %v5051_v3  ;;  %12173 = vmatprep.subr.bf16.mxu0 %v12989_v22  ;;  %v6153_v36 = vadd.f32 %v6151_v63, %v6146_v54  ;;  %v13006_v3 = vld [vmem:[%s13573_s21 + $0xd0c] sm:$0xff]   ;;  %v6131_v22 = vmul.f32 %v15727_v1, %v6129_v57  ;;  %v6138_v1 = vmul.f32 %v15746_v6, %v6136_v44  ;;  %v6678_v44 = vstv %s15938_s11  ;;  %v16013_v18 = vld [vmem:[%s17297_s2 + $0x18] sm:$0xff]  ;;  %s7252_s11 = sadd.s32 12, %s13566_s16 }
 0x240   : > { %12184 = vmatpush3.bf16.msra.mxu1 %v12988_v10  ;;  %6049 = vmatprep.mubr.bf16.mxu1 %v5627_v53  ;;  %v13005_v10 = vld [vmem:[%s13573_s21 + $0xc9c] sm:$0xff]   ;;  %v6119_v27 = vadd.f32 %v6117_v31, %v6112_v19  ;;  %v13011_v53 = vld [vmem:[%s13573_s21 + $0xcac] sm:$0xff]   ;;  %v6685_v54 = vstv %s15941_s30  ;;  %s16178_s9 = smul.u32 9, %s7252_s11 }
 0x241   : > { %12185 = vmatprep.subr.bf16.mxu1 %v12991_v23  ;;  %v6160_v49 = vadd.f32 %v6158_v38, %v6153_v36  ;;  %v13014_v6 = vld [vmem:[%s13573_s21 + $0xd48] sm:$0xff]  }
 0x242   : > { %12174 = vmatpush3.bf16.msra.mxu0 %v12990_v30  ;;  %v6126_v59 = vadd.f32 %v6124_v33, %v6119_v27  ;;  %v13010_v30 = vld [vmem:[%s13573_s21 + $0xcec] sm:$0xff]   ;;  %v13015_v36 = vld [vmem:[%s13573_s21 + $0xd24] sm:$0xff]   ;;  %v13024_v33 = vld [vmem:[%s13573_s21 + $0xd3c] sm:$0xff]   ;;  %s7260_s8 = sadd.s32 1, %s16178_s9  ;;  %s16198_s13 = sld [smem:[#allocation3 + %s16178_s9]] }
 0x243   : > { %12175 = vmatprep.subr.bf16.mxu0 %v12993_v46  ;;  %v6164_v61 = vadd.f32 %v6163_v12, %v6160_v49  ;;  %s16201_s17 = sld [smem:[#allocation3 + %s7260_s8]]  ;;  %s7274_s30 = sadd.s32 3, %s16178_s9 }
 0x244   : > { %v12001_v45 = vpop.f32.mrb[28].mxu0  ;;  %12186 = vmatpush3.bf16.msra.mxu1 %v12992_v8  ;;  %v6133_v2 = vadd.f32 %v6131_v22, %v6126_v59  ;;  %v5626_v8 = vpack.c.bf16 %v15834_v17, %v15834_v17  ;;  %v13016_v17 = vld [vmem:[%s13573_s21 + $0xd90] sm:$0xff]   ;;  %v13026_v59 = vld [vmem:[%s13573_s21 + $0xd68] sm:$0xff]   ;;  %v6713_v22 = vstv %s16020_s22  ;;  %s16242_s22 = sld [smem:[#allocation3 + %s7274_s30]]  ;;  %s7281_s27 = sadd.s32 4, %s16178_s9 }
 0x245   : > { %v12002_v39 = vpop.f32.mrb[29].mxu0  ;;  %12187 = vmatprep.subr.bf16.mxu1 %v12995_v58  ;;  %v15932_v56 = vmax.f32 %v6164_v61, 0.0  ;;  %v16034_v61 = vld [vmem:[%s17297_s2 + $0x24] sm:$0xff]  ;;  %s7288_s20 = sadd.s32 5, %s16178_s9  ;;  %s7295_s26 = sadd.s32 6, %s16178_s9 }
 0x246   : > { %v15898_v21 = vadd.f32 %v12002_v39, %v12001_v45  ;;  %v12004_v60 = vpop.f32.mrb[30].mxu0  ;;  %12176 = vmatpush3.bf16.msra.mxu0 %v12994_v13  ;;  %v6140_v13 = vadd.f32 %v6138_v1, %v6133_v2  ;;  %v15986_v39 = vld [vmem:[%s17297_s2] sm:$0xff]  ;;  %v13029_v2 = vld [vmem:[%s13573_s21 + $0xd70] sm:$0xff]   ;;  %s7302_s30 = sadd.s32 7, %s16178_s9 }
 0x247   : > { %v12005_v25 = vpop.f32.mrb[31].mxu0  ;;  %6057 = vmatprep.subr.bf16.mxu0 %v13467_v40  ;;  %v15950_v37 = vrot.slane %v15932_v56, %v13825_v9  ;;  %v6679_v47 = vmul.f32 %v15986_v39, %v6678_v44  ;;  %v6170_v19 = vcombine.high %v15932_v56, %v15932_v56  ;;  %s16322_s10 = sld [smem:[#allocation3 + %s7302_s30]] }
 0x248   : > { %12188 = vmatpush3.bf16.msra.mxu1 %v12996_v28  ;;  %v6147_v60 = vadd.f32 %v6145_v55, %v6140_v13  ;;  %v13018_v25 = vld [vmem:[%s13573_s21 + $0xd2c] sm:$0xff]   ;;  %v5628_v13 = vpack.c.bf16 %v15876_v7, %v15876_v7  ;;  %v13032_v55 = vld [vmem:[%s13573_s21 + $0xdb8] sm:$0xff]  }
 0x249   : > { %6010 = vmatmul.mubr.bf16.vlgmr.msra.gmra.mrb[52].mxu0 %v5624_v29  ;;  %12189 = vmatprep.subr.bf16.mxu1 %v12998_v41  ;;  %v6185_v57 = vcombine.high %v15950_v37, %v15950_v37  ;;  %v6686_v29 = vmul.f32 %v15994_v0, %v6685_v54  ;;  %v6692_v41 = vstv %s15954_s15  ;;  %v16049_v56 = vrot.slane %v6170_v19, %v13825_v9  ;;  %s7309_s15 = sadd.s32 8, %s16178_s9 }
 0x24a   : > { %6058 = vmatpush1.bf16.msra.mxu0 %v12997_v52  ;;  %10983 = vmatprep.mubr.msk.bf16.mxu0 %vm973_vm0, %v5629_v48  ;;  %v6152_v52 = vmul.f32 %v15792_v5, %v6150_v50  ;;  %v13019_v48 = vld [vmem:[%s13573_s21 + $0xd98] sm:$0xff]   ;;  %v6693_v51 = vmul.f32 %v16013_v18, %v6692_v41  ;;  %v6699_v5 = vstv %s15972_s14  ;;  %s7267_s14 = sadd.s32 2, %s16178_s9  ;;  %s16366_s9 = sld [smem:[#allocation6 + %s7252_s11]] }
 0x24b   : > { %6059 = vmatprep.subr.bf16.mxu0 %v13467_v40  ;;  %v6202_v45 = vpack.c.bf16 %v6185_v57, %v6185_v57  ;;  %v13020_v50 = vld [vmem:[%s13573_s21 + $0xd58] sm:$0xff]   ;;  %v6186_v1 = vcombine.high %v16049_v56, %v16049_v56  ;;  %s16219_s29 = sld [smem:[#allocation3 + %s7267_s14]]  ;;  %s7829_s11 = sadd.s32 13, %s13566_s16 }
 0x24c   : > { %12190 = vmatpush3.bf16.msra.mxu1 %v12999_v35  ;;  %v6688_v35 = vadd.f32 %v6686_v29, %v6679_v47  ;;  %v6154_v49 = vadd.f32 %v6152_v52, %v6147_v60  ;;  %v16094_v47 = vld [vmem:[%s17297_s2 + $0x48] sm:$0xff]  ;;  %v6727_v60 = vstv %s16062_s23  ;;  %v13036_v52 = vld [vmem:[%s13573_s21 + $0xdc0] sm:$0xff]   ;;  %s16285_s23 = sld [smem:[#allocation3 + %s7288_s20]] }
 0x24d   : > { %12191 = vmatprep.subr.bf16.mxu1 %v13001_v16  ;;  %v6159_v16 = vmul.f32 %v15811_v26, %v6157_v24  ;;  %v6700_v26 = vmul.f32 %v16034_v61, %v6699_v5  ;;  %v13023_v24 = vld [vmem:[%s13573_s21 + $0xd60] sm:$0xff]  }
 0x24e   : > { %6060 = vmatpush1.bf16.msra.mxu0 %v13000_v42  ;;  %v13022_v42 = vld [vmem:[%s13573_s21 + $0xda0] sm:$0xff]   ;;  %v6695_v31 = vadd.f32 %v6693_v51, %v6688_v35  ;;  %v16112_v35 = vld [vmem:[%s17297_s2 + $0x54] sm:$0xff] }
 0x24f   : > { %6061 = vmatprep.subr.bf16.mxu0 %v13467_v40  ;;  %v6161_v27 = vadd.f32 %v6159_v16, %v6154_v49  ;;  %v6728_v51 = vmul.f32 %v16112_v35, %v6727_v60  ;;  %v6734_v49 = vstv %s16083_s19  ;;  %v13037_v16 = vld [vmem:[%s13573_s21 + $0xd80] sm:$0xff]   ;;  %s16307_s19 = sld [smem:[#allocation3 + %s7295_s26]] }
 0x250   : > { %12192 = vmatpush3.bf16.msra.mxu1 %v13002_v32  ;;  %v13021_v32 = vld [vmem:[%s13573_s21 + $0xd34] sm:$0xff]  }
 0x251   : > { %12193 = vmatprep.subr.bf16.mxu1 %v13004_v4  ;;  %v6706_v4 = vstv %s16001_s0 }
 0x252   : > { %6062 = vmatpush1.bf16.msra.mxu0 %v13003_v15  ;;  %v13025_v15 = vld [vmem:[%s13573_s21 + $0xda8] sm:$0xff]  }
 0x253   : > { %6063 = vmatprep.subr.bf16.mxu0 %v13467_v40 }
 0x254   : > { %12194 = vmatpush3.bf16.msra.mxu1 %v13005_v10  ;;  %v13027_v10 = vld [vmem:[%s13573_s21 + $0xd44] ss:$0 sps:$4 sm:$0x33]  }
 0x255   : > { %12195 = vmatprep.subr.bf16.mxu1 %v13007_v20  ;;  %v6702_v20 = vadd.f32 %v6700_v26, %v6695_v31  ;;  %v16130_v26 = vld [vmem:[%s17297_s2 + $0x60] sm:$0xff] }
 0x256   : > { %6064 = vmatpush1.bf16.msra.mxu0 %v13006_v3  ;;  %v16054_v3 = vld [vmem:[%s17297_s2 + $0x30] sm:$0xff] }
 0x257   : > { %6065 = vmatprep.subr.bf16.mxu0 %v13467_v40 }
 0x258   : > { %12196 = vmatpush3.bf16.msra.mxu1 %v13008_v62  ;;  %v6707_v62 = vmul.f32 %v16054_v3, %v6706_v4 }
 0x259   : > { %12197 = vmatprep.subr.bf16.mxu1 %v13010_v30  ;;  %v13028_v30 = vld [vmem:[%s13573_s21 + $0xdb0] sm:$0xff]  }
 0x25a   : > { %v12023_v23 = vpop.f32.mrb[32].mxu1  ;;  %6066 = vmatpush1.bf16.msra.mxu0 %v13009_v11  ;;  %v6165_v11 = vadd.f32 %v6163_v12, %v6161_v27  ;;  %v6709_v57 = vadd.f32 %v6707_v62, %v6702_v20 }
 0x25b   : > { %v12024_v46 = vpop.f32.mrb[33].mxu1  ;;  %6067 = vmatprep.subr.bf16.mxu0 %v13467_v40 }
 0x25c   : > { %v12025_v63 = vadd.f32 %v12024_v46, %v12023_v23  ;;  %12198 = vmatpush3.bf16.msra.mxu1 %v13011_v53  ;;  %v12026_v58 = vpop.f32.mrb[34].mxu1  ;;  %v5975_v53 = vsel %vm977_vm1, %v13027_v10, 0  ;;  %v13030_v23 = vld [vmem:[%s13573_s21 + $0xe08] sm:$0xff]   ;;  %v13041_v10 = vld [vmem:[%s13573_s21 + $0xe20] sm:$0xff]  }
 0x25d   : > { %12205 = vmatprep.subr.bf16.mxu1 %v13013_v43  ;;  %v12027_v28 = vpop.f32.mrb[35].mxu1  ;;  %v16075_v43 = vld [vmem:[%s17297_s2 + $0x3c] sm:$0xff] }
 0x25e   : > { %6068 = vmatpush1.bf16.msra.mxu0 %v13012_v34  ;;  %v15981_v38 = vadd.f32 %v12025_v63, %v15898_v21  ;;  %v13017_v21 = vld [vmem:[%s13573_s21 + $0xd50] sm:$0xff]   ;;  %v6714_v12 = vmul.f32 %v16075_v43, %v6713_v22  ;;  %v6720_v34 = vstv %s16042_s28  ;;  %v6204_v28 = vpack.c.bf16 %v6186_v1, %v6186_v1  ;;  %s16266_s28 = sld [smem:[#allocation3 + %s7281_s27]] }
 0x25f   : > { %6050 = vmatmul.mubr.bf16.vlgmr.msra.gmra.mrb[56].mxu1 %v5626_v8  ;;  %6069 = vmatprep.subr.bf16.mxu0 %v13467_v40  ;;  %v13031_v8 = vld [vmem:[%s13573_s21 + $0xdc8] sm:$0xff]  }
 0x260   : > { %12206 = vmatpush3.bf16.msra.mxu1 %v13014_v6  ;;  %6586 = vmatprep.mubr.bf16.mxu1 %v6202_v45  ;;  %v6167_v6 = vmax.f32 %v6165_v11, 0.0  ;;  %v13042_v11 = vld [vmem:[%s13573_s21 + $0xde0] sm:$0xff]  }
 0x261   : > { %12207 = vmatprep.subr.bf16.mxu1 %v13016_v17  ;;  %v13033_v17 = vld [vmem:[%s13573_s21 + $0xd78] sm:$0xff]  }
 0x262   : > { %6070 = vmatpush1.bf16.msra.mxu0 %v13015_v36  ;;  %v6716_v36 = vadd.f32 %v6714_v12, %v6709_v57  ;;  %v13044_v12 = vld [vmem:[%s13573_s21 + $0xe28] sm:$0xff]  }
 0x263   : > { %6071 = vmatprep.subr.bf16.mxu0 %v13467_v40 }
 0x264   : > { %12208 = vmatpush3.bf16.msra.mxu1 %v13017_v21  ;;  %v13034_v21 = vld [vmem:[%s13573_s21 + $0xe10] sm:$0xff]  }
 0x265   : > { %12209 = vmatprep.subr.bf16.mxu1 %v13019_v48  ;;  %v16106_v48 = vrot.slane %v6167_v6, %v13825_v9 }
 0x266   : > { %6072 = vmatpush1.bf16.msra.mxu0 %v13018_v25  ;;  %v13035_v25 = vld [vmem:[%s13573_s21 + $0xdd0] sm:$0xff]  }
 0x267   : > { %6073 = vmatprep.subr.bf16.mxu0 %v13467_v40 }
 0x268   : > { %12210 = vmatpush3.bf16.msra.mxu1 %v13020_v50  ;;  %v13038_v50 = vld [vmem:[%s13573_s21 + $0xe18] sm:$0xff]  }
 0x269   : > { %12211 = vmatprep.subr.bf16.mxu1 %v13022_v42  ;;  %v6194_v42 = vcombine.high %v16106_v48, %v16106_v48 }
 0x26a   : > { %6074 = vmatpush1.bf16.msra.mxu0 %v13021_v32  ;;  %v13039_v32 = vld [vmem:[%s13573_s21 + $0xdd8] sm:$0xff]  }
 0x26b   : > { %6075 = vmatprep.subr.bf16.mxu0 %v13467_v40 }
 0x26c   : > { %12212 = vmatpush3.bf16.msra.mxu1 %v13023_v24  ;;  %v6735_v24 = vmul.f32 %v16130_v26, %v6734_v49 }
 0x26d   : > { %12213 = vmatprep.subr.bf16.mxu1 %v13025_v15  ;;  %v6201_v15 = vpack.c.bf16 %v15950_v37, %v15950_v37  ;;  %v16146_v37 = vld [vmem:[%s17297_s2 + $0x8] sm:$0xf] }
 0x26e   : > { %6076 = vmatpush1.bf16.msra.mxu0 %v13024_v33  ;;  %v13040_v33 = vld [vmem:[%s13573_s21 + $0xe48] sm:$0xff]  }
 0x26f   : > { %6077 = vmatprep.subr.bf16.mxu0 %v13467_v40 }
 0x270   : > { %v3783_v46 = vpop.f32.mrb[32].mxu0  ;;  %12214 = vmatpush3.bf16.msra.mxu1 %v13026_v59  ;;  %v6206_v59 = vpack.c.bf16 %v6194_v42, %v6194_v42 }
 0x271   : > { %v3784_v63 = vadd.f32 %v3783_v46, %v15981_v38  ;;  %v3785_v58 = vpop.f32.mrb[33].mxu0  ;;  %12215 = vmatprep.subr.bf16.mxu1 %v13028_v30  ;;  %v6721_v38 = vmul.f32 %v16094_v47, %v6720_v34 }
 0x272   : > { %v3786_v45 = vpop.f32.mrb[34].mxu0  ;;  %6078 = vmatpush1.bf16.msra.mxu0 %v5975_v53  ;;  %v6680_v53 = vmul.f32 %v16146_v37, %v6678_v44  ;;  %v13043_v44 = vld [vmem:[%s13573_s21 + $0xe50] sm:$0xff]  }
 0x273   : > { %v16100_v29 = vadd.f32 %v3784_v63, %v15870_v14  ;;  %v3787_v7 = vpop.f32.mrb[35].mxu0  ;;  %12227 = vmatprep.subr.bf16.mxu0 %v13030_v23  ;;  %v6723_v14 = vadd.f32 %v6721_v38, %v6716_v36  ;;  %v6740_v23 = vstv %s16121_s18  ;;  %v13047_v58 = vld [vmem:[%s13573_s21 + $0xe30] sm:$0xff]   ;;  %v16187_v45 = vld [vmem:[%s17297_s2 + $0x2c] sm:$0xf]  ;;  %v13050_v36 = vld [vmem:[%s13573_s21 + $0xe38] sm:$0xff]   ;;  %s16338_s18 = sld [smem:[#allocation3 + %s7309_s15]] }
 0x274   : > { %12216 = vmatpush3.bf16.msra.mxu1 %v13029_v2  ;;  %v16154_v2 = vld [vmem:[%s17297_s2 + $0x14] sm:$0xf]  ;;  %v13049_v38 = vld [vmem:[%s13573_s21 + $0xe60] sm:$0xff]  }
 0x275   : > { %6090 = vmatmul.mubr.bf16.vlgmr.msra.gmra.mrb[56].mxu0 %v5628_v13  ;;  %12217 = vmatprep.subr.bf16.mxu1 %v13032_v55  ;;  %v6730_v31 = vadd.f32 %v6728_v51, %v6723_v14  ;;  %v6687_v1 = vmul.f32 %v16154_v2, %v6685_v54  ;;  %v13045_v54 = vld [vmem:[%s13573_s21 + $0xde8] sm:$0xff]   ;;  %v13046_v13 = vld [vmem:[%s13573_s21 + $0xe58] sm:$0xff]   ;;  %v13048_v55 = vld [vmem:[%s13573_s21 + $0xdf0] sm:$0xff]  }
 0x276   : > { %12228 = vmatpush3.bf16.msra.mxu0 %v13031_v8  ;;  %6626 = vmatprep.mubr.bf16.mxu0 %v6204_v28  ;;  %v16169_v8 = vld [vmem:[%s17297_s2 + $0x20] sm:$0xf]  ;;  %v13052_v51 = vld [vmem:[%s13573_s21 + $0xe68] sm:$0xff]  }
 0x277   : > { %12229 = vmatprep.subr.bf16.mxu0 %v13034_v21  ;;  %v6737_v57 = vadd.f32 %v6735_v24, %v6730_v31  ;;  %v6689_v46 = vadd.f32 %v6687_v1, %v6680_v53  ;;  %v6694_v6 = vmul.f32 %v16169_v8, %v6692_v41  ;;  %v16208_v21 = vld [vmem:[%s17297_s2 + $0x38] sm:$0xf]  ;;  %v13053_v14 = vld [vmem:[%s13573_s21 + $0xe40] sm:$0xff]   ;;  %v13055_v24 = vld [vmem:[%s13573_s21 + $0xe70] sm:$0xff]  }
 0x278   : > { %12218 = vmatpush3.bf16.msra.mxu1 %v13033_v17  ;;  %v6701_v17 = vmul.f32 %v16187_v45, %v6699_v5  ;;  %v13051_v5 = vld [vmem:[%s13573_s21 + $0xdf8] sm:$0xff]  }
 0x279   : > { %12219 = vmatprep.subr.bf16.mxu1 %v13036_v52  ;;  %v6741_v63 = vadd.f32 %v6740_v23, %v6737_v57  ;;  %v6696_v41 = vadd.f32 %v6694_v6, %v6689_v46  ;;  %v6708_v52 = vmul.f32 %v16208_v21, %v6706_v4  ;;  %v13059_v57 = vld [vmem:[%s13573_s21 + $0xee4] sm:$0xff]   ;;  %v7269_v46 = vstv %s16219_s29 }
 0x27a   : > { %12230 = vmatpush3.bf16.msra.mxu0 %v13035_v25  ;;  %v12045_v19 = vpop.f32.mrb[36].mxu1  ;;  %v13060_v6 = vld [vmem:[%s13573_s21 + $0xea4] sm:$0xff]  }
 0x27b   : > { %12231 = vmatprep.subr.bf16.mxu0 %v13038_v50  ;;  %v12046_v27 = vpop.f32.mrb[37].mxu1  ;;  %v16192_v28 = vmax.f32 %v6741_v63, 0.0  ;;  %v6703_v7 = vadd.f32 %v6701_v17, %v6696_v41  ;;  %v13054_v50 = vld [vmem:[%s13573_s21 + $0xe00] sm:$0xff]   ;;  %v13062_v63 = vld [vmem:[%s13573_s21 + $0xeec] sm:$0xff]   ;;  %v7276_v41 = vstv %s16242_s22 }
 0x27c   : > { %12220 = vmatpush3.bf16.msra.mxu1 %v13037_v16  ;;  %v16139_v20 = vadd.f32 %v12046_v27, %v12045_v19  ;;  %v12048_v62 = vpop.f32.mrb[38].mxu1  ;;  %v16226_v16 = vld [vmem:[%s17297_s2 + $0x44] sm:$0xf]  ;;  %v13056_v19 = vld [vmem:[%s13573_s21 + $0xedc] sm:$0xff]  }
 0x27d   : > { %6634 = vmatprep.subr.bf16.mxu1 %v13467_v40  ;;  %v12049_v30 = vpop.f32.mrb[39].mxu1  ;;  %v16215_v25 = vrot.slane %v16192_v28, %v13825_v9  ;;  %v6710_v4 = vadd.f32 %v6708_v52, %v6703_v7  ;;  %v6715_v42 = vmul.f32 %v16226_v16, %v6713_v22  ;;  %v13057_v27 = vld [vmem:[%s13573_s21 + $0xe9c] sm:$0xff]   ;;  %v7255_v22 = vstv %s16198_s13  ;;  %s16403_s13 = smul.u32 9, %s7829_s11 }
 0x27e   : > { %12232 = vmatpush3.bf16.msra.mxu0 %v13039_v32  ;;  %v6747_v7 = vcombine.high %v16192_v28, %v16192_v28 }
 0x27f   : > { %6587 = vmatmul.mubr.bf16.vlgmr.msra.gmra.mrb[60].mxu1 %v6201_v15  ;;  %12233 = vmatprep.subr.bf16.mxu0 %v13041_v10  ;;  %v6762_v32 = vcombine.high %v16215_v25, %v16215_v25  ;;  %v6203_v10 = vpack.c.bf16 %v16049_v56, %v16049_v56  ;;  %v6717_v30 = vadd.f32 %v6715_v42, %v6710_v4  ;;  %v13070_v4 = vld [vmem:[%s13573_s21 + $0xe98] ss:$0 sps:$4 sm:$0x33]   ;;  %s16418_s29 = sld [smem:[#allocation3 + %s16403_s13]]  ;;  %s7844_s22 = sadd.s32 2, %s16403_s13 }
 0x280   : > { %6635 = vmatpush1.bf16.msra.mxu1 %v13040_v33  ;;  %11112 = vmatprep.mubr.msk.bf16.mxu1 %vm973_vm0, %v6206_v59  ;;  %v7262_v33 = vstv %s16201_s17  ;;  %v16314_v42 = vrot.slane %v6747_v7, %v13825_v9  ;;  %v13080_v7 = vld [vmem:[%s13573_s21 + $0xed4] sm:$0xff]   ;;  %s7837_s17 = sadd.s32 1, %s16403_s13  ;;  %s16434_s8 = sld [smem:[#allocation3 + %s7844_s22]] }
 0x281   : > { %6636 = vmatprep.subr.bf16.mxu1 %v13467_v40  ;;  %v6779_v53 = vpack.c.bf16 %v6762_v32, %v6762_v32  ;;  %s16421_s27 = sld [smem:[#allocation3 + %s7837_s17]]  ;;  %s7858_s20 = sadd.s32 4, %s16403_s13 }
 0x282   : > { %12234 = vmatpush3.bf16.msra.mxu0 %v13042_v11  ;;  %v16247_v11 = vld [vmem:[%s17297_s2 + $0x50] sm:$0xf]  ;;  %s7865_s30 = sadd.s32 5, %s16403_s13  ;;  %s7872_s22 = sadd.s32 6, %s16403_s13 }
 0x283   : > { %12235 = vmatprep.subr.bf16.mxu0 %v13044_v12  ;;  %v6722_v56 = vmul.f32 %v16247_v11, %v6720_v34  ;;  %v13058_v12 = vld [vmem:[%s13573_s21 + $0xe78] sm:$0xff]   ;;  %v7263_v34 = vmul.f32 %v15994_v0, %v7262_v33 }
 0x284   : > { %6637 = vmatpush1.bf16.msra.mxu1 %v13043_v44 }
 0x285   : > { %6638 = vmatprep.subr.bf16.mxu1 %v13467_v40 }
 0x286   : > { %12236 = vmatpush3.bf16.msra.mxu0 %v13045_v54  ;;  %v7256_v54 = vmul.f32 %v15986_v39, %v7255_v22  ;;  %v16272_v39 = vld [vmem:[%s17297_s2 + $0x5c] sm:$0xf] }
 0x287   : > { %12237 = vmatprep.subr.bf16.mxu0 %v13047_v58  ;;  %v6729_v0 = vmul.f32 %v16272_v39, %v6727_v60  ;;  %v13061_v58 = vld [vmem:[%s13573_s21 + $0xe80] sm:$0xff]   ;;  %v13063_v60 = vld [vmem:[%s13573_s21 + $0xeac] sm:$0xff]  }
 0x288   : > { %6639 = vmatpush1.bf16.msra.mxu1 %v13046_v13  ;;  %v7265_v13 = vadd.f32 %v7263_v34, %v7256_v54  ;;  %v13075_v54 = vld [vmem:[%s13573_s21 + $0xf0c] sm:$0xff]  }
 0x289   : > { %6640 = vmatprep.subr.bf16.mxu1 %v13467_v40 }
 0x28a   : > { %12238 = vmatpush3.bf16.msra.mxu0 %v13048_v55  ;;  %v7270_v55 = vmul.f32 %v16013_v18, %v7269_v46 }
 0x28b   : > { %12239 = vmatprep.subr.bf16.mxu0 %v13050_v36  ;;  %v16291_v36 = vld [vmem:[%s17297_s2 + $0x68] sm:$0xf] }
 0x28c   : > { %6641 = vmatpush1.bf16.msra.mxu1 %v13049_v38  ;;  %v6736_v18 = vmul.f32 %v16291_v36, %v6734_v49  ;;  %v13065_v38 = vld [vmem:[%s13573_s21 + $0xef4] sm:$0xff]   ;;  %v7272_v52 = vadd.f32 %v7270_v55, %v7265_v13  ;;  %v7283_v49 = vstv %s16266_s28  ;;  %v7304_v55 = vstv %s16322_s10  ;;  %s7851_s28 = sadd.s32 3, %s16403_s13  ;;  %s16500_s10 = sld [smem:[#allocation3 + %s7865_s30]] }
 0x28d   : > { %6642 = vmatprep.subr.bf16.mxu1 %v13467_v40  ;;  %s16452_s14 = sld [smem:[#allocation3 + %s7851_s28]]  ;;  %s7886_s30 = sadd.s32 8, %s16403_s13 }
 0x28e   : > { %12240 = vmatpush3.bf16.msra.mxu0 %v13051_v5  ;;  %v13064_v5 = vld [vmem:[%s13573_s21 + $0xe88] sm:$0xff]  }
 0x28f   : > { %12241 = vmatprep.subr.bf16.mxu0 %v13053_v14  ;;  %v7277_v14 = vmul.f32 %v16034_v61, %v7276_v41  ;;  %v13067_v61 = vld [vmem:[%s13573_s21 + $0xe90] sm:$0xff]  }
 0x290   : > { %v12067_v31 = vpop.f32.mrb[36].mxu0  ;;  %6643 = vmatpush1.bf16.msra.mxu1 %v13052_v51  ;;  %v13066_v51 = vld [vmem:[%s13573_s21 + $0xeb4] sm:$0xff]  }
 0x291   : > { %v12068_v15 = vpop.f32.mrb[37].mxu0  ;;  %6644 = vmatprep.subr.bf16.mxu1 %v13467_v40  ;;  %v7279_v32 = vadd.f32 %v7277_v14, %v7272_v52 }
 0x292   : > { %v12069_v62 = vadd.f32 %v12068_v15, %v12067_v31  ;;  %v12070_v59 = vpop.f32.mrb[38].mxu0  ;;  %12242 = vmatpush3.bf16.msra.mxu0 %v13054_v50  ;;  %v13068_v50 = vld [vmem:[%s13573_s21 + $0xefc] sm:$0xff]   ;;  %v13071_v15 = vld [vmem:[%s13573_s21 + $0xf04] sm:$0xff]  }
 0x293   : > { %v12071_v1 = vpop.f32.mrb[39].mxu0  ;;  %12249 = vmatprep.subr.bf16.mxu0 %v13056_v19  ;;  %v7284_v19 = vmul.f32 %v16054_v3, %v7283_v49  ;;  %v13069_v31 = vld [vmem:[%s13573_s21 + $0xebc] sm:$0xff]   ;;  %v13072_v3 = vld [vmem:[%s13573_s21 + $0xec4] sm:$0xff]  }
 0x294   : > { %6645 = vmatpush1.bf16.msra.mxu1 %v13055_v24  ;;  %v16256_v44 = vadd.f32 %v12069_v62, %v16139_v20  ;;  %v6724_v20 = vadd.f32 %v6722_v56, %v6717_v30  ;;  %v7290_v24 = vstv %s16285_s23  ;;  %v6763_v62 = vcombine.high %v16314_v42, %v16314_v42  ;;  %v13073_v56 = vld [vmem:[%s13573_s21 + $0xf5c] sm:$0xff]   ;;  %s7879_s23 = sadd.s32 7, %s16403_s13 }
 0x295   : > { %6627 = vmatmul.mubr.bf16.vlgmr.msra.gmra.mrb[60].mxu0 %v6203_v10  ;;  %6646 = vmatprep.subr.bf16.mxu1 %v13467_v40  ;;  %v7286_v59 = vadd.f32 %v7284_v19, %v7279_v32  ;;  %v7291_v30 = vmul.f32 %v16075_v43, %v7290_v24  ;;  %v13074_v1 = vld [vmem:[%s13573_s21 + $0xf1c] sm:$0xff]   ;;  %v6205_v43 = vpack.c.bf16 %v16106_v48, %v16106_v48  ;;  %s16542_s26 = sld [smem:[#allocation3 + %s7879_s23]] }
 0x296   : > { %12250 = vmatpush3.bf16.msra.mxu0 %v13057_v27  ;;  %7163 = vmatprep.mubr.bf16.mxu0 %v6779_v53  ;;  %v6731_v17 = vadd.f32 %v6729_v0, %v6724_v20  ;;  %v6552_v27 = vsel %vm977_vm1, %v13070_v4, 0  ;;  %v7297_v53 = vstv %s16307_s19  ;;  %v6781_v0 = vpack.c.bf16 %v6763_v62, %v6763_v62  ;;  %v13087_v62 = vld [vmem:[%s13573_s21 + $0xf7c] sm:$0xff]   ;;  %s16481_s19 = sld [smem:[#allocation3 + %s7858_s20]] }
 0x297   : > { %12251 = vmatprep.subr.bf16.mxu0 %v13059_v57  ;;  %s16601_s23 = sld [smem:[#allocation6 + %s7829_s11]] }
 0x298   : > { %6647 = vmatpush1.bf16.msra.mxu1 %v13058_v12  ;;  %v6738_v28 = vadd.f32 %v6736_v18, %v6731_v17  ;;  %v7305_v18 = vmul.f32 %v16112_v35, %v7304_v55 }
 0x299   : > { %6648 = vmatprep.subr.bf16.mxu1 %v13467_v40 }
 0x29a   : > { %12252 = vmatpush3.bf16.msra.mxu0 %v13060_v6  ;;  %v6742_v10 = vadd.f32 %v6740_v23, %v6738_v28  ;;  %v13076_v6 = vld [vmem:[%s13573_s21 + $0xecc] sm:$0xff]   ;;  %v6778_v28 = vpack.c.bf16 %v16215_v25, %v16215_v25  ;;  %v7257_v25 = vmul.f32 %v16146_v37, %v7255_v22  ;;  %v13088_v37 = vld [vmem:[%s13573_s21 + $0xf3c] sm:$0xff]   ;;  %v7271_v22 = vmul.f32 %v16169_v8, %v7269_v46 }
 0x29b   : > { %12253 = vmatprep.subr.bf16.mxu0 %v13062_v63  ;;  %v7293_v63 = vadd.f32 %v7291_v30, %v7286_v59  ;;  %v7317_v59 = vstv %s16366_s9  ;;  %v13086_v30 = vld [vmem:[%s13573_s21 + $0xfa4] sm:$0xff]   ;;  %v7278_v46 = vmul.f32 %v16187_v45, %v7276_v41  ;;  %v13094_v45 = vld [vmem:[%s13573_s21 + $0xf4c] sm:$0xff]   ;;  %s16563_s9 = sld [smem:[#allocation3 + %s7886_s30]] }
 0x29c   : > { %6649 = vmatpush1.bf16.msra.mxu1 %v13061_v58  ;;  %v6744_v57 = vmax.f32 %v6742_v10, 0.0  ;;  %v7298_v58 = vmul.f32 %v16094_v47, %v7297_v53  ;;  %v13078_v47 = vld [vmem:[%s13573_s21 + $0xf24] sm:$0xff]  }
 0x29d   : > { %6650 = vmatprep.subr.bf16.mxu1 %v13467_v40 }
 0x29e   : > { %12254 = vmatpush3.bf16.msra.mxu0 %v13063_v60  ;;  %v13079_v60 = vld [vmem:[%s13573_s21 + $0xf14] sm:$0xff]   ;;  %v16356_v17 = vrot.slane %v6744_v57, %v13825_v9 }
 0x29f   : > { %12255 = vmatprep.subr.bf16.mxu0 %v13065_v38  ;;  %v13081_v38 = vld [vmem:[%s13573_s21 + $0xf6c] sm:$0xff]  }
 0x2a0   : > { %6651 = vmatpush1.bf16.msra.mxu1 %v13064_v5  ;;  %v7311_v5 = vstv %s16338_s18  ;;  %v6771_v52 = vcombine.high %v16356_v17, %v16356_v17  ;;  %s16522_s18 = sld [smem:[#allocation3 + %s7872_s22]] }
 0x2a1   : > { %6652 = vmatprep.subr.bf16.mxu1 %v13467_v40 }
 0x2a2   : > { %12256 = vmatpush3.bf16.msra.mxu0 %v13066_v51  ;;  %v13082_v51 = vld [vmem:[%s13573_s21 + $0xf2c] sm:$0xff]  }
 0x2a3   : > { %12257 = vmatprep.subr.bf16.mxu0 %v13068_v50  ;;  %v7312_v50 = vmul.f32 %v16130_v26, %v7311_v5  ;;  %v13085_v26 = vld [vmem:[%s13573_s21 + $0xf34] sm:$0xff]  }
 0x2a4   : > { %6653 = vmatpush1.bf16.msra.mxu1 %v13067_v61  ;;  %v13084_v61 = vld [vmem:[%s13573_s21 + $0xf74] sm:$0xff]  }
 0x2a5   : > { %6654 = vmatprep.subr.bf16.mxu1 %v13467_v40 }
 0x2a6   : > { %v4360_v23 = vpop.f32.mrb[40].mxu1  ;;  %12258 = vmatpush3.bf16.msra.mxu0 %v13069_v31  ;;  %v13083_v31 = vld [vmem:[%s13573_s21 + $0xf9c] sm:$0xff]  }
 0x2a7   : > { %v4361_v12 = vadd.f32 %v4360_v23, %v16256_v44  ;;  %12259 = vmatprep.subr.bf16.mxu0 %v13071_v15  ;;  %v4362_v34 = vpop.f32.mrb[41].mxu1  ;;  %v13077_v44 = vld [vmem:[%s13573_s21 + $0xf64] sm:$0xff]   ;;  %v6783_v15 = vpack.c.bf16 %v6771_v52, %v6771_v52  ;;  %v13089_v23 = vld [vmem:[%s13573_s21 + $0xfac] sm:$0xff]   ;;  %v7299_v52 = vmul.f32 %v16247_v11, %v7297_v53 }
 0x2a8   : > { %6655 = vmatpush1.bf16.msra.mxu1 %v6552_v27  ;;  %v4363_v20 = vpop.f32.mrb[42].mxu1  ;;  %v7264_v27 = vmul.f32 %v16154_v2, %v7262_v33  ;;  %v16474_v53 = vld [vmem:[%s17297_s2 + $0xc] sm:$0xff] }
 0x2a9   : > { %v16350_v13 = vadd.f32 %v4361_v12, %v16100_v29  ;;  %12271 = vmatprep.subr.bf16.mxu1 %v13073_v56  ;;  %v4364_v48 = vpop.f32.mrb[43].mxu1  ;;  %v7300_v29 = vadd.f32 %v7298_v58, %v7293_v63  ;;  %v13090_v56 = vld [vmem:[%s13573_s21 + $0xf84] sm:$0xff]   ;;  %v13093_v12 = vld [vmem:[%s13573_s21 + $0xf8c] sm:$0xff]   ;;  %v13095_v20 = vld [vmem:[%s13573_s21 + $0xfbc] sm:$0xff]  }
 0x2aa   : > { %12260 = vmatpush3.bf16.msra.mxu0 %v13072_v3  ;;  %v7266_v2 = vadd.f32 %v7264_v27, %v7257_v25  ;;  %v13099_v58 = vld [vmem:[%s13573_s21 + $0x1030] sm:$0xff]   ;;  %v13098_v48 = vld [vmem:[%s13573_s21 + $0xfc4] sm:$0xff]   ;;  %v16493_v25 = vld [vmem:[%s17297_s2 + $0x18] sm:$0xff] }
 0x2ab   : > { %6667 = vmatmul.mubr.bf16.vlgmr.msra.gmra.mrb[64].mxu1 %v6205_v43  ;;  %12261 = vmatprep.subr.bf16.mxu0 %v13075_v54  ;;  %v7307_v35 = vadd.f32 %v7305_v18, %v7300_v29  ;;  %v13092_v43 = vld [vmem:[%s13573_s21 + $0xfb4] sm:$0xff]   ;;  %v7285_v54 = vmul.f32 %v16208_v21, %v7283_v49  ;;  %v7292_v21 = vmul.f32 %v16226_v16, %v7290_v24  ;;  %v7832_v24 = vstv %s16418_s29  ;;  %s8406_s29 = sadd.s32 14, %s13566_s16 }
 0x2ac   : > { %12272 = vmatpush3.bf16.msra.mxu1 %v13074_v1  ;;  %7203 = vmatprep.mubr.bf16.mxu1 %v6781_v0  ;;  %v13091_v1 = vld [vmem:[%s13573_s21 + $0xf44] sm:$0xff]   ;;  %v7273_v8 = vadd.f32 %v7271_v22, %v7266_v2  ;;  %v13097_v0 = vld [vmem:[%s13573_s21 + $0xf54] sm:$0xff]   ;;  %v7839_v29 = vstv %s16421_s27  ;;  %s16658_s22 = smul.u32 9, %s8406_s29 }
 0x2ad   : > { %12273 = vmatprep.subr.bf16.mxu1 %v13077_v44  ;;  %v7314_v3 = vadd.f32 %v7312_v50, %v7307_v35  ;;  %v13100_v16 = vld [vmem:[%s13573_s21 + $0xff0] sm:$0xff]  }
 0x2ae   : > { %12262 = vmatpush3.bf16.msra.mxu0 %v13076_v6  ;;  %v7280_v41 = vadd.f32 %v7278_v46, %v7273_v8  ;;  %v13096_v6 = vld [vmem:[%s13573_s21 + $0xf94] sm:$0xff]   ;;  %v13101_v35 = vld [vmem:[%s13573_s21 + $0xfcc] sm:$0xff]   ;;  %v13110_v46 = vld [vmem:[%s13573_s21 + $0xfe4] sm:$0xff]   ;;  %s8414_s20 = sadd.s32 1, %s16658_s22  ;;  %s16679_s12 = sld [smem:[#allocation3 + %s16658_s22]] }
 0x2af   : > { %12263 = vmatprep.subr.bf16.mxu0 %v13079_v60  ;;  %v7318_v33 = vadd.f32 %v7317_v59, %v7314_v3  ;;  %s16681_s0 = sld [smem:[#allocation3 + %s8414_s20]]  ;;  %s8421_s30 = sadd.s32 2, %s16658_s22 }
 0x2b0   : > { %v12089_v14 = vpop.f32.mrb[40].mxu0  ;;  %12274 = vmatpush3.bf16.msra.mxu1 %v13078_v47  ;;  %v7287_v63 = vadd.f32 %v7285_v54, %v7280_v41  ;;  %v6780_v47 = vpack.c.bf16 %v16314_v42, %v16314_v42  ;;  %v13102_v42 = vld [vmem:[%s13573_s21 + $0x1038] sm:$0xff]   ;;  %v13112_v41 = vld [vmem:[%s13573_s21 + $0x1010] sm:$0xff]   ;;  %v7867_v54 = vstv %s16500_s10  ;;  %s16700_s15 = sld [smem:[#allocation3 + %s8421_s30]]  ;;  %s8428_s27 = sadd.s32 3, %s16658_s22 }
 0x2b1   : > { %v12090_v4 = vpop.f32.mrb[41].mxu0  ;;  %12275 = vmatprep.subr.bf16.mxu1 %v13081_v38  ;;  %v16412_v57 = vmax.f32 %v7318_v33, 0.0  ;;  %v16514_v33 = vld [vmem:[%s17297_s2 + $0x24] sm:$0xff]  ;;  %s16721_s10 = sld [smem:[#allocation3 + %s8428_s27]]  ;;  %s8435_s28 = sadd.s32 4, %s16658_s22 }
 0x2b2   : > { %v16378_v32 = vadd.f32 %v12090_v4, %v12089_v14  ;;  %v12092_v19 = vpop.f32.mrb[42].mxu0  ;;  %12264 = vmatpush3.bf16.msra.mxu0 %v13080_v7  ;;  %v7294_v7 = vadd.f32 %v7292_v21, %v7287_v63  ;;  %v16466_v4 = vld [vmem:[%s17297_s2] sm:$0xff]  ;;  %v13115_v63 = vld [vmem:[%s13573_s21 + $0x1018] sm:$0xff]   ;;  %s8442_s11 = sadd.s32 5, %s16658_s22  ;;  %s8449_s17 = sadd.s32 6, %s16658_s22 }
 0x2b3   : > { %v12093_v10 = vpop.f32.mrb[43].mxu0  ;;  %7211 = vmatprep.subr.bf16.mxu0 %v13467_v40  ;;  %v16430_v34 = vrot.slane %v16412_v57, %v13825_v9  ;;  %v7833_v11 = vmul.f32 %v16466_v4, %v7832_v24  ;;  %v7324_v2 = vcombine.high %v16412_v57, %v16412_v57  ;;  %s8456_s27 = sadd.s32 7, %s16658_s22 }
 0x2b4   : > { %12276 = vmatpush3.bf16.msra.mxu1 %v13082_v51  ;;  %v7301_v19 = vadd.f32 %v7299_v52, %v7294_v7  ;;  %v13104_v10 = vld [vmem:[%s13573_s21 + $0xfd4] sm:$0xff]   ;;  %v13118_v7 = vld [vmem:[%s13573_s21 + $0x1060] sm:$0xff]   ;;  %s16801_s13 = sld [smem:[#allocation3 + %s8456_s27]] }
 0x2b5   : > { %7164 = vmatmul.mubr.bf16.vlgmr.msra.gmra.mrb[64].mxu0 %v6778_v28  ;;  %12277 = vmatprep.subr.bf16.mxu1 %v13084_v61  ;;  %v7339_v49 = vcombine.high %v16430_v34, %v16430_v34  ;;  %v7840_v28 = vmul.f32 %v16474_v53, %v7839_v29  ;;  %v7846_v61 = vstv %s16434_s8  ;;  %v16529_v57 = vrot.slane %v7324_v2, %v13825_v9  ;;  %s8463_s8 = sadd.s32 8, %s16658_s22  ;;  %s16846_s22 = sld [smem:[#allocation6 + %s8406_s29]] }
 0x2b6   : > { %7212 = vmatpush1.bf16.msra.mxu0 %v13083_v31  ;;  %11241 = vmatprep.mubr.msk.bf16.mxu0 %vm973_vm0, %v6783_v15  ;;  %v7306_v31 = vmul.f32 %v16272_v39, %v7304_v55  ;;  %v13105_v15 = vld [vmem:[%s13573_s21 + $0x1040] sm:$0xff]   ;;  %v7847_v27 = vmul.f32 %v16493_v25, %v7846_v61  ;;  %v7853_v39 = vstv %s16452_s14  ;;  %s8983_s29 = sadd.s32 15, %s13566_s16 }
 0x2b7   : > { %7213 = vmatprep.subr.bf16.mxu0 %v13467_v40  ;;  %v7356_v14 = vpack.c.bf16 %v7339_v49, %v7339_v49  ;;  %v13106_v55 = vld [vmem:[%s13573_s21 + $0x1000] sm:$0xff]   ;;  %v7340_v21 = vcombine.high %v16529_v57, %v16529_v57 }
 0x2b8   : > { %12278 = vmatpush3.bf16.msra.mxu1 %v13085_v26  ;;  %v7842_v26 = vadd.f32 %v7840_v28, %v7833_v11  ;;  %v7308_v3 = vadd.f32 %v7306_v31, %v7301_v19  ;;  %v13120_v28 = vld [vmem:[%s13573_s21 + $0x10b8] sm:$0xff]   ;;  %v13119_v19 = vld [vmem:[%s13573_s21 + $0x1020] sm:$0xff]  }
 0x2b9   : > { %12279 = vmatprep.subr.bf16.mxu1 %v13087_v62  ;;  %v7313_v62 = vmul.f32 %v16291_v36, %v7311_v5  ;;  %v7854_v36 = vmul.f32 %v16514_v33, %v7853_v39  ;;  %v13109_v5 = vld [vmem:[%s13573_s21 + $0x1008] sm:$0xff]  }
 0x2ba   : > { %7214 = vmatpush1.bf16.msra.mxu0 %v13086_v30  ;;  %v13108_v30 = vld [vmem:[%s13573_s21 + $0x1048] sm:$0xff]   ;;  %v7849_v22 = vadd.f32 %v7847_v27, %v7842_v26  ;;  %v16592_v26 = vld [vmem:[%s17297_s2 + $0x54] sm:$0xff] }
 0x2bb   : > { %7215 = vmatprep.subr.bf16.mxu0 %v13467_v40  ;;  %v7315_v8 = vadd.f32 %v7313_v62, %v7308_v3  ;;  %v7888_v3 = vstv %s16563_s9  ;;  %v13123_v62 = vld [vmem:[%s13573_s21 + $0x1028] sm:$0xff]   ;;  %s16786_s9 = sld [smem:[#allocation3 + %s8449_s17]] }
 0x2bc   : > { %12280 = vmatpush3.bf16.msra.mxu1 %v13088_v37  ;;  %v13107_v37 = vld [vmem:[%s13573_s21 + $0xfdc] sm:$0xff]  }
 0x2bd   : > { %12281 = vmatprep.subr.bf16.mxu1 %v13090_v56  ;;  %v7860_v56 = vstv %s16481_s19 }
 0x2be   : > { %7216 = vmatpush1.bf16.msra.mxu0 %v13089_v23  ;;  %v13111_v23 = vld [vmem:[%s13573_s21 + $0x1050] sm:$0xff]  }
 0x2bf   : > { %7217 = vmatprep.subr.bf16.mxu0 %v13467_v40 }
 0x2c0   : > { %12282 = vmatpush3.bf16.msra.mxu1 %v13091_v1  ;;  %v13113_v1 = vld [vmem:[%s13573_s21 + $0xfec] ss:$0 sps:$4 sm:$0x33]  }
 0x2c1   : > { %12283 = vmatprep.subr.bf16.mxu1 %v13093_v12  ;;  %v7856_v12 = vadd.f32 %v7854_v36, %v7849_v22  ;;  %v16610_v36 = vld [vmem:[%s17297_s2 + $0x60] sm:$0xff] }
 0x2c2   : > { %7218 = vmatpush1.bf16.msra.mxu0 %v13092_v43  ;;  %v16534_v43 = vld [vmem:[%s17297_s2 + $0x30] sm:$0xff] }
 0x2c3   : > { %7219 = vmatprep.subr.bf16.mxu0 %v13467_v40 }
 0x2c4   : > { %12284 = vmatpush3.bf16.msra.mxu1 %v13094_v45  ;;  %v7861_v45 = vmul.f32 %v16534_v43, %v7860_v56 }
 0x2c5   : > { %12285 = vmatprep.subr.bf16.mxu1 %v13096_v6  ;;  %v13114_v6 = vld [vmem:[%s13573_s21 + $0x1058] sm:$0xff]  }
 0x2c6   : > { %v12111_v44 = vpop.f32.mrb[44].mxu1  ;;  %7220 = vmatpush1.bf16.msra.mxu0 %v13095_v20  ;;  %v7319_v20 = vadd.f32 %v7317_v59, %v7315_v8  ;;  %v7863_v49 = vadd.f32 %v7861_v45, %v7856_v12 }
 0x2c7   : > { %v12112_v60 = vpop.f32.mrb[45].mxu1  ;;  %7221 = vmatprep.subr.bf16.mxu0 %v13467_v40 }
 0x2c8   : > { %v12113_v18 = vadd.f32 %v12112_v60, %v12111_v44  ;;  %12286 = vmatpush3.bf16.msra.mxu1 %v13097_v0  ;;  %v12114_v38 = vpop.f32.mrb[46].mxu1  ;;  %v7129_v0 = vsel %vm977_vm1, %v13113_v1, 0  ;;  %v13116_v44 = vld [vmem:[%s13573_s21 + $0x10b0] sm:$0xff]   ;;  %v13127_v1 = vld [vmem:[%s13573_s21 + $0x10c8] sm:$0xff]  }
 0x2c9   : > { %12293 = vmatprep.subr.bf16.mxu1 %v13099_v58  ;;  %v12115_v51 = vpop.f32.mrb[47].mxu1  ;;  %v16555_v58 = vld [vmem:[%s17297_s2 + $0x3c] sm:$0xff]  ;;  %v6782_v38 = vpack.c.bf16 %v16356_v17, %v16356_v17 }
 0x2ca   : > { %7222 = vmatpush1.bf16.msra.mxu0 %v13098_v48  ;;  %v16461_v50 = vadd.f32 %v12113_v18, %v16378_v32  ;;  %v13103_v32 = vld [vmem:[%s13573_s21 + $0xff8] sm:$0xff]   ;;  %v7868_v59 = vmul.f32 %v16555_v58, %v7867_v54  ;;  %v7874_v48 = vstv %s16522_s18  ;;  %s16746_s18 = sld [smem:[#allocation3 + %s8435_s28]] }
 0x2cb   : > { %7204 = vmatmul.mubr.bf16.vlgmr.msra.gmra.mrb[68].mxu1 %v6780_v47  ;;  %7223 = vmatprep.subr.bf16.mxu0 %v13467_v40  ;;  %v7321_v47 = vmax.f32 %v7319_v20, 0.0  ;;  %v13128_v20 = vld [vmem:[%s13573_s21 + $0x1088] sm:$0xff]  }
 0x2cc   : > { %12294 = vmatpush3.bf16.msra.mxu1 %v13100_v16  ;;  %7740 = vmatprep.mubr.bf16.mxu1 %v7356_v14  ;;  %v13117_v14 = vld [vmem:[%s13573_s21 + $0x1070] sm:$0xff]   ;;  %v7870_v51 = vadd.f32 %v7868_v59, %v7863_v49 }
 0x2cd   : > { %12295 = vmatprep.subr.bf16.mxu1 %v13102_v42  ;;  %v7358_v42 = vpack.c.bf16 %v7340_v21, %v7340_v21  ;;  %v16585_v31 = vrot.slane %v7321_v47, %v13825_v9  ;;  %v13130_v59 = vld [vmem:[%s13573_s21 + $0x10d0] sm:$0xff]   ;;  %v16649_v47 = vld [vmem:[%s17297_s2 + $0x20] sm:$0xf] }
 0x2ce   : > { %7224 = vmatpush1.bf16.msra.mxu0 %v13101_v35  ;;  %v16573_v35 = vld [vmem:[%s17297_s2 + $0x48] sm:$0xff] }
 0x2cf   : > { %7225 = vmatprep.subr.bf16.mxu0 %v13467_v40 }
 0x2d0   : > { %12296 = vmatpush3.bf16.msra.mxu1 %v13103_v32  ;;  %v7881_v32 = vstv %s16542_s26  ;;  %s16765_s26 = sld [smem:[#allocation3 + %s8442_s11]] }
 0x2d1   : > { %12297 = vmatprep.subr.bf16.mxu1 %v13105_v15  ;;  %v13122_v15 = vld [vmem:[%s13573_s21 + $0x1068] sm:$0xff]   ;;  %v7882_v27 = vmul.f32 %v16592_v26, %v7881_v32 }
 0x2d2   : > { %7226 = vmatpush1.bf16.msra.mxu0 %v13104_v10 }
 0x2d3   : > { %7227 = vmatprep.subr.bf16.mxu0 %v13467_v40 }
 0x2d4   : > { %12298 = vmatpush3.bf16.msra.mxu1 %v13106_v55  ;;  %v13124_v55 = vld [vmem:[%s13573_s21 + $0x10c0] sm:$0xff]  }
 0x2d5   : > { %12299 = vmatprep.subr.bf16.mxu1 %v13108_v30  ;;  %v7348_v30 = vcombine.high %v16585_v31, %v16585_v31 }
 0x2d6   : > { %7228 = vmatpush1.bf16.msra.mxu0 %v13107_v37  ;;  %v13125_v37 = vld [vmem:[%s13573_s21 + $0x1080] sm:$0xff]  }
 0x2d7   : > { %7229 = vmatprep.subr.bf16.mxu0 %v13467_v40 }
 0x2d8   : > { %12300 = vmatpush3.bf16.msra.mxu1 %v13109_v5  ;;  %v7889_v5 = vmul.f32 %v16610_v36, %v7888_v3 }
 0x2d9   : > { %12301 = vmatprep.subr.bf16.mxu1 %v13111_v23  ;;  %v7355_v23 = vpack.c.bf16 %v16430_v34, %v16430_v34  ;;  %v16626_v34 = vld [vmem:[%s17297_s2 + $0x8] sm:$0xf] }
 0x2da   : > { %7230 = vmatpush1.bf16.msra.mxu0 %v13110_v46  ;;  %v13126_v46 = vld [vmem:[%s13573_s21 + $0x10f0] sm:$0xff]  }
 0x2db   : > { %7231 = vmatprep.subr.bf16.mxu0 %v13467_v40 }
 0x2dc   : > { %v4937_v60 = vpop.f32.mrb[44].mxu0  ;;  %12302 = vmatpush3.bf16.msra.mxu1 %v13112_v41  ;;  %v7360_v41 = vpack.c.bf16 %v7348_v30, %v7348_v30 }
 0x2dd   : > { %v4938_v16 = vadd.f32 %v4937_v60, %v16461_v50  ;;  %v4939_v18 = vpop.f32.mrb[45].mxu0  ;;  %12303 = vmatprep.subr.bf16.mxu1 %v13114_v6  ;;  %v7875_v50 = vmul.f32 %v16573_v35, %v7874_v48 }
 0x2de   : > { %v4940_v52 = vpop.f32.mrb[46].mxu0  ;;  %7232 = vmatpush1.bf16.msra.mxu0 %v7129_v0  ;;  %v7834_v0 = vmul.f32 %v16626_v34, %v7832_v24  ;;  %v13129_v24 = vld [vmem:[%s13573_s21 + $0x10f8] sm:$0xff]  }
 0x2df   : > { %v16579_v11 = vadd.f32 %v4938_v16, %v16350_v13  ;;  %v4941_v17 = vpop.f32.mrb[47].mxu0  ;;  %12315 = vmatprep.subr.bf16.mxu0 %v13116_v44  ;;  %v13121_v13 = vld [vmem:[%s13573_s21 + $0x1078] sm:$0xff]   ;;  %v7877_v10 = vadd.f32 %v7875_v50, %v7870_v51  ;;  %v7894_v44 = vstv %s16601_s23  ;;  %v7848_v16 = vmul.f32 %v16649_v47, %v7846_v61  ;;  %v16667_v61 = vld [vmem:[%s17297_s2 + $0x2c] sm:$0xf]  ;;  %v13136_v50 = vld [vmem:[%s13573_s21 + $0x10e0] sm:$0xff]   ;;  %s16817_s23 = sld [smem:[#allocation3 + %s8463_s8]] }
 0x2e0   : > { %12304 = vmatpush3.bf16.msra.mxu1 %v13115_v63  ;;  %v16634_v63 = vld [vmem:[%s17297_s2 + $0x14] sm:$0xf]  ;;  %v13134_v52 = vld [vmem:[%s13573_s21 + $0x1098] sm:$0xff]   ;;  %v13135_v17 = vld [vmem:[%s13573_s21 + $0x1108] sm:$0xff]  }
 0x2e1   : > { %7244 = vmatmul.mubr.bf16.vlgmr.msra.gmra.mrb[68].mxu0 %v6782_v38  ;;  %12305 = vmatprep.subr.bf16.mxu1 %v13118_v7  ;;  %v7884_v22 = vadd.f32 %v7882_v27, %v7877_v10  ;;  %v7841_v21 = vmul.f32 %v16634_v63, %v7839_v29  ;;  %v13131_v29 = vld [vmem:[%s13573_s21 + $0x1090] sm:$0xff]   ;;  %v13133_v38 = vld [vmem:[%s13573_s21 + $0x10d8] sm:$0xff]   ;;  %v13132_v7 = vld [vmem:[%s13573_s21 + $0x1100] sm:$0xff]  }
 0x2e2   : > { %12316 = vmatpush3.bf16.msra.mxu0 %v13117_v14  ;;  %7780 = vmatprep.mubr.bf16.mxu0 %v7358_v42  ;;  %v7855_v42 = vmul.f32 %v16667_v61, %v7853_v39  ;;  %v13139_v10 = vld [vmem:[%s13573_s21 + $0x10e8] sm:$0xff]   ;;  %v13138_v27 = vld [vmem:[%s13573_s21 + $0x1110] sm:$0xff]  }
 0x2e3   : > { %12317 = vmatprep.subr.bf16.mxu0 %v13120_v28  ;;  %v7891_v49 = vadd.f32 %v7889_v5, %v7884_v22  ;;  %v7843_v60 = vadd.f32 %v7841_v21, %v7834_v0  ;;  %v13137_v28 = vld [vmem:[%s13573_s21 + $0x10a0] sm:$0xff]   ;;  %v13141_v5 = vld [vmem:[%s13573_s21 + $0x1118] sm:$0xff]  }
 0x2e4   : > { %12306 = vmatpush3.bf16.msra.mxu1 %v13119_v19  ;;  %v16687_v19 = vld [vmem:[%s17297_s2 + $0x38] sm:$0xf] }
 0x2e5   : > { %12307 = vmatprep.subr.bf16.mxu1 %v13122_v15  ;;  %v7895_v18 = vadd.f32 %v7894_v44, %v7891_v49  ;;  %v7850_v14 = vadd.f32 %v7848_v16, %v7843_v60  ;;  %v7862_v15 = vmul.f32 %v16687_v19, %v7860_v56  ;;  %v13145_v49 = vld [vmem:[%s13573_s21 + $0x118c] sm:$0xff]   ;;  %v8423_v60 = vstv %s16700_s15 }
 0x2e6   : > { %12318 = vmatpush3.bf16.msra.mxu0 %v13121_v13  ;;  %v12133_v2 = vpop.f32.mrb[48].mxu1  ;;  %v13146_v16 = vld [vmem:[%s13573_s21 + $0x114c] sm:$0xff]  }
 0x2e7   : > { %12319 = vmatprep.subr.bf16.mxu0 %v13124_v55  ;;  %v12134_v8 = vpop.f32.mrb[49].mxu1  ;;  %v16672_v51 = vmax.f32 %v7895_v18, 0.0  ;;  %v7857_v39 = vadd.f32 %v7855_v42, %v7850_v14  ;;  %v13140_v55 = vld [vmem:[%s13573_s21 + $0x10a8] sm:$0xff]   ;;  %v16752_v18 = vld [vmem:[%s17297_s2 + $0x5c] sm:$0xf]  ;;  %v8424_v42 = vmul.f32 %v16493_v25, %v8423_v60 }
 0x2e8   : > { %12308 = vmatpush3.bf16.msra.mxu1 %v13123_v62  ;;  %v16619_v12 = vadd.f32 %v12134_v8, %v12133_v2  ;;  %v12136_v45 = vpop.f32.mrb[50].mxu1  ;;  %v16706_v62 = vld [vmem:[%s17297_s2 + $0x44] sm:$0xf]  ;;  %v8416_v8 = vstv %s16681_s0 }
 0x2e9   : > { %7788 = vmatprep.subr.bf16.mxu1 %v13467_v40  ;;  %v12137_v6 = vpop.f32.mrb[51].mxu1  ;;  %v16694_v13 = vrot.slane %v16672_v51, %v13825_v9  ;;  %v7864_v56 = vadd.f32 %v7862_v15, %v7857_v39  ;;  %v7869_v30 = vmul.f32 %v16706_v62, %v7867_v54  ;;  %v13142_v2 = vld [vmem:[%s13573_s21 + $0x1184] sm:$0xff]   ;;  %v8409_v54 = vstv %s16679_s12  ;;  %v13151_v15 = vld [vmem:[%s13573_s21 + $0x119c] sm:$0xff]   ;;  %s16883_s12 = smul.u32 9, %s8983_s29 }
 0x2ea   : > { %12320 = vmatpush3.bf16.msra.mxu0 %v13125_v37 }
 0x2eb   : > { %7741 = vmatmul.mubr.bf16.vlgmr.msra.gmra.mrb[72].mxu1 %v7355_v23  ;;  %12321 = vmatprep.subr.bf16.mxu0 %v13127_v1  ;;  %v7916_v37 = vcombine.high %v16694_v13, %v16694_v13  ;;  %v7357_v1 = vpack.c.bf16 %v16529_v57, %v16529_v57  ;;  %v7871_v6 = vadd.f32 %v7869_v30, %v7864_v56  ;;  %v13152_v30 = vld [vmem:[%s13573_s21 + $0x115c] sm:$0xff]   ;;  %s8991_s0 = sadd.s32 1, %s16883_s12  ;;  %s16899_s15 = sld [smem:[#allocation3 + %s16883_s12]] }
 0x2ec   : > { %7789 = vmatpush1.bf16.msra.mxu1 %v13126_v46  ;;  %11370 = vmatprep.mubr.msk.bf16.mxu1 %vm973_vm0, %v7360_v41  ;;  %v13143_v41 = vld [vmem:[%s13573_s21 + $0x1144] sm:$0xff]   ;;  %s16901_s28 = sld [smem:[#allocation3 + %s8991_s0]]  ;;  %s9012_s11 = sadd.s32 4, %s16883_s12 }
 0x2ed   : > { %7790 = vmatprep.subr.bf16.mxu1 %v13467_v40  ;;  %v7933_v0 = vpack.c.bf16 %v7916_v37, %v7916_v37  ;;  %s9019_s30 = sadd.s32 5, %s16883_s12  ;;  %s9026_s17 = sadd.s32 6, %s16883_s12 }
 0x2ee   : > { %12322 = vmatpush3.bf16.msra.mxu0 %v13128_v20  ;;  %v16727_v20 = vld [vmem:[%s17297_s2 + $0x50] sm:$0xf]  ;;  %s16965_s19 = sld [smem:[#allocation3 + %s9019_s30]]  ;;  %s9033_s27 = sadd.s32 7, %s16883_s12 }
 0x2ef   : > { %12323 = vmatprep.subr.bf16.mxu0 %v13130_v59  ;;  %v7876_v57 = vmul.f32 %v16727_v20, %v7874_v48  ;;  %v13144_v59 = vld [vmem:[%s13573_s21 + $0x1120] sm:$0xff]   ;;  %v8417_v48 = vmul.f32 %v16474_v53, %v8416_v8  ;;  %s9040_s8 = sadd.s32 8, %s16883_s12 }
 0x2f0   : > { %7791 = vmatpush1.bf16.msra.mxu1 %v13129_v24 }
 0x2f1   : > { %7792 = vmatprep.subr.bf16.mxu1 %v13467_v40 }
 0x2f2   : > { %12324 = vmatpush3.bf16.msra.mxu0 %v13131_v29  ;;  %v8410_v29 = vmul.f32 %v16466_v4, %v8409_v54 }
 0x2f3   : > { %12325 = vmatprep.subr.bf16.mxu0 %v13133_v38  ;;  %v7883_v38 = vmul.f32 %v16752_v18, %v7881_v32  ;;  %v13149_v32 = vld [vmem:[%s13573_s21 + $0x1154] sm:$0xff]  }
 0x2f4   : > { %7793 = vmatpush1.bf16.msra.mxu1 %v13132_v7  ;;  %v13148_v7 = vld [vmem:[%s13573_s21 + $0x1194] sm:$0xff]   ;;  %v8419_v14 = vadd.f32 %v8417_v48, %v8410_v29  ;;  %v8451_v29 = vstv %s16786_s9  ;;  %v13158_v48 = vld [vmem:[%s13573_s21 + $0x116c] sm:$0xff]   ;;  %s16981_s9 = sld [smem:[#allocation3 + %s9026_s17]] }
 0x2f5   : > { %7794 = vmatprep.subr.bf16.mxu1 %v13467_v40 }
 0x2f6   : > { %12326 = vmatpush3.bf16.msra.mxu0 %v13134_v52  ;;  %v13147_v52 = vld [vmem:[%s13573_s21 + $0x1128] sm:$0xff]  }
 0x2f7   : > { %12327 = vmatprep.subr.bf16.mxu0 %v13136_v50  ;;  %v8430_v50 = vstv %s16721_s10  ;;  %s8998_s10 = sadd.s32 2, %s16883_s12 }
 0x2f8   : > { %7795 = vmatpush1.bf16.msra.mxu1 %v13135_v17  ;;  %v8431_v56 = vmul.f32 %v16514_v33, %v8430_v50  ;;  %s16915_s20 = sld [smem:[#allocation3 + %s8998_s10]] }
 0x2f9   : > { %7796 = vmatprep.subr.bf16.mxu1 %v13467_v40 }
 0x2fa   : > { %12328 = vmatpush3.bf16.msra.mxu0 %v13137_v28  ;;  %v16771_v28 = vld [vmem:[%s17297_s2 + $0x68] sm:$0xf] }
 0x2fb   : > { %12329 = vmatprep.subr.bf16.mxu0 %v13139_v10  ;;  %v7890_v39 = vmul.f32 %v16771_v28, %v7888_v3  ;;  %v13150_v10 = vld [vmem:[%s13573_s21 + $0x1130] sm:$0xff]   ;;  %v8437_v3 = vstv %s16746_s18  ;;  %s9005_s18 = sadd.s32 3, %s16883_s12 }
 0x2fc   : > { %v12155_v22 = vpop.f32.mrb[48].mxu0  ;;  %7797 = vmatpush1.bf16.msra.mxu1 %v13138_v27  ;;  %v7901_v27 = vcombine.high %v16672_v51, %v16672_v51  ;;  %v13154_v51 = vld [vmem:[%s13573_s21 + $0x11a4] sm:$0xff]   ;;  %s16931_s14 = sld [smem:[#allocation3 + %s9005_s18]] }
 0x2fd   : > { %v12156_v23 = vpop.f32.mrb[49].mxu0  ;;  %7798 = vmatprep.subr.bf16.mxu1 %v13467_v40 }
 0x2fe   : > { %v12157_v46 = vadd.f32 %v12156_v23, %v12155_v22  ;;  %v12158_v45 = vpop.f32.mrb[50].mxu0  ;;  %12330 = vmatpush3.bf16.msra.mxu0 %v13140_v55  ;;  %v8426_v55 = vadd.f32 %v8424_v42, %v8419_v14  ;;  %v16793_v22 = vrot.slane %v7901_v27, %v13825_v9  ;;  %v8438_v23 = vmul.f32 %v16534_v43, %v8437_v3  ;;  %v13160_v14 = vld [vmem:[%s13573_s21 + $0x11c4] sm:$0xff]   ;;  %v13162_v27 = vld [vmem:[%s13573_s21 + $0x1174] sm:$0xff]  }
 0x2ff   : > { %v12159_v21 = vpop.f32.mrb[51].mxu0  ;;  %12337 = vmatprep.subr.bf16.mxu0 %v13142_v2  ;;  %v13153_v2 = vld [vmem:[%s13573_s21 + $0x1138] sm:$0xff]   ;;  %v13155_v45 = vld [vmem:[%s13573_s21 + $0x1164] sm:$0xff]  }
 0x300   : > { %7799 = vmatpush1.bf16.msra.mxu1 %v13141_v5  ;;  %v16736_v24 = vadd.f32 %v12157_v46, %v16619_v12  ;;  %v7878_v12 = vadd.f32 %v7876_v57, %v7871_v6  ;;  %v8433_v5 = vadd.f32 %v8431_v56, %v8426_v55  ;;  %v8444_v46 = vstv %s16765_s26  ;;  %v13157_v6 = vld [vmem:[%s13573_s21 + $0x11ac] sm:$0xff]   ;;  %v13165_v56 = vld [vmem:[%s13573_s21 + $0x11bc] sm:$0xff]   ;;  %s16951_s26 = sld [smem:[#allocation3 + %s9012_s11]] }
 0x301   : > { %7781 = vmatmul.mubr.bf16.vlgmr.msra.gmra.mrb[72].mxu0 %v7357_v1  ;;  %7800 = vmatprep.subr.bf16.mxu1 %v13467_v40  ;;  %v13156_v1 = vld [vmem:[%s13573_s21 + $0x1140] ss:$0 sps:$4 sm:$0x33]   ;;  %v7917_v57 = vcombine.high %v16793_v22, %v16793_v22  ;;  %v8445_v21 = vmul.f32 %v16555_v58, %v8444_v46 }
 0x302   : > { %12338 = vmatpush3.bf16.msra.mxu0 %v13143_v41  ;;  %8317 = vmatprep.mubr.bf16.mxu0 %v7933_v0  ;;  %v7885_v17 = vadd.f32 %v7883_v38, %v7878_v12  ;;  %v8440_v0 = vadd.f32 %v8438_v23, %v8433_v5  ;;  %v7359_v38 = vpack.c.bf16 %v16585_v31, %v16585_v31  ;;  %v13166_v5 = vld [vmem:[%s13573_s21 + $0x117c] sm:$0xff]  }
 0x303   : > { %12339 = vmatprep.subr.bf16.mxu0 %v13145_v49  ;;  %v7706_v49 = vsel %vm977_vm1, %v13156_v1, 0 }
 0x304   : > { %7801 = vmatpush1.bf16.msra.mxu1 %v13144_v59  ;;  %v7892_v37 = vadd.f32 %v7890_v39, %v7885_v17  ;;  %v13159_v59 = vld [vmem:[%s13573_s21 + $0x1204] sm:$0xff]   ;;  %v8447_v17 = vadd.f32 %v8445_v21, %v8440_v0  ;;  %v8452_v39 = vmul.f32 %v16573_v35, %v8451_v29  ;;  %v7932_v0 = vpack.c.bf16 %v16694_v13, %v16694_v13  ;;  %v13170_v21 = vld [vmem:[%s13573_s21 + $0x121c] sm:$0xff]  }
 0x305   : > { %7802 = vmatprep.subr.bf16.mxu1 %v13467_v40  ;;  %v8411_v13 = vmul.f32 %v16626_v34, %v8409_v54  ;;  %v13174_v54 = vld [vmem:[%s13573_s21 + $0x11e4] sm:$0xff]  }
 0x306   : > { %12340 = vmatpush3.bf16.msra.mxu0 %v13146_v16  ;;  %v7896_v41 = vadd.f32 %v7894_v44, %v7892_v37 }
 0x307   : > { %12341 = vmatprep.subr.bf16.mxu0 %v13148_v7  ;;  %v13161_v7 = vld [vmem:[%s13573_s21 + $0x11b4] sm:$0xff]  }
 0x308   : > { %7803 = vmatpush1.bf16.msra.mxu1 %v13147_v52  ;;  %v7898_v16 = vmax.f32 %v7896_v41, 0.0 }
 0x309   : > { %7804 = vmatprep.subr.bf16.mxu1 %v13467_v40 }
 0x30a   : > { %12342 = vmatpush3.bf16.msra.mxu0 %v13149_v32  ;;  %v7935_v32 = vpack.c.bf16 %v7917_v57, %v7917_v57  ;;  %v16835_v55 = vrot.slane %v7898_v16, %v13825_v9 }
 0x30b   : > { %12343 = vmatprep.subr.bf16.mxu0 %v13151_v15  ;;  %v13163_v15 = vld [vmem:[%s13573_s21 + $0x120c] sm:$0xff]  }
 0x30c   : > { %7805 = vmatpush1.bf16.msra.mxu1 %v13150_v10  ;;  %v8458_v10 = vstv %s16801_s13  ;;  %v7925_v23 = vcombine.high %v16835_v55, %v16835_v55  ;;  %s16996_s13 = sld [smem:[#allocation3 + %s9033_s27]] }
 0x30d   : > { %7806 = vmatprep.subr.bf16.mxu1 %v13467_v40  ;;  %v8459_v37 = vmul.f32 %v16592_v26, %v8458_v10 }
 0x30e   : > { %12344 = vmatpush3.bf16.msra.mxu0 %v13152_v30  ;;  %v8454_v30 = vadd.f32 %v8452_v39, %v8447_v17  ;;  %v13176_v39 = vld [vmem:[%s13573_s21 + $0x122c] sm:$0xff]  }
 0x30f   : > { %12345 = vmatprep.subr.bf16.mxu0 %v13154_v51  ;;  %v13167_v51 = vld [vmem:[%s13573_s21 + $0x1214] sm:$0xff]  }
 0x310   : > { %7807 = vmatpush1.bf16.msra.mxu1 %v13153_v2  ;;  %v8465_v2 = vstv %s16817_s23  ;;  %v8461_v41 = vadd.f32 %v8459_v37, %v8454_v30  ;;  %v13178_v30 = vld [vmem:[%s13573_s21 + $0x125c] sm:$0xff]   ;;  %v13180_v37 = vld [vmem:[%s13573_s21 + $0x11f4] sm:$0xff]   ;;  %s17012_s23 = sld [smem:[#allocation3 + %s9040_s8]] }
 0x311   : > { %7808 = vmatprep.subr.bf16.mxu1 %v13467_v40 }
 0x312   : > { %v5514_v44 = vpop.f32.mrb[52].mxu1  ;;  %12346 = vmatpush3.bf16.msra.mxu0 %v13155_v45  ;;  %v13168_v45 = vld [vmem:[%s13573_s21 + $0x11d4] sm:$0xff]  }
 0x313   : > { %v5515_v12 = vadd.f32 %v5514_v44, %v16736_v24  ;;  %12347 = vmatprep.subr.bf16.mxu0 %v13157_v6  ;;  %v5516_v52 = vpop.f32.mrb[53].mxu1  ;;  %v8466_v6 = vmul.f32 %v16610_v36, %v8465_v2  ;;  %v13169_v44 = vld [vmem:[%s13573_s21 + $0x1244] sm:$0xff]  }
 0x314   : > { %7809 = vmatpush1.bf16.msra.mxu1 %v7706_v49  ;;  %v5517_v42 = vpop.f32.mrb[54].mxu1  ;;  %v13173_v52 = vld [vmem:[%s13573_s21 + $0x1224] sm:$0xff]  }
 0x315   : > { %v16829_v24 = vadd.f32 %v5515_v12, %v16579_v11  ;;  %12359 = vmatprep.subr.bf16.mxu1 %v13159_v59  ;;  %v5518_v31 = vpop.f32.mrb[55].mxu1  ;;  %v13164_v11 = vld [vmem:[%s13573_s21 + $0x11cc] sm:$0xff]   ;;  %v13171_v12 = vld [vmem:[%s13573_s21 + $0x11dc] sm:$0xff]  }
 0x316   : > { %12348 = vmatpush3.bf16.msra.mxu0 %v13158_v48  ;;  %v7937_v48 = vpack.c.bf16 %v7925_v23, %v7925_v23  ;;  %v13172_v42 = vld [vmem:[%s13573_s21 + $0x124c] sm:$0xff]   ;;  %v13182_v23 = vld [vmem:[%s13573_s21 + $0x123c] sm:$0xff]  }
 0x317   : > { %7821 = vmatmul.mubr.bf16.vlgmr.msra.gmra.mrb[76].mxu1 %v7359_v38  ;;  %12349 = vmatprep.subr.bf16.mxu0 %v13161_v7  ;;  %v8418_v38 = vmul.f32 %v16634_v63, %v8416_v8  ;;  %v8468_v7 = vadd.f32 %v8466_v6, %v8461_v41  ;;  %v13177_v31 = vld [vmem:[%s13573_s21 + $0x11ec] sm:$0xff]   ;;  %v8446_v41 = vmul.f32 %v16706_v62, %v8444_v46  ;;  %v8986_v46 = vstv %s16899_s15 }
 0x318   : > { %12360 = vmatpush3.bf16.msra.mxu1 %v13160_v14  ;;  %8357 = vmatprep.mubr.bf16.mxu1 %v7935_v32  ;;  %v8471_v14 = vstv %s16846_s22  ;;  %v8425_v32 = vmul.f32 %v16649_v47, %v8423_v60  ;;  %v8432_v60 = vmul.f32 %v16667_v61, %v8430_v50  ;;  %s17041_s22 = sld [smem:[#allocation6 + %s8983_s29]] }
 0x319   : > { %12361 = vmatprep.subr.bf16.mxu1 %v13163_v15  ;;  %v8420_v8 = vadd.f32 %v8418_v38, %v8411_v13  ;;  %v8472_v17 = vadd.f32 %v8471_v14, %v8468_v7  ;;  %v13175_v15 = vld [vmem:[%s13573_s21 + $0x1254] sm:$0xff]   ;;  %v8453_v7 = vmul.f32 %v16727_v20, %v8451_v29 }
 0x31a   : > { %12350 = vmatpush3.bf16.msra.mxu0 %v13162_v27 }
 0x31b   : > { %12351 = vmatprep.subr.bf16.mxu0 %v13165_v56  ;;  %v8427_v27 = vadd.f32 %v8425_v32, %v8420_v8  ;;  %v16892_v56 = vmax.f32 %v8472_v17, 0.0  ;;  %v8987_v32 = vmul.f32 %v16466_v4, %v8986_v46  ;;  %v9000_v17 = vstv %s16915_s20  ;;  %v13191_v4 = vld [vmem:[%s13573_s21 + $0x12e8] sm:$0xff]  }
 0x31c   : > { %v12177_v1 = vpop.f32.mrb[52].mxu0  ;;  %12362 = vmatpush3.bf16.msra.mxu1 %v13164_v11  ;;  %v13179_v11 = vld [vmem:[%s13573_s21 + $0x1234] sm:$0xff]  }
 0x31d   : > { %v12178_v57 = vpop.f32.mrb[53].mxu0  ;;  %12363 = vmatprep.subr.bf16.mxu1 %v13167_v51  ;;  %v8434_v50 = vadd.f32 %v8432_v60, %v8427_v27  ;;  %v8439_v51 = vmul.f32 %v16687_v19, %v8437_v3  ;;  %v9001_v27 = vmul.f32 %v16493_v25, %v9000_v17  ;;  %v9007_v60 = vstv %s16931_s14  ;;  %v13193_v25 = vld [vmem:[%s13573_s21 + $0x1284] sm:$0xff]  }
 0x31e   : > { %v16858_v49 = vadd.f32 %v12178_v57, %v12177_v1  ;;  %v12180_v59 = vpop.f32.mrb[54].mxu0  ;;  %12352 = vmatpush3.bf16.msra.mxu0 %v13166_v5  ;;  %v16909_v5 = vrot.slane %v16892_v56, %v13825_v9  ;;  %v13181_v1 = vld [vmem:[%s13573_s21 + $0x1264] sm:$0xff]   ;;  %v13185_v57 = vld [vmem:[%s13573_s21 + $0x12d8] sm:$0xff]  }
 0x31f   : > { %v12181_v16 = vpop.f32.mrb[55].mxu0  ;;  %8365 = vmatprep.subr.bf16.mxu0 %v13467_v40  ;;  %v8441_v3 = vadd.f32 %v8439_v51, %v8434_v50  ;;  %v8478_v50 = vcombine.high %v16892_v56, %v16892_v56  ;;  %v13197_v56 = vld [vmem:[%s13573_s21 + $0x12f8] sm:$0xff]  }
 0x320   : > { %12364 = vmatpush3.bf16.msra.mxu1 %v13168_v45  ;;  %v13183_v45 = vld [vmem:[%s13573_s21 + $0x11fc] sm:$0xff]   ;;  %v8493_v6 = vcombine.high %v16909_v5, %v16909_v5 }
 0x321   : > { %8318 = vmatmul.mubr.bf16.vlgmr.msra.gmra.mrb[76].mxu0 %v7932_v0  ;;  %12365 = vmatprep.subr.bf16.mxu1 %v13170_v21  ;;  %v13184_v21 = vld [vmem:[%s13573_s21 + $0x126c] sm:$0xff]   ;;  %v8448_v38 = vadd.f32 %v8446_v41, %v8441_v3 }
 0x322   : > { %8366 = vmatpush1.bf16.msra.mxu0 %v13169_v44  ;;  %11499 = vmatprep.mubr.msk.bf16.mxu0 %vm973_vm0, %v7937_v48  ;;  %v7934_v44 = vpack.c.bf16 %v16793_v22, %v16793_v22  ;;  %v8993_v48 = vstv %s16901_s28  ;;  %v13188_v22 = vld [vmem:[%s13573_s21 + $0x12e0] sm:$0xff]   ;;  %v13196_v3 = vld [vmem:[%s13573_s21 + $0x128c] sm:$0xff]  }
 0x323   : > { %8367 = vmatprep.subr.bf16.mxu0 %v13467_v40  ;;  %v8994_v29 = vmul.f32 %v16474_v53, %v8993_v48  ;;  %v13190_v53 = vld [vmem:[%s13573_s21 + $0x127c] sm:$0xff]  }
 0x324   : > { %12366 = vmatpush3.bf16.msra.mxu1 %v13171_v12  ;;  %v13186_v12 = vld [vmem:[%s13573_s21 + $0x1298] sm:$0xff]  }
 0x325   : > { %12367 = vmatprep.subr.bf16.mxu1 %v13173_v52  ;;  %v8510_v52 = vpack.c.bf16 %v8493_v6, %v8493_v6 }
 0x326   : > { %8368 = vmatpush1.bf16.msra.mxu0 %v13172_v42 }
 0x327   : > { %8369 = vmatprep.subr.bf16.mxu0 %v13467_v40 }
 0x328   : > { %12368 = vmatpush3.bf16.msra.mxu1 %v13174_v54  ;;  %v13187_v54 = vld [vmem:[%s13573_s21 + $0x1274] sm:$0xff]  }
 0x329   : > { %12369 = vmatprep.subr.bf16.mxu1 %v13176_v39  ;;  %v13189_v39 = vld [vmem:[%s13573_s21 + $0x12a0] sm:$0xff]  }
 0x32a   : > { %8370 = vmatpush1.bf16.msra.mxu0 %v13175_v15  ;;  %v8460_v15 = vmul.f32 %v16752_v18, %v8458_v10  ;;  %v13192_v10 = vld [vmem:[%s13573_s21 + $0x12a8] sm:$0xff]  }
 0x32b   : > { %8371 = vmatprep.subr.bf16.mxu0 %v13467_v40 }
 0x32c   : > { %12370 = vmatpush3.bf16.msra.mxu1 %v13177_v31  ;;  %v8996_v31 = vadd.f32 %v8994_v29, %v8987_v32  ;;  %v13204_v32 = vld [vmem:[%s13573_s21 + $0x1308] sm:$0xff]  }
 0x32d   : > { %12371 = vmatprep.subr.bf16.mxu1 %v13179_v11 }
 0x32e   : > { %8372 = vmatpush1.bf16.msra.mxu0 %v13178_v30  ;;  %v8467_v30 = vmul.f32 %v16771_v28, %v8465_v2  ;;  %v9003_v51 = vadd.f32 %v9001_v27, %v8996_v31  ;;  %v9014_v2 = vstv %s16951_s26  ;;  %v9035_v31 = vstv %s16996_s13  ;;  %v13205_v27 = vld [vmem:[%s13573_s21 + $0x12c8] sm:$0xff]  }
 0x32f   : > { %8373 = vmatprep.subr.bf16.mxu0 %v13467_v40  ;;  %v9015_v6 = vmul.f32 %v16534_v43, %v9014_v2 }
 0x330   : > { %12372 = vmatpush3.bf16.msra.mxu1 %v13180_v37  ;;  %v13194_v37 = vld [vmem:[%s13573_s21 + $0x12f0] sm:$0xff]  }
 0x331   : > { %12373 = vmatprep.subr.bf16.mxu1 %v13182_v23  ;;  %v9008_v23 = vmul.f32 %v16514_v33, %v9007_v60  ;;  %v16988_v33 = vrot.slane %v8478_v50, %v13825_v9  ;;  %v13209_v50 = vld [vmem:[%s13573_s21 + $0x12d0] sm:$0xff]  }
 0x332   : > { %v12199_v0 = vpop.f32.mrb[56].mxu1  ;;  %8374 = vmatpush1.bf16.msra.mxu0 %v13181_v1  ;;  %v13195_v1 = vld [vmem:[%s13573_s21 + $0x12b0] sm:$0xff]  }
 0x333   : > { %v12200_v59 = vpop.f32.mrb[57].mxu1  ;;  %8375 = vmatprep.subr.bf16.mxu0 %v13467_v40  ;;  %v9010_v41 = vadd.f32 %v9008_v23, %v9003_v51  ;;  %v8494_v43 = vcombine.high %v16988_v33, %v16988_v33  ;;  %v13211_v23 = vld [vmem:[%s13573_s21 + $0x1328] sm:$0xff]  }
 0x334   : > { %v12201_v16 = vadd.f32 %v12200_v59, %v12199_v0  ;;  %12374 = vmatpush3.bf16.msra.mxu1 %v13183_v45  ;;  %v12202_v13 = vpop.f32.mrb[58].mxu1  ;;  %v9021_v0 = vstv %s16965_s19 }
 0x335   : > { %12381 = vmatprep.subr.bf16.mxu1 %v13185_v57  ;;  %v12203_v42 = vpop.f32.mrb[59].mxu1  ;;  %v13199_v57 = vld [vmem:[%s13573_s21 + $0x1294] ss:$0 sps:$4 sm:$0x33]  }
 0x336   : > { %8376 = vmatpush1.bf16.msra.mxu0 %v13184_v21  ;;  %v16941_v8 = vadd.f32 %v12201_v16, %v16858_v49  ;;  %v8455_v49 = vadd.f32 %v8453_v7, %v8448_v38  ;;  %v13198_v21 = vld [vmem:[%s13573_s21 + $0x12b8] sm:$0xff]   ;;  %v9017_v16 = vadd.f32 %v9015_v6, %v9010_v41  ;;  %v8283_v13 = vsel %vm977_vm1, %v13199_v57, 0 }
 0x337   : > { %8358 = vmatmul.mubr.bf16.vlgmr.msra.gmra.mrb[80].mxu1 %v7934_v44  ;;  %8377 = vmatprep.subr.bf16.mxu0 %v13467_v40  ;;  %v13200_v44 = vld [vmem:[%s13573_s21 + $0x1300] sm:$0xff]   ;;  %v13202_v38 = vld [vmem:[%s13573_s21 + $0x1358] sm:$0xff]   ;;  %v9028_v7 = vstv %s16981_s9 }
 0x338   : > { %12382 = vmatpush3.bf16.msra.mxu1 %v13186_v12  ;;  %8894 = vmatprep.mubr.bf16.mxu1 %v8510_v52  ;;  %v8462_v11 = vadd.f32 %v8460_v15, %v8455_v49  ;;  %v9022_v12 = vmul.f32 %v16555_v58, %v9021_v0  ;;  %v13201_v52 = vld [vmem:[%s13573_s21 + $0x12c0] sm:$0xff]   ;;  %v7936_v58 = vpack.c.bf16 %v16835_v55, %v16835_v55  ;;  %v13212_v6 = vld [vmem:[%s13573_s21 + $0x1398] sm:$0xff]  }
 0x339   : > { %12383 = vmatprep.subr.bf16.mxu1 %v13188_v22  ;;  %v8512_v49 = vpack.c.bf16 %v8494_v43, %v8494_v43  ;;  %v13206_v55 = vld [vmem:[%s13573_s21 + $0x1360] sm:$0xff]   ;;  %v8995_v43 = vmul.f32 %v16634_v63, %v8993_v48  ;;  %v9002_v63 = vmul.f32 %v16649_v47, %v9000_v17  ;;  %v13222_v47 = vld [vmem:[%s13573_s21 + $0x1388] sm:$0xff]   ;;  %v13221_v17 = vld [vmem:[%s13573_s21 + $0x13b0] sm:$0xff]  }
 0x33a   : > { %8378 = vmatpush1.bf16.msra.mxu0 %v13187_v54  ;;  %v8469_v45 = vadd.f32 %v8467_v30, %v8462_v11  ;;  %v9024_v15 = vadd.f32 %v9022_v12, %v9017_v16  ;;  %v9036_v30 = vmul.f32 %v16592_v26, %v9035_v31  ;;  %v13216_v12 = vld [vmem:[%s13573_s21 + $0x1378] sm:$0xff]  }
 0x33b   : > { %8379 = vmatprep.subr.bf16.mxu0 %v13467_v40 }
 0x33c   : > { %12384 = vmatpush3.bf16.msra.mxu1 %v13189_v39  ;;  %v8473_v59 = vadd.f32 %v8471_v14, %v8469_v45  ;;  %v13203_v39 = vld [vmem:[%s13573_s21 + $0x1318] sm:$0xff]  }
 0x33d   : > { %12385 = vmatprep.subr.bf16.mxu1 %v13191_v4  ;;  %v9029_v4 = vmul.f32 %v16573_v35, %v9028_v7  ;;  %v13208_v35 = vld [vmem:[%s13573_s21 + $0x1310] sm:$0xff]  }
 0x33e   : > { %8380 = vmatpush1.bf16.msra.mxu0 %v13190_v53  ;;  %v8475_v22 = vmax.f32 %v8473_v59, 0.0 }
 0x33f   : > { %8381 = vmatprep.subr.bf16.mxu0 %v13467_v40  ;;  %v9031_v11 = vadd.f32 %v9029_v4, %v9024_v15  ;;  %v13226_v15 = vld [vmem:[%s13573_s21 + $0x1350] sm:$0xff]  }
 0x340   : > { %12386 = vmatpush3.bf16.msra.mxu1 %v13192_v10  ;;  %v17030_v10 = vrot.slane %v8475_v22, %v13825_v9  ;;  %v13220_v22 = vld [vmem:[%s13573_s21 + $0x1340] sm:$0xff]  }
 0x341   : > { %12387 = vmatprep.subr.bf16.mxu1 %v13194_v37  ;;  %v13210_v37 = vld [vmem:[%s13573_s21 + $0x1368] sm:$0xff]   ;;  %v9038_v26 = vadd.f32 %v9036_v30, %v9031_v11 }
 0x342   : > { %8382 = vmatpush1.bf16.msra.mxu0 %v13193_v25  ;;  %v9042_v25 = vstv %s17012_s23  ;;  %v8502_v51 = vcombine.high %v17030_v10, %v17030_v10 }
 0x343   : > { %8383 = vmatprep.subr.bf16.mxu0 %v13467_v40  ;;  %v9043_v45 = vmul.f32 %v16610_v36, %v9042_v25  ;;  %v13214_v36 = vld [vmem:[%s13573_s21 + $0x1330] sm:$0xff]  }
 0x344   : > { %12388 = vmatpush3.bf16.msra.mxu1 %v13195_v1  ;;  %v8514_v59 = vpack.c.bf16 %v8502_v51, %v8502_v51 }
 0x345   : > { %12389 = vmatprep.subr.bf16.mxu1 %v13197_v56  ;;  %v8509_v56 = vpack.c.bf16 %v16909_v5, %v16909_v5  ;;  %v8988_v5 = vmul.f32 %v16626_v34, %v8986_v46  ;;  %v9045_v16 = vadd.f32 %v9043_v45, %v9038_v26  ;;  %v13217_v34 = vld [vmem:[%s13573_s21 + $0x1338] sm:$0xff]  }
 0x346   : > { %8384 = vmatpush1.bf16.msra.mxu0 %v13196_v3  ;;  %v13213_v3 = vld [vmem:[%s13573_s21 + $0x1370] sm:$0xff]   ;;  %v13234_v45 = vld [vmem:[%s13573_s21 + $0x143c] sm:$0xff]  }
 0x347   : > { %8385 = vmatprep.subr.bf16.mxu0 %v13467_v40  ;;  %v8997_v46 = vadd.f32 %v8995_v43, %v8988_v5  ;;  %v13232_v26 = vld [vmem:[%s13573_s21 + $0x13f4] sm:$0xff]   ;;  %v13241_v5 = vld [vmem:[%s13573_s21 + $0x140c] sm:$0xff]  }
 0x348   : > { %v6091_v14 = vpop.f32.mrb[56].mxu0  ;;  %12390 = vmatpush3.bf16.msra.mxu1 %v13198_v21 }
 0x349   : > { %v6092_v42 = vadd.f32 %v6091_v14, %v16941_v8  ;;  %v6093_v54 = vpop.f32.mrb[57].mxu0  ;;  %12391 = vmatprep.subr.bf16.mxu1 %v13200_v44  ;;  %v13219_v14 = vld [vmem:[%s13573_s21 + $0x1380] sm:$0xff]  }
 0x34a   : > { %v6094_v29 = vpop.f32.mrb[58].mxu0  ;;  %8386 = vmatpush1.bf16.msra.mxu0 %v8283_v13  ;;  %v9048_v13 = vstv %s17041_s22  ;;  %v9009_v54 = vmul.f32 %v16667_v61, %v9007_v60  ;;  %v13225_v60 = vld [vmem:[%s13573_s21 + $0x1390] sm:$0xff]  }
 0x34b   : > { %v17024_v8 = vadd.f32 %v6092_v42, %v16829_v24  ;;  %v6095_v53 = vpop.f32.mrb[59].mxu0  ;;  %12403 = vmatprep.subr.bf16.mxu0 %v13202_v38  ;;  %v13207_v24 = vld [vmem:[%s13573_s21 + $0x1320] sm:$0xff]   ;;  %v9049_v48 = vadd.f32 %v9048_v13, %v9045_v16  ;;  %v9004_v42 = vadd.f32 %v9002_v63, %v8997_v46  ;;  %v13243_v16 = vld [vmem:[%s13573_s21 + $0x1454] sm:$0xff]  }
 0x34c   : > { %12392 = vmatpush3.bf16.msra.mxu1 %v13201_v52  ;;  %v13215_v38 = vld [vmem:[%s13573_s21 + $0x13a0] sm:$0xff]   ;;  %v13218_v52 = vld [vmem:[%s13573_s21 + $0x13a8] sm:$0xff]   ;;  %v9023_v53 = vmul.f32 %v16706_v62, %v9021_v0  ;;  %v13244_v63 = vld [vmem:[%s13573_s21 + $0x1414] sm:$0xff]  }
 0x34d   : > { %8398 = vmatmul.mubr.bf16.vlgmr.msra.gmra.mrb[80].mxu0 %v7936_v58  ;;  %12393 = vmatprep.subr.bf16.mxu1 %v13204_v32  ;;  %v17082_v58 = vmax.f32 %v9049_v48, 0.0  ;;  %v13223_v32 = vld [vmem:[%s13573_s21 + $0x1348] sm:$0xff]   ;;  %v9011_v29 = vadd.f32 %v9009_v54, %v9004_v42 }
 0x34e   : > { %12404 = vmatpush3.bf16.msra.mxu0 %v13203_v39  ;;  %8934 = vmatprep.mubr.bf16.mxu0 %v8512_v49  ;;  %v9016_v39 = vmul.f32 %v16687_v19, %v9014_v2  ;;  %v13224_v49 = vld [vmem:[%s13573_s21 + $0x13b8] sm:$0xff]   ;;  %v13228_v2 = vld [vmem:[%s13573_s21 + $0x142c] sm:$0xff]  }
 0x34f   : > { %12405 = vmatprep.subr.bf16.mxu0 %v13206_v55  ;;  %v17093_v61 = vrot.slane %v17082_v58, %v13825_v9  ;;  %v13229_v62 = vld [vmem:[%s13573_s21 + $0x13ec] sm:$0xff]  }
 0x350   : > { %12394 = vmatpush3.bf16.msra.mxu1 %v13205_v27  ;;  %v9018_v4 = vadd.f32 %v9016_v39, %v9011_v29  ;;  %v13227_v27 = vld [vmem:[%s13573_s21 + $0x13c0] sm:$0xff]   ;;  %v13246_v42 = vld [vmem:[%s13573_s21 + $0x146c] sm:$0xff]  }
 0x351   : > { %12395 = vmatprep.subr.bf16.mxu1 %v13208_v35  ;;  %v9070_v19 = vcombine.high %v17093_v61, %v17093_v61  ;;  %v13248_v29 = vld [vmem:[%s13573_s21 + $0x141c] sm:$0xff]   ;;  %v13251_v39 = vld [vmem:[%s13573_s21 + $0x1464] sm:$0xff]  }
 0x352   : > { %12406 = vmatpush3.bf16.msra.mxu0 %v13207_v24  ;;  %v12221_v1 = vpop.f32.mrb[60].mxu1  ;;  %v8511_v24 = vpack.c.bf16 %v16988_v33, %v16988_v33  ;;  %v9025_v0 = vadd.f32 %v9023_v53, %v9018_v4 }
 0x353   : > { %12407 = vmatprep.subr.bf16.mxu0 %v13210_v37  ;;  %v12222_v41 = vpop.f32.mrb[61].mxu1  ;;  %v9030_v37 = vmul.f32 %v16727_v20, %v9028_v7  ;;  %v9037_v7 = vmul.f32 %v16752_v18, %v9035_v31  ;;  %v13236_v18 = vld [vmem:[%s13573_s21 + $0x13d8] sm:$0xff]   ;;  %v9055_v31 = vcombine.high %v17082_v58, %v17082_v58 }
 0x354   : > { %12396 = vmatpush3.bf16.msra.mxu1 %v13209_v50  ;;  %v17054_v57 = vadd.f32 %v12222_v41, %v12221_v1  ;;  %v12224_v21 = vpop.f32.mrb[62].mxu1  ;;  %v9087_v50 = vpack.c.bf16 %v9070_v19, %v9070_v19  ;;  %v13230_v1 = vld [vmem:[%s13573_s21 + $0x13c8] sm:$0xff]   ;;  %v9086_v19 = vpack.c.bf16 %v17093_v61, %v17093_v61  ;;  %v13258_v61 = vld [vmem:[%s13573_s21 + $0x14f4] sm:$0xff]  }
 0x355   : > { %8942 = vmatprep.subr.bf16.mxu1 %v13467_v40  ;;  %v12225_v44 = vpop.f32.mrb[63].mxu1  ;;  %v9032_v20 = vadd.f32 %v9030_v37, %v9025_v0  ;;  %v13238_v21 = vld [vmem:[%s13573_s21 + $0x1404] sm:$0xff]   ;;  %v13260_v0 = vld [vmem:[%s13573_s21 + $0x148c] sm:$0xff]   ;;  %v13262_v37 = vld [vmem:[%s13573_s21 + $0x14d4] sm:$0xff]  }
 0x356   : > { %12408 = vmatpush3.bf16.msra.mxu0 %v13211_v23  ;;  %v13231_v23 = vld [vmem:[%s13573_s21 + $0x1434] sm:$0xff]   ;;  %v13240_v44 = vld [vmem:[%s13573_s21 + $0x144c] sm:$0xff]  }
 0x357   : > { %8895 = vmatmul.mubr.bf16.vlgmr.msra.gmra.mrb[84].mxu1 %v8509_v56  ;;  %12409 = vmatprep.subr.bf16.mxu0 %v13213_v3  ;;  %v13233_v56 = vld [vmem:[%s13573_s21 + $0x13d0] sm:$0xff]   ;;  %v13235_v3 = vld [vmem:[%s13573_s21 + $0x13fc] sm:$0xff]   ;;  %v9039_v41 = vadd.f32 %v9037_v7, %v9032_v20  ;;  %v13269_v7 = vld [vmem:[%s13573_s21 + $0x14a4] sm:$0xff]  }
 0x358   : > { %8943 = vmatpush1.bf16.msra.mxu1 %v13212_v6  ;;  %11628 = vmatprep.mubr.msk.bf16.mxu1 %vm973_vm0, %v8514_v59  ;;  %v9044_v6 = vmul.f32 %v16771_v28, %v9042_v25  ;;  %v13239_v28 = vld [vmem:[%s13573_s21 + $0x13e0] sm:$0xff]   ;;  %v17137_v25 = vrot.slane %v9055_v31, %v13825_v9  ;;  %v13267_v20 = vld [vmem:[%s13573_s21 + $0x150c] sm:$0xff]  }
 0x359   : > { %8944 = vmatprep.subr.bf16.mxu1 %v13467_v40  ;;  %v13271_v31 = vld [vmem:[%s13573_s21 + $0x151c] sm:$0xff]  }
 0x35a   : > { %12410 = vmatpush3.bf16.msra.mxu0 %v13214_v36  ;;  %v9046_v59 = vadd.f32 %v9044_v6, %v9039_v41  ;;  %v13242_v36 = vld [vmem:[%s13573_s21 + $0x13e8] ss:$0 sps:$4 sm:$0x33]   ;;  %v9088_v41 = vpack.c.bf16 %v17137_v25, %v17137_v25 }
 0x35b   : > { %12411 = vmatprep.subr.bf16.mxu0 %v13216_v12  ;;  %v9071_v12 = vcombine.high %v17137_v25, %v17137_v25  ;;  %v13275_v25 = vld [vmem:[%s13573_s21 + $0x153c] ss:$0 sps:$4 sm:$0x33]  }
 0x35c   : > { %8945 = vmatpush1.bf16.msra.mxu1 %v13215_v38  ;;  %v9050_v43 = vadd.f32 %v9048_v13, %v9046_v59  ;;  %v8860_v38 = vsel %vm977_vm1, %v13242_v36, 0  ;;  %v8513_v13 = vpack.c.bf16 %v17030_v10, %v17030_v10  ;;  %v13272_v59 = vld [vmem:[%s13573_s21 + $0x1524] sm:$0xff]   ;;  %v9437_v36 = vsel %vm977_vm1, %v13275_v25, 0 }
 0x35d   : > { %8946 = vmatprep.subr.bf16.mxu1 %v13467_v40  ;;  %v9089_v58 = vpack.c.bf16 %v9071_v12, %v9071_v12 }
 0x35e   : > { %12412 = vmatpush3.bf16.msra.mxu0 %v13217_v34  ;;  %v13245_v34 = vld [vmem:[%s13573_s21 + $0x14ac] sm:$0xff]   ;;  %v9052_v48 = vmax.f32 %v9050_v43, 0.0 }
 0x35f   : > { %12413 = vmatprep.subr.bf16.mxu0 %v13219_v14 }
 0x360   : > { %8947 = vmatpush1.bf16.msra.mxu1 %v13218_v52  ;;  %v13247_v52 = vld [vmem:[%s13573_s21 + $0x145c] sm:$0xff]   ;;  %v17161_v10 = vrot.slane %v9052_v48, %v13825_v9 }
 0x361   : > { %8948 = vmatprep.subr.bf16.mxu1 %v13467_v40  ;;  %v13254_v9 = vld [vmem:[%s13573_s21 + $0x147c] sm:$0xff]  }
 0x362   : > { %12414 = vmatpush3.bf16.msra.mxu0 %v13220_v22  ;;  %v9090_v12 = vpack.c.bf16 %v17161_v10, %v17161_v10 }
 0x363   : > { %12415 = vmatprep.subr.bf16.mxu0 %v13222_v47 }
 0x364   : > { %8949 = vmatpush1.bf16.msra.mxu1 %v13221_v17  ;;  %v13249_v17 = vld [vmem:[%s13573_s21 + $0x14b4] sm:$0xff]  }
 0x365   : > { %8950 = vmatprep.subr.bf16.mxu1 %v13467_v40 }
 0x366   : > { %12416 = vmatpush3.bf16.msra.mxu0 %v13223_v32 }
 0x367   : > { %12417 = vmatprep.subr.bf16.mxu0 %v13225_v60  ;;  %v13250_v60 = vld [vmem:[%s13573_s21 + $0x1474] sm:$0xff]  }
 0x368   : > { %v12243_v55 = vpop.f32.mrb[60].mxu0  ;;  %8951 = vmatpush1.bf16.msra.mxu1 %v13224_v49  ;;  %v13252_v49 = vld [vmem:[%s13573_s21 + $0x1424] sm:$0xff]  }
 0x369   : > { %v12244_v35 = vpop.f32.mrb[61].mxu0  ;;  %8952 = vmatprep.subr.bf16.mxu1 %v13467_v40 }
 0x36a   : > { %v12245_v11 = vadd.f32 %v12244_v35, %v12243_v55  ;;  %v12246_v30 = vpop.f32.mrb[62].mxu0  ;;  %12418 = vmatpush3.bf16.msra.mxu0 %v13226_v15  ;;  %v9079_v15 = vcombine.high %v17161_v10, %v17161_v10  ;;  %v13255_v35 = vld [vmem:[%s13573_s21 + $0x14ec] sm:$0xff]  }
 0x36b   : > { %v12247_v51 = vpop.f32.mrb[63].mxu0  ;;  %12425 = vmatprep.subr.bf16.mxu0 %v13228_v2  ;;  %v13256_v2 = vld [vmem:[%s13573_s21 + $0x14c4] sm:$0xff]  }
 0x36c   : > { %8953 = vmatpush1.bf16.msra.mxu1 %v13227_v27  ;;  %v6629_v33 = vadd.f32 %v12245_v11, %v17054_v57  ;;  %v13237_v57 = vld [vmem:[%s13573_s21 + $0x1444] sm:$0xff]   ;;  %v13263_v51 = vld [vmem:[%s13573_s21 + $0x1494] sm:$0xff]  }
 0x36d   : > { %8935 = vmatmul.mubr.bf16.vlgmr.msra.gmra.mrb[84].mxu0 %v8511_v24  ;;  %8954 = vmatprep.subr.bf16.mxu1 %v13467_v40  ;;  %v9091_v24 = vpack.c.bf16 %v9079_v15, %v9079_v15  ;;  %v13257_v30 = vld [vmem:[%s13573_s21 + $0x1484] sm:$0xff]  }
 0x36e   : > { %12426 = vmatpush3.bf16.msra.mxu0 %v13229_v62  ;;  %9471 = vmatprep.mubr.bf16.mxu0 %v9087_v50  ;;  %v13259_v62 = vld [vmem:[%s13573_s21 + $0x14cc] sm:$0xff]   ;;  %v13261_v50 = vld [vmem:[%s13573_s21 + $0x14fc] sm:$0xff]  }
 0x36f   : > { %12427 = vmatprep.subr.bf16.mxu0 %v13231_v23  ;;  %v13265_v23 = vld [vmem:[%s13573_s21 + $0x14dc] sm:$0xff]  }
 0x370   : > { %8955 = vmatpush1.bf16.msra.mxu1 %v13230_v1  ;;  %v13264_v1 = vld [vmem:[%s13573_s21 + $0x1504] sm:$0xff]  }
 0x371   : > { %8956 = vmatprep.subr.bf16.mxu1 %v13467_v40 }
 0x372   : > { %12428 = vmatpush3.bf16.msra.mxu0 %v13232_v26  ;;  %v13268_v26 = vld [vmem:[%s13573_s21 + $0x14e4] sm:$0xff]  }
 0x373   : > { %12429 = vmatprep.subr.bf16.mxu0 %v13234_v45 }
 0x374   : > { %8957 = vmatpush1.bf16.msra.mxu1 %v13233_v56  ;;  %v13270_v56 = vld [vmem:[%s13573_s21 + $0x1514] sm:$0xff]  }
 0x375   : > { %8958 = vmatprep.subr.bf16.mxu1 %v13467_v40 }
 0x376   : > { %12430 = vmatpush3.bf16.msra.mxu0 %v13235_v3 }
 0x377   : > { %12431 = vmatprep.subr.bf16.mxu0 %v13237_v57 }
 0x378   : > { %8959 = vmatpush1.bf16.msra.mxu1 %v13236_v18 }
 0x379   : > { %8960 = vmatprep.subr.bf16.mxu1 %v13467_v40 }
 0x37a   : > { %12432 = vmatpush3.bf16.msra.mxu0 %v13238_v21 }
 0x37b   : > { %12433 = vmatprep.subr.bf16.mxu0 %v13240_v44  ;;  %v13273_v44 = vld [vmem:[%s13573_s21 + $0x152c] sm:$0xff]  }
 0x37c   : > { %8961 = vmatpush1.bf16.msra.mxu1 %v13239_v28  ;;  %v13274_v28 = vld [vmem:[%s13573_s21 + $0x1534] sm:$0xff]  }
 0x37d   : > { %8962 = vmatprep.subr.bf16.mxu1 %v13467_v40 }
 0x37e   : > { %v6668_v46 = vpop.f32.mrb[64].mxu1  ;;  %12434 = vmatpush3.bf16.msra.mxu0 %v13241_v5 }
 0x37f   : > { %v6669_v14 = vadd.f32 %v6668_v46, %v6629_v33  ;;  %12435 = vmatprep.subr.bf16.mxu0 %v13243_v16  ;;  %v6670_v22 = vpop.f32.mrb[65].mxu1  ;;  %v13266_v33 = vld [vmem:[%s13573_s21 + $0x149c] sm:$0xff]  }
 0x380   : > { %8963 = vmatpush1.bf16.msra.mxu1 %v8860_v38  ;;  %v6671_v54 = vpop.f32.mrb[66].mxu1 }
 0x381   : > { %v17156_v47 = vadd.f32 %v6669_v14, %v17024_v8  ;;  %12447 = vmatprep.subr.bf16.mxu1 %v13245_v34  ;;  %v6672_v32 = vpop.f32.mrb[67].mxu1  ;;  %v13253_v8 = vld [vmem:[%s13573_s21 + $0x14bc] sm:$0xff]  }
 0x382   : > { %12436 = vmatpush3.bf16.msra.mxu0 %v13244_v63 }
 0x383   : > { %8975 = vmatmul.mubr.bf16.vlgmr.msra.gmra.mrb[88].mxu1 %v8513_v13  ;;  %12437 = vmatprep.subr.bf16.mxu0 %v13247_v52 }
 0x384   : > { %12448 = vmatpush3.bf16.msra.mxu1 %v13246_v42  ;;  %9511 = vmatprep.mubr.bf16.mxu1 %v9089_v58 }
 0x385   : > { %12449 = vmatprep.subr.bf16.mxu1 %v13249_v17 }
 0x386   : > { %12438 = vmatpush3.bf16.msra.mxu0 %v13248_v29 }
 0x387   : > { %12439 = vmatprep.subr.bf16.mxu0 %v13251_v39 }
 0x388   : > { %v12265_v4 = vpop.f32.mrb[64].mxu0  ;;  %12450 = vmatpush3.bf16.msra.mxu1 %v13250_v60 }
 0x389   : > { %v12266_v53 = vpop.f32.mrb[65].mxu0  ;;  %12451 = vmatprep.subr.bf16.mxu1 %v13253_v8 }
 0x38a   : > { %v12267_v55 = vadd.f32 %v12266_v53, %v12265_v4  ;;  %v12268_v27 = vpop.f32.mrb[66].mxu0  ;;  %12440 = vmatpush3.bf16.msra.mxu0 %v13252_v49 }
 0x38b   : > { %v12269_v11 = vpop.f32.mrb[67].mxu0  ;;  %9519 = vmatprep.subr.bf16.mxu0 %v13467_v40 }
 0x38c   : > { %12452 = vmatpush3.bf16.msra.mxu1 %v13254_v9 }
 0x38d   : > { %9472 = vmatmul.mubr.bf16.vlgmr.msra.gmra.mrb[88].mxu0 %v9086_v19  ;;  %12453 = vmatprep.subr.bf16.mxu1 %v13256_v2 }
 0x38e   : > { %9520 = vmatpush1.bf16.msra.mxu0 %v13255_v35  ;;  %11757 = vmatprep.mubr.msk.bf16.mxu0 %vm973_vm0, %v9091_v24 }
 0x38f   : > { %9521 = vmatprep.subr.bf16.mxu0 %v13467_v40 }
 0x390   : > { %12454 = vmatpush3.bf16.msra.mxu1 %v13257_v30 }
 0x391   : > { %12455 = vmatprep.subr.bf16.mxu1 %v13259_v62 }
 0x392   : > { %9522 = vmatpush1.bf16.msra.mxu0 %v13258_v61 }
 0x393   : > { %9523 = vmatprep.subr.bf16.mxu0 %v13467_v40 }
 0x394   : > { %12456 = vmatpush3.bf16.msra.mxu1 %v13260_v0 }
 0x395   : > { %12457 = vmatprep.subr.bf16.mxu1 %v13262_v37 }
 0x396   : > { %9524 = vmatpush1.bf16.msra.mxu0 %v13261_v50 }
 0x397   : > { %9525 = vmatprep.subr.bf16.mxu0 %v13467_v40 }
 0x398   : > { %12458 = vmatpush3.bf16.msra.mxu1 %v13263_v51 }
 0x399   : > { %12459 = vmatprep.subr.bf16.mxu1 %v13265_v23 }
 0x39a   : > { %9526 = vmatpush1.bf16.msra.mxu0 %v13264_v1 }
 0x39b   : > { %9527 = vmatprep.subr.bf16.mxu0 %v13467_v40 }
 0x39c   : > { %12460 = vmatpush3.bf16.msra.mxu1 %v13266_v33 }
 0x39d   : > { %12461 = vmatprep.subr.bf16.mxu1 %v13268_v26 }
 0x39e   : > { %v12287_v45 = vpop.f32.mrb[68].mxu1  ;;  %9528 = vmatpush1.bf16.msra.mxu0 %v13267_v20 }
 0x39f   : > { %v12288_v3 = vpop.f32.mrb[69].mxu1  ;;  %9529 = vmatprep.subr.bf16.mxu0 %v13467_v40 }
 0x3a0   : > { %v12289_v6 = vadd.f32 %v12288_v3, %v12287_v45  ;;  %12462 = vmatpush3.bf16.msra.mxu1 %v13269_v7  ;;  %v12290_v57 = vpop.f32.mrb[70].mxu1 }
 0x3a1   : > { %v12291_v18 = vpop.f32.mrb[71].mxu1 }
 0x3a2   : > { %9530 = vmatpush1.bf16.msra.mxu0 %v13270_v56  ;;  %v7206_v21 = vadd.f32 %v12289_v6, %v12267_v55 }
 0x3a3   : > { %9512 = vmatmul.mubr.bf16.vlgmr.msra.gmra.mrb[92].mxu1 %v9088_v41  ;;  %9531 = vmatprep.subr.bf16.mxu0 %v13467_v40 }
 0x3a6   : > { %9532 = vmatpush1.bf16.msra.mxu0 %v13271_v31 }
 0x3a7   : > { %9533 = vmatprep.subr.bf16.mxu0 %v13467_v40 }
 0x3aa   : > { %9534 = vmatpush1.bf16.msra.mxu0 %v13272_v59 }
 0x3ab   : > { %9535 = vmatprep.subr.bf16.mxu0 %v13467_v40 }
 0x3ae   : > { %9536 = vmatpush1.bf16.msra.mxu0 %v13273_v44 }
 0x3af   : > { %9537 = vmatprep.subr.bf16.mxu0 %v13467_v40 }
 0x3b2   : > { %9538 = vmatpush1.bf16.msra.mxu0 %v13274_v28 }
 0x3b3   : > { %9539 = vmatprep.subr.bf16.mxu0 %v13467_v40 }
 0x3b4   : > { %v7245_v5 = vpop.f32.mrb[68].mxu0 }
 0x3b5   : > { %v7246_v43 = vadd.f32 %v7245_v5, %v7206_v21  ;;  %v7247_v16 = vpop.f32.mrb[69].mxu0 }
 0x3b6   : > { %v7248_v38 = vpop.f32.mrb[70].mxu0  ;;  %9540 = vmatpush1.bf16.msra.mxu0 %v9437_v36 }
 0x3b7   : > { %v7251_v34 = vadd.f32 %v7246_v43, %v17156_v47  ;;  %v7249_v46 = vpop.f32.mrb[71].mxu0 }
 0x3b9   : > { %9552 = vmatmul.mubr.bf16.vlgmr.msra.gmra.mrb[92].mxu0 %v9090_v12 }
 0x3be   : > { %v12309_v63 = vpop.f32.mrb[72].mxu1 }
 0x3bf   : > { %v12310_v48 = vpop.f32.mrb[73].mxu1 }
 0x3c0   : > { %v12311_v14 = vadd.f32 %v12310_v48, %v12309_v63  ;;  %v12312_v13 = vpop.f32.mrb[74].mxu1  ;;  %v9560_v48 = vld [vmem:[#allocation2] sm:$0x3] }
 0x3c1   : > { %v12313_v52 = vpop.f32.mrb[75].mxu1 }
 0x3d4   : > { %v12331_v40 = vpop.f32.mrb[72].mxu0 }
 0x3d5   : > { %v12332_v22 = vpop.f32.mrb[73].mxu0 }
 0x3d6   : > { %v12333_v42 = vadd.f32 %v12332_v22, %v12331_v40  ;;  %v12334_v54 = vpop.f32.mrb[74].mxu0  ;;  %v9577_v22 = vld [vmem:[%s17300_s5] sm:$0xff] (!%p11758_p6) }
 0x3d7   : > { %v12335_v58 = vpop.f32.mrb[75].mxu0  ;;  %v9579_v54 = vld [vmem:[%s17300_s5 + $0x10] sm:$0xff] (!%p11758_p6) }
 0x3d8   : > { %v7783_v17 = vadd.f32 %v12333_v42, %v12311_v14  ;;  %v9578_v42 = vld [vmem:[%s17300_s5 + $0x8] sm:$0xff] (!%p11758_p6)  ;;  %v13469_v58 = vmov (!%p11758_p6), 0.0|0.0  }
 0x3d9   : > { %12521 = vmatprep.subr.bf16.mxu0 (!%p11758_p6), %v13469_v58 }
 0x3ea   : > { %v7822_v32 = vpop.f32.mrb[76].mxu1 }
 0x3eb   : > { %v7823_v29 = vadd.f32 %v7822_v32, %v7783_v17  ;;  %v7824_v10 = vpop.f32.mrb[77].mxu1  ;;  %v12522_v17 = vpack.c.bf16 (!%p11758_p6), %v9578_v42, %v9577_v22  ;;  %v9580_v32 = vld [vmem:[%s17300_s5 + $0x18] sm:$0xff] (!%p11758_p6) }
 0x3ec   : > { %v7825_v39 = vpop.f32.mrb[78].mxu1  ;;  %v12525_v10 = vpack.c.bf16 (!%p11758_p6), %v9580_v32, %v9579_v54 }
 0x3ed   : > { %v7828_v60 = vadd.f32 %v7823_v29, %v7251_v34  ;;  %v7826_v8 = vpop.f32.mrb[79].mxu1  ;;  %v13471_v29 = vmov (!%p11758_p6), 0.0   ;;  %12523 = vmatpush3.bf16.msra.mxu0 (!%p11758_p6), %v12522_v17  ;;  %v9581_v39 = vld [vmem:[%s17300_s5 + $0x20] sm:$0xff] (!%p11758_p6) }
 0x3ee   : > { %12518 = vmatprep.mubr.msk.f32.mxu0 (!%p11758_p6), %vm13470_vm2, %v13471_v29  ;;  %12524 = vmatprep.subr.bf16.mxu0 (!%p11758_p6), %v13469_v58 }
 0x3f1   : > { %12526 = vmatpush3.bf16.msra.mxu0 (!%p11758_p6), %v12525_v10 }
 0x3f2   : > { %12527 = vmatprep.subr.bf16.mxu0 (!%p11758_p6), %v13469_v58 }
 0x3f4   : > { %v12353_v47 = vpop.f32.mrb[76].mxu0 }
 0x3f5   : > { %v12354_v49 = vpop.f32.mrb[77].mxu0 }
 0x3f6   : > { %v12355_v15 = vadd.f32 %v12354_v49, %v12353_v47  ;;  %v12356_v4 = vpop.f32.mrb[78].mxu0  ;;  %v9583_v47 = vld [vmem:[%s17300_s5 + $0x30] sm:$0xff] (!%p11758_p6)  ;;  %v9584_v49 = vld [vmem:[%s17300_s5 + $0x38] sm:$0xff] (!%p11758_p6) }
 0x3f7   : > { %v12357_v9 = vpop.f32.mrb[79].mxu0  ;;  %v9585_v4 = vld [vmem:[%s17300_s5 + $0x40] sm:$0xff] (!%p11758_p6) }
 0x3f8   : > { %v9586_v9 = vld [vmem:[%s17300_s5 + $0x48] sm:$0xff] (!%p11758_p6) }
 0x40a   : > { %v12375_v53 = vpop.f32.mrb[80].mxu1 }
 0x40b   : > { %v12376_v19 = vpop.f32.mrb[81].mxu1 }
 0x40c   : > { %v12377_v2 = vadd.f32 %v12376_v19, %v12375_v53  ;;  %v12378_v55 = vpop.f32.mrb[82].mxu1  ;;  %v12534_v53 = vpack.c.bf16 (!%p11758_p6), %v9586_v9, %v9585_v4  ;;  %v9587_v19 = vld [vmem:[%s17300_s5 + $0x50] sm:$0xff] (!%p11758_p6) }
 0x40d   : > { %v12379_v27 = vpop.f32.mrb[83].mxu1 }
 0x40e   : > { %v8360_v35 = vadd.f32 %v12377_v2, %v12355_v15  ;;  %v12531_v15 = vpack.c.bf16 (!%p11758_p6), %v9584_v49, %v9583_v47  ;;  %v9588_v2 = vld [vmem:[%s17300_s5 + $0x58] sm:$0xff] (!%p11758_p6)  ;;  %v9589_v27 = vld [vmem:[%s17300_s5 + $0x60] sm:$0xff] (!%p11758_p6) }
 0x40f   : > { %v12537_v55 = vpack.c.bf16 (!%p11758_p6), %v9588_v2, %v9587_v19 }
 0x420   : > { %v8399_v24 = vpop.f32.mrb[80].mxu0 }
 0x421   : > { %v8400_v11 = vadd.f32 %v8399_v24, %v8360_v35  ;;  %v8401_v30 = vpop.f32.mrb[81].mxu0  ;;  %v9590_v35 = vld [vmem:[%s17300_s5 + $0x68] sm:$0xff] (!%p11758_p6) }
 0x422   : > { %v8402_v62 = vpop.f32.mrb[82].mxu0  ;;  %v12540_v24 = vpack.c.bf16 (!%p11758_p6), %v9590_v35, %v9589_v27  ;;  %v11759_v30 = vld [vmem:[%s17299_s4] ss:$0 sm:$0xff] (!%p11758_p6) }
 0x423   : > { %v8405_v61 = vadd.f32 %v8400_v11, %v7828_v60  ;;  %v8403_v0 = vpop.f32.mrb[83].mxu0  ;;  %v9582_v60 = vld [vmem:[%s17300_s5 + $0x28] sm:$0xff] (!%p11758_p6)  ;;  %v9591_v62 = vld [vmem:[%s17300_s5 + $0x70] sm:$0xff] (!%p11758_p6) }
 0x424   : > { %v12528_v8 = vpack.c.bf16 (!%p11758_p6), %v9582_v60, %v9581_v39 }
 0x426   : > { %12529 = vmatpush3.bf16.msra.mxu0 (!%p11758_p6), %v12528_v8 }
 0x427   : > { %12530 = vmatprep.subr.bf16.mxu0 (!%p11758_p6), %v13469_v58 }
 0x42a   : > { %v12397_v37 = vpop.f32.mrb[84].mxu1  ;;  %12532 = vmatpush3.bf16.msra.mxu0 (!%p11758_p6), %v12531_v15 }
 0x42b   : > { %v12398_v50 = vpop.f32.mrb[85].mxu1  ;;  %12533 = vmatprep.subr.bf16.mxu0 (!%p11758_p6), %v13469_v58 }
 0x42c   : > { %v12399_v51 = vadd.f32 %v12398_v50, %v12397_v37  ;;  %v12400_v23 = vpop.f32.mrb[86].mxu1 }
 0x42d   : > { %v12401_v1 = vpop.f32.mrb[87].mxu1 }
 0x42e   : > { %12535 = vmatpush3.bf16.msra.mxu0 (!%p11758_p6), %v12534_v53 }
 0x42f   : > { %12536 = vmatprep.subr.bf16.mxu0 (!%p11758_p6), %v13469_v58 }
 0x432   : > { %12538 = vmatpush3.bf16.msra.mxu0 (!%p11758_p6), %v12537_v55 }
 0x433   : > { %12539 = vmatprep.subr.bf16.mxu0 (!%p11758_p6), %v13469_v58 }
 0x436   : > { %12541 = vmatpush3.bf16.msra.mxu0 (!%p11758_p6), %v12540_v24 }
 0x437   : > { %12542 = vmatprep.subr.bf16.mxu0 (!%p11758_p6), %v13469_v58 }
 0x440   : > { %v12419_v33 = vpop.f32.mrb[84].mxu0 }
 0x441   : > { %v12420_v26 = vpop.f32.mrb[85].mxu0 }
 0x442   : > { %v12421_v20 = vadd.f32 %v12420_v26, %v12419_v33  ;;  %v12422_v7 = vpop.f32.mrb[86].mxu0 }
 0x443   : > { %v12423_v45 = vpop.f32.mrb[87].mxu0 }
 0x444   : > { %v8937_v56 = vadd.f32 %v12421_v20, %v12399_v51  ;;  %v11760_v51 = vld [vmem:[%s17301_s6] ss:$0 sm:$0xff] (!%p11758_p6) }
 0x456   : > { %v8976_v3 = vpop.f32.mrb[88].mxu1 }
 0x457   : > { %v8977_v41 = vadd.f32 %v8976_v3, %v8937_v56  ;;  %v8978_v6 = vpop.f32.mrb[89].mxu1 }
 0x458   : > { %v8979_v57 = vpop.f32.mrb[90].mxu1 }
 0x459   : > { %v8982_v18 = vadd.f32 %v8977_v41, %v8405_v61  ;;  %v8980_v31 = vpop.f32.mrb[91].mxu1  ;;  %v9592_v61 = vld [vmem:[%s17300_s5 + $0x78] sm:$0xff] (!%p11758_p6) }
 0x45a   : > { %v12543_v37 = vpack.c.bf16 (!%p11758_p6), %v9592_v61, %v9591_v62 }
 0x45c   : > { %12544 = vmatpush3.bf16.msra.mxu0 (!%p11758_p6), %v12543_v37 }
 0x460   : > { %v12441_v21 = vpop.f32.mrb[88].mxu0 }
 0x461   : > { %v12442_v59 = vpop.f32.mrb[89].mxu0 }
 0x462   : > { %v12443_v44 = vadd.f32 %v12442_v59, %v12441_v21  ;;  %v12444_v28 = vpop.f32.mrb[90].mxu0 }
 0x463   : > { %v12445_v25 = vpop.f32.mrb[91].mxu0 }
 0x476   : > { %v12463_v36 = vpop.f32.mrb[92].mxu1 }
 0x477   : > { %v12464_v5 = vpop.f32.mrb[93].mxu1 }
 0x478   : > { %v12465_v43 = vadd.f32 %v12464_v5, %v12463_v36  ;;  %v12466_v16 = vpop.f32.mrb[94].mxu1 }
 0x479   : > { %v12467_v12 = vpop.f32.mrb[95].mxu1 }
 0x47a   : > { %v9514_v38 = vadd.f32 %v12465_v43, %v12443_v44 }
 0x48c   : > { %v9553_v34 = vpop.f32.mrb[92].mxu0 }
 0x48d   : > { %v9554_v46 = vadd.f32 %v9553_v34, %v9514_v38  ;;  %v9555_v63 = vpop.f32.mrb[93].mxu0  ;;  %9566 = sbr.rel (%p11758_p6) target bundleno = 1712 (0x6b0), region = 64 }
 0x48e   : > { %v9556_v14 = vpop.f32.mrb[94].mxu0 }
 0x48f   : > { %v9559_v13 = vadd.f32 %v9554_v46, %v8982_v18  ;;  %v9557_v52 = vpop.f32.mrb[95].mxu0 }
 0x491   : > { %v9561_v40 = vadd.f32 %v9560_v48, %v9559_v13 }
 0x493   : > { %9562 = vst [vmem:[#allocation2] sm:$0x3] %v9561_v40 }
 0x49a   : > { %v9567_v11 = vld [vmem:[#allocation2] sm:$0x3] }
 0x49b   : > { %v9575_v0 = vadd.f32 %v11759_v30, %v9567_v11 }
 0x49d   : > { %v9576_v50 = vmax.f32 %v9575_v0, 0.0 }
 0x49f   : > { %12519 = vmatmul.mubr.f32.vlgmr.msra.gmra.mrb[0].mxu0 %v9576_v50 }
 0x572   : > { %v9666_v23 = vpop.f32.mrb[0].mxu0 }
 0x573   : > { %v9667_v1 = vadd.f32 %v11760_v51, %v9666_v23  ;;  %v12520_v33 = vpop.f32.mrb[1].mxu0 }
 0x575   : > { %v9671_v26 = vsel %vm9670_vm3, %v9667_v1, -inf }
 0x576   : > { %9672 = vmax.xlane.f32.xlu0 %v9671_v26 }
 0x603   : > { %v9673_v20 = vpop.xlane.xlu0 %9672 }
 0x604   : > { %v9674_v7 = vsub.f32 %v9667_v1, %v9673_v20 }
 0x606   : > { %v9675_v45 = vmul.f32 1.442695, %v9674_v7 }
 0x608   : > { %13384 = vpow2.f32 %v9675_v45 }
 0x612   : > { %v13385_v56 = vpop.eup %13384 }
 0x613   : > { %v9677_v3 = vsel %vm9670_vm3, %v13385_v56, 0.0 }
 0x614   : > { %9678 = vadd.xlane.f32.xlu0 %v9677_v3 }
 0x6a1   : > { %v9679_v41 = vpop.xlane.xlu0 %9678 }
 0x6a2   : > { %13386 = vrcp.f32 %v9679_v41 }
 0x6ac   : > { %v13387_v6 = vpop.eup %13386 }
 0x6ad   : > { %v9681_v57 = vmul.f32 %v13387_v6, %v13385_v56 }
 0x6af   : > { %9682 = vst.msk [vmem:[#allocation8] sm:$0x3] %vm9670_vm3, %v9681_v57 }
 0x6b0 PF: > { %p12569_p13 = scmp.eq.s32.totalorder %s13519_s25, 1  ;;  %s13472_s19 = smov [#allocation8]  }
 0x6b1   : > { %s9690_s17 = sshll.u32 %s13472_s19, 4  ;;  %s9691_s17 = int_to_ptr.vmem [resolvable:$true] %s9690_s17 }
 0x6b2   : > { %s13418_s9 = scalar_lea.vmem %s9691_s17, 32  ;;  %p13425_p7 = scmp.lt.s32.totalorder %s9691_s17, %s9691_s17 }
 0x6b3   : > { %p13419_p0 = scmp.ne.s32.totalorder %s9691_s17, %s13418_s9  ;;  %p13426_p9 = scmp.lt.s32.totalorder %s13418_s9, %s13418_s9 }
 0x6b5   : > { %p13420_p1 = pnand %p13419_p0, %p12569_p13  ;;  %p13427_p10 = por %p13426_p9, %p13425_p7 }
 0x6b7   : > { %p13421_p5 = pneg %p13420_p1 }
 0x6b9   : > { %p13428_p11 = pnand %p13427_p10, %p13421_p5 }
 0x6bb   : > { %13431 = shalt.err (!%p13428_p11)
}
 0x6bc   : > { %s13432_s8 = scalar_lea.hbm %s17302_s7, 32 }
 0x6bd   : > { %p13433_p12 = scmp.ne.s32.totalorder %s17302_s7, %s13432_s8  ;;  %p13438_p2 = scmp.lt.u32.totalorder %s13432_s8, %s17302_s7 }
 0x6bf   : > { %p13434_p8 = pnand %p13433_p12, %p12569_p13 }
 0x6c1   : > { %p13435_p4 = pneg %p13434_p8 }
 0x6c3   : > { %p13440_p3 = pnand %p13438_p2, %p13435_p4 }
 0x6c5   : > { %13443 = shalt.err (!%p13440_p3)
}
 0x6c6   : > { %12555 = dma.vmem_to_hbm [thread:$0]  (%p12569_p13), %s9691_s17, 32, %s17302_s7, [#allocation4]  }
 0x6c7   : > { %13457 = dma.done.wait (%p12569_p13), [#allocation4], 32  }
 0x6c8   : > { %13459 = vsyncadd (%p12569_p13), [#allocation4], 4294967264 }
 0x6c9 PF: > { %s20_s24 = sadd.s32 1, %s13462_s24  }
 0x6ca   : > { %p17_p6 = scmp.ge.s32.totalorder %s20_s24, 4  }
 0x6cc   :  { %19 = sbr.rel (!%p17_p6) target bundleno = 5 (0x5), region = 115 }
 0x6d3   :  { %9703 = vsyncpa [#allocation4], 1 }
 0x6d4   :  { %9705 = vsyncpa [#allocation4 + $0x1], 1 }
 0x6d5   :  { %9706 = vsyncpa [#allocation5], 1 }
 0x6d6   :  { %9708 = vsyncpa [#allocation5 + $0x1], 1 }
 0x6d7   :  { %9709 = vsyncpa [#allocation7], 1 }

</bundles_post_ra>
